<compile_context>
chip_gen: v7x
topology: tpu7x:2x2x1
jax: 0.10.0
libtpu: 0.0.40
codegen_flags: <defaults>
</compile_context>

<pallas_src>
import functools

import numpy as np
import jax
import jax.numpy as jnp
from jax.experimental import pallas as pl
from jax.experimental.pallas import tpu as pltpu


# ----------------------------------------------------------------------------
# Host-side constants: 0/1 selection matrices so every conv / resample on
# in-kernel data is a plain matmul (rows = (b, y, x), lanes = channels).
# ----------------------------------------------------------------------------
def _shift_matrices(B, H, W):
    """S[k] @ X == X spatially shifted by 3x3 offset k (zero padded)."""
    n = H * W
    S = np.zeros((9, B * n, B * n), np.float32)
    for ki in range(3):
        for kj in range(3):
            k = ki * 3 + kj
            for b in range(B):
                for y in range(H):
                    for x in range(W):
                        yi, xi = y + ki - 1, x + kj - 1
                        if 0 <= yi < H and 0 <= xi < W:
                            S[k, b * n + y * W + x, b * n + yi * W + xi] = 1.0
    return S


def _upsample_shift_matrices(B, Hs, Ws):
    """A[k] @ h == nearest-2x upsample of h, then 3x3 spatial shift k (zero padded)."""
    H, W = 2 * Hs, 2 * Ws
    no, ni = H * W, Hs * Ws
    A = np.zeros((9, B * no, B * ni), np.float32)
    for ki in range(3):
        for kj in range(3):
            k = ki * 3 + kj
            for b in range(B):
                for Y in range(H):
                    for X in range(W):
                        Yi, Xi = Y + ki - 1, X + kj - 1
                        if 0 <= Yi < H and 0 <= Xi < W:
                            A[k, b * no + Y * W + X,
                              b * ni + (Yi // 2) * Ws + (Xi // 2)] = 1.0
    return A


def _space_to_depth_matrices(B, Ho, Wo):
    """D[q] @ X selects rows (b, 2y+dy, 2x+dx) from a (2Ho x 2Wo) grid; q = dy*2+dx."""
    H, W = 2 * Ho, 2 * Wo
    no, ni = Ho * Wo, H * W
    D = np.zeros((4, B * no, B * ni), np.float32)
    for dy in range(2):
        for dx in range(2):
            q = dy * 2 + dx
            for b in range(B):
                for y in range(Ho):
                    for x in range(Wo):
                        D[q, b * no + y * Wo + x,
                          b * ni + (2 * y + dy) * W + (2 * x + dx)] = 1.0
    return D


def build_constants(B, H, W):
    return {
        "s4": jnp.asarray(_shift_matrices(B, H // 4, W // 4), jnp.bfloat16),
        "s8": jnp.asarray(_shift_matrices(B, H // 2, W // 2), jnp.bfloat16),
        "s2d": jnp.asarray(_space_to_depth_matrices(B, H // 4, W // 4), jnp.bfloat16),
        "a": jnp.asarray(_upsample_shift_matrices(B, H // 4, W // 4), jnp.bfloat16),
    }


# ----------------------------------------------------------------------------
# Boundary layout glue (plain JAX, inputs/outputs only; no compute).
# ----------------------------------------------------------------------------
def _im2col_3x3(x):
    """x: (..., H, W, C) -> (..., H, W, 9*C), 'same' padding, column order k*C + c."""
    lead = x.ndim - 3
    H, W = x.shape[-3], x.shape[-2]
    xp = jnp.pad(x, [(0, 0)] * lead + [(1, 1), (1, 1), (0, 0)])
    cols = [xp[..., ki:ki + H, kj:kj + W, :] for ki in range(3) for kj in range(3)]
    return jnp.concatenate(cols, axis=-1)


def _build_cond_cols(x):
    """x: (B,T,C,H,W) -> im2col of space_to_depth(frame, 2), all T frames side by side.

    Rows are (b, y, x) on the (H/2, W/2) grid; columns are t-major 3x3 x (4C) blocks, so
    a block-diagonal weight computes all T per-frame convs in ONE matmul whose output
    channels come out already stacked as [t0 feats, t1 feats, ...].
    """
    B, T, C, H, W = x.shape
    Hs, Ws = H // 2, W // 2
    xs = x.reshape(B, T, C, Hs, 2, Ws, 2)
    xs = xs.transpose(0, 1, 3, 5, 2, 4, 6).reshape(B, T, Hs, Ws, C * 4)  # NHWC, ch=c*4+dy*2+dx
    cols = _im2col_3x3(xs)                       # (B, T, Hs, Ws, 9*4C)
    cols = cols.transpose(0, 2, 3, 1, 4)         # (B, Hs, Ws, T, 9*4C)
    return cols.reshape(B * Hs * Ws, T * 9 * 4 * C)


# ----------------------------------------------------------------------------
# Deterministic parameters, stored in kernel-ready layout (bf16 weights, f32 biases).
# ----------------------------------------------------------------------------
def init_params(key, T=4, in_channels=1, hidden=32, frame_feats=8, s1c=16):
    bf16 = jnp.bfloat16
    cin_f = 4 * in_channels
    ks = jax.random.split(key, 19)

    def w(k, shape, fan_in):
        return jax.random.normal(k, shape, jnp.float32) / np.sqrt(float(fan_in))

    def b(k, n):
        return 0.01 * jax.random.normal(k, (1, n), jnp.float32)

    w_frame = w(ks[0], (9 * cin_f, frame_feats), 9 * cin_f)
    return {
        # conditioning stack
        "w_frame_bd": jnp.kron(jnp.eye(T, dtype=jnp.float32), w_frame).astype(bf16),
        "b_frame": jnp.tile(b(ks[11], frame_feats), (1, T)),
        "w_mix1": w(ks[1], (T * frame_feats, s1c), T * frame_feats).astype(bf16),
        "b_mix1": b(ks[12], s1c),
        "w_mix2": w(ks[2], (4, s1c, hidden), 4 * s1c).astype(bf16),
        "b_mix2": b(ks[13], hidden),
        # latent stack
        "w_lat": w(ks[3], (9 * 8, hidden), 9 * 8).astype(bf16),
        "b_lat": b(ks[14], hidden),
        # ConvGRU gates (r,u packed along Cout), split by input source (latent | h)
        "wg_lat": w(ks[4], (9, hidden, 2 * hidden), 9 * 2 * hidden).astype(bf16),
        "wg_h": w(ks[5], (9, hidden, 2 * hidden), 9 * 2 * hidden).astype(bf16),
        "b_g": b(ks[15], 2 * hidden),
        # ConvGRU candidate, split by input source (latent | r*h)
        "wc_lat": w(ks[6], (9, hidden, hidden), 9 * 2 * hidden).astype(bf16),
        "wc_h": w(ks[7], (9, hidden, hidden), 9 * 2 * hidden).astype(bf16),
        "b_c": b(ks[16], hidden),
        # sampler mixing conv, split by input source (upsampled h | state1)
        "wm_h": w(ks[8], (9, hidden, s1c), 9 * (hidden + s1c)).astype(bf16),
        "wm_s1": w(ks[9], (9, s1c, s1c), 9 * (hidden + s1c)).astype(bf16),
        "b_m": b(ks[17], s1c),
        # output head: 1x1 conv -> 4 ch -> PixelShuffle(2) -> 1 ch
        "w_out": w(ks[10], (s1c, 4), s1c).astype(bf16),
        "b_out": b(ks[18], 4),
    }


# ----------------------------------------------------------------------------
# The single fused Generator kernel (conditioning + latent + ConvGRU sampler).
# ----------------------------------------------------------------------------
def _generator_kernel(
    cond_cols_ref, lat_cols_ref,
    s4_ref, s8_ref, s2d_ref, a_ref,
    w_frame_ref, b_frame_ref,
    w_mix1_ref, b_mix1_ref,
    w_mix2_ref, b_mix2_ref,
    w_lat_ref, b_lat_ref,
    wg_lat_ref, wg_h_ref, b_g_ref,
    wc_lat_ref, wc_h_ref, b_c_ref,
    wm_s1_ref, wm_h_ref, b_m_ref,
    w_out_ref, b_out_ref,
    out_ref,
    *, forecast_steps,
):
    bf16 = jnp.bfloat16

    def mm(a, b):  # MXU matmul: bf16 operands, f32 accumulation
        return jnp.dot(a, b, preferred_element_type=jnp.float32)

    def conv3x3(shift_ref, x_bf, w_ref):
        """3x3 'same' conv as sum_k (S_k @ X) @ W_k — all VMEM, no im2col round-trip."""
        acc = None
        for k in range(9):
            t = mm(mm(shift_ref[k], x_bf).astype(bf16), w_ref[k])
            acc = t if acc is None else acc + t
        return acc

    def relu(v):
        return jnp.maximum(v, 0.0)

    # ---------------- conditioning stack ----------------
    # all T per-frame convs in one block-diagonal matmul (channels come out stacked)
    f = relu(mm(cond_cols_ref[...], w_frame_ref[...]) + b_frame_ref[...])      # (B*64, T*8)
    state1 = relu(mm(f.astype(bf16), w_mix1_ref[...]) + b_mix1_ref[...])       # (B*64, 16)
    s1_bf = state1.astype(bf16)

    st2 = None                                       # space_to_depth(2) folded into the 1x1 conv
    for q in range(4):
        t = mm(mm(s2d_ref[q], s1_bf).astype(bf16), w_mix2_ref[q])
        st2 = t if st2 is None else st2 + t
    state2 = relu(st2 + b_mix2_ref[...])                                       # (B*16, 32)

    # ---------------- latent stack ----------------
    latent = relu(mm(lat_cols_ref[...], w_lat_ref[...]) + b_lat_ref[...])      # (B*16, 32)
    lat_bf = latent.astype(bf16)

    # loop-invariant conv contributions, hoisted out of the forecast loop
    g_lat = conv3x3(s4_ref, lat_bf, wg_lat_ref)                                # (B*16, 64)
    c_lat = conv3x3(s4_ref, lat_bf, wc_lat_ref)                                # (B*16, 32)
    m_s1 = conv3x3(s8_ref, s1_bf, wm_s1_ref)                                   # (B*64, 16)

    # ---------------- sampler: ConvGRU + output head (VMEM-resident loop) ------
    h = state2
    for step in range(forecast_steps):               # unrolled at trace time (small, fixed)
        h_bf = h.astype(bf16)
        # packed r/u gate conv: one 64-wide matmul per offset, split in the epilogue
        g = jax.nn.sigmoid(g_lat + conv3x3(s4_ref, h_bf, wg_h_ref) + b_g_ref[...])
        half = g.shape[-1] // 2
        r, u = g[:, :half], g[:, half:]
        rh_bf = (r * h).astype(bf16)
        c = relu(c_lat + conv3x3(s4_ref, rh_bf, wc_h_ref) + b_c_ref[...])
        h = u * h + (1.0 - u) * c                                              # GRU update

        # upsample(h) + 3x3 conv folded into A_k matmuls; state1 part precomputed
        m = relu(m_s1 + conv3x3(a_ref, h.astype(bf16), wm_h_ref) + b_m_ref[...])  # (B*64, 16)
        o = mm(m.astype(bf16), w_out_ref[...]) + b_out_ref[...]                   # (B*64, 4)
        out_ref[step] = o


# ----------------------------------------------------------------------------
# Generator.forward: conditioning -> latent -> sampler, one pallas_call.
# ----------------------------------------------------------------------------
def generator_forward(params, consts, x, noise_key, forecast_steps=2):
    B, T, C, H, W = x.shape
    Hs, Ws = H // 4, W // 4          # ConvGRU / latent spatial grid
    Hm, Wm = H // 2, W // 2          # conditioning / mixing spatial grid

    # input-side layout glue only (depends on x / noise, not on in-kernel results)
    cond_cols = _build_cond_cols(x).astype(jnp.bfloat16)                      # (B*64, T*36C)
    z = jax.random.normal(noise_key, (B, Hs, Ws, 8), jnp.float32)
    lat_cols = _im2col_3x3(z).reshape(B * Hs * Ws, 9 * 8).astype(jnp.bfloat16)  # (B*16, 72)

    inputs = (
        cond_cols, lat_cols,
        consts["s4"], consts["s8"], consts["s2d"], consts["a"],
        params["w_frame_bd"], params["b_frame"],
        params["w_mix1"], params["b_mix1"],
        params["w_mix2"], params["b_mix2"],
        params["w_lat"], params["b_lat"],
        params["wg_lat"], params["wg_h"], params["b_g"],
        params["wc_lat"], params["wc_h"], params["b_c"],
        params["wm_s1"], params["wm_h"], params["b_m"],
        params["w_out"], params["b_out"],
    )

    out = pl.pallas_call(
        functools.partial(_generator_kernel, forecast_steps=forecast_steps),
        out_shape=jax.ShapeDtypeStruct((forecast_steps, B * Hm * Wm, 4), jnp.float32),
        in_specs=[pl.BlockSpec(memory_space=pltpu.MemorySpace.VMEM) for _ in inputs],
        out_specs=pl.BlockSpec(memory_space=pltpu.MemorySpace.VMEM),
    )(*inputs)

    # output-side glue: PixelShuffle(2) + NHWC-internal -> NCHW-external formatting
    o = out.reshape(forecast_steps, B, Hm, Wm, 2, 2)
    o = o.transpose(1, 0, 2, 4, 3, 5).reshape(B, forecast_steps, H, W)
    return o[:, :, None, :, :]                                                # (B, Tout, 1, H, W)


# ----------------------------------------------------------------------------
if __name__ == "__main__":
    key = jax.random.PRNGKey(0)
    pkey, xkey, nkey = jax.random.split(key, 3)

    B, T, C, H, W = 2, 4, 1, 16, 16
    params = init_params(pkey, T=T, in_channels=C)
    consts = build_constants(B, H, W)
    x = jax.random.normal(xkey, (B, T, C, H, W), jnp.float32)

    fwd = jax.jit(functools.partial(generator_forward, forecast_steps=2))
    out = jax.block_until_ready(fwd(params, consts, x, nkey))

    assert out.shape == (B, 2, 1, H, W), out.shape
    assert bool(jnp.all(jnp.isfinite(out)))
    print("KERNEL_OK")
</pallas_src>

<mosaic_0001>
module attributes {stable_mosaic.version = 11 : i64} {
  func.func @_generator_kernel(%arg0: memref<128x144xbf16, #tpu.memory_space<vmem>>, %arg1: memref<32x72xbf16, #tpu.memory_space<vmem>>, %arg2: memref<9x32x32xbf16, #tpu.memory_space<vmem>>, %arg3: memref<9x128x128xbf16, #tpu.memory_space<vmem>>, %arg4: memref<4x32x128xbf16, #tpu.memory_space<vmem>>, %arg5: memref<9x128x32xbf16, #tpu.memory_space<vmem>>, %arg6: memref<144x32xbf16, #tpu.memory_space<vmem>>, %arg7: memref<1x32xf32, #tpu.memory_space<vmem>>, %arg8: memref<32x16xbf16, #tpu.memory_space<vmem>>, %arg9: memref<1x16xf32, #tpu.memory_space<vmem>>, %arg10: memref<4x16x32xbf16, #tpu.memory_space<vmem>>, %arg11: memref<1x32xf32, #tpu.memory_space<vmem>>, %arg12: memref<72x32xbf16, #tpu.memory_space<vmem>>, %arg13: memref<1x32xf32, #tpu.memory_space<vmem>>, %arg14: memref<9x32x64xbf16, #tpu.memory_space<vmem>>, %arg15: memref<9x32x64xbf16, #tpu.memory_space<vmem>>, %arg16: memref<1x64xf32, #tpu.memory_space<vmem>>, %arg17: memref<9x32x32xbf16, #tpu.memory_space<vmem>>, %arg18: memref<9x32x32xbf16, #tpu.memory_space<vmem>>, %arg19: memref<1x32xf32, #tpu.memory_space<vmem>>, %arg20: memref<9x16x16xbf16, #tpu.memory_space<vmem>>, %arg21: memref<9x32x16xbf16, #tpu.memory_space<vmem>>, %arg22: memref<1x16xf32, #tpu.memory_space<vmem>>, %arg23: memref<16x4xbf16, #tpu.memory_space<vmem>>, %arg24: memref<1x4xf32, #tpu.memory_space<vmem>>, %arg25: memref<2x128x4xf32, #tpu.memory_space<vmem>>) attributes {dimension_semantics = [], scalar_prefetch = 0 : i64, scratch_operands = 0 : i64, tpu.core_type = #tpu.core_type<tc>} {
    %c0 = arith.constant 0 : index
    %c0_0 = arith.constant 0 : index
    %0 = vector.load %arg0[%c0, %c0_0] : memref<128x144xbf16, #tpu.memory_space<vmem>>, vector<128x144xbf16>
    %c0_1 = arith.constant 0 : index
    %c0_2 = arith.constant 0 : index
    %1 = vector.load %arg6[%c0_1, %c0_2] : memref<144x32xbf16, #tpu.memory_space<vmem>>, vector<144x32xbf16>
    %cst = arith.constant dense<0.000000e+00> : vector<128x32xf32>
    %2 = tpu.matmul %0, %1, %cst {dimension_numbers = #tpu.dot_dimension_numbers<[1], [0], [0], [1], [0, 0, 1, 1], [], []>} : vector<128x144xbf16>, vector<144x32xbf16>, vector<128x32xf32> -> vector<128x32xf32>
    %c0_3 = arith.constant 0 : index
    %c0_4 = arith.constant 0 : index
    %3 = vector.load %arg7[%c0_3, %c0_4] : memref<1x32xf32, #tpu.memory_space<vmem>>, vector<1x32xf32>
    %4 = vector.broadcast %3 : vector<1x32xf32> to vector<128x32xf32>
    %5 = arith.addf %2, %4 : vector<128x32xf32>
    %cst_5 = arith.constant 0.000000e+00 : f32
    %6 = vector.broadcast %cst_5 : f32 to vector<128x32xf32>
    %7 = arith.maximumf %5, %6 : vector<128x32xf32>
    %8 = arith.truncf %7 : vector<128x32xf32> to vector<128x32xbf16>
    %c0_6 = arith.constant 0 : index
    %c0_7 = arith.constant 0 : index
    %9 = vector.load %arg8[%c0_6, %c0_7] : memref<32x16xbf16, #tpu.memory_space<vmem>>, vector<32x16xbf16>
    %cst_8 = arith.constant dense<0.000000e+00> : vector<128x16xf32>
    %10 = tpu.matmul %8, %9, %cst_8 {dimension_numbers = #tpu.dot_dimension_numbers<[1], [0], [0], [1], [0, 0, 1, 1], [], []>} : vector<128x32xbf16>, vector<32x16xbf16>, vector<128x16xf32> -> vector<128x16xf32>
    %c0_9 = arith.constant 0 : index
    %c0_10 = arith.constant 0 : index
    %11 = vector.load %arg9[%c0_9, %c0_10] : memref<1x16xf32, #tpu.memory_space<vmem>>, vector<1x16xf32>
    %12 = vector.broadcast %11 : vector<1x16xf32> to vector<128x16xf32>
    %13 = arith.addf %10, %12 : vector<128x16xf32>
    %cst_11 = arith.constant 0.000000e+00 : f32
    %14 = vector.broadcast %cst_11 : f32 to vector<128x16xf32>
    %15 = arith.maximumf %13, %14 : vector<128x16xf32>
    %16 = arith.truncf %15 : vector<128x16xf32> to vector<128x16xbf16>
    %c0_12 = arith.constant 0 : index
    %c0_13 = arith.constant 0 : index
    %c0_14 = arith.constant 0 : index
    %17 = vector.load %arg4[%c0_12, %c0_13, %c0_14] : memref<4x32x128xbf16, #tpu.memory_space<vmem>>, vector<1x32x128xbf16>
    %18 = vector.shape_cast %17 : vector<1x32x128xbf16> to vector<32x128xbf16>
    %cst_15 = arith.constant dense<0.000000e+00> : vector<32x16xf32>
    %19 = tpu.matmul %18, %16, %cst_15 {dimension_numbers = #tpu.dot_dimension_numbers<[1], [0], [0], [1], [0, 0, 1, 1], [], []>} : vector<32x128xbf16>, vector<128x16xbf16>, vector<32x16xf32> -> vector<32x16xf32>
    %20 = arith.truncf %19 : vector<32x16xf32> to vector<32x16xbf16>
    %c0_16 = arith.constant 0 : index
    %c0_17 = arith.constant 0 : index
    %c0_18 = arith.constant 0 : index
    %21 = vector.load %arg10[%c0_16, %c0_17, %c0_18] : memref<4x16x32xbf16, #tpu.memory_space<vmem>>, vector<1x16x32xbf16>
    %22 = vector.shape_cast %21 : vector<1x16x32xbf16> to vector<16x32xbf16>
    %cst_19 = arith.constant dense<0.000000e+00> : vector<32x32xf32>
    %23 = tpu.matmul %20, %22, %cst_19 {dimension_numbers = #tpu.dot_dimension_numbers<[1], [0], [0], [1], [0, 0, 1, 1], [], []>} : vector<32x16xbf16>, vector<16x32xbf16>, vector<32x32xf32> -> vector<32x32xf32>
    %c1 = arith.constant 1 : index
    %c0_20 = arith.constant 0 : index
    %c0_21 = arith.constant 0 : index
    %24 = vector.load %arg4[%c1, %c0_20, %c0_21] : memref<4x32x128xbf16, #tpu.memory_space<vmem>>, vector<1x32x128xbf16>
    %25 = vector.shape_cast %24 : vector<1x32x128xbf16> to vector<32x128xbf16>
    %cst_22 = arith.constant dense<0.000000e+00> : vector<32x16xf32>
    %26 = tpu.matmul %25, %16, %cst_22 {dimension_numbers = #tpu.dot_dimension_numbers<[1], [0], [0], [1], [0, 0, 1, 1], [], []>} : vector<32x128xbf16>, vector<128x16xbf16>, vector<32x16xf32> -> vector<32x16xf32>
    %27 = arith.truncf %26 : vector<32x16xf32> to vector<32x16xbf16>
    %c1_23 = arith.constant 1 : index
    %c0_24 = arith.constant 0 : index
    %c0_25 = arith.constant 0 : index
    %28 = vector.load %arg10[%c1_23, %c0_24, %c0_25] : memref<4x16x32xbf16, #tpu.memory_space<vmem>>, vector<1x16x32xbf16>
    %29 = vector.shape_cast %28 : vector<1x16x32xbf16> to vector<16x32xbf16>
    %cst_26 = arith.constant dense<0.000000e+00> : vector<32x32xf32>
    %30 = tpu.matmul %27, %29, %cst_26 {dimension_numbers = #tpu.dot_dimension_numbers<[1], [0], [0], [1], [0, 0, 1, 1], [], []>} : vector<32x16xbf16>, vector<16x32xbf16>, vector<32x32xf32> -> vector<32x32xf32>
    %31 = arith.addf %23, %30 : vector<32x32xf32>
    %c2 = arith.constant 2 : index
    %c0_27 = arith.constant 0 : index
    %c0_28 = arith.constant 0 : index
    %32 = vector.load %arg4[%c2, %c0_27, %c0_28] : memref<4x32x128xbf16, #tpu.memory_space<vmem>>, vector<1x32x128xbf16>
    %33 = vector.shape_cast %32 : vector<1x32x128xbf16> to vector<32x128xbf16>
    %cst_29 = arith.constant dense<0.000000e+00> : vector<32x16xf32>
    %34 = tpu.matmul %33, %16, %cst_29 {dimension_numbers = #tpu.dot_dimension_numbers<[1], [0], [0], [1], [0, 0, 1, 1], [], []>} : vector<32x128xbf16>, vector<128x16xbf16>, vector<32x16xf32> -> vector<32x16xf32>
    %35 = arith.truncf %34 : vector<32x16xf32> to vector<32x16xbf16>
    %c2_30 = arith.constant 2 : index
    %c0_31 = arith.constant 0 : index
    %c0_32 = arith.constant 0 : index
    %36 = vector.load %arg10[%c2_30, %c0_31, %c0_32] : memref<4x16x32xbf16, #tpu.memory_space<vmem>>, vector<1x16x32xbf16>
    %37 = vector.shape_cast %36 : vector<1x16x32xbf16> to vector<16x32xbf16>
    %cst_33 = arith.constant dense<0.000000e+00> : vector<32x32xf32>
    %38 = tpu.matmul %35, %37, %cst_33 {dimension_numbers = #tpu.dot_dimension_numbers<[1], [0], [0], [1], [0, 0, 1, 1], [], []>} : vector<32x16xbf16>, vector<16x32xbf16>, vector<32x32xf32> -> vector<32x32xf32>
    %39 = arith.addf %31, %38 : vector<32x32xf32>
    %c3 = arith.constant 3 : index
    %c0_34 = arith.constant 0 : index
    %c0_35 = arith.constant 0 : index
    %40 = vector.load %arg4[%c3, %c0_34, %c0_35] : memref<4x32x128xbf16, #tpu.memory_space<vmem>>, vector<1x32x128xbf16>
    %41 = vector.shape_cast %40 : vector<1x32x128xbf16> to vector<32x128xbf16>
    %cst_36 = arith.constant dense<0.000000e+00> : vector<32x16xf32>
    %42 = tpu.matmul %41, %16, %cst_36 {dimension_numbers = #tpu.dot_dimension_numbers<[1], [0], [0], [1], [0, 0, 1, 1], [], []>} : vector<32x128xbf16>, vector<128x16xbf16>, vector<32x16xf32> -> vector<32x16xf32>
    %43 = arith.truncf %42 : vector<32x16xf32> to vector<32x16xbf16>
    %c3_37 = arith.constant 3 : index
    %c0_38 = arith.constant 0 : index
    %c0_39 = arith.constant 0 : index
    %44 = vector.load %arg10[%c3_37, %c0_38, %c0_39] : memref<4x16x32xbf16, #tpu.memory_space<vmem>>, vector<1x16x32xbf16>
    %45 = vector.shape_cast %44 : vector<1x16x32xbf16> to vector<16x32xbf16>
    %cst_40 = arith.constant dense<0.000000e+00> : vector<32x32xf32>
    %46 = tpu.matmul %43, %45, %cst_40 {dimension_numbers = #tpu.dot_dimension_numbers<[1], [0], [0], [1], [0, 0, 1, 1], [], []>} : vector<32x16xbf16>, vector<16x32xbf16>, vector<32x32xf32> -> vector<32x32xf32>
    %47 = arith.addf %39, %46 : vector<32x32xf32>
    %c0_41 = arith.constant 0 : index
    %c0_42 = arith.constant 0 : index
    %48 = vector.load %arg11[%c0_41, %c0_42] : memref<1x32xf32, #tpu.memory_space<vmem>>, vector<1x32xf32>
    %49 = vector.broadcast %48 : vector<1x32xf32> to vector<32x32xf32>
    %50 = arith.addf %47, %49 : vector<32x32xf32>
    %cst_43 = arith.constant 0.000000e+00 : f32
    %51 = vector.broadcast %cst_43 : f32 to vector<32x32xf32>
    %52 = arith.maximumf %50, %51 : vector<32x32xf32>
    %c0_44 = arith.constant 0 : index
    %c0_45 = arith.constant 0 : index
    %53 = vector.load %arg1[%c0_44, %c0_45] : memref<32x72xbf16, #tpu.memory_space<vmem>>, vector<32x72xbf16>
    %c0_46 = arith.constant 0 : index
    %c0_47 = arith.constant 0 : index
    %54 = vector.load %arg12[%c0_46, %c0_47] : memref<72x32xbf16, #tpu.memory_space<vmem>>, vector<72x32xbf16>
    %cst_48 = arith.constant dense<0.000000e+00> : vector<32x32xf32>
    %55 = tpu.matmul %53, %54, %cst_48 {dimension_numbers = #tpu.dot_dimension_numbers<[1], [0], [0], [1], [0, 0, 1, 1], [], []>} : vector<32x72xbf16>, vector<72x32xbf16>, vector<32x32xf32> -> vector<32x32xf32>
    %c0_49 = arith.constant 0 : index
    %c0_50 = arith.constant 0 : index
    %56 = vector.load %arg13[%c0_49, %c0_50] : memref<1x32xf32, #tpu.memory_space<vmem>>, vector<1x32xf32>
    %57 = vector.broadcast %56 : vector<1x32xf32> to vector<32x32xf32>
    %58 = arith.addf %55, %57 : vector<32x32xf32>
    %cst_51 = arith.constant 0.000000e+00 : f32
    %59 = vector.broadcast %cst_51 : f32 to vector<32x32xf32>
    %60 = arith.maximumf %58, %59 : vector<32x32xf32>
    %61 = arith.truncf %60 : vector<32x32xf32> to vector<32x32xbf16>
    %c0_52 = arith.constant 0 : index
    %c0_53 = arith.constant 0 : index
    %c0_54 = arith.constant 0 : index
    %62 = vector.load %arg2[%c0_52, %c0_53, %c0_54] : memref<9x32x32xbf16, #tpu.memory_space<vmem>>, vector<1x32x32xbf16>
    %63 = vector.shape_cast %62 : vector<1x32x32xbf16> to vector<32x32xbf16>
    %cst_55 = arith.constant dense<0.000000e+00> : vector<32x32xf32>
    %64 = tpu.matmul %63, %61, %cst_55 {dimension_numbers = #tpu.dot_dimension_numbers<[1], [0], [0], [1], [0, 0, 1, 1], [], []>} : vector<32x32xbf16>, vector<32x32xbf16>, vector<32x32xf32> -> vector<32x32xf32>
    %65 = arith.truncf %64 : vector<32x32xf32> to vector<32x32xbf16>
    %c0_56 = arith.constant 0 : index
    %c0_57 = arith.constant 0 : index
    %c0_58 = arith.constant 0 : index
    %66 = vector.load %arg14[%c0_56, %c0_57, %c0_58] : memref<9x32x64xbf16, #tpu.memory_space<vmem>>, vector<1x32x64xbf16>
    %67 = vector.shape_cast %66 : vector<1x32x64xbf16> to vector<32x64xbf16>
    %cst_59 = arith.constant dense<0.000000e+00> : vector<32x64xf32>
    %68 = tpu.matmul %65, %67, %cst_59 {dimension_numbers = #tpu.dot_dimension_numbers<[1], [0], [0], [1], [0, 0, 1, 1], [], []>} : vector<32x32xbf16>, vector<32x64xbf16>, vector<32x64xf32> -> vector<32x64xf32>
    %c1_60 = arith.constant 1 : index
    %c0_61 = arith.constant 0 : index
    %c0_62 = arith.constant 0 : index
    %69 = vector.load %arg2[%c1_60, %c0_61, %c0_62] : memref<9x32x32xbf16, #tpu.memory_space<vmem>>, vector<1x32x32xbf16>
    %70 = vector.shape_cast %69 : vector<1x32x32xbf16> to vector<32x32xbf16>
    %cst_63 = arith.constant dense<0.000000e+00> : vector<32x32xf32>
    %71 = tpu.matmul %70, %61, %cst_63 {dimension_numbers = #tpu.dot_dimension_numbers<[1], [0], [0], [1], [0, 0, 1, 1], [], []>} : vector<32x32xbf16>, vector<32x32xbf16>, vector<32x32xf32> -> vector<32x32xf32>
    %72 = arith.truncf %71 : vector<32x32xf32> to vector<32x32xbf16>
    %c1_64 = arith.constant 1 : index
    %c0_65 = arith.constant 0 : index
    %c0_66 = arith.constant 0 : index
    %73 = vector.load %arg14[%c1_64, %c0_65, %c0_66] : memref<9x32x64xbf16, #tpu.memory_space<vmem>>, vector<1x32x64xbf16>
    %74 = vector.shape_cast %73 : vector<1x32x64xbf16> to vector<32x64xbf16>
    %cst_67 = arith.constant dense<0.000000e+00> : vector<32x64xf32>
    %75 = tpu.matmul %72, %74, %cst_67 {dimension_numbers = #tpu.dot_dimension_numbers<[1], [0], [0], [1], [0, 0, 1, 1], [], []>} : vector<32x32xbf16>, vector<32x64xbf16>, vector<32x64xf32> -> vector<32x64xf32>
    %76 = arith.addf %68, %75 : vector<32x64xf32>
    %c2_68 = arith.constant 2 : index
    %c0_69 = arith.constant 0 : index
    %c0_70 = arith.constant 0 : index
    %77 = vector.load %arg2[%c2_68, %c0_69, %c0_70] : memref<9x32x32xbf16, #tpu.memory_space<vmem>>, vector<1x32x32xbf16>
    %78 = vector.shape_cast %77 : vector<1x32x32xbf16> to vector<32x32xbf16>
    %cst_71 = arith.constant dense<0.000000e+00> : vector<32x32xf32>
    %79 = tpu.matmul %78, %61, %cst_71 {dimension_numbers = #tpu.dot_dimension_numbers<[1], [0], [0], [1], [0, 0, 1, 1], [], []>} : vector<32x32xbf16>, vector<32x32xbf16>, vector<32x32xf32> -> vector<32x32xf32>
    %80 = arith.truncf %79 : vector<32x32xf32> to vector<32x32xbf16>
    %c2_72 = arith.constant 2 : index
    %c0_73 = arith.constant 0 : index
    %c0_74 = arith.constant 0 : index
    %81 = vector.load %arg14[%c2_72, %c0_73, %c0_74] : memref<9x32x64xbf16, #tpu.memory_space<vmem>>, vector<1x32x64xbf16>
    %82 = vector.shape_cast %81 : vector<1x32x64xbf16> to vector<32x64xbf16>
    %cst_75 = arith.constant dense<0.000000e+00> : vector<32x64xf32>
    %83 = tpu.matmul %80, %82, %cst_75 {dimension_numbers = #tpu.dot_dimension_numbers<[1], [0], [0], [1], [0, 0, 1, 1], [], []>} : vector<32x32xbf16>, vector<32x64xbf16>, vector<32x64xf32> -> vector<32x64xf32>
    %84 = arith.addf %76, %83 : vector<32x64xf32>
    %c3_76 = arith.constant 3 : index
    %c0_77 = arith.constant 0 : index
    %c0_78 = arith.constant 0 : index
    %85 = vector.load %arg2[%c3_76, %c0_77, %c0_78] : memref<9x32x32xbf16, #tpu.memory_space<vmem>>, vector<1x32x32xbf16>
    %86 = vector.shape_cast %85 : vector<1x32x32xbf16> to vector<32x32xbf16>
    %cst_79 = arith.constant dense<0.000000e+00> : vector<32x32xf32>
    %87 = tpu.matmul %86, %61, %cst_79 {dimension_numbers = #tpu.dot_dimension_numbers<[1], [0], [0], [1], [0, 0, 1, 1], [], []>} : vector<32x32xbf16>, vector<32x32xbf16>, vector<32x32xf32> -> vector<32x32xf32>
    %88 = arith.truncf %87 : vector<32x32xf32> to vector<32x32xbf16>
    %c3_80 = arith.constant 3 : index
    %c0_81 = arith.constant 0 : index
    %c0_82 = arith.constant 0 : index
    %89 = vector.load %arg14[%c3_80, %c0_81, %c0_82] : memref<9x32x64xbf16, #tpu.memory_space<vmem>>, vector<1x32x64xbf16>
    %90 = vector.shape_cast %89 : vector<1x32x64xbf16> to vector<32x64xbf16>
    %cst_83 = arith.constant dense<0.000000e+00> : vector<32x64xf32>
    %91 = tpu.matmul %88, %90, %cst_83 {dimension_numbers = #tpu.dot_dimension_numbers<[1], [0], [0], [1], [0, 0, 1, 1], [], []>} : vector<32x32xbf16>, vector<32x64xbf16>, vector<32x64xf32> -> vector<32x64xf32>
    %92 = arith.addf %84, %91 : vector<32x64xf32>
    %c4 = arith.constant 4 : index
    %c0_84 = arith.constant 0 : index
    %c0_85 = arith.constant 0 : index
    %93 = vector.load %arg2[%c4, %c0_84, %c0_85] : memref<9x32x32xbf16, #tpu.memory_space<vmem>>, vector<1x32x32xbf16>
    %94 = vector.shape_cast %93 : vector<1x32x32xbf16> to vector<32x32xbf16>
    %cst_86 = arith.constant dense<0.000000e+00> : vector<32x32xf32>
    %95 = tpu.matmul %94, %61, %cst_86 {dimension_numbers = #tpu.dot_dimension_numbers<[1], [0], [0], [1], [0, 0, 1, 1], [], []>} : vector<32x32xbf16>, vector<32x32xbf16>, vector<32x32xf32> -> vector<32x32xf32>
    %96 = arith.truncf %95 : vector<32x32xf32> to vector<32x32xbf16>
    %c4_87 = arith.constant 4 : index
    %c0_88 = arith.constant 0 : index
    %c0_89 = arith.constant 0 : index
    %97 = vector.load %arg14[%c4_87, %c0_88, %c0_89] : memref<9x32x64xbf16, #tpu.memory_space<vmem>>, vector<1x32x64xbf16>
    %98 = vector.shape_cast %97 : vector<1x32x64xbf16> to vector<32x64xbf16>
    %cst_90 = arith.constant dense<0.000000e+00> : vector<32x64xf32>
    %99 = tpu.matmul %96, %98, %cst_90 {dimension_numbers = #tpu.dot_dimension_numbers<[1], [0], [0], [1], [0, 0, 1, 1], [], []>} : vector<32x32xbf16>, vector<32x64xbf16>, vector<32x64xf32> -> vector<32x64xf32>
    %100 = arith.addf %92, %99 : vector<32x64xf32>
    %c5 = arith.constant 5 : index
    %c0_91 = arith.constant 0 : index
    %c0_92 = arith.constant 0 : index
    %101 = vector.load %arg2[%c5, %c0_91, %c0_92] : memref<9x32x32xbf16, #tpu.memory_space<vmem>>, vector<1x32x32xbf16>
    %102 = vector.shape_cast %101 : vector<1x32x32xbf16> to vector<32x32xbf16>
    %cst_93 = arith.constant dense<0.000000e+00> : vector<32x32xf32>
    %103 = tpu.matmul %102, %61, %cst_93 {dimension_numbers = #tpu.dot_dimension_numbers<[1], [0], [0], [1], [0, 0, 1, 1], [], []>} : vector<32x32xbf16>, vector<32x32xbf16>, vector<32x32xf32> -> vector<32x32xf32>
    %104 = arith.truncf %103 : vector<32x32xf32> to vector<32x32xbf16>
    %c5_94 = arith.constant 5 : index
    %c0_95 = arith.constant 0 : index
    %c0_96 = arith.constant 0 : index
    %105 = vector.load %arg14[%c5_94, %c0_95, %c0_96] : memref<9x32x64xbf16, #tpu.memory_space<vmem>>, vector<1x32x64xbf16>
    %106 = vector.shape_cast %105 : vector<1x32x64xbf16> to vector<32x64xbf16>
    %cst_97 = arith.constant dense<0.000000e+00> : vector<32x64xf32>
    %107 = tpu.matmul %104, %106, %cst_97 {dimension_numbers = #tpu.dot_dimension_numbers<[1], [0], [0], [1], [0, 0, 1, 1], [], []>} : vector<32x32xbf16>, vector<32x64xbf16>, vector<32x64xf32> -> vector<32x64xf32>
    %108 = arith.addf %100, %107 : vector<32x64xf32>
    %c6 = arith.constant 6 : index
    %c0_98 = arith.constant 0 : index
    %c0_99 = arith.constant 0 : index
    %109 = vector.load %arg2[%c6, %c0_98, %c0_99] : memref<9x32x32xbf16, #tpu.memory_space<vmem>>, vector<1x32x32xbf16>
    %110 = vector.shape_cast %109 : vector<1x32x32xbf16> to vector<32x32xbf16>
    %cst_100 = arith.constant dense<0.000000e+00> : vector<32x32xf32>
    %111 = tpu.matmul %110, %61, %cst_100 {dimension_numbers = #tpu.dot_dimension_numbers<[1], [0], [0], [1], [0, 0, 1, 1], [], []>} : vector<32x32xbf16>, vector<32x32xbf16>, vector<32x32xf32> -> vector<32x32xf32>
    %112 = arith.truncf %111 : vector<32x32xf32> to vector<32x32xbf16>
    %c6_101 = arith.constant 6 : index
    %c0_102 = arith.constant 0 : index
    %c0_103 = arith.constant 0 : index
    %113 = vector.load %arg14[%c6_101, %c0_102, %c0_103] : memref<9x32x64xbf16, #tpu.memory_space<vmem>>, vector<1x32x64xbf16>
    %114 = vector.shape_cast %113 : vector<1x32x64xbf16> to vector<32x64xbf16>
    %cst_104 = arith.constant dense<0.000000e+00> : vector<32x64xf32>
    %115 = tpu.matmul %112, %114, %cst_104 {dimension_numbers = #tpu.dot_dimension_numbers<[1], [0], [0], [1], [0, 0, 1, 1], [], []>} : vector<32x32xbf16>, vector<32x64xbf16>, vector<32x64xf32> -> vector<32x64xf32>
    %116 = arith.addf %108, %115 : vector<32x64xf32>
    %c7 = arith.constant 7 : index
    %c0_105 = arith.constant 0 : index
    %c0_106 = arith.constant 0 : index
    %117 = vector.load %arg2[%c7, %c0_105, %c0_106] : memref<9x32x32xbf16, #tpu.memory_space<vmem>>, vector<1x32x32xbf16>
    %118 = vector.shape_cast %117 : vector<1x32x32xbf16> to vector<32x32xbf16>
    %cst_107 = arith.constant dense<0.000000e+00> : vector<32x32xf32>
    %119 = tpu.matmul %118, %61, %cst_107 {dimension_numbers = #tpu.dot_dimension_numbers<[1], [0], [0], [1], [0, 0, 1, 1], [], []>} : vector<32x32xbf16>, vector<32x32xbf16>, vector<32x32xf32> -> vector<32x32xf32>
    %120 = arith.truncf %119 : vector<32x32xf32> to vector<32x32xbf16>
    %c7_108 = arith.constant 7 : index
    %c0_109 = arith.constant 0 : index
    %c0_110 = arith.constant 0 : index
    %121 = vector.load %arg14[%c7_108, %c0_109, %c0_110] : memref<9x32x64xbf16, #tpu.memory_space<vmem>>, vector<1x32x64xbf16>
    %122 = vector.shape_cast %121 : vector<1x32x64xbf16> to vector<32x64xbf16>
    %cst_111 = arith.constant dense<0.000000e+00> : vector<32x64xf32>
    %123 = tpu.matmul %120, %122, %cst_111 {dimension_numbers = #tpu.dot_dimension_numbers<[1], [0], [0], [1], [0, 0, 1, 1], [], []>} : vector<32x32xbf16>, vector<32x64xbf16>, vector<32x64xf32> -> vector<32x64xf32>
    %124 = arith.addf %116, %123 : vector<32x64xf32>
    %c8 = arith.constant 8 : index
    %c0_112 = arith.constant 0 : index
    %c0_113 = arith.constant 0 : index
    %125 = vector.load %arg2[%c8, %c0_112, %c0_113] : memref<9x32x32xbf16, #tpu.memory_space<vmem>>, vector<1x32x32xbf16>
    %126 = vector.shape_cast %125 : vector<1x32x32xbf16> to vector<32x32xbf16>
    %cst_114 = arith.constant dense<0.000000e+00> : vector<32x32xf32>
    %127 = tpu.matmul %126, %61, %cst_114 {dimension_numbers = #tpu.dot_dimension_numbers<[1], [0], [0], [1], [0, 0, 1, 1], [], []>} : vector<32x32xbf16>, vector<32x32xbf16>, vector<32x32xf32> -> vector<32x32xf32>
    %128 = arith.truncf %127 : vector<32x32xf32> to vector<32x32xbf16>
    %c8_115 = arith.constant 8 : index
    %c0_116 = arith.constant 0 : index
    %c0_117 = arith.constant 0 : index
    %129 = vector.load %arg14[%c8_115, %c0_116, %c0_117] : memref<9x32x64xbf16, #tpu.memory_space<vmem>>, vector<1x32x64xbf16>
    %130 = vector.shape_cast %129 : vector<1x32x64xbf16> to vector<32x64xbf16>
    %cst_118 = arith.constant dense<0.000000e+00> : vector<32x64xf32>
    %131 = tpu.matmul %128, %130, %cst_118 {dimension_numbers = #tpu.dot_dimension_numbers<[1], [0], [0], [1], [0, 0, 1, 1], [], []>} : vector<32x32xbf16>, vector<32x64xbf16>, vector<32x64xf32> -> vector<32x64xf32>
    %132 = arith.addf %124, %131 : vector<32x64xf32>
    %c0_119 = arith.constant 0 : index
    %c0_120 = arith.constant 0 : index
    %c0_121 = arith.constant 0 : index
    %133 = vector.load %arg2[%c0_119, %c0_120, %c0_121] : memref<9x32x32xbf16, #tpu.memory_space<vmem>>, vector<1x32x32xbf16>
    %134 = vector.shape_cast %133 : vector<1x32x32xbf16> to vector<32x32xbf16>
    %cst_122 = arith.constant dense<0.000000e+00> : vector<32x32xf32>
    %135 = tpu.matmul %134, %61, %cst_122 {dimension_numbers = #tpu.dot_dimension_numbers<[1], [0], [0], [1], [0, 0, 1, 1], [], []>} : vector<32x32xbf16>, vector<32x32xbf16>, vector<32x32xf32> -> vector<32x32xf32>
    %136 = arith.truncf %135 : vector<32x32xf32> to vector<32x32xbf16>
    %c0_123 = arith.constant 0 : index
    %c0_124 = arith.constant 0 : index
    %c0_125 = arith.constant 0 : index
    %137 = vector.load %arg17[%c0_123, %c0_124, %c0_125] : memref<9x32x32xbf16, #tpu.memory_space<vmem>>, vector<1x32x32xbf16>
    %138 = vector.shape_cast %137 : vector<1x32x32xbf16> to vector<32x32xbf16>
    %cst_126 = arith.constant dense<0.000000e+00> : vector<32x32xf32>
    %139 = tpu.matmul %136, %138, %cst_126 {dimension_numbers = #tpu.dot_dimension_numbers<[1], [0], [0], [1], [0, 0, 1, 1], [], []>} : vector<32x32xbf16>, vector<32x32xbf16>, vector<32x32xf32> -> vector<32x32xf32>
    %c1_127 = arith.constant 1 : index
    %c0_128 = arith.constant 0 : index
    %c0_129 = arith.constant 0 : index
    %140 = vector.load %arg2[%c1_127, %c0_128, %c0_129] : memref<9x32x32xbf16, #tpu.memory_space<vmem>>, vector<1x32x32xbf16>
    %141 = vector.shape_cast %140 : vector<1x32x32xbf16> to vector<32x32xbf16>
    %cst_130 = arith.constant dense<0.000000e+00> : vector<32x32xf32>
    %142 = tpu.matmul %141, %61, %cst_130 {dimension_numbers = #tpu.dot_dimension_numbers<[1], [0], [0], [1], [0, 0, 1, 1], [], []>} : vector<32x32xbf16>, vector<32x32xbf16>, vector<32x32xf32> -> vector<32x32xf32>
    %143 = arith.truncf %142 : vector<32x32xf32> to vector<32x32xbf16>
    %c1_131 = arith.constant 1 : index
    %c0_132 = arith.constant 0 : index
    %c0_133 = arith.constant 0 : index
    %144 = vector.load %arg17[%c1_131, %c0_132, %c0_133] : memref<9x32x32xbf16, #tpu.memory_space<vmem>>, vector<1x32x32xbf16>
    %145 = vector.shape_cast %144 : vector<1x32x32xbf16> to vector<32x32xbf16>
    %cst_134 = arith.constant dense<0.000000e+00> : vector<32x32xf32>
    %146 = tpu.matmul %143, %145, %cst_134 {dimension_numbers = #tpu.dot_dimension_numbers<[1], [0], [0], [1], [0, 0, 1, 1], [], []>} : vector<32x32xbf16>, vector<32x32xbf16>, vector<32x32xf32> -> vector<32x32xf32>
    %147 = arith.addf %139, %146 : vector<32x32xf32>
    %c2_135 = arith.constant 2 : index
    %c0_136 = arith.constant 0 : index
    %c0_137 = arith.constant 0 : index
    %148 = vector.load %arg2[%c2_135, %c0_136, %c0_137] : memref<9x32x32xbf16, #tpu.memory_space<vmem>>, vector<1x32x32xbf16>
    %149 = vector.shape_cast %148 : vector<1x32x32xbf16> to vector<32x32xbf16>
    %cst_138 = arith.constant dense<0.000000e+00> : vector<32x32xf32>
    %150 = tpu.matmul %149, %61, %cst_138 {dimension_numbers = #tpu.dot_dimension_numbers<[1], [0], [0], [1], [0, 0, 1, 1], [], []>} : vector<32x32xbf16>, vector<32x32xbf16>, vector<32x32xf32> -> vector<32x32xf32>
    %151 = arith.truncf %150 : vector<32x32xf32> to vector<32x32xbf16>
    %c2_139 = arith.constant 2 : index
    %c0_140 = arith.constant 0 : index
    %c0_141 = arith.constant 0 : index
    %152 = vector.load %arg17[%c2_139, %c0_140, %c0_141] : memref<9x32x32xbf16, #tpu.memory_space<vmem>>, vector<1x32x32xbf16>
    %153 = vector.shape_cast %152 : vector<1x32x32xbf16> to vector<32x32xbf16>
    %cst_142 = arith.constant dense<0.000000e+00> : vector<32x32xf32>
    %154 = tpu.matmul %151, %153, %cst_142 {dimension_numbers = #tpu.dot_dimension_numbers<[1], [0], [0], [1], [0, 0, 1, 1], [], []>} : vector<32x32xbf16>, vector<32x32xbf16>, vector<32x32xf32> -> vector<32x32xf32>
    %155 = arith.addf %147, %154 : vector<32x32xf32>
    %c3_143 = arith.constant 3 : index
    %c0_144 = arith.constant 0 : index
    %c0_145 = arith.constant 0 : index
    %156 = vector.load %arg2[%c3_143, %c0_144, %c0_145] : memref<9x32x32xbf16, #tpu.memory_space<vmem>>, vector<1x32x32xbf16>
    %157 = vector.shape_cast %156 : vector<1x32x32xbf16> to vector<32x32xbf16>
    %cst_146 = arith.constant dense<0.000000e+00> : vector<32x32xf32>
    %158 = tpu.matmul %157, %61, %cst_146 {dimension_numbers = #tpu.dot_dimension_numbers<[1], [0], [0], [1], [0, 0, 1, 1], [], []>} : vector<32x32xbf16>, vector<32x32xbf16>, vector<32x32xf32> -> vector<32x32xf32>
    %159 = arith.truncf %158 : vector<32x32xf32> to vector<32x32xbf16>
    %c3_147 = arith.constant 3 : index
    %c0_148 = arith.constant 0 : index
    %c0_149 = arith.constant 0 : index
    %160 = vector.load %arg17[%c3_147, %c0_148, %c0_149] : memref<9x32x32xbf16, #tpu.memory_space<vmem>>, vector<1x32x32xbf16>
    %161 = vector.shape_cast %160 : vector<1x32x32xbf16> to vector<32x32xbf16>
    %cst_150 = arith.constant dense<0.000000e+00> : vector<32x32xf32>
    %162 = tpu.matmul %159, %161, %cst_150 {dimension_numbers = #tpu.dot_dimension_numbers<[1], [0], [0], [1], [0, 0, 1, 1], [], []>} : vector<32x32xbf16>, vector<32x32xbf16>, vector<32x32xf32> -> vector<32x32xf32>
    %163 = arith.addf %155, %162 : vector<32x32xf32>
    %c4_151 = arith.constant 4 : index
    %c0_152 = arith.constant 0 : index
    %c0_153 = arith.constant 0 : index
    %164 = vector.load %arg2[%c4_151, %c0_152, %c0_153] : memref<9x32x32xbf16, #tpu.memory_space<vmem>>, vector<1x32x32xbf16>
    %165 = vector.shape_cast %164 : vector<1x32x32xbf16> to vector<32x32xbf16>
    %cst_154 = arith.constant dense<0.000000e+00> : vector<32x32xf32>
    %166 = tpu.matmul %165, %61, %cst_154 {dimension_numbers = #tpu.dot_dimension_numbers<[1], [0], [0], [1], [0, 0, 1, 1], [], []>} : vector<32x32xbf16>, vector<32x32xbf16>, vector<32x32xf32> -> vector<32x32xf32>
    %167 = arith.truncf %166 : vector<32x32xf32> to vector<32x32xbf16>
    %c4_155 = arith.constant 4 : index
    %c0_156 = arith.constant 0 : index
    %c0_157 = arith.constant 0 : index
    %168 = vector.load %arg17[%c4_155, %c0_156, %c0_157] : memref<9x32x32xbf16, #tpu.memory_space<vmem>>, vector<1x32x32xbf16>
    %169 = vector.shape_cast %168 : vector<1x32x32xbf16> to vector<32x32xbf16>
    %cst_158 = arith.constant dense<0.000000e+00> : vector<32x32xf32>
    %170 = tpu.matmul %167, %169, %cst_158 {dimension_numbers = #tpu.dot_dimension_numbers<[1], [0], [0], [1], [0, 0, 1, 1], [], []>} : vector<32x32xbf16>, vector<32x32xbf16>, vector<32x32xf32> -> vector<32x32xf32>
    %171 = arith.addf %163, %170 : vector<32x32xf32>
    %c5_159 = arith.constant 5 : index
    %c0_160 = arith.constant 0 : index
    %c0_161 = arith.constant 0 : index
    %172 = vector.load %arg2[%c5_159, %c0_160, %c0_161] : memref<9x32x32xbf16, #tpu.memory_space<vmem>>, vector<1x32x32xbf16>
    %173 = vector.shape_cast %172 : vector<1x32x32xbf16> to vector<32x32xbf16>
    %cst_162 = arith.constant dense<0.000000e+00> : vector<32x32xf32>
    %174 = tpu.matmul %173, %61, %cst_162 {dimension_numbers = #tpu.dot_dimension_numbers<[1], [0], [0], [1], [0, 0, 1, 1], [], []>} : vector<32x32xbf16>, vector<32x32xbf16>, vector<32x32xf32> -> vector<32x32xf32>
    %175 = arith.truncf %174 : vector<32x32xf32> to vector<32x32xbf16>
    %c5_163 = arith.constant 5 : index
    %c0_164 = arith.constant 0 : index
    %c0_165 = arith.constant 0 : index
    %176 = vector.load %arg17[%c5_163, %c0_164, %c0_165] : memref<9x32x32xbf16, #tpu.memory_space<vmem>>, vector<1x32x32xbf16>
    %177 = vector.shape_cast %176 : vector<1x32x32xbf16> to vector<32x32xbf16>
    %cst_166 = arith.constant dense<0.000000e+00> : vector<32x32xf32>
    %178 = tpu.matmul %175, %177, %cst_166 {dimension_numbers = #tpu.dot_dimension_numbers<[1], [0], [0], [1], [0, 0, 1, 1], [], []>} : vector<32x32xbf16>, vector<32x32xbf16>, vector<32x32xf32> -> vector<32x32xf32>
    %179 = arith.addf %171, %178 : vector<32x32xf32>
    %c6_167 = arith.constant 6 : index
    %c0_168 = arith.constant 0 : index
    %c0_169 = arith.constant 0 : index
    %180 = vector.load %arg2[%c6_167, %c0_168, %c0_169] : memref<9x32x32xbf16, #tpu.memory_space<vmem>>, vector<1x32x32xbf16>
    %181 = vector.shape_cast %180 : vector<1x32x32xbf16> to vector<32x32xbf16>
    %cst_170 = arith.constant dense<0.000000e+00> : vector<32x32xf32>
    %182 = tpu.matmul %181, %61, %cst_170 {dimension_numbers = #tpu.dot_dimension_numbers<[1], [0], [0], [1], [0, 0, 1, 1], [], []>} : vector<32x32xbf16>, vector<32x32xbf16>, vector<32x32xf32> -> vector<32x32xf32>
    %183 = arith.truncf %182 : vector<32x32xf32> to vector<32x32xbf16>
    %c6_171 = arith.constant 6 : index
    %c0_172 = arith.constant 0 : index
    %c0_173 = arith.constant 0 : index
    %184 = vector.load %arg17[%c6_171, %c0_172, %c0_173] : memref<9x32x32xbf16, #tpu.memory_space<vmem>>, vector<1x32x32xbf16>
    %185 = vector.shape_cast %184 : vector<1x32x32xbf16> to vector<32x32xbf16>
    %cst_174 = arith.constant dense<0.000000e+00> : vector<32x32xf32>
    %186 = tpu.matmul %183, %185, %cst_174 {dimension_numbers = #tpu.dot_dimension_numbers<[1], [0], [0], [1], [0, 0, 1, 1], [], []>} : vector<32x32xbf16>, vector<32x32xbf16>, vector<32x32xf32> -> vector<32x32xf32>
    %187 = arith.addf %179, %186 : vector<32x32xf32>
    %c7_175 = arith.constant 7 : index
    %c0_176 = arith.constant 0 : index
    %c0_177 = arith.constant 0 : index
    %188 = vector.load %arg2[%c7_175, %c0_176, %c0_177] : memref<9x32x32xbf16, #tpu.memory_space<vmem>>, vector<1x32x32xbf16>
    %189 = vector.shape_cast %188 : vector<1x32x32xbf16> to vector<32x32xbf16>
    %cst_178 = arith.constant dense<0.000000e+00> : vector<32x32xf32>
    %190 = tpu.matmul %189, %61, %cst_178 {dimension_numbers = #tpu.dot_dimension_numbers<[1], [0], [0], [1], [0, 0, 1, 1], [], []>} : vector<32x32xbf16>, vector<32x32xbf16>, vector<32x32xf32> -> vector<32x32xf32>
    %191 = arith.truncf %190 : vector<32x32xf32> to vector<32x32xbf16>
    %c7_179 = arith.constant 7 : index
    %c0_180 = arith.constant 0 : index
    %c0_181 = arith.constant 0 : index
    %192 = vector.load %arg17[%c7_179, %c0_180, %c0_181] : memref<9x32x32xbf16, #tpu.memory_space<vmem>>, vector<1x32x32xbf16>
    %193 = vector.shape_cast %192 : vector<1x32x32xbf16> to vector<32x32xbf16>
    %cst_182 = arith.constant dense<0.000000e+00> : vector<32x32xf32>
    %194 = tpu.matmul %191, %193, %cst_182 {dimension_numbers = #tpu.dot_dimension_numbers<[1], [0], [0], [1], [0, 0, 1, 1], [], []>} : vector<32x32xbf16>, vector<32x32xbf16>, vector<32x32xf32> -> vector<32x32xf32>
    %195 = arith.addf %187, %194 : vector<32x32xf32>
    %c8_183 = arith.constant 8 : index
    %c0_184 = arith.constant 0 : index
    %c0_185 = arith.constant 0 : index
    %196 = vector.load %arg2[%c8_183, %c0_184, %c0_185] : memref<9x32x32xbf16, #tpu.memory_space<vmem>>, vector<1x32x32xbf16>
    %197 = vector.shape_cast %196 : vector<1x32x32xbf16> to vector<32x32xbf16>
    %cst_186 = arith.constant dense<0.000000e+00> : vector<32x32xf32>
    %198 = tpu.matmul %197, %61, %cst_186 {dimension_numbers = #tpu.dot_dimension_numbers<[1], [0], [0], [1], [0, 0, 1, 1], [], []>} : vector<32x32xbf16>, vector<32x32xbf16>, vector<32x32xf32> -> vector<32x32xf32>
    %199 = arith.truncf %198 : vector<32x32xf32> to vector<32x32xbf16>
    %c8_187 = arith.constant 8 : index
    %c0_188 = arith.constant 0 : index
    %c0_189 = arith.constant 0 : index
    %200 = vector.load %arg17[%c8_187, %c0_188, %c0_189] : memref<9x32x32xbf16, #tpu.memory_space<vmem>>, vector<1x32x32xbf16>
    %201 = vector.shape_cast %200 : vector<1x32x32xbf16> to vector<32x32xbf16>
    %cst_190 = arith.constant dense<0.000000e+00> : vector<32x32xf32>
    %202 = tpu.matmul %199, %201, %cst_190 {dimension_numbers = #tpu.dot_dimension_numbers<[1], [0], [0], [1], [0, 0, 1, 1], [], []>} : vector<32x32xbf16>, vector<32x32xbf16>, vector<32x32xf32> -> vector<32x32xf32>
    %203 = arith.addf %195, %202 : vector<32x32xf32>
    %c0_191 = arith.constant 0 : index
    %c0_192 = arith.constant 0 : index
    %c0_193 = arith.constant 0 : index
    %204 = vector.load %arg3[%c0_191, %c0_192, %c0_193] : memref<9x128x128xbf16, #tpu.memory_space<vmem>>, vector<1x128x128xbf16>
    %205 = vector.shape_cast %204 : vector<1x128x128xbf16> to vector<128x128xbf16>
    %cst_194 = arith.constant dense<0.000000e+00> : vector<128x16xf32>
    %206 = tpu.matmul %205, %16, %cst_194 {dimension_numbers = #tpu.dot_dimension_numbers<[1], [0], [0], [1], [0, 0, 1, 1], [], []>} : vector<128x128xbf16>, vector<128x16xbf16>, vector<128x16xf32> -> vector<128x16xf32>
    %207 = arith.truncf %206 : vector<128x16xf32> to vector<128x16xbf16>
    %c0_195 = arith.constant 0 : index
    %c0_196 = arith.constant 0 : index
    %c0_197 = arith.constant 0 : index
    %208 = vector.load %arg20[%c0_195, %c0_196, %c0_197] : memref<9x16x16xbf16, #tpu.memory_space<vmem>>, vector<1x16x16xbf16>
    %209 = vector.shape_cast %208 : vector<1x16x16xbf16> to vector<16x16xbf16>
    %cst_198 = arith.constant dense<0.000000e+00> : vector<128x16xf32>
    %210 = tpu.matmul %207, %209, %cst_198 {dimension_numbers = #tpu.dot_dimension_numbers<[1], [0], [0], [1], [0, 0, 1, 1], [], []>} : vector<128x16xbf16>, vector<16x16xbf16>, vector<128x16xf32> -> vector<128x16xf32>
    %c1_199 = arith.constant 1 : index
    %c0_200 = arith.constant 0 : index
    %c0_201 = arith.constant 0 : index
    %211 = vector.load %arg3[%c1_199, %c0_200, %c0_201] : memref<9x128x128xbf16, #tpu.memory_space<vmem>>, vector<1x128x128xbf16>
    %212 = vector.shape_cast %211 : vector<1x128x128xbf16> to vector<128x128xbf16>
    %cst_202 = arith.constant dense<0.000000e+00> : vector<128x16xf32>
    %213 = tpu.matmul %212, %16, %cst_202 {dimension_numbers = #tpu.dot_dimension_numbers<[1], [0], [0], [1], [0, 0, 1, 1], [], []>} : vector<128x128xbf16>, vector<128x16xbf16>, vector<128x16xf32> -> vector<128x16xf32>
    %214 = arith.truncf %213 : vector<128x16xf32> to vector<128x16xbf16>
    %c1_203 = arith.constant 1 : index
    %c0_204 = arith.constant 0 : index
    %c0_205 = arith.constant 0 : index
    %215 = vector.load %arg20[%c1_203, %c0_204, %c0_205] : memref<9x16x16xbf16, #tpu.memory_space<vmem>>, vector<1x16x16xbf16>
    %216 = vector.shape_cast %215 : vector<1x16x16xbf16> to vector<16x16xbf16>
    %cst_206 = arith.constant dense<0.000000e+00> : vector<128x16xf32>
    %217 = tpu.matmul %214, %216, %cst_206 {dimension_numbers = #tpu.dot_dimension_numbers<[1], [0], [0], [1], [0, 0, 1, 1], [], []>} : vector<128x16xbf16>, vector<16x16xbf16>, vector<128x16xf32> -> vector<128x16xf32>
    %218 = arith.addf %210, %217 : vector<128x16xf32>
    %c2_207 = arith.constant 2 : index
    %c0_208 = arith.constant 0 : index
    %c0_209 = arith.constant 0 : index
    %219 = vector.load %arg3[%c2_207, %c0_208, %c0_209] : memref<9x128x128xbf16, #tpu.memory_space<vmem>>, vector<1x128x128xbf16>
    %220 = vector.shape_cast %219 : vector<1x128x128xbf16> to vector<128x128xbf16>
    %cst_210 = arith.constant dense<0.000000e+00> : vector<128x16xf32>
    %221 = tpu.matmul %220, %16, %cst_210 {dimension_numbers = #tpu.dot_dimension_numbers<[1], [0], [0], [1], [0, 0, 1, 1], [], []>} : vector<128x128xbf16>, vector<128x16xbf16>, vector<128x16xf32> -> vector<128x16xf32>
    %222 = arith.truncf %221 : vector<128x16xf32> to vector<128x16xbf16>
    %c2_211 = arith.constant 2 : index
    %c0_212 = arith.constant 0 : index
    %c0_213 = arith.constant 0 : index
    %223 = vector.load %arg20[%c2_211, %c0_212, %c0_213] : memref<9x16x16xbf16, #tpu.memory_space<vmem>>, vector<1x16x16xbf16>
    %224 = vector.shape_cast %223 : vector<1x16x16xbf16> to vector<16x16xbf16>
    %cst_214 = arith.constant dense<0.000000e+00> : vector<128x16xf32>
    %225 = tpu.matmul %222, %224, %cst_214 {dimension_numbers = #tpu.dot_dimension_numbers<[1], [0], [0], [1], [0, 0, 1, 1], [], []>} : vector<128x16xbf16>, vector<16x16xbf16>, vector<128x16xf32> -> vector<128x16xf32>
    %226 = arith.addf %218, %225 : vector<128x16xf32>
    %c3_215 = arith.constant 3 : index
    %c0_216 = arith.constant 0 : index
    %c0_217 = arith.constant 0 : index
    %227 = vector.load %arg3[%c3_215, %c0_216, %c0_217] : memref<9x128x128xbf16, #tpu.memory_space<vmem>>, vector<1x128x128xbf16>
    %228 = vector.shape_cast %227 : vector<1x128x128xbf16> to vector<128x128xbf16>
    %cst_218 = arith.constant dense<0.000000e+00> : vector<128x16xf32>
    %229 = tpu.matmul %228, %16, %cst_218 {dimension_numbers = #tpu.dot_dimension_numbers<[1], [0], [0], [1], [0, 0, 1, 1], [], []>} : vector<128x128xbf16>, vector<128x16xbf16>, vector<128x16xf32> -> vector<128x16xf32>
    %230 = arith.truncf %229 : vector<128x16xf32> to vector<128x16xbf16>
    %c3_219 = arith.constant 3 : index
    %c0_220 = arith.constant 0 : index
    %c0_221 = arith.constant 0 : index
    %231 = vector.load %arg20[%c3_219, %c0_220, %c0_221] : memref<9x16x16xbf16, #tpu.memory_space<vmem>>, vector<1x16x16xbf16>
    %232 = vector.shape_cast %231 : vector<1x16x16xbf16> to vector<16x16xbf16>
    %cst_222 = arith.constant dense<0.000000e+00> : vector<128x16xf32>
    %233 = tpu.matmul %230, %232, %cst_222 {dimension_numbers = #tpu.dot_dimension_numbers<[1], [0], [0], [1], [0, 0, 1, 1], [], []>} : vector<128x16xbf16>, vector<16x16xbf16>, vector<128x16xf32> -> vector<128x16xf32>
    %234 = arith.addf %226, %233 : vector<128x16xf32>
    %c4_223 = arith.constant 4 : index
    %c0_224 = arith.constant 0 : index
    %c0_225 = arith.constant 0 : index
    %235 = vector.load %arg3[%c4_223, %c0_224, %c0_225] : memref<9x128x128xbf16, #tpu.memory_space<vmem>>, vector<1x128x128xbf16>
    %236 = vector.shape_cast %235 : vector<1x128x128xbf16> to vector<128x128xbf16>
    %cst_226 = arith.constant dense<0.000000e+00> : vector<128x16xf32>
    %237 = tpu.matmul %236, %16, %cst_226 {dimension_numbers = #tpu.dot_dimension_numbers<[1], [0], [0], [1], [0, 0, 1, 1], [], []>} : vector<128x128xbf16>, vector<128x16xbf16>, vector<128x16xf32> -> vector<128x16xf32>
    %238 = arith.truncf %237 : vector<128x16xf32> to vector<128x16xbf16>
    %c4_227 = arith.constant 4 : index
    %c0_228 = arith.constant 0 : index
    %c0_229 = arith.constant 0 : index
    %239 = vector.load %arg20[%c4_227, %c0_228, %c0_229] : memref<9x16x16xbf16, #tpu.memory_space<vmem>>, vector<1x16x16xbf16>
    %240 = vector.shape_cast %239 : vector<1x16x16xbf16> to vector<16x16xbf16>
    %cst_230 = arith.constant dense<0.000000e+00> : vector<128x16xf32>
    %241 = tpu.matmul %238, %240, %cst_230 {dimension_numbers = #tpu.dot_dimension_numbers<[1], [0], [0], [1], [0, 0, 1, 1], [], []>} : vector<128x16xbf16>, vector<16x16xbf16>, vector<128x16xf32> -> vector<128x16xf32>
    %242 = arith.addf %234, %241 : vector<128x16xf32>
    %c5_231 = arith.constant 5 : index
    %c0_232 = arith.constant 0 : index
    %c0_233 = arith.constant 0 : index
    %243 = vector.load %arg3[%c5_231, %c0_232, %c0_233] : memref<9x128x128xbf16, #tpu.memory_space<vmem>>, vector<1x128x128xbf16>
    %244 = vector.shape_cast %243 : vector<1x128x128xbf16> to vector<128x128xbf16>
    %cst_234 = arith.constant dense<0.000000e+00> : vector<128x16xf32>
    %245 = tpu.matmul %244, %16, %cst_234 {dimension_numbers = #tpu.dot_dimension_numbers<[1], [0], [0], [1], [0, 0, 1, 1], [], []>} : vector<128x128xbf16>, vector<128x16xbf16>, vector<128x16xf32> -> vector<128x16xf32>
    %246 = arith.truncf %245 : vector<128x16xf32> to vector<128x16xbf16>
    %c5_235 = arith.constant 5 : index
    %c0_236 = arith.constant 0 : index
    %c0_237 = arith.constant 0 : index
    %247 = vector.load %arg20[%c5_235, %c0_236, %c0_237] : memref<9x16x16xbf16, #tpu.memory_space<vmem>>, vector<1x16x16xbf16>
    %248 = vector.shape_cast %247 : vector<1x16x16xbf16> to vector<16x16xbf16>
    %cst_238 = arith.constant dense<0.000000e+00> : vector<128x16xf32>
    %249 = tpu.matmul %246, %248, %cst_238 {dimension_numbers = #tpu.dot_dimension_numbers<[1], [0], [0], [1], [0, 0, 1, 1], [], []>} : vector<128x16xbf16>, vector<16x16xbf16>, vector<128x16xf32> -> vector<128x16xf32>
    %250 = arith.addf %242, %249 : vector<128x16xf32>
    %c6_239 = arith.constant 6 : index
    %c0_240 = arith.constant 0 : index
    %c0_241 = arith.constant 0 : index
    %251 = vector.load %arg3[%c6_239, %c0_240, %c0_241] : memref<9x128x128xbf16, #tpu.memory_space<vmem>>, vector<1x128x128xbf16>
    %252 = vector.shape_cast %251 : vector<1x128x128xbf16> to vector<128x128xbf16>
    %cst_242 = arith.constant dense<0.000000e+00> : vector<128x16xf32>
    %253 = tpu.matmul %252, %16, %cst_242 {dimension_numbers = #tpu.dot_dimension_numbers<[1], [0], [0], [1], [0, 0, 1, 1], [], []>} : vector<128x128xbf16>, vector<128x16xbf16>, vector<128x16xf32> -> vector<128x16xf32>
    %254 = arith.truncf %253 : vector<128x16xf32> to vector<128x16xbf16>
    %c6_243 = arith.constant 6 : index
    %c0_244 = arith.constant 0 : index
    %c0_245 = arith.constant 0 : index
    %255 = vector.load %arg20[%c6_243, %c0_244, %c0_245] : memref<9x16x16xbf16, #tpu.memory_space<vmem>>, vector<1x16x16xbf16>
    %256 = vector.shape_cast %255 : vector<1x16x16xbf16> to vector<16x16xbf16>
    %cst_246 = arith.constant dense<0.000000e+00> : vector<128x16xf32>
    %257 = tpu.matmul %254, %256, %cst_246 {dimension_numbers = #tpu.dot_dimension_numbers<[1], [0], [0], [1], [0, 0, 1, 1], [], []>} : vector<128x16xbf16>, vector<16x16xbf16>, vector<128x16xf32> -> vector<128x16xf32>
    %258 = arith.addf %250, %257 : vector<128x16xf32>
    %c7_247 = arith.constant 7 : index
    %c0_248 = arith.constant 0 : index
    %c0_249 = arith.constant 0 : index
    %259 = vector.load %arg3[%c7_247, %c0_248, %c0_249] : memref<9x128x128xbf16, #tpu.memory_space<vmem>>, vector<1x128x128xbf16>
    %260 = vector.shape_cast %259 : vector<1x128x128xbf16> to vector<128x128xbf16>
    %cst_250 = arith.constant dense<0.000000e+00> : vector<128x16xf32>
    %261 = tpu.matmul %260, %16, %cst_250 {dimension_numbers = #tpu.dot_dimension_numbers<[1], [0], [0], [1], [0, 0, 1, 1], [], []>} : vector<128x128xbf16>, vector<128x16xbf16>, vector<128x16xf32> -> vector<128x16xf32>
    %262 = arith.truncf %261 : vector<128x16xf32> to vector<128x16xbf16>
    %c7_251 = arith.constant 7 : index
    %c0_252 = arith.constant 0 : index
    %c0_253 = arith.constant 0 : index
    %263 = vector.load %arg20[%c7_251, %c0_252, %c0_253] : memref<9x16x16xbf16, #tpu.memory_space<vmem>>, vector<1x16x16xbf16>
    %264 = vector.shape_cast %263 : vector<1x16x16xbf16> to vector<16x16xbf16>
    %cst_254 = arith.constant dense<0.000000e+00> : vector<128x16xf32>
    %265 = tpu.matmul %262, %264, %cst_254 {dimension_numbers = #tpu.dot_dimension_numbers<[1], [0], [0], [1], [0, 0, 1, 1], [], []>} : vector<128x16xbf16>, vector<16x16xbf16>, vector<128x16xf32> -> vector<128x16xf32>
    %266 = arith.addf %258, %265 : vector<128x16xf32>
    %c8_255 = arith.constant 8 : index
    %c0_256 = arith.constant 0 : index
    %c0_257 = arith.constant 0 : index
    %267 = vector.load %arg3[%c8_255, %c0_256, %c0_257] : memref<9x128x128xbf16, #tpu.memory_space<vmem>>, vector<1x128x128xbf16>
    %268 = vector.shape_cast %267 : vector<1x128x128xbf16> to vector<128x128xbf16>
    %cst_258 = arith.constant dense<0.000000e+00> : vector<128x16xf32>
    %269 = tpu.matmul %268, %16, %cst_258 {dimension_numbers = #tpu.dot_dimension_numbers<[1], [0], [0], [1], [0, 0, 1, 1], [], []>} : vector<128x128xbf16>, vector<128x16xbf16>, vector<128x16xf32> -> vector<128x16xf32>
    %270 = arith.truncf %269 : vector<128x16xf32> to vector<128x16xbf16>
    %c8_259 = arith.constant 8 : index
    %c0_260 = arith.constant 0 : index
    %c0_261 = arith.constant 0 : index
    %271 = vector.load %arg20[%c8_259, %c0_260, %c0_261] : memref<9x16x16xbf16, #tpu.memory_space<vmem>>, vector<1x16x16xbf16>
    %272 = vector.shape_cast %271 : vector<1x16x16xbf16> to vector<16x16xbf16>
    %cst_262 = arith.constant dense<0.000000e+00> : vector<128x16xf32>
    %273 = tpu.matmul %270, %272, %cst_262 {dimension_numbers = #tpu.dot_dimension_numbers<[1], [0], [0], [1], [0, 0, 1, 1], [], []>} : vector<128x16xbf16>, vector<16x16xbf16>, vector<128x16xf32> -> vector<128x16xf32>
    %274 = arith.addf %266, %273 : vector<128x16xf32>
    %275 = arith.truncf %52 : vector<32x32xf32> to vector<32x32xbf16>
    %c0_263 = arith.constant 0 : index
    %c0_264 = arith.constant 0 : index
    %c0_265 = arith.constant 0 : index
    %276 = vector.load %arg2[%c0_263, %c0_264, %c0_265] : memref<9x32x32xbf16, #tpu.memory_space<vmem>>, vector<1x32x32xbf16>
    %277 = vector.shape_cast %276 : vector<1x32x32xbf16> to vector<32x32xbf16>
    %cst_266 = arith.constant dense<0.000000e+00> : vector<32x32xf32>
    %278 = tpu.matmul %277, %275, %cst_266 {dimension_numbers = #tpu.dot_dimension_numbers<[1], [0], [0], [1], [0, 0, 1, 1], [], []>} : vector<32x32xbf16>, vector<32x32xbf16>, vector<32x32xf32> -> vector<32x32xf32>
    %279 = arith.truncf %278 : vector<32x32xf32> to vector<32x32xbf16>
    %c0_267 = arith.constant 0 : index
    %c0_268 = arith.constant 0 : index
    %c0_269 = arith.constant 0 : index
    %280 = vector.load %arg15[%c0_267, %c0_268, %c0_269] : memref<9x32x64xbf16, #tpu.memory_space<vmem>>, vector<1x32x64xbf16>
    %281 = vector.shape_cast %280 : vector<1x32x64xbf16> to vector<32x64xbf16>
    %cst_270 = arith.constant dense<0.000000e+00> : vector<32x64xf32>
    %282 = tpu.matmul %279, %281, %cst_270 {dimension_numbers = #tpu.dot_dimension_numbers<[1], [0], [0], [1], [0, 0, 1, 1], [], []>} : vector<32x32xbf16>, vector<32x64xbf16>, vector<32x64xf32> -> vector<32x64xf32>
    %c1_271 = arith.constant 1 : index
    %c0_272 = arith.constant 0 : index
    %c0_273 = arith.constant 0 : index
    %283 = vector.load %arg2[%c1_271, %c0_272, %c0_273] : memref<9x32x32xbf16, #tpu.memory_space<vmem>>, vector<1x32x32xbf16>
    %284 = vector.shape_cast %283 : vector<1x32x32xbf16> to vector<32x32xbf16>
    %cst_274 = arith.constant dense<0.000000e+00> : vector<32x32xf32>
    %285 = tpu.matmul %284, %275, %cst_274 {dimension_numbers = #tpu.dot_dimension_numbers<[1], [0], [0], [1], [0, 0, 1, 1], [], []>} : vector<32x32xbf16>, vector<32x32xbf16>, vector<32x32xf32> -> vector<32x32xf32>
    %286 = arith.truncf %285 : vector<32x32xf32> to vector<32x32xbf16>
    %c1_275 = arith.constant 1 : index
    %c0_276 = arith.constant 0 : index
    %c0_277 = arith.constant 0 : index
    %287 = vector.load %arg15[%c1_275, %c0_276, %c0_277] : memref<9x32x64xbf16, #tpu.memory_space<vmem>>, vector<1x32x64xbf16>
    %288 = vector.shape_cast %287 : vector<1x32x64xbf16> to vector<32x64xbf16>
    %cst_278 = arith.constant dense<0.000000e+00> : vector<32x64xf32>
    %289 = tpu.matmul %286, %288, %cst_278 {dimension_numbers = #tpu.dot_dimension_numbers<[1], [0], [0], [1], [0, 0, 1, 1], [], []>} : vector<32x32xbf16>, vector<32x64xbf16>, vector<32x64xf32> -> vector<32x64xf32>
    %290 = arith.addf %282, %289 : vector<32x64xf32>
    %c2_279 = arith.constant 2 : index
    %c0_280 = arith.constant 0 : index
    %c0_281 = arith.constant 0 : index
    %291 = vector.load %arg2[%c2_279, %c0_280, %c0_281] : memref<9x32x32xbf16, #tpu.memory_space<vmem>>, vector<1x32x32xbf16>
    %292 = vector.shape_cast %291 : vector<1x32x32xbf16> to vector<32x32xbf16>
    %cst_282 = arith.constant dense<0.000000e+00> : vector<32x32xf32>
    %293 = tpu.matmul %292, %275, %cst_282 {dimension_numbers = #tpu.dot_dimension_numbers<[1], [0], [0], [1], [0, 0, 1, 1], [], []>} : vector<32x32xbf16>, vector<32x32xbf16>, vector<32x32xf32> -> vector<32x32xf32>
    %294 = arith.truncf %293 : vector<32x32xf32> to vector<32x32xbf16>
    %c2_283 = arith.constant 2 : index
    %c0_284 = arith.constant 0 : index
    %c0_285 = arith.constant 0 : index
    %295 = vector.load %arg15[%c2_283, %c0_284, %c0_285] : memref<9x32x64xbf16, #tpu.memory_space<vmem>>, vector<1x32x64xbf16>
    %296 = vector.shape_cast %295 : vector<1x32x64xbf16> to vector<32x64xbf16>
    %cst_286 = arith.constant dense<0.000000e+00> : vector<32x64xf32>
    %297 = tpu.matmul %294, %296, %cst_286 {dimension_numbers = #tpu.dot_dimension_numbers<[1], [0], [0], [1], [0, 0, 1, 1], [], []>} : vector<32x32xbf16>, vector<32x64xbf16>, vector<32x64xf32> -> vector<32x64xf32>
    %298 = arith.addf %290, %297 : vector<32x64xf32>
    %c3_287 = arith.constant 3 : index
    %c0_288 = arith.constant 0 : index
    %c0_289 = arith.constant 0 : index
    %299 = vector.load %arg2[%c3_287, %c0_288, %c0_289] : memref<9x32x32xbf16, #tpu.memory_space<vmem>>, vector<1x32x32xbf16>
    %300 = vector.shape_cast %299 : vector<1x32x32xbf16> to vector<32x32xbf16>
    %cst_290 = arith.constant dense<0.000000e+00> : vector<32x32xf32>
    %301 = tpu.matmul %300, %275, %cst_290 {dimension_numbers = #tpu.dot_dimension_numbers<[1], [0], [0], [1], [0, 0, 1, 1], [], []>} : vector<32x32xbf16>, vector<32x32xbf16>, vector<32x32xf32> -> vector<32x32xf32>
    %302 = arith.truncf %301 : vector<32x32xf32> to vector<32x32xbf16>
    %c3_291 = arith.constant 3 : index
    %c0_292 = arith.constant 0 : index
    %c0_293 = arith.constant 0 : index
    %303 = vector.load %arg15[%c3_291, %c0_292, %c0_293] : memref<9x32x64xbf16, #tpu.memory_space<vmem>>, vector<1x32x64xbf16>
    %304 = vector.shape_cast %303 : vector<1x32x64xbf16> to vector<32x64xbf16>
    %cst_294 = arith.constant dense<0.000000e+00> : vector<32x64xf32>
    %305 = tpu.matmul %302, %304, %cst_294 {dimension_numbers = #tpu.dot_dimension_numbers<[1], [0], [0], [1], [0, 0, 1, 1], [], []>} : vector<32x32xbf16>, vector<32x64xbf16>, vector<32x64xf32> -> vector<32x64xf32>
    %306 = arith.addf %298, %305 : vector<32x64xf32>
    %c4_295 = arith.constant 4 : index
    %c0_296 = arith.constant 0 : index
    %c0_297 = arith.constant 0 : index
    %307 = vector.load %arg2[%c4_295, %c0_296, %c0_297] : memref<9x32x32xbf16, #tpu.memory_space<vmem>>, vector<1x32x32xbf16>
    %308 = vector.shape_cast %307 : vector<1x32x32xbf16> to vector<32x32xbf16>
    %cst_298 = arith.constant dense<0.000000e+00> : vector<32x32xf32>
    %309 = tpu.matmul %308, %275, %cst_298 {dimension_numbers = #tpu.dot_dimension_numbers<[1], [0], [0], [1], [0, 0, 1, 1], [], []>} : vector<32x32xbf16>, vector<32x32xbf16>, vector<32x32xf32> -> vector<32x32xf32>
    %310 = arith.truncf %309 : vector<32x32xf32> to vector<32x32xbf16>
    %c4_299 = arith.constant 4 : index
    %c0_300 = arith.constant 0 : index
    %c0_301 = arith.constant 0 : index
    %311 = vector.load %arg15[%c4_299, %c0_300, %c0_301] : memref<9x32x64xbf16, #tpu.memory_space<vmem>>, vector<1x32x64xbf16>
    %312 = vector.shape_cast %311 : vector<1x32x64xbf16> to vector<32x64xbf16>
    %cst_302 = arith.constant dense<0.000000e+00> : vector<32x64xf32>
    %313 = tpu.matmul %310, %312, %cst_302 {dimension_numbers = #tpu.dot_dimension_numbers<[1], [0], [0], [1], [0, 0, 1, 1], [], []>} : vector<32x32xbf16>, vector<32x64xbf16>, vector<32x64xf32> -> vector<32x64xf32>
    %314 = arith.addf %306, %313 : vector<32x64xf32>
    %c5_303 = arith.constant 5 : index
    %c0_304 = arith.constant 0 : index
    %c0_305 = arith.constant 0 : index
    %315 = vector.load %arg2[%c5_303, %c0_304, %c0_305] : memref<9x32x32xbf16, #tpu.memory_space<vmem>>, vector<1x32x32xbf16>
    %316 = vector.shape_cast %315 : vector<1x32x32xbf16> to vector<32x32xbf16>
    %cst_306 = arith.constant dense<0.000000e+00> : vector<32x32xf32>
    %317 = tpu.matmul %316, %275, %cst_306 {dimension_numbers = #tpu.dot_dimension_numbers<[1], [0], [0], [1], [0, 0, 1, 1], [], []>} : vector<32x32xbf16>, vector<32x32xbf16>, vector<32x32xf32> -> vector<32x32xf32>
    %318 = arith.truncf %317 : vector<32x32xf32> to vector<32x32xbf16>
    %c5_307 = arith.constant 5 : index
    %c0_308 = arith.constant 0 : index
    %c0_309 = arith.constant 0 : index
    %319 = vector.load %arg15[%c5_307, %c0_308, %c0_309] : memref<9x32x64xbf16, #tpu.memory_space<vmem>>, vector<1x32x64xbf16>
    %320 = vector.shape_cast %319 : vector<1x32x64xbf16> to vector<32x64xbf16>
    %cst_310 = arith.constant dense<0.000000e+00> : vector<32x64xf32>
    %321 = tpu.matmul %318, %320, %cst_310 {dimension_numbers = #tpu.dot_dimension_numbers<[1], [0], [0], [1], [0, 0, 1, 1], [], []>} : vector<32x32xbf16>, vector<32x64xbf16>, vector<32x64xf32> -> vector<32x64xf32>
    %322 = arith.addf %314, %321 : vector<32x64xf32>
    %c6_311 = arith.constant 6 : index
    %c0_312 = arith.constant 0 : index
    %c0_313 = arith.constant 0 : index
    %323 = vector.load %arg2[%c6_311, %c0_312, %c0_313] : memref<9x32x32xbf16, #tpu.memory_space<vmem>>, vector<1x32x32xbf16>
    %324 = vector.shape_cast %323 : vector<1x32x32xbf16> to vector<32x32xbf16>
    %cst_314 = arith.constant dense<0.000000e+00> : vector<32x32xf32>
    %325 = tpu.matmul %324, %275, %cst_314 {dimension_numbers = #tpu.dot_dimension_numbers<[1], [0], [0], [1], [0, 0, 1, 1], [], []>} : vector<32x32xbf16>, vector<32x32xbf16>, vector<32x32xf32> -> vector<32x32xf32>
    %326 = arith.truncf %325 : vector<32x32xf32> to vector<32x32xbf16>
    %c6_315 = arith.constant 6 : index
    %c0_316 = arith.constant 0 : index
    %c0_317 = arith.constant 0 : index
    %327 = vector.load %arg15[%c6_315, %c0_316, %c0_317] : memref<9x32x64xbf16, #tpu.memory_space<vmem>>, vector<1x32x64xbf16>
    %328 = vector.shape_cast %327 : vector<1x32x64xbf16> to vector<32x64xbf16>
    %cst_318 = arith.constant dense<0.000000e+00> : vector<32x64xf32>
    %329 = tpu.matmul %326, %328, %cst_318 {dimension_numbers = #tpu.dot_dimension_numbers<[1], [0], [0], [1], [0, 0, 1, 1], [], []>} : vector<32x32xbf16>, vector<32x64xbf16>, vector<32x64xf32> -> vector<32x64xf32>
    %330 = arith.addf %322, %329 : vector<32x64xf32>
    %c7_319 = arith.constant 7 : index
    %c0_320 = arith.constant 0 : index
    %c0_321 = arith.constant 0 : index
    %331 = vector.load %arg2[%c7_319, %c0_320, %c0_321] : memref<9x32x32xbf16, #tpu.memory_space<vmem>>, vector<1x32x32xbf16>
    %332 = vector.shape_cast %331 : vector<1x32x32xbf16> to vector<32x32xbf16>
    %cst_322 = arith.constant dense<0.000000e+00> : vector<32x32xf32>
    %333 = tpu.matmul %332, %275, %cst_322 {dimension_numbers = #tpu.dot_dimension_numbers<[1], [0], [0], [1], [0, 0, 1, 1], [], []>} : vector<32x32xbf16>, vector<32x32xbf16>, vector<32x32xf32> -> vector<32x32xf32>
    %334 = arith.truncf %333 : vector<32x32xf32> to vector<32x32xbf16>
    %c7_323 = arith.constant 7 : index
    %c0_324 = arith.constant 0 : index
    %c0_325 = arith.constant 0 : index
    %335 = vector.load %arg15[%c7_323, %c0_324, %c0_325] : memref<9x32x64xbf16, #tpu.memory_space<vmem>>, vector<1x32x64xbf16>
    %336 = vector.shape_cast %335 : vector<1x32x64xbf16> to vector<32x64xbf16>
    %cst_326 = arith.constant dense<0.000000e+00> : vector<32x64xf32>
    %337 = tpu.matmul %334, %336, %cst_326 {dimension_numbers = #tpu.dot_dimension_numbers<[1], [0], [0], [1], [0, 0, 1, 1], [], []>} : vector<32x32xbf16>, vector<32x64xbf16>, vector<32x64xf32> -> vector<32x64xf32>
    %338 = arith.addf %330, %337 : vector<32x64xf32>
    %c8_327 = arith.constant 8 : index
    %c0_328 = arith.constant 0 : index
    %c0_329 = arith.constant 0 : index
    %339 = vector.load %arg2[%c8_327, %c0_328, %c0_329] : memref<9x32x32xbf16, #tpu.memory_space<vmem>>, vector<1x32x32xbf16>
    %340 = vector.shape_cast %339 : vector<1x32x32xbf16> to vector<32x32xbf16>
    %cst_330 = arith.constant dense<0.000000e+00> : vector<32x32xf32>
    %341 = tpu.matmul %340, %275, %cst_330 {dimension_numbers = #tpu.dot_dimension_numbers<[1], [0], [0], [1], [0, 0, 1, 1], [], []>} : vector<32x32xbf16>, vector<32x32xbf16>, vector<32x32xf32> -> vector<32x32xf32>
    %342 = arith.truncf %341 : vector<32x32xf32> to vector<32x32xbf16>
    %c8_331 = arith.constant 8 : index
    %c0_332 = arith.constant 0 : index
    %c0_333 = arith.constant 0 : index
    %343 = vector.load %arg15[%c8_331, %c0_332, %c0_333] : memref<9x32x64xbf16, #tpu.memory_space<vmem>>, vector<1x32x64xbf16>
    %344 = vector.shape_cast %343 : vector<1x32x64xbf16> to vector<32x64xbf16>
    %cst_334 = arith.constant dense<0.000000e+00> : vector<32x64xf32>
    %345 = tpu.matmul %342, %344, %cst_334 {dimension_numbers = #tpu.dot_dimension_numbers<[1], [0], [0], [1], [0, 0, 1, 1], [], []>} : vector<32x32xbf16>, vector<32x64xbf16>, vector<32x64xf32> -> vector<32x64xf32>
    %346 = arith.addf %338, %345 : vector<32x64xf32>
    %347 = arith.addf %132, %346 : vector<32x64xf32>
    %c0_335 = arith.constant 0 : index
    %c0_336 = arith.constant 0 : index
    %348 = vector.load %arg16[%c0_335, %c0_336] : memref<1x64xf32, #tpu.memory_space<vmem>>, vector<1x64xf32>
    %349 = vector.broadcast %348 : vector<1x64xf32> to vector<32x64xf32>
    %350 = arith.addf %347, %349 : vector<32x64xf32>
    %351 = arith.negf %350 : vector<32x64xf32>
    %352 = math.exp %351 : vector<32x64xf32>
    %cst_337 = arith.constant 1.000000e+00 : f32
    %353 = vector.broadcast %cst_337 : f32 to vector<32x64xf32>
    %354 = arith.addf %353, %352 : vector<32x64xf32>
    %355 = arith.divf %353, %354 : vector<32x64xf32>
    %356 = vector.extract_strided_slice %355 {offsets = [0, 0], sizes = [32, 32], strides = [1, 1]} : vector<32x64xf32> to vector<32x32xf32>
    %357 = vector.extract_strided_slice %355 {offsets = [0, 32], sizes = [32, 32], strides = [1, 1]} : vector<32x64xf32> to vector<32x32xf32>
    %358 = arith.mulf %356, %52 : vector<32x32xf32>
    %359 = arith.truncf %358 : vector<32x32xf32> to vector<32x32xbf16>
    %c0_338 = arith.constant 0 : index
    %c0_339 = arith.constant 0 : index
    %c0_340 = arith.constant 0 : index
    %360 = vector.load %arg2[%c0_338, %c0_339, %c0_340] : memref<9x32x32xbf16, #tpu.memory_space<vmem>>, vector<1x32x32xbf16>
    %361 = vector.shape_cast %360 : vector<1x32x32xbf16> to vector<32x32xbf16>
    %cst_341 = arith.constant dense<0.000000e+00> : vector<32x32xf32>
    %362 = tpu.matmul %361, %359, %cst_341 {dimension_numbers = #tpu.dot_dimension_numbers<[1], [0], [0], [1], [0, 0, 1, 1], [], []>} : vector<32x32xbf16>, vector<32x32xbf16>, vector<32x32xf32> -> vector<32x32xf32>
    %363 = arith.truncf %362 : vector<32x32xf32> to vector<32x32xbf16>
    %c0_342 = arith.constant 0 : index
    %c0_343 = arith.constant 0 : index
    %c0_344 = arith.constant 0 : index
    %364 = vector.load %arg18[%c0_342, %c0_343, %c0_344] : memref<9x32x32xbf16, #tpu.memory_space<vmem>>, vector<1x32x32xbf16>
    %365 = vector.shape_cast %364 : vector<1x32x32xbf16> to vector<32x32xbf16>
    %cst_345 = arith.constant dense<0.000000e+00> : vector<32x32xf32>
    %366 = tpu.matmul %363, %365, %cst_345 {dimension_numbers = #tpu.dot_dimension_numbers<[1], [0], [0], [1], [0, 0, 1, 1], [], []>} : vector<32x32xbf16>, vector<32x32xbf16>, vector<32x32xf32> -> vector<32x32xf32>
    %c1_346 = arith.constant 1 : index
    %c0_347 = arith.constant 0 : index
    %c0_348 = arith.constant 0 : index
    %367 = vector.load %arg2[%c1_346, %c0_347, %c0_348] : memref<9x32x32xbf16, #tpu.memory_space<vmem>>, vector<1x32x32xbf16>
    %368 = vector.shape_cast %367 : vector<1x32x32xbf16> to vector<32x32xbf16>
    %cst_349 = arith.constant dense<0.000000e+00> : vector<32x32xf32>
    %369 = tpu.matmul %368, %359, %cst_349 {dimension_numbers = #tpu.dot_dimension_numbers<[1], [0], [0], [1], [0, 0, 1, 1], [], []>} : vector<32x32xbf16>, vector<32x32xbf16>, vector<32x32xf32> -> vector<32x32xf32>
    %370 = arith.truncf %369 : vector<32x32xf32> to vector<32x32xbf16>
    %c1_350 = arith.constant 1 : index
    %c0_351 = arith.constant 0 : index
    %c0_352 = arith.constant 0 : index
    %371 = vector.load %arg18[%c1_350, %c0_351, %c0_352] : memref<9x32x32xbf16, #tpu.memory_space<vmem>>, vector<1x32x32xbf16>
    %372 = vector.shape_cast %371 : vector<1x32x32xbf16> to vector<32x32xbf16>
    %cst_353 = arith.constant dense<0.000000e+00> : vector<32x32xf32>
    %373 = tpu.matmul %370, %372, %cst_353 {dimension_numbers = #tpu.dot_dimension_numbers<[1], [0], [0], [1], [0, 0, 1, 1], [], []>} : vector<32x32xbf16>, vector<32x32xbf16>, vector<32x32xf32> -> vector<32x32xf32>
    %374 = arith.addf %366, %373 : vector<32x32xf32>
    %c2_354 = arith.constant 2 : index
    %c0_355 = arith.constant 0 : index
    %c0_356 = arith.constant 0 : index
    %375 = vector.load %arg2[%c2_354, %c0_355, %c0_356] : memref<9x32x32xbf16, #tpu.memory_space<vmem>>, vector<1x32x32xbf16>
    %376 = vector.shape_cast %375 : vector<1x32x32xbf16> to vector<32x32xbf16>
    %cst_357 = arith.constant dense<0.000000e+00> : vector<32x32xf32>
    %377 = tpu.matmul %376, %359, %cst_357 {dimension_numbers = #tpu.dot_dimension_numbers<[1], [0], [0], [1], [0, 0, 1, 1], [], []>} : vector<32x32xbf16>, vector<32x32xbf16>, vector<32x32xf32> -> vector<32x32xf32>
    %378 = arith.truncf %377 : vector<32x32xf32> to vector<32x32xbf16>
    %c2_358 = arith.constant 2 : index
    %c0_359 = arith.constant 0 : index
    %c0_360 = arith.constant 0 : index
    %379 = vector.load %arg18[%c2_358, %c0_359, %c0_360] : memref<9x32x32xbf16, #tpu.memory_space<vmem>>, vector<1x32x32xbf16>
    %380 = vector.shape_cast %379 : vector<1x32x32xbf16> to vector<32x32xbf16>
    %cst_361 = arith.constant dense<0.000000e+00> : vector<32x32xf32>
    %381 = tpu.matmul %378, %380, %cst_361 {dimension_numbers = #tpu.dot_dimension_numbers<[1], [0], [0], [1], [0, 0, 1, 1], [], []>} : vector<32x32xbf16>, vector<32x32xbf16>, vector<32x32xf32> -> vector<32x32xf32>
    %382 = arith.addf %374, %381 : vector<32x32xf32>
    %c3_362 = arith.constant 3 : index
    %c0_363 = arith.constant 0 : index
    %c0_364 = arith.constant 0 : index
    %383 = vector.load %arg2[%c3_362, %c0_363, %c0_364] : memref<9x32x32xbf16, #tpu.memory_space<vmem>>, vector<1x32x32xbf16>
    %384 = vector.shape_cast %383 : vector<1x32x32xbf16> to vector<32x32xbf16>
    %cst_365 = arith.constant dense<0.000000e+00> : vector<32x32xf32>
    %385 = tpu.matmul %384, %359, %cst_365 {dimension_numbers = #tpu.dot_dimension_numbers<[1], [0], [0], [1], [0, 0, 1, 1], [], []>} : vector<32x32xbf16>, vector<32x32xbf16>, vector<32x32xf32> -> vector<32x32xf32>
    %386 = arith.truncf %385 : vector<32x32xf32> to vector<32x32xbf16>
    %c3_366 = arith.constant 3 : index
    %c0_367 = arith.constant 0 : index
    %c0_368 = arith.constant 0 : index
    %387 = vector.load %arg18[%c3_366, %c0_367, %c0_368] : memref<9x32x32xbf16, #tpu.memory_space<vmem>>, vector<1x32x32xbf16>
    %388 = vector.shape_cast %387 : vector<1x32x32xbf16> to vector<32x32xbf16>
    %cst_369 = arith.constant dense<0.000000e+00> : vector<32x32xf32>
    %389 = tpu.matmul %386, %388, %cst_369 {dimension_numbers = #tpu.dot_dimension_numbers<[1], [0], [0], [1], [0, 0, 1, 1], [], []>} : vector<32x32xbf16>, vector<32x32xbf16>, vector<32x32xf32> -> vector<32x32xf32>
    %390 = arith.addf %382, %389 : vector<32x32xf32>
    %c4_370 = arith.constant 4 : index
    %c0_371 = arith.constant 0 : index
    %c0_372 = arith.constant 0 : index
    %391 = vector.load %arg2[%c4_370, %c0_371, %c0_372] : memref<9x32x32xbf16, #tpu.memory_space<vmem>>, vector<1x32x32xbf16>
    %392 = vector.shape_cast %391 : vector<1x32x32xbf16> to vector<32x32xbf16>
    %cst_373 = arith.constant dense<0.000000e+00> : vector<32x32xf32>
    %393 = tpu.matmul %392, %359, %cst_373 {dimension_numbers = #tpu.dot_dimension_numbers<[1], [0], [0], [1], [0, 0, 1, 1], [], []>} : vector<32x32xbf16>, vector<32x32xbf16>, vector<32x32xf32> -> vector<32x32xf32>
    %394 = arith.truncf %393 : vector<32x32xf32> to vector<32x32xbf16>
    %c4_374 = arith.constant 4 : index
    %c0_375 = arith.constant 0 : index
    %c0_376 = arith.constant 0 : index
    %395 = vector.load %arg18[%c4_374, %c0_375, %c0_376] : memref<9x32x32xbf16, #tpu.memory_space<vmem>>, vector<1x32x32xbf16>
    %396 = vector.shape_cast %395 : vector<1x32x32xbf16> to vector<32x32xbf16>
    %cst_377 = arith.constant dense<0.000000e+00> : vector<32x32xf32>
    %397 = tpu.matmul %394, %396, %cst_377 {dimension_numbers = #tpu.dot_dimension_numbers<[1], [0], [0], [1], [0, 0, 1, 1], [], []>} : vector<32x32xbf16>, vector<32x32xbf16>, vector<32x32xf32> -> vector<32x32xf32>
    %398 = arith.addf %390, %397 : vector<32x32xf32>
    %c5_378 = arith.constant 5 : index
    %c0_379 = arith.constant 0 : index
    %c0_380 = arith.constant 0 : index
    %399 = vector.load %arg2[%c5_378, %c0_379, %c0_380] : memref<9x32x32xbf16, #tpu.memory_space<vmem>>, vector<1x32x32xbf16>
    %400 = vector.shape_cast %399 : vector<1x32x32xbf16> to vector<32x32xbf16>
    %cst_381 = arith.constant dense<0.000000e+00> : vector<32x32xf32>
    %401 = tpu.matmul %400, %359, %cst_381 {dimension_numbers = #tpu.dot_dimension_numbers<[1], [0], [0], [1], [0, 0, 1, 1], [], []>} : vector<32x32xbf16>, vector<32x32xbf16>, vector<32x32xf32> -> vector<32x32xf32>
    %402 = arith.truncf %401 : vector<32x32xf32> to vector<32x32xbf16>
    %c5_382 = arith.constant 5 : index
    %c0_383 = arith.constant 0 : index
    %c0_384 = arith.constant 0 : index
    %403 = vector.load %arg18[%c5_382, %c0_383, %c0_384] : memref<9x32x32xbf16, #tpu.memory_space<vmem>>, vector<1x32x32xbf16>
    %404 = vector.shape_cast %403 : vector<1x32x32xbf16> to vector<32x32xbf16>
    %cst_385 = arith.constant dense<0.000000e+00> : vector<32x32xf32>
    %405 = tpu.matmul %402, %404, %cst_385 {dimension_numbers = #tpu.dot_dimension_numbers<[1], [0], [0], [1], [0, 0, 1, 1], [], []>} : vector<32x32xbf16>, vector<32x32xbf16>, vector<32x32xf32> -> vector<32x32xf32>
    %406 = arith.addf %398, %405 : vector<32x32xf32>
    %c6_386 = arith.constant 6 : index
    %c0_387 = arith.constant 0 : index
    %c0_388 = arith.constant 0 : index
    %407 = vector.load %arg2[%c6_386, %c0_387, %c0_388] : memref<9x32x32xbf16, #tpu.memory_space<vmem>>, vector<1x32x32xbf16>
    %408 = vector.shape_cast %407 : vector<1x32x32xbf16> to vector<32x32xbf16>
    %cst_389 = arith.constant dense<0.000000e+00> : vector<32x32xf32>
    %409 = tpu.matmul %408, %359, %cst_389 {dimension_numbers = #tpu.dot_dimension_numbers<[1], [0], [0], [1], [0, 0, 1, 1], [], []>} : vector<32x32xbf16>, vector<32x32xbf16>, vector<32x32xf32> -> vector<32x32xf32>
    %410 = arith.truncf %409 : vector<32x32xf32> to vector<32x32xbf16>
    %c6_390 = arith.constant 6 : index
    %c0_391 = arith.constant 0 : index
    %c0_392 = arith.constant 0 : index
    %411 = vector.load %arg18[%c6_390, %c0_391, %c0_392] : memref<9x32x32xbf16, #tpu.memory_space<vmem>>, vector<1x32x32xbf16>
    %412 = vector.shape_cast %411 : vector<1x32x32xbf16> to vector<32x32xbf16>
    %cst_393 = arith.constant dense<0.000000e+00> : vector<32x32xf32>
    %413 = tpu.matmul %410, %412, %cst_393 {dimension_numbers = #tpu.dot_dimension_numbers<[1], [0], [0], [1], [0, 0, 1, 1], [], []>} : vector<32x32xbf16>, vector<32x32xbf16>, vector<32x32xf32> -> vector<32x32xf32>
    %414 = arith.addf %406, %413 : vector<32x32xf32>
    %c7_394 = arith.constant 7 : index
    %c0_395 = arith.constant 0 : index
    %c0_396 = arith.constant 0 : index
    %415 = vector.load %arg2[%c7_394, %c0_395, %c0_396] : memref<9x32x32xbf16, #tpu.memory_space<vmem>>, vector<1x32x32xbf16>
    %416 = vector.shape_cast %415 : vector<1x32x32xbf16> to vector<32x32xbf16>
    %cst_397 = arith.constant dense<0.000000e+00> : vector<32x32xf32>
    %417 = tpu.matmul %416, %359, %cst_397 {dimension_numbers = #tpu.dot_dimension_numbers<[1], [0], [0], [1], [0, 0, 1, 1], [], []>} : vector<32x32xbf16>, vector<32x32xbf16>, vector<32x32xf32> -> vector<32x32xf32>
    %418 = arith.truncf %417 : vector<32x32xf32> to vector<32x32xbf16>
    %c7_398 = arith.constant 7 : index
    %c0_399 = arith.constant 0 : index
    %c0_400 = arith.constant 0 : index
    %419 = vector.load %arg18[%c7_398, %c0_399, %c0_400] : memref<9x32x32xbf16, #tpu.memory_space<vmem>>, vector<1x32x32xbf16>
    %420 = vector.shape_cast %419 : vector<1x32x32xbf16> to vector<32x32xbf16>
    %cst_401 = arith.constant dense<0.000000e+00> : vector<32x32xf32>
    %421 = tpu.matmul %418, %420, %cst_401 {dimension_numbers = #tpu.dot_dimension_numbers<[1], [0], [0], [1], [0, 0, 1, 1], [], []>} : vector<32x32xbf16>, vector<32x32xbf16>, vector<32x32xf32> -> vector<32x32xf32>
    %422 = arith.addf %414, %421 : vector<32x32xf32>
    %c8_402 = arith.constant 8 : index
    %c0_403 = arith.constant 0 : index
    %c0_404 = arith.constant 0 : index
    %423 = vector.load %arg2[%c8_402, %c0_403, %c0_404] : memref<9x32x32xbf16, #tpu.memory_space<vmem>>, vector<1x32x32xbf16>
    %424 = vector.shape_cast %423 : vector<1x32x32xbf16> to vector<32x32xbf16>
    %cst_405 = arith.constant dense<0.000000e+00> : vector<32x32xf32>
    %425 = tpu.matmul %424, %359, %cst_405 {dimension_numbers = #tpu.dot_dimension_numbers<[1], [0], [0], [1], [0, 0, 1, 1], [], []>} : vector<32x32xbf16>, vector<32x32xbf16>, vector<32x32xf32> -> vector<32x32xf32>
    %426 = arith.truncf %425 : vector<32x32xf32> to vector<32x32xbf16>
    %c8_406 = arith.constant 8 : index
    %c0_407 = arith.constant 0 : index
    %c0_408 = arith.constant 0 : index
    %427 = vector.load %arg18[%c8_406, %c0_407, %c0_408] : memref<9x32x32xbf16, #tpu.memory_space<vmem>>, vector<1x32x32xbf16>
    %428 = vector.shape_cast %427 : vector<1x32x32xbf16> to vector<32x32xbf16>
    %cst_409 = arith.constant dense<0.000000e+00> : vector<32x32xf32>
    %429 = tpu.matmul %426, %428, %cst_409 {dimension_numbers = #tpu.dot_dimension_numbers<[1], [0], [0], [1], [0, 0, 1, 1], [], []>} : vector<32x32xbf16>, vector<32x32xbf16>, vector<32x32xf32> -> vector<32x32xf32>
    %430 = arith.addf %422, %429 : vector<32x32xf32>
    %431 = arith.addf %203, %430 : vector<32x32xf32>
    %c0_410 = arith.constant 0 : index
    %c0_411 = arith.constant 0 : index
    %432 = vector.load %arg19[%c0_410, %c0_411] : memref<1x32xf32, #tpu.memory_space<vmem>>, vector<1x32xf32>
    %433 = vector.broadcast %432 : vector<1x32xf32> to vector<32x32xf32>
    %434 = arith.addf %431, %433 : vector<32x32xf32>
    %cst_412 = arith.constant 0.000000e+00 : f32
    %435 = vector.broadcast %cst_412 : f32 to vector<32x32xf32>
    %436 = arith.maximumf %434, %435 : vector<32x32xf32>
    %437 = arith.mulf %357, %52 : vector<32x32xf32>
    %cst_413 = arith.constant 1.000000e+00 : f32
    %438 = vector.broadcast %cst_413 : f32 to vector<32x32xf32>
    %439 = arith.subf %438, %357 : vector<32x32xf32>
    %440 = arith.mulf %439, %436 : vector<32x32xf32>
    %441 = arith.addf %437, %440 : vector<32x32xf32>
    %442 = arith.truncf %441 : vector<32x32xf32> to vector<32x32xbf16>
    %c0_414 = arith.constant 0 : index
    %c0_415 = arith.constant 0 : index
    %c0_416 = arith.constant 0 : index
    %443 = vector.load %arg5[%c0_414, %c0_415, %c0_416] : memref<9x128x32xbf16, #tpu.memory_space<vmem>>, vector<1x128x32xbf16>
    %444 = vector.shape_cast %443 : vector<1x128x32xbf16> to vector<128x32xbf16>
    %cst_417 = arith.constant dense<0.000000e+00> : vector<128x32xf32>
    %445 = tpu.matmul %444, %442, %cst_417 {dimension_numbers = #tpu.dot_dimension_numbers<[1], [0], [0], [1], [0, 0, 1, 1], [], []>} : vector<128x32xbf16>, vector<32x32xbf16>, vector<128x32xf32> -> vector<128x32xf32>
    %446 = arith.truncf %445 : vector<128x32xf32> to vector<128x32xbf16>
    %c0_418 = arith.constant 0 : index
    %c0_419 = arith.constant 0 : index
    %c0_420 = arith.constant 0 : index
    %447 = vector.load %arg21[%c0_418, %c0_419, %c0_420] : memref<9x32x16xbf16, #tpu.memory_space<vmem>>, vector<1x32x16xbf16>
    %448 = vector.shape_cast %447 : vector<1x32x16xbf16> to vector<32x16xbf16>
    %cst_421 = arith.constant dense<0.000000e+00> : vector<128x16xf32>
    %449 = tpu.matmul %446, %448, %cst_421 {dimension_numbers = #tpu.dot_dimension_numbers<[1], [0], [0], [1], [0, 0, 1, 1], [], []>} : vector<128x32xbf16>, vector<32x16xbf16>, vector<128x16xf32> -> vector<128x16xf32>
    %c1_422 = arith.constant 1 : index
    %c0_423 = arith.constant 0 : index
    %c0_424 = arith.constant 0 : index
    %450 = vector.load %arg5[%c1_422, %c0_423, %c0_424] : memref<9x128x32xbf16, #tpu.memory_space<vmem>>, vector<1x128x32xbf16>
    %451 = vector.shape_cast %450 : vector<1x128x32xbf16> to vector<128x32xbf16>
    %cst_425 = arith.constant dense<0.000000e+00> : vector<128x32xf32>
    %452 = tpu.matmul %451, %442, %cst_425 {dimension_numbers = #tpu.dot_dimension_numbers<[1], [0], [0], [1], [0, 0, 1, 1], [], []>} : vector<128x32xbf16>, vector<32x32xbf16>, vector<128x32xf32> -> vector<128x32xf32>
    %453 = arith.truncf %452 : vector<128x32xf32> to vector<128x32xbf16>
    %c1_426 = arith.constant 1 : index
    %c0_427 = arith.constant 0 : index
    %c0_428 = arith.constant 0 : index
    %454 = vector.load %arg21[%c1_426, %c0_427, %c0_428] : memref<9x32x16xbf16, #tpu.memory_space<vmem>>, vector<1x32x16xbf16>
    %455 = vector.shape_cast %454 : vector<1x32x16xbf16> to vector<32x16xbf16>
    %cst_429 = arith.constant dense<0.000000e+00> : vector<128x16xf32>
    %456 = tpu.matmul %453, %455, %cst_429 {dimension_numbers = #tpu.dot_dimension_numbers<[1], [0], [0], [1], [0, 0, 1, 1], [], []>} : vector<128x32xbf16>, vector<32x16xbf16>, vector<128x16xf32> -> vector<128x16xf32>
    %457 = arith.addf %449, %456 : vector<128x16xf32>
    %c2_430 = arith.constant 2 : index
    %c0_431 = arith.constant 0 : index
    %c0_432 = arith.constant 0 : index
    %458 = vector.load %arg5[%c2_430, %c0_431, %c0_432] : memref<9x128x32xbf16, #tpu.memory_space<vmem>>, vector<1x128x32xbf16>
    %459 = vector.shape_cast %458 : vector<1x128x32xbf16> to vector<128x32xbf16>
    %cst_433 = arith.constant dense<0.000000e+00> : vector<128x32xf32>
    %460 = tpu.matmul %459, %442, %cst_433 {dimension_numbers = #tpu.dot_dimension_numbers<[1], [0], [0], [1], [0, 0, 1, 1], [], []>} : vector<128x32xbf16>, vector<32x32xbf16>, vector<128x32xf32> -> vector<128x32xf32>
    %461 = arith.truncf %460 : vector<128x32xf32> to vector<128x32xbf16>
    %c2_434 = arith.constant 2 : index
    %c0_435 = arith.constant 0 : index
    %c0_436 = arith.constant 0 : index
    %462 = vector.load %arg21[%c2_434, %c0_435, %c0_436] : memref<9x32x16xbf16, #tpu.memory_space<vmem>>, vector<1x32x16xbf16>
    %463 = vector.shape_cast %462 : vector<1x32x16xbf16> to vector<32x16xbf16>
    %cst_437 = arith.constant dense<0.000000e+00> : vector<128x16xf32>
    %464 = tpu.matmul %461, %463, %cst_437 {dimension_numbers = #tpu.dot_dimension_numbers<[1], [0], [0], [1], [0, 0, 1, 1], [], []>} : vector<128x32xbf16>, vector<32x16xbf16>, vector<128x16xf32> -> vector<128x16xf32>
    %465 = arith.addf %457, %464 : vector<128x16xf32>
    %c3_438 = arith.constant 3 : index
    %c0_439 = arith.constant 0 : index
    %c0_440 = arith.constant 0 : index
    %466 = vector.load %arg5[%c3_438, %c0_439, %c0_440] : memref<9x128x32xbf16, #tpu.memory_space<vmem>>, vector<1x128x32xbf16>
    %467 = vector.shape_cast %466 : vector<1x128x32xbf16> to vector<128x32xbf16>
    %cst_441 = arith.constant dense<0.000000e+00> : vector<128x32xf32>
    %468 = tpu.matmul %467, %442, %cst_441 {dimension_numbers = #tpu.dot_dimension_numbers<[1], [0], [0], [1], [0, 0, 1, 1], [], []>} : vector<128x32xbf16>, vector<32x32xbf16>, vector<128x32xf32> -> vector<128x32xf32>
    %469 = arith.truncf %468 : vector<128x32xf32> to vector<128x32xbf16>
    %c3_442 = arith.constant 3 : index
    %c0_443 = arith.constant 0 : index
    %c0_444 = arith.constant 0 : index
    %470 = vector.load %arg21[%c3_442, %c0_443, %c0_444] : memref<9x32x16xbf16, #tpu.memory_space<vmem>>, vector<1x32x16xbf16>
    %471 = vector.shape_cast %470 : vector<1x32x16xbf16> to vector<32x16xbf16>
    %cst_445 = arith.constant dense<0.000000e+00> : vector<128x16xf32>
    %472 = tpu.matmul %469, %471, %cst_445 {dimension_numbers = #tpu.dot_dimension_numbers<[1], [0], [0], [1], [0, 0, 1, 1], [], []>} : vector<128x32xbf16>, vector<32x16xbf16>, vector<128x16xf32> -> vector<128x16xf32>
    %473 = arith.addf %465, %472 : vector<128x16xf32>
    %c4_446 = arith.constant 4 : index
    %c0_447 = arith.constant 0 : index
    %c0_448 = arith.constant 0 : index
    %474 = vector.load %arg5[%c4_446, %c0_447, %c0_448] : memref<9x128x32xbf16, #tpu.memory_space<vmem>>, vector<1x128x32xbf16>
    %475 = vector.shape_cast %474 : vector<1x128x32xbf16> to vector<128x32xbf16>
    %cst_449 = arith.constant dense<0.000000e+00> : vector<128x32xf32>
    %476 = tpu.matmul %475, %442, %cst_449 {dimension_numbers = #tpu.dot_dimension_numbers<[1], [0], [0], [1], [0, 0, 1, 1], [], []>} : vector<128x32xbf16>, vector<32x32xbf16>, vector<128x32xf32> -> vector<128x32xf32>
    %477 = arith.truncf %476 : vector<128x32xf32> to vector<128x32xbf16>
    %c4_450 = arith.constant 4 : index
    %c0_451 = arith.constant 0 : index
    %c0_452 = arith.constant 0 : index
    %478 = vector.load %arg21[%c4_450, %c0_451, %c0_452] : memref<9x32x16xbf16, #tpu.memory_space<vmem>>, vector<1x32x16xbf16>
    %479 = vector.shape_cast %478 : vector<1x32x16xbf16> to vector<32x16xbf16>
    %cst_453 = arith.constant dense<0.000000e+00> : vector<128x16xf32>
    %480 = tpu.matmul %477, %479, %cst_453 {dimension_numbers = #tpu.dot_dimension_numbers<[1], [0], [0], [1], [0, 0, 1, 1], [], []>} : vector<128x32xbf16>, vector<32x16xbf16>, vector<128x16xf32> -> vector<128x16xf32>
    %481 = arith.addf %473, %480 : vector<128x16xf32>
    %c5_454 = arith.constant 5 : index
    %c0_455 = arith.constant 0 : index
    %c0_456 = arith.constant 0 : index
    %482 = vector.load %arg5[%c5_454, %c0_455, %c0_456] : memref<9x128x32xbf16, #tpu.memory_space<vmem>>, vector<1x128x32xbf16>
    %483 = vector.shape_cast %482 : vector<1x128x32xbf16> to vector<128x32xbf16>
    %cst_457 = arith.constant dense<0.000000e+00> : vector<128x32xf32>
    %484 = tpu.matmul %483, %442, %cst_457 {dimension_numbers = #tpu.dot_dimension_numbers<[1], [0], [0], [1], [0, 0, 1, 1], [], []>} : vector<128x32xbf16>, vector<32x32xbf16>, vector<128x32xf32> -> vector<128x32xf32>
    %485 = arith.truncf %484 : vector<128x32xf32> to vector<128x32xbf16>
    %c5_458 = arith.constant 5 : index
    %c0_459 = arith.constant 0 : index
    %c0_460 = arith.constant 0 : index
    %486 = vector.load %arg21[%c5_458, %c0_459, %c0_460] : memref<9x32x16xbf16, #tpu.memory_space<vmem>>, vector<1x32x16xbf16>
    %487 = vector.shape_cast %486 : vector<1x32x16xbf16> to vector<32x16xbf16>
    %cst_461 = arith.constant dense<0.000000e+00> : vector<128x16xf32>
    %488 = tpu.matmul %485, %487, %cst_461 {dimension_numbers = #tpu.dot_dimension_numbers<[1], [0], [0], [1], [0, 0, 1, 1], [], []>} : vector<128x32xbf16>, vector<32x16xbf16>, vector<128x16xf32> -> vector<128x16xf32>
    %489 = arith.addf %481, %488 : vector<128x16xf32>
    %c6_462 = arith.constant 6 : index
    %c0_463 = arith.constant 0 : index
    %c0_464 = arith.constant 0 : index
    %490 = vector.load %arg5[%c6_462, %c0_463, %c0_464] : memref<9x128x32xbf16, #tpu.memory_space<vmem>>, vector<1x128x32xbf16>
    %491 = vector.shape_cast %490 : vector<1x128x32xbf16> to vector<128x32xbf16>
    %cst_465 = arith.constant dense<0.000000e+00> : vector<128x32xf32>
    %492 = tpu.matmul %491, %442, %cst_465 {dimension_numbers = #tpu.dot_dimension_numbers<[1], [0], [0], [1], [0, 0, 1, 1], [], []>} : vector<128x32xbf16>, vector<32x32xbf16>, vector<128x32xf32> -> vector<128x32xf32>
    %493 = arith.truncf %492 : vector<128x32xf32> to vector<128x32xbf16>
    %c6_466 = arith.constant 6 : index
    %c0_467 = arith.constant 0 : index
    %c0_468 = arith.constant 0 : index
    %494 = vector.load %arg21[%c6_466, %c0_467, %c0_468] : memref<9x32x16xbf16, #tpu.memory_space<vmem>>, vector<1x32x16xbf16>
    %495 = vector.shape_cast %494 : vector<1x32x16xbf16> to vector<32x16xbf16>
    %cst_469 = arith.constant dense<0.000000e+00> : vector<128x16xf32>
    %496 = tpu.matmul %493, %495, %cst_469 {dimension_numbers = #tpu.dot_dimension_numbers<[1], [0], [0], [1], [0, 0, 1, 1], [], []>} : vector<128x32xbf16>, vector<32x16xbf16>, vector<128x16xf32> -> vector<128x16xf32>
    %497 = arith.addf %489, %496 : vector<128x16xf32>
    %c7_470 = arith.constant 7 : index
    %c0_471 = arith.constant 0 : index
    %c0_472 = arith.constant 0 : index
    %498 = vector.load %arg5[%c7_470, %c0_471, %c0_472] : memref<9x128x32xbf16, #tpu.memory_space<vmem>>, vector<1x128x32xbf16>
    %499 = vector.shape_cast %498 : vector<1x128x32xbf16> to vector<128x32xbf16>
    %cst_473 = arith.constant dense<0.000000e+00> : vector<128x32xf32>
    %500 = tpu.matmul %499, %442, %cst_473 {dimension_numbers = #tpu.dot_dimension_numbers<[1], [0], [0], [1], [0, 0, 1, 1], [], []>} : vector<128x32xbf16>, vector<32x32xbf16>, vector<128x32xf32> -> vector<128x32xf32>
    %501 = arith.truncf %500 : vector<128x32xf32> to vector<128x32xbf16>
    %c7_474 = arith.constant 7 : index
    %c0_475 = arith.constant 0 : index
    %c0_476 = arith.constant 0 : index
    %502 = vector.load %arg21[%c7_474, %c0_475, %c0_476] : memref<9x32x16xbf16, #tpu.memory_space<vmem>>, vector<1x32x16xbf16>
    %503 = vector.shape_cast %502 : vector<1x32x16xbf16> to vector<32x16xbf16>
    %cst_477 = arith.constant dense<0.000000e+00> : vector<128x16xf32>
    %504 = tpu.matmul %501, %503, %cst_477 {dimension_numbers = #tpu.dot_dimension_numbers<[1], [0], [0], [1], [0, 0, 1, 1], [], []>} : vector<128x32xbf16>, vector<32x16xbf16>, vector<128x16xf32> -> vector<128x16xf32>
    %505 = arith.addf %497, %504 : vector<128x16xf32>
    %c8_478 = arith.constant 8 : index
    %c0_479 = arith.constant 0 : index
    %c0_480 = arith.constant 0 : index
    %506 = vector.load %arg5[%c8_478, %c0_479, %c0_480] : memref<9x128x32xbf16, #tpu.memory_space<vmem>>, vector<1x128x32xbf16>
    %507 = vector.shape_cast %506 : vector<1x128x32xbf16> to vector<128x32xbf16>
    %cst_481 = arith.constant dense<0.000000e+00> : vector<128x32xf32>
    %508 = tpu.matmul %507, %442, %cst_481 {dimension_numbers = #tpu.dot_dimension_numbers<[1], [0], [0], [1], [0, 0, 1, 1], [], []>} : vector<128x32xbf16>, vector<32x32xbf16>, vector<128x32xf32> -> vector<128x32xf32>
    %509 = arith.truncf %508 : vector<128x32xf32> to vector<128x32xbf16>
    %c8_482 = arith.constant 8 : index
    %c0_483 = arith.constant 0 : index
    %c0_484 = arith.constant 0 : index
    %510 = vector.load %arg21[%c8_482, %c0_483, %c0_484] : memref<9x32x16xbf16, #tpu.memory_space<vmem>>, vector<1x32x16xbf16>
    %511 = vector.shape_cast %510 : vector<1x32x16xbf16> to vector<32x16xbf16>
    %cst_485 = arith.constant dense<0.000000e+00> : vector<128x16xf32>
    %512 = tpu.matmul %509, %511, %cst_485 {dimension_numbers = #tpu.dot_dimension_numbers<[1], [0], [0], [1], [0, 0, 1, 1], [], []>} : vector<128x32xbf16>, vector<32x16xbf16>, vector<128x16xf32> -> vector<128x16xf32>
    %513 = arith.addf %505, %512 : vector<128x16xf32>
    %514 = arith.addf %274, %513 : vector<128x16xf32>
    %c0_486 = arith.constant 0 : index
    %c0_487 = arith.constant 0 : index
    %515 = vector.load %arg22[%c0_486, %c0_487] : memref<1x16xf32, #tpu.memory_space<vmem>>, vector<1x16xf32>
    %516 = vector.broadcast %515 : vector<1x16xf32> to vector<128x16xf32>
    %517 = arith.addf %514, %516 : vector<128x16xf32>
    %cst_488 = arith.constant 0.000000e+00 : f32
    %518 = vector.broadcast %cst_488 : f32 to vector<128x16xf32>
    %519 = arith.maximumf %517, %518 : vector<128x16xf32>
    %520 = arith.truncf %519 : vector<128x16xf32> to vector<128x16xbf16>
    %c0_489 = arith.constant 0 : index
    %c0_490 = arith.constant 0 : index
    %521 = vector.load %arg23[%c0_489, %c0_490] : memref<16x4xbf16, #tpu.memory_space<vmem>>, vector<16x4xbf16>
    %cst_491 = arith.constant dense<0.000000e+00> : vector<128x4xf32>
    %522 = tpu.matmul %520, %521, %cst_491 {dimension_numbers = #tpu.dot_dimension_numbers<[1], [0], [0], [1], [0, 0, 1, 1], [], []>} : vector<128x16xbf16>, vector<16x4xbf16>, vector<128x4xf32> -> vector<128x4xf32>
    %c0_492 = arith.constant 0 : index
    %c0_493 = arith.constant 0 : index
    %523 = vector.load %arg24[%c0_492, %c0_493] : memref<1x4xf32, #tpu.memory_space<vmem>>, vector<1x4xf32>
    %524 = vector.broadcast %523 : vector<1x4xf32> to vector<128x4xf32>
    %525 = arith.addf %522, %524 : vector<128x4xf32>
    %c0_494 = arith.constant 0 : index
    %c0_495 = arith.constant 0 : index
    %c0_496 = arith.constant 0 : index
    %526 = vector.load %arg25[%c0_494, %c0_495, %c0_496] : memref<2x128x4xf32, #tpu.memory_space<vmem>>, vector<1x128x4xf32>
    %527 = vector.shape_cast %526 : vector<1x128x4xf32> to vector<128x4xf32>
    %528 = vector.shape_cast %525 : vector<128x4xf32> to vector<1x128x4xf32>
    tpu.vector_store %arg25[%c0_494, %c0_495, %c0_496], %528 {strides = array<i32>} : memref<2x128x4xf32, #tpu.memory_space<vmem>>, vector<1x128x4xf32>,
    %529 = arith.truncf %441 : vector<32x32xf32> to vector<32x32xbf16>
    %c0_497 = arith.constant 0 : index
    %c0_498 = arith.constant 0 : index
    %c0_499 = arith.constant 0 : index
    %530 = vector.load %arg2[%c0_497, %c0_498, %c0_499] : memref<9x32x32xbf16, #tpu.memory_space<vmem>>, vector<1x32x32xbf16>
    %531 = vector.shape_cast %530 : vector<1x32x32xbf16> to vector<32x32xbf16>
    %cst_500 = arith.constant dense<0.000000e+00> : vector<32x32xf32>
    %532 = tpu.matmul %531, %529, %cst_500 {dimension_numbers = #tpu.dot_dimension_numbers<[1], [0], [0], [1], [0, 0, 1, 1], [], []>} : vector<32x32xbf16>, vector<32x32xbf16>, vector<32x32xf32> -> vector<32x32xf32>
    %533 = arith.truncf %532 : vector<32x32xf32> to vector<32x32xbf16>
    %c0_501 = arith.constant 0 : index
    %c0_502 = arith.constant 0 : index
    %c0_503 = arith.constant 0 : index
    %534 = vector.load %arg15[%c0_501, %c0_502, %c0_503] : memref<9x32x64xbf16, #tpu.memory_space<vmem>>, vector<1x32x64xbf16>
    %535 = vector.shape_cast %534 : vector<1x32x64xbf16> to vector<32x64xbf16>
    %cst_504 = arith.constant dense<0.000000e+00> : vector<32x64xf32>
    %536 = tpu.matmul %533, %535, %cst_504 {dimension_numbers = #tpu.dot_dimension_numbers<[1], [0], [0], [1], [0, 0, 1, 1], [], []>} : vector<32x32xbf16>, vector<32x64xbf16>, vector<32x64xf32> -> vector<32x64xf32>
    %c1_505 = arith.constant 1 : index
    %c0_506 = arith.constant 0 : index
    %c0_507 = arith.constant 0 : index
    %537 = vector.load %arg2[%c1_505, %c0_506, %c0_507] : memref<9x32x32xbf16, #tpu.memory_space<vmem>>, vector<1x32x32xbf16>
    %538 = vector.shape_cast %537 : vector<1x32x32xbf16> to vector<32x32xbf16>
    %cst_508 = arith.constant dense<0.000000e+00> : vector<32x32xf32>
    %539 = tpu.matmul %538, %529, %cst_508 {dimension_numbers = #tpu.dot_dimension_numbers<[1], [0], [0], [1], [0, 0, 1, 1], [], []>} : vector<32x32xbf16>, vector<32x32xbf16>, vector<32x32xf32> -> vector<32x32xf32>
    %540 = arith.truncf %539 : vector<32x32xf32> to vector<32x32xbf16>
    %c1_509 = arith.constant 1 : index
    %c0_510 = arith.constant 0 : index
    %c0_511 = arith.constant 0 : index
    %541 = vector.load %arg15[%c1_509, %c0_510, %c0_511] : memref<9x32x64xbf16, #tpu.memory_space<vmem>>, vector<1x32x64xbf16>
    %542 = vector.shape_cast %541 : vector<1x32x64xbf16> to vector<32x64xbf16>
    %cst_512 = arith.constant dense<0.000000e+00> : vector<32x64xf32>
    %543 = tpu.matmul %540, %542, %cst_512 {dimension_numbers = #tpu.dot_dimension_numbers<[1], [0], [0], [1], [0, 0, 1, 1], [], []>} : vector<32x32xbf16>, vector<32x64xbf16>, vector<32x64xf32> -> vector<32x64xf32>
    %544 = arith.addf %536, %543 : vector<32x64xf32>
    %c2_513 = arith.constant 2 : index
    %c0_514 = arith.constant 0 : index
    %c0_515 = arith.constant 0 : index
    %545 = vector.load %arg2[%c2_513, %c0_514, %c0_515] : memref<9x32x32xbf16, #tpu.memory_space<vmem>>, vector<1x32x32xbf16>
    %546 = vector.shape_cast %545 : vector<1x32x32xbf16> to vector<32x32xbf16>
    %cst_516 = arith.constant dense<0.000000e+00> : vector<32x32xf32>
    %547 = tpu.matmul %546, %529, %cst_516 {dimension_numbers = #tpu.dot_dimension_numbers<[1], [0], [0], [1], [0, 0, 1, 1], [], []>} : vector<32x32xbf16>, vector<32x32xbf16>, vector<32x32xf32> -> vector<32x32xf32>
    %548 = arith.truncf %547 : vector<32x32xf32> to vector<32x32xbf16>
    %c2_517 = arith.constant 2 : index
    %c0_518 = arith.constant 0 : index
    %c0_519 = arith.constant 0 : index
    %549 = vector.load %arg15[%c2_517, %c0_518, %c0_519] : memref<9x32x64xbf16, #tpu.memory_space<vmem>>, vector<1x32x64xbf16>
    %550 = vector.shape_cast %549 : vector<1x32x64xbf16> to vector<32x64xbf16>
    %cst_520 = arith.constant dense<0.000000e+00> : vector<32x64xf32>
    %551 = tpu.matmul %548, %550, %cst_520 {dimension_numbers = #tpu.dot_dimension_numbers<[1], [0], [0], [1], [0, 0, 1, 1], [], []>} : vector<32x32xbf16>, vector<32x64xbf16>, vector<32x64xf32> -> vector<32x64xf32>
    %552 = arith.addf %544, %551 : vector<32x64xf32>
    %c3_521 = arith.constant 3 : index
    %c0_522 = arith.constant 0 : index
    %c0_523 = arith.constant 0 : index
    %553 = vector.load %arg2[%c3_521, %c0_522, %c0_523] : memref<9x32x32xbf16, #tpu.memory_space<vmem>>, vector<1x32x32xbf16>
    %554 = vector.shape_cast %553 : vector<1x32x32xbf16> to vector<32x32xbf16>
    %cst_524 = arith.constant dense<0.000000e+00> : vector<32x32xf32>
    %555 = tpu.matmul %554, %529, %cst_524 {dimension_numbers = #tpu.dot_dimension_numbers<[1], [0], [0], [1], [0, 0, 1, 1], [], []>} : vector<32x32xbf16>, vector<32x32xbf16>, vector<32x32xf32> -> vector<32x32xf32>
    %556 = arith.truncf %555 : vector<32x32xf32> to vector<32x32xbf16>
    %c3_525 = arith.constant 3 : index
    %c0_526 = arith.constant 0 : index
    %c0_527 = arith.constant 0 : index
    %557 = vector.load %arg15[%c3_525, %c0_526, %c0_527] : memref<9x32x64xbf16, #tpu.memory_space<vmem>>, vector<1x32x64xbf16>
    %558 = vector.shape_cast %557 : vector<1x32x64xbf16> to vector<32x64xbf16>
    %cst_528 = arith.constant dense<0.000000e+00> : vector<32x64xf32>
    %559 = tpu.matmul %556, %558, %cst_528 {dimension_numbers = #tpu.dot_dimension_numbers<[1], [0], [0], [1], [0, 0, 1, 1], [], []>} : vector<32x32xbf16>, vector<32x64xbf16>, vector<32x64xf32> -> vector<32x64xf32>
    %560 = arith.addf %552, %559 : vector<32x64xf32>
    %c4_529 = arith.constant 4 : index
    %c0_530 = arith.constant 0 : index
    %c0_531 = arith.constant 0 : index
    %561 = vector.load %arg2[%c4_529, %c0_530, %c0_531] : memref<9x32x32xbf16, #tpu.memory_space<vmem>>, vector<1x32x32xbf16>
    %562 = vector.shape_cast %561 : vector<1x32x32xbf16> to vector<32x32xbf16>
    %cst_532 = arith.constant dense<0.000000e+00> : vector<32x32xf32>
    %563 = tpu.matmul %562, %529, %cst_532 {dimension_numbers = #tpu.dot_dimension_numbers<[1], [0], [0], [1], [0, 0, 1, 1], [], []>} : vector<32x32xbf16>, vector<32x32xbf16>, vector<32x32xf32> -> vector<32x32xf32>
    %564 = arith.truncf %563 : vector<32x32xf32> to vector<32x32xbf16>
    %c4_533 = arith.constant 4 : index
    %c0_534 = arith.constant 0 : index
    %c0_535 = arith.constant 0 : index
    %565 = vector.load %arg15[%c4_533, %c0_534, %c0_535] : memref<9x32x64xbf16, #tpu.memory_space<vmem>>, vector<1x32x64xbf16>
    %566 = vector.shape_cast %565 : vector<1x32x64xbf16> to vector<32x64xbf16>
    %cst_536 = arith.constant dense<0.000000e+00> : vector<32x64xf32>
    %567 = tpu.matmul %564, %566, %cst_536 {dimension_numbers = #tpu.dot_dimension_numbers<[1], [0], [0], [1], [0, 0, 1, 1], [], []>} : vector<32x32xbf16>, vector<32x64xbf16>, vector<32x64xf32> -> vector<32x64xf32>
    %568 = arith.addf %560, %567 : vector<32x64xf32>
    %c5_537 = arith.constant 5 : index
    %c0_538 = arith.constant 0 : index
    %c0_539 = arith.constant 0 : index
    %569 = vector.load %arg2[%c5_537, %c0_538, %c0_539] : memref<9x32x32xbf16, #tpu.memory_space<vmem>>, vector<1x32x32xbf16>
    %570 = vector.shape_cast %569 : vector<1x32x32xbf16> to vector<32x32xbf16>
    %cst_540 = arith.constant dense<0.000000e+00> : vector<32x32xf32>
    %571 = tpu.matmul %570, %529, %cst_540 {dimension_numbers = #tpu.dot_dimension_numbers<[1], [0], [0], [1], [0, 0, 1, 1], [], []>} : vector<32x32xbf16>, vector<32x32xbf16>, vector<32x32xf32> -> vector<32x32xf32>
    %572 = arith.truncf %571 : vector<32x32xf32> to vector<32x32xbf16>
    %c5_541 = arith.constant 5 : index
    %c0_542 = arith.constant 0 : index
    %c0_543 = arith.constant 0 : index
    %573 = vector.load %arg15[%c5_541, %c0_542, %c0_543] : memref<9x32x64xbf16, #tpu.memory_space<vmem>>, vector<1x32x64xbf16>
    %574 = vector.shape_cast %573 : vector<1x32x64xbf16> to vector<32x64xbf16>
    %cst_544 = arith.constant dense<0.000000e+00> : vector<32x64xf32>
    %575 = tpu.matmul %572, %574, %cst_544 {dimension_numbers = #tpu.dot_dimension_numbers<[1], [0], [0], [1], [0, 0, 1, 1], [], []>} : vector<32x32xbf16>, vector<32x64xbf16>, vector<32x64xf32> -> vector<32x64xf32>
    %576 = arith.addf %568, %575 : vector<32x64xf32>
    %c6_545 = arith.constant 6 : index
    %c0_546 = arith.constant 0 : index
    %c0_547 = arith.constant 0 : index
    %577 = vector.load %arg2[%c6_545, %c0_546, %c0_547] : memref<9x32x32xbf16, #tpu.memory_space<vmem>>, vector<1x32x32xbf16>
    %578 = vector.shape_cast %577 : vector<1x32x32xbf16> to vector<32x32xbf16>
    %cst_548 = arith.constant dense<0.000000e+00> : vector<32x32xf32>
    %579 = tpu.matmul %578, %529, %cst_548 {dimension_numbers = #tpu.dot_dimension_numbers<[1], [0], [0], [1], [0, 0, 1, 1], [], []>} : vector<32x32xbf16>, vector<32x32xbf16>, vector<32x32xf32> -> vector<32x32xf32>
    %580 = arith.truncf %579 : vector<32x32xf32> to vector<32x32xbf16>
    %c6_549 = arith.constant 6 : index
    %c0_550 = arith.constant 0 : index
    %c0_551 = arith.constant 0 : index
    %581 = vector.load %arg15[%c6_549, %c0_550, %c0_551] : memref<9x32x64xbf16, #tpu.memory_space<vmem>>, vector<1x32x64xbf16>
    %582 = vector.shape_cast %581 : vector<1x32x64xbf16> to vector<32x64xbf16>
    %cst_552 = arith.constant dense<0.000000e+00> : vector<32x64xf32>
    %583 = tpu.matmul %580, %582, %cst_552 {dimension_numbers = #tpu.dot_dimension_numbers<[1], [0], [0], [1], [0, 0, 1, 1], [], []>} : vector<32x32xbf16>, vector<32x64xbf16>, vector<32x64xf32> -> vector<32x64xf32>
    %584 = arith.addf %576, %583 : vector<32x64xf32>
    %c7_553 = arith.constant 7 : index
    %c0_554 = arith.constant 0 : index
    %c0_555 = arith.constant 0 : index
    %585 = vector.load %arg2[%c7_553, %c0_554, %c0_555] : memref<9x32x32xbf16, #tpu.memory_space<vmem>>, vector<1x32x32xbf16>
    %586 = vector.shape_cast %585 : vector<1x32x32xbf16> to vector<32x32xbf16>
    %cst_556 = arith.constant dense<0.000000e+00> : vector<32x32xf32>
    %587 = tpu.matmul %586, %529, %cst_556 {dimension_numbers = #tpu.dot_dimension_numbers<[1], [0], [0], [1], [0, 0, 1, 1], [], []>} : vector<32x32xbf16>, vector<32x32xbf16>, vector<32x32xf32> -> vector<32x32xf32>
    %588 = arith.truncf %587 : vector<32x32xf32> to vector<32x32xbf16>
    %c7_557 = arith.constant 7 : index
    %c0_558 = arith.constant 0 : index
    %c0_559 = arith.constant 0 : index
    %589 = vector.load %arg15[%c7_557, %c0_558, %c0_559] : memref<9x32x64xbf16, #tpu.memory_space<vmem>>, vector<1x32x64xbf16>
    %590 = vector.shape_cast %589 : vector<1x32x64xbf16> to vector<32x64xbf16>
    %cst_560 = arith.constant dense<0.000000e+00> : vector<32x64xf32>
    %591 = tpu.matmul %588, %590, %cst_560 {dimension_numbers = #tpu.dot_dimension_numbers<[1], [0], [0], [1], [0, 0, 1, 1], [], []>} : vector<32x32xbf16>, vector<32x64xbf16>, vector<32x64xf32> -> vector<32x64xf32>
    %592 = arith.addf %584, %591 : vector<32x64xf32>
    %c8_561 = arith.constant 8 : index
    %c0_562 = arith.constant 0 : index
    %c0_563 = arith.constant 0 : index
    %593 = vector.load %arg2[%c8_561, %c0_562, %c0_563] : memref<9x32x32xbf16, #tpu.memory_space<vmem>>, vector<1x32x32xbf16>
    %594 = vector.shape_cast %593 : vector<1x32x32xbf16> to vector<32x32xbf16>
    %cst_564 = arith.constant dense<0.000000e+00> : vector<32x32xf32>
    %595 = tpu.matmul %594, %529, %cst_564 {dimension_numbers = #tpu.dot_dimension_numbers<[1], [0], [0], [1], [0, 0, 1, 1], [], []>} : vector<32x32xbf16>, vector<32x32xbf16>, vector<32x32xf32> -> vector<32x32xf32>
    %596 = arith.truncf %595 : vector<32x32xf32> to vector<32x32xbf16>
    %c8_565 = arith.constant 8 : index
    %c0_566 = arith.constant 0 : index
    %c0_567 = arith.constant 0 : index
    %597 = vector.load %arg15[%c8_565, %c0_566, %c0_567] : memref<9x32x64xbf16, #tpu.memory_space<vmem>>, vector<1x32x64xbf16>
    %598 = vector.shape_cast %597 : vector<1x32x64xbf16> to vector<32x64xbf16>
    %cst_568 = arith.constant dense<0.000000e+00> : vector<32x64xf32>
    %599 = tpu.matmul %596, %598, %cst_568 {dimension_numbers = #tpu.dot_dimension_numbers<[1], [0], [0], [1], [0, 0, 1, 1], [], []>} : vector<32x32xbf16>, vector<32x64xbf16>, vector<32x64xf32> -> vector<32x64xf32>
    %600 = arith.addf %592, %599 : vector<32x64xf32>
    %601 = arith.addf %132, %600 : vector<32x64xf32>
    %c0_569 = arith.constant 0 : index
    %c0_570 = arith.constant 0 : index
    %602 = vector.load %arg16[%c0_569, %c0_570] : memref<1x64xf32, #tpu.memory_space<vmem>>, vector<1x64xf32>
    %603 = vector.broadcast %602 : vector<1x64xf32> to vector<32x64xf32>
    %604 = arith.addf %601, %603 : vector<32x64xf32>
    %605 = arith.negf %604 : vector<32x64xf32>
    %606 = math.exp %605 : vector<32x64xf32>
    %cst_571 = arith.constant 1.000000e+00 : f32
    %607 = vector.broadcast %cst_571 : f32 to vector<32x64xf32>
    %608 = arith.addf %607, %606 : vector<32x64xf32>
    %609 = arith.divf %607, %608 : vector<32x64xf32>
    %610 = vector.extract_strided_slice %609 {offsets = [0, 0], sizes = [32, 32], strides = [1, 1]} : vector<32x64xf32> to vector<32x32xf32>
    %611 = vector.extract_strided_slice %609 {offsets = [0, 32], sizes = [32, 32], strides = [1, 1]} : vector<32x64xf32> to vector<32x32xf32>
    %612 = arith.mulf %610, %441 : vector<32x32xf32>
    %613 = arith.truncf %612 : vector<32x32xf32> to vector<32x32xbf16>
    %c0_572 = arith.constant 0 : index
    %c0_573 = arith.constant 0 : index
    %c0_574 = arith.constant 0 : index
    %614 = vector.load %arg2[%c0_572, %c0_573, %c0_574] : memref<9x32x32xbf16, #tpu.memory_space<vmem>>, vector<1x32x32xbf16>
    %615 = vector.shape_cast %614 : vector<1x32x32xbf16> to vector<32x32xbf16>
    %cst_575 = arith.constant dense<0.000000e+00> : vector<32x32xf32>
    %616 = tpu.matmul %615, %613, %cst_575 {dimension_numbers = #tpu.dot_dimension_numbers<[1], [0], [0], [1], [0, 0, 1, 1], [], []>} : vector<32x32xbf16>, vector<32x32xbf16>, vector<32x32xf32> -> vector<32x32xf32>
    %617 = arith.truncf %616 : vector<32x32xf32> to vector<32x32xbf16>
    %c0_576 = arith.constant 0 : index
    %c0_577 = arith.constant 0 : index
    %c0_578 = arith.constant 0 : index
    %618 = vector.load %arg18[%c0_576, %c0_577, %c0_578] : memref<9x32x32xbf16, #tpu.memory_space<vmem>>, vector<1x32x32xbf16>
    %619 = vector.shape_cast %618 : vector<1x32x32xbf16> to vector<32x32xbf16>
    %cst_579 = arith.constant dense<0.000000e+00> : vector<32x32xf32>
    %620 = tpu.matmul %617, %619, %cst_579 {dimension_numbers = #tpu.dot_dimension_numbers<[1], [0], [0], [1], [0, 0, 1, 1], [], []>} : vector<32x32xbf16>, vector<32x32xbf16>, vector<32x32xf32> -> vector<32x32xf32>
    %c1_580 = arith.constant 1 : index
    %c0_581 = arith.constant 0 : index
    %c0_582 = arith.constant 0 : index
    %621 = vector.load %arg2[%c1_580, %c0_581, %c0_582] : memref<9x32x32xbf16, #tpu.memory_space<vmem>>, vector<1x32x32xbf16>
    %622 = vector.shape_cast %621 : vector<1x32x32xbf16> to vector<32x32xbf16>
    %cst_583 = arith.constant dense<0.000000e+00> : vector<32x32xf32>
    %623 = tpu.matmul %622, %613, %cst_583 {dimension_numbers = #tpu.dot_dimension_numbers<[1], [0], [0], [1], [0, 0, 1, 1], [], []>} : vector<32x32xbf16>, vector<32x32xbf16>, vector<32x32xf32> -> vector<32x32xf32>
    %624 = arith.truncf %623 : vector<32x32xf32> to vector<32x32xbf16>
    %c1_584 = arith.constant 1 : index
    %c0_585 = arith.constant 0 : index
    %c0_586 = arith.constant 0 : index
    %625 = vector.load %arg18[%c1_584, %c0_585, %c0_586] : memref<9x32x32xbf16, #tpu.memory_space<vmem>>, vector<1x32x32xbf16>
    %626 = vector.shape_cast %625 : vector<1x32x32xbf16> to vector<32x32xbf16>
    %cst_587 = arith.constant dense<0.000000e+00> : vector<32x32xf32>
    %627 = tpu.matmul %624, %626, %cst_587 {dimension_numbers = #tpu.dot_dimension_numbers<[1], [0], [0], [1], [0, 0, 1, 1], [], []>} : vector<32x32xbf16>, vector<32x32xbf16>, vector<32x32xf32> -> vector<32x32xf32>
    %628 = arith.addf %620, %627 : vector<32x32xf32>
    %c2_588 = arith.constant 2 : index
    %c0_589 = arith.constant 0 : index
    %c0_590 = arith.constant 0 : index
    %629 = vector.load %arg2[%c2_588, %c0_589, %c0_590] : memref<9x32x32xbf16, #tpu.memory_space<vmem>>, vector<1x32x32xbf16>
    %630 = vector.shape_cast %629 : vector<1x32x32xbf16> to vector<32x32xbf16>
    %cst_591 = arith.constant dense<0.000000e+00> : vector<32x32xf32>
    %631 = tpu.matmul %630, %613, %cst_591 {dimension_numbers = #tpu.dot_dimension_numbers<[1], [0], [0], [1], [0, 0, 1, 1], [], []>} : vector<32x32xbf16>, vector<32x32xbf16>, vector<32x32xf32> -> vector<32x32xf32>
    %632 = arith.truncf %631 : vector<32x32xf32> to vector<32x32xbf16>
    %c2_592 = arith.constant 2 : index
    %c0_593 = arith.constant 0 : index
    %c0_594 = arith.constant 0 : index
    %633 = vector.load %arg18[%c2_592, %c0_593, %c0_594] : memref<9x32x32xbf16, #tpu.memory_space<vmem>>, vector<1x32x32xbf16>
    %634 = vector.shape_cast %633 : vector<1x32x32xbf16> to vector<32x32xbf16>
    %cst_595 = arith.constant dense<0.000000e+00> : vector<32x32xf32>
    %635 = tpu.matmul %632, %634, %cst_595 {dimension_numbers = #tpu.dot_dimension_numbers<[1], [0], [0], [1], [0, 0, 1, 1], [], []>} : vector<32x32xbf16>, vector<32x32xbf16>, vector<32x32xf32> -> vector<32x32xf32>
    %636 = arith.addf %628, %635 : vector<32x32xf32>
    %c3_596 = arith.constant 3 : index
    %c0_597 = arith.constant 0 : index
    %c0_598 = arith.constant 0 : index
    %637 = vector.load %arg2[%c3_596, %c0_597, %c0_598] : memref<9x32x32xbf16, #tpu.memory_space<vmem>>, vector<1x32x32xbf16>
    %638 = vector.shape_cast %637 : vector<1x32x32xbf16> to vector<32x32xbf16>
    %cst_599 = arith.constant dense<0.000000e+00> : vector<32x32xf32>
    %639 = tpu.matmul %638, %613, %cst_599 {dimension_numbers = #tpu.dot_dimension_numbers<[1], [0], [0], [1], [0, 0, 1, 1], [], []>} : vector<32x32xbf16>, vector<32x32xbf16>, vector<32x32xf32> -> vector<32x32xf32>
    %640 = arith.truncf %639 : vector<32x32xf32> to vector<32x32xbf16>
    %c3_600 = arith.constant 3 : index
    %c0_601 = arith.constant 0 : index
    %c0_602 = arith.constant 0 : index
    %641 = vector.load %arg18[%c3_600, %c0_601, %c0_602] : memref<9x32x32xbf16, #tpu.memory_space<vmem>>, vector<1x32x32xbf16>
    %642 = vector.shape_cast %641 : vector<1x32x32xbf16> to vector<32x32xbf16>
    %cst_603 = arith.constant dense<0.000000e+00> : vector<32x32xf32>
    %643 = tpu.matmul %640, %642, %cst_603 {dimension_numbers = #tpu.dot_dimension_numbers<[1], [0], [0], [1], [0, 0, 1, 1], [], []>} : vector<32x32xbf16>, vector<32x32xbf16>, vector<32x32xf32> -> vector<32x32xf32>
    %644 = arith.addf %636, %643 : vector<32x32xf32>
    %c4_604 = arith.constant 4 : index
    %c0_605 = arith.constant 0 : index
    %c0_606 = arith.constant 0 : index
    %645 = vector.load %arg2[%c4_604, %c0_605, %c0_606] : memref<9x32x32xbf16, #tpu.memory_space<vmem>>, vector<1x32x32xbf16>
    %646 = vector.shape_cast %645 : vector<1x32x32xbf16> to vector<32x32xbf16>
    %cst_607 = arith.constant dense<0.000000e+00> : vector<32x32xf32>
    %647 = tpu.matmul %646, %613, %cst_607 {dimension_numbers = #tpu.dot_dimension_numbers<[1], [0], [0], [1], [0, 0, 1, 1], [], []>} : vector<32x32xbf16>, vector<32x32xbf16>, vector<32x32xf32> -> vector<32x32xf32>
    %648 = arith.truncf %647 : vector<32x32xf32> to vector<32x32xbf16>
    %c4_608 = arith.constant 4 : index
    %c0_609 = arith.constant 0 : index
    %c0_610 = arith.constant 0 : index
    %649 = vector.load %arg18[%c4_608, %c0_609, %c0_610] : memref<9x32x32xbf16, #tpu.memory_space<vmem>>, vector<1x32x32xbf16>
    %650 = vector.shape_cast %649 : vector<1x32x32xbf16> to vector<32x32xbf16>
    %cst_611 = arith.constant dense<0.000000e+00> : vector<32x32xf32>
    %651 = tpu.matmul %648, %650, %cst_611 {dimension_numbers = #tpu.dot_dimension_numbers<[1], [0], [0], [1], [0, 0, 1, 1], [], []>} : vector<32x32xbf16>, vector<32x32xbf16>, vector<32x32xf32> -> vector<32x32xf32>
    %652 = arith.addf %644, %651 : vector<32x32xf32>
    %c5_612 = arith.constant 5 : index
    %c0_613 = arith.constant 0 : index
    %c0_614 = arith.constant 0 : index
    %653 = vector.load %arg2[%c5_612, %c0_613, %c0_614] : memref<9x32x32xbf16, #tpu.memory_space<vmem>>, vector<1x32x32xbf16>
    %654 = vector.shape_cast %653 : vector<1x32x32xbf16> to vector<32x32xbf16>
    %cst_615 = arith.constant dense<0.000000e+00> : vector<32x32xf32>
    %655 = tpu.matmul %654, %613, %cst_615 {dimension_numbers = #tpu.dot_dimension_numbers<[1], [0], [0], [1], [0, 0, 1, 1], [], []>} : vector<32x32xbf16>, vector<32x32xbf16>, vector<32x32xf32> -> vector<32x32xf32>
    %656 = arith.truncf %655 : vector<32x32xf32> to vector<32x32xbf16>
    %c5_616 = arith.constant 5 : index
    %c0_617 = arith.constant 0 : index
    %c0_618 = arith.constant 0 : index
    %657 = vector.load %arg18[%c5_616, %c0_617, %c0_618] : memref<9x32x32xbf16, #tpu.memory_space<vmem>>, vector<1x32x32xbf16>
    %658 = vector.shape_cast %657 : vector<1x32x32xbf16> to vector<32x32xbf16>
    %cst_619 = arith.constant dense<0.000000e+00> : vector<32x32xf32>
    %659 = tpu.matmul %656, %658, %cst_619 {dimension_numbers = #tpu.dot_dimension_numbers<[1], [0], [0], [1], [0, 0, 1, 1], [], []>} : vector<32x32xbf16>, vector<32x32xbf16>, vector<32x32xf32> -> vector<32x32xf32>
    %660 = arith.addf %652, %659 : vector<32x32xf32>
    %c6_620 = arith.constant 6 : index
    %c0_621 = arith.constant 0 : index
    %c0_622 = arith.constant 0 : index
    %661 = vector.load %arg2[%c6_620, %c0_621, %c0_622] : memref<9x32x32xbf16, #tpu.memory_space<vmem>>, vector<1x32x32xbf16>
    %662 = vector.shape_cast %661 : vector<1x32x32xbf16> to vector<32x32xbf16>
    %cst_623 = arith.constant dense<0.000000e+00> : vector<32x32xf32>
    %663 = tpu.matmul %662, %613, %cst_623 {dimension_numbers = #tpu.dot_dimension_numbers<[1], [0], [0], [1], [0, 0, 1, 1], [], []>} : vector<32x32xbf16>, vector<32x32xbf16>, vector<32x32xf32> -> vector<32x32xf32>
    %664 = arith.truncf %663 : vector<32x32xf32> to vector<32x32xbf16>
    %c6_624 = arith.constant 6 : index
    %c0_625 = arith.constant 0 : index
    %c0_626 = arith.constant 0 : index
    %665 = vector.load %arg18[%c6_624, %c0_625, %c0_626] : memref<9x32x32xbf16, #tpu.memory_space<vmem>>, vector<1x32x32xbf16>
    %666 = vector.shape_cast %665 : vector<1x32x32xbf16> to vector<32x32xbf16>
    %cst_627 = arith.constant dense<0.000000e+00> : vector<32x32xf32>
    %667 = tpu.matmul %664, %666, %cst_627 {dimension_numbers = #tpu.dot_dimension_numbers<[1], [0], [0], [1], [0, 0, 1, 1], [], []>} : vector<32x32xbf16>, vector<32x32xbf16>, vector<32x32xf32> -> vector<32x32xf32>
    %668 = arith.addf %660, %667 : vector<32x32xf32>
    %c7_628 = arith.constant 7 : index
    %c0_629 = arith.constant 0 : index
    %c0_630 = arith.constant 0 : index
    %669 = vector.load %arg2[%c7_628, %c0_629, %c0_630] : memref<9x32x32xbf16, #tpu.memory_space<vmem>>, vector<1x32x32xbf16>
    %670 = vector.shape_cast %669 : vector<1x32x32xbf16> to vector<32x32xbf16>
    %cst_631 = arith.constant dense<0.000000e+00> : vector<32x32xf32>
    %671 = tpu.matmul %670, %613, %cst_631 {dimension_numbers = #tpu.dot_dimension_numbers<[1], [0], [0], [1], [0, 0, 1, 1], [], []>} : vector<32x32xbf16>, vector<32x32xbf16>, vector<32x32xf32> -> vector<32x32xf32>
    %672 = arith.truncf %671 : vector<32x32xf32> to vector<32x32xbf16>
    %c7_632 = arith.constant 7 : index
    %c0_633 = arith.constant 0 : index
    %c0_634 = arith.constant 0 : index
    %673 = vector.load %arg18[%c7_632, %c0_633, %c0_634] : memref<9x32x32xbf16, #tpu.memory_space<vmem>>, vector<1x32x32xbf16>
    %674 = vector.shape_cast %673 : vector<1x32x32xbf16> to vector<32x32xbf16>
    %cst_635 = arith.constant dense<0.000000e+00> : vector<32x32xf32>
    %675 = tpu.matmul %672, %674, %cst_635 {dimension_numbers = #tpu.dot_dimension_numbers<[1], [0], [0], [1], [0, 0, 1, 1], [], []>} : vector<32x32xbf16>, vector<32x32xbf16>, vector<32x32xf32> -> vector<32x32xf32>
    %676 = arith.addf %668, %675 : vector<32x32xf32>
    %c8_636 = arith.constant 8 : index
    %c0_637 = arith.constant 0 : index
    %c0_638 = arith.constant 0 : index
    %677 = vector.load %arg2[%c8_636, %c0_637, %c0_638] : memref<9x32x32xbf16, #tpu.memory_space<vmem>>, vector<1x32x32xbf16>
    %678 = vector.shape_cast %677 : vector<1x32x32xbf16> to vector<32x32xbf16>
    %cst_639 = arith.constant dense<0.000000e+00> : vector<32x32xf32>
    %679 = tpu.matmul %678, %613, %cst_639 {dimension_numbers = #tpu.dot_dimension_numbers<[1], [0], [0], [1], [0, 0, 1, 1], [], []>} : vector<32x32xbf16>, vector<32x32xbf16>, vector<32x32xf32> -> vector<32x32xf32>
    %680 = arith.truncf %679 : vector<32x32xf32> to vector<32x32xbf16>
    %c8_640 = arith.constant 8 : index
    %c0_641 = arith.constant 0 : index
    %c0_642 = arith.constant 0 : index
    %681 = vector.load %arg18[%c8_640, %c0_641, %c0_642] : memref<9x32x32xbf16, #tpu.memory_space<vmem>>, vector<1x32x32xbf16>
    %682 = vector.shape_cast %681 : vector<1x32x32xbf16> to vector<32x32xbf16>
    %cst_643 = arith.constant dense<0.000000e+00> : vector<32x32xf32>
    %683 = tpu.matmul %680, %682, %cst_643 {dimension_numbers = #tpu.dot_dimension_numbers<[1], [0], [0], [1], [0, 0, 1, 1], [], []>} : vector<32x32xbf16>, vector<32x32xbf16>, vector<32x32xf32> -> vector<32x32xf32>
    %684 = arith.addf %676, %683 : vector<32x32xf32>
    %685 = arith.addf %203, %684 : vector<32x32xf32>
    %c0_644 = arith.constant 0 : index
    %c0_645 = arith.constant 0 : index
    %686 = vector.load %arg19[%c0_644, %c0_645] : memref<1x32xf32, #tpu.memory_space<vmem>>, vector<1x32xf32>
    %687 = vector.broadcast %686 : vector<1x32xf32> to vector<32x32xf32>
    %688 = arith.addf %685, %687 : vector<32x32xf32>
    %cst_646 = arith.constant 0.000000e+00 : f32
    %689 = vector.broadcast %cst_646 : f32 to vector<32x32xf32>
    %690 = arith.maximumf %688, %689 : vector<32x32xf32>
    %691 = arith.mulf %611, %441 : vector<32x32xf32>
    %cst_647 = arith.constant 1.000000e+00 : f32
    %692 = vector.broadcast %cst_647 : f32 to vector<32x32xf32>
    %693 = arith.subf %692, %611 : vector<32x32xf32>
    %694 = arith.mulf %693, %690 : vector<32x32xf32>
    %695 = arith.addf %691, %694 : vector<32x32xf32>
    %696 = arith.truncf %695 : vector<32x32xf32> to vector<32x32xbf16>
    %c0_648 = arith.constant 0 : index
    %c0_649 = arith.constant 0 : index
    %c0_650 = arith.constant 0 : index
    %697 = vector.load %arg5[%c0_648, %c0_649, %c0_650] : memref<9x128x32xbf16, #tpu.memory_space<vmem>>, vector<1x128x32xbf16>
    %698 = vector.shape_cast %697 : vector<1x128x32xbf16> to vector<128x32xbf16>
    %cst_651 = arith.constant dense<0.000000e+00> : vector<128x32xf32>
    %699 = tpu.matmul %698, %696, %cst_651 {dimension_numbers = #tpu.dot_dimension_numbers<[1], [0], [0], [1], [0, 0, 1, 1], [], []>} : vector<128x32xbf16>, vector<32x32xbf16>, vector<128x32xf32> -> vector<128x32xf32>
    %700 = arith.truncf %699 : vector<128x32xf32> to vector<128x32xbf16>
    %c0_652 = arith.constant 0 : index
    %c0_653 = arith.constant 0 : index
    %c0_654 = arith.constant 0 : index
    %701 = vector.load %arg21[%c0_652, %c0_653, %c0_654] : memref<9x32x16xbf16, #tpu.memory_space<vmem>>, vector<1x32x16xbf16>
    %702 = vector.shape_cast %701 : vector<1x32x16xbf16> to vector<32x16xbf16>
    %cst_655 = arith.constant dense<0.000000e+00> : vector<128x16xf32>
    %703 = tpu.matmul %700, %702, %cst_655 {dimension_numbers = #tpu.dot_dimension_numbers<[1], [0], [0], [1], [0, 0, 1, 1], [], []>} : vector<128x32xbf16>, vector<32x16xbf16>, vector<128x16xf32> -> vector<128x16xf32>
    %c1_656 = arith.constant 1 : index
    %c0_657 = arith.constant 0 : index
    %c0_658 = arith.constant 0 : index
    %704 = vector.load %arg5[%c1_656, %c0_657, %c0_658] : memref<9x128x32xbf16, #tpu.memory_space<vmem>>, vector<1x128x32xbf16>
    %705 = vector.shape_cast %704 : vector<1x128x32xbf16> to vector<128x32xbf16>
    %cst_659 = arith.constant dense<0.000000e+00> : vector<128x32xf32>
    %706 = tpu.matmul %705, %696, %cst_659 {dimension_numbers = #tpu.dot_dimension_numbers<[1], [0], [0], [1], [0, 0, 1, 1], [], []>} : vector<128x32xbf16>, vector<32x32xbf16>, vector<128x32xf32> -> vector<128x32xf32>
    %707 = arith.truncf %706 : vector<128x32xf32> to vector<128x32xbf16>
    %c1_660 = arith.constant 1 : index
    %c0_661 = arith.constant 0 : index
    %c0_662 = arith.constant 0 : index
    %708 = vector.load %arg21[%c1_660, %c0_661, %c0_662] : memref<9x32x16xbf16, #tpu.memory_space<vmem>>, vector<1x32x16xbf16>
    %709 = vector.shape_cast %708 : vector<1x32x16xbf16> to vector<32x16xbf16>
    %cst_663 = arith.constant dense<0.000000e+00> : vector<128x16xf32>
    %710 = tpu.matmul %707, %709, %cst_663 {dimension_numbers = #tpu.dot_dimension_numbers<[1], [0], [0], [1], [0, 0, 1, 1], [], []>} : vector<128x32xbf16>, vector<32x16xbf16>, vector<128x16xf32> -> vector<128x16xf32>
    %711 = arith.addf %703, %710 : vector<128x16xf32>
    %c2_664 = arith.constant 2 : index
    %c0_665 = arith.constant 0 : index
    %c0_666 = arith.constant 0 : index
    %712 = vector.load %arg5[%c2_664, %c0_665, %c0_666] : memref<9x128x32xbf16, #tpu.memory_space<vmem>>, vector<1x128x32xbf16>
    %713 = vector.shape_cast %712 : vector<1x128x32xbf16> to vector<128x32xbf16>
    %cst_667 = arith.constant dense<0.000000e+00> : vector<128x32xf32>
    %714 = tpu.matmul %713, %696, %cst_667 {dimension_numbers = #tpu.dot_dimension_numbers<[1], [0], [0], [1], [0, 0, 1, 1], [], []>} : vector<128x32xbf16>, vector<32x32xbf16>, vector<128x32xf32> -> vector<128x32xf32>
    %715 = arith.truncf %714 : vector<128x32xf32> to vector<128x32xbf16>
    %c2_668 = arith.constant 2 : index
    %c0_669 = arith.constant 0 : index
    %c0_670 = arith.constant 0 : index
    %716 = vector.load %arg21[%c2_668, %c0_669, %c0_670] : memref<9x32x16xbf16, #tpu.memory_space<vmem>>, vector<1x32x16xbf16>
    %717 = vector.shape_cast %716 : vector<1x32x16xbf16> to vector<32x16xbf16>
    %cst_671 = arith.constant dense<0.000000e+00> : vector<128x16xf32>
    %718 = tpu.matmul %715, %717, %cst_671 {dimension_numbers = #tpu.dot_dimension_numbers<[1], [0], [0], [1], [0, 0, 1, 1], [], []>} : vector<128x32xbf16>, vector<32x16xbf16>, vector<128x16xf32> -> vector<128x16xf32>
    %719 = arith.addf %711, %718 : vector<128x16xf32>
    %c3_672 = arith.constant 3 : index
    %c0_673 = arith.constant 0 : index
    %c0_674 = arith.constant 0 : index
    %720 = vector.load %arg5[%c3_672, %c0_673, %c0_674] : memref<9x128x32xbf16, #tpu.memory_space<vmem>>, vector<1x128x32xbf16>
    %721 = vector.shape_cast %720 : vector<1x128x32xbf16> to vector<128x32xbf16>
    %cst_675 = arith.constant dense<0.000000e+00> : vector<128x32xf32>
    %722 = tpu.matmul %721, %696, %cst_675 {dimension_numbers = #tpu.dot_dimension_numbers<[1], [0], [0], [1], [0, 0, 1, 1], [], []>} : vector<128x32xbf16>, vector<32x32xbf16>, vector<128x32xf32> -> vector<128x32xf32>
    %723 = arith.truncf %722 : vector<128x32xf32> to vector<128x32xbf16>
    %c3_676 = arith.constant 3 : index
    %c0_677 = arith.constant 0 : index
    %c0_678 = arith.constant 0 : index
    %724 = vector.load %arg21[%c3_676, %c0_677, %c0_678] : memref<9x32x16xbf16, #tpu.memory_space<vmem>>, vector<1x32x16xbf16>
    %725 = vector.shape_cast %724 : vector<1x32x16xbf16> to vector<32x16xbf16>
    %cst_679 = arith.constant dense<0.000000e+00> : vector<128x16xf32>
    %726 = tpu.matmul %723, %725, %cst_679 {dimension_numbers = #tpu.dot_dimension_numbers<[1], [0], [0], [1], [0, 0, 1, 1], [], []>} : vector<128x32xbf16>, vector<32x16xbf16>, vector<128x16xf32> -> vector<128x16xf32>
    %727 = arith.addf %719, %726 : vector<128x16xf32>
    %c4_680 = arith.constant 4 : index
    %c0_681 = arith.constant 0 : index
    %c0_682 = arith.constant 0 : index
    %728 = vector.load %arg5[%c4_680, %c0_681, %c0_682] : memref<9x128x32xbf16, #tpu.memory_space<vmem>>, vector<1x128x32xbf16>
    %729 = vector.shape_cast %728 : vector<1x128x32xbf16> to vector<128x32xbf16>
    %cst_683 = arith.constant dense<0.000000e+00> : vector<128x32xf32>
    %730 = tpu.matmul %729, %696, %cst_683 {dimension_numbers = #tpu.dot_dimension_numbers<[1], [0], [0], [1], [0, 0, 1, 1], [], []>} : vector<128x32xbf16>, vector<32x32xbf16>, vector<128x32xf32> -> vector<128x32xf32>
    %731 = arith.truncf %730 : vector<128x32xf32> to vector<128x32xbf16>
    %c4_684 = arith.constant 4 : index
    %c0_685 = arith.constant 0 : index
    %c0_686 = arith.constant 0 : index
    %732 = vector.load %arg21[%c4_684, %c0_685, %c0_686] : memref<9x32x16xbf16, #tpu.memory_space<vmem>>, vector<1x32x16xbf16>
    %733 = vector.shape_cast %732 : vector<1x32x16xbf16> to vector<32x16xbf16>
    %cst_687 = arith.constant dense<0.000000e+00> : vector<128x16xf32>
    %734 = tpu.matmul %731, %733, %cst_687 {dimension_numbers = #tpu.dot_dimension_numbers<[1], [0], [0], [1], [0, 0, 1, 1], [], []>} : vector<128x32xbf16>, vector<32x16xbf16>, vector<128x16xf32> -> vector<128x16xf32>
    %735 = arith.addf %727, %734 : vector<128x16xf32>
    %c5_688 = arith.constant 5 : index
    %c0_689 = arith.constant 0 : index
    %c0_690 = arith.constant 0 : index
    %736 = vector.load %arg5[%c5_688, %c0_689, %c0_690] : memref<9x128x32xbf16, #tpu.memory_space<vmem>>, vector<1x128x32xbf16>
    %737 = vector.shape_cast %736 : vector<1x128x32xbf16> to vector<128x32xbf16>
    %cst_691 = arith.constant dense<0.000000e+00> : vector<128x32xf32>
    %738 = tpu.matmul %737, %696, %cst_691 {dimension_numbers = #tpu.dot_dimension_numbers<[1], [0], [0], [1], [0, 0, 1, 1], [], []>} : vector<128x32xbf16>, vector<32x32xbf16>, vector<128x32xf32> -> vector<128x32xf32>
    %739 = arith.truncf %738 : vector<128x32xf32> to vector<128x32xbf16>
    %c5_692 = arith.constant 5 : index
    %c0_693 = arith.constant 0 : index
    %c0_694 = arith.constant 0 : index
    %740 = vector.load %arg21[%c5_692, %c0_693, %c0_694] : memref<9x32x16xbf16, #tpu.memory_space<vmem>>, vector<1x32x16xbf16>
    %741 = vector.shape_cast %740 : vector<1x32x16xbf16> to vector<32x16xbf16>
    %cst_695 = arith.constant dense<0.000000e+00> : vector<128x16xf32>
    %742 = tpu.matmul %739, %741, %cst_695 {dimension_numbers = #tpu.dot_dimension_numbers<[1], [0], [0], [1], [0, 0, 1, 1], [], []>} : vector<128x32xbf16>, vector<32x16xbf16>, vector<128x16xf32> -> vector<128x16xf32>
    %743 = arith.addf %735, %742 : vector<128x16xf32>
    %c6_696 = arith.constant 6 : index
    %c0_697 = arith.constant 0 : index
    %c0_698 = arith.constant 0 : index
    %744 = vector.load %arg5[%c6_696, %c0_697, %c0_698] : memref<9x128x32xbf16, #tpu.memory_space<vmem>>, vector<1x128x32xbf16>
    %745 = vector.shape_cast %744 : vector<1x128x32xbf16> to vector<128x32xbf16>
    %cst_699 = arith.constant dense<0.000000e+00> : vector<128x32xf32>
    %746 = tpu.matmul %745, %696, %cst_699 {dimension_numbers = #tpu.dot_dimension_numbers<[1], [0], [0], [1], [0, 0, 1, 1], [], []>} : vector<128x32xbf16>, vector<32x32xbf16>, vector<128x32xf32> -> vector<128x32xf32>
    %747 = arith.truncf %746 : vector<128x32xf32> to vector<128x32xbf16>
    %c6_700 = arith.constant 6 : index
    %c0_701 = arith.constant 0 : index
    %c0_702 = arith.constant 0 : index
    %748 = vector.load %arg21[%c6_700, %c0_701, %c0_702] : memref<9x32x16xbf16, #tpu.memory_space<vmem>>, vector<1x32x16xbf16>
    %749 = vector.shape_cast %748 : vector<1x32x16xbf16> to vector<32x16xbf16>
    %cst_703 = arith.constant dense<0.000000e+00> : vector<128x16xf32>
    %750 = tpu.matmul %747, %749, %cst_703 {dimension_numbers = #tpu.dot_dimension_numbers<[1], [0], [0], [1], [0, 0, 1, 1], [], []>} : vector<128x32xbf16>, vector<32x16xbf16>, vector<128x16xf32> -> vector<128x16xf32>
    %751 = arith.addf %743, %750 : vector<128x16xf32>
    %c7_704 = arith.constant 7 : index
    %c0_705 = arith.constant 0 : index
    %c0_706 = arith.constant 0 : index
    %752 = vector.load %arg5[%c7_704, %c0_705, %c0_706] : memref<9x128x32xbf16, #tpu.memory_space<vmem>>, vector<1x128x32xbf16>
    %753 = vector.shape_cast %752 : vector<1x128x32xbf16> to vector<128x32xbf16>
    %cst_707 = arith.constant dense<0.000000e+00> : vector<128x32xf32>
    %754 = tpu.matmul %753, %696, %cst_707 {dimension_numbers = #tpu.dot_dimension_numbers<[1], [0], [0], [1], [0, 0, 1, 1], [], []>} : vector<128x32xbf16>, vector<32x32xbf16>, vector<128x32xf32> -> vector<128x32xf32>
    %755 = arith.truncf %754 : vector<128x32xf32> to vector<128x32xbf16>
    %c7_708 = arith.constant 7 : index
    %c0_709 = arith.constant 0 : index
    %c0_710 = arith.constant 0 : index
    %756 = vector.load %arg21[%c7_708, %c0_709, %c0_710] : memref<9x32x16xbf16, #tpu.memory_space<vmem>>, vector<1x32x16xbf16>
    %757 = vector.shape_cast %756 : vector<1x32x16xbf16> to vector<32x16xbf16>
    %cst_711 = arith.constant dense<0.000000e+00> : vector<128x16xf32>
    %758 = tpu.matmul %755, %757, %cst_711 {dimension_numbers = #tpu.dot_dimension_numbers<[1], [0], [0], [1], [0, 0, 1, 1], [], []>} : vector<128x32xbf16>, vector<32x16xbf16>, vector<128x16xf32> -> vector<128x16xf32>
    %759 = arith.addf %751, %758 : vector<128x16xf32>
    %c8_712 = arith.constant 8 : index
    %c0_713 = arith.constant 0 : index
    %c0_714 = arith.constant 0 : index
    %760 = vector.load %arg5[%c8_712, %c0_713, %c0_714] : memref<9x128x32xbf16, #tpu.memory_space<vmem>>, vector<1x128x32xbf16>
    %761 = vector.shape_cast %760 : vector<1x128x32xbf16> to vector<128x32xbf16>
    %cst_715 = arith.constant dense<0.000000e+00> : vector<128x32xf32>
    %762 = tpu.matmul %761, %696, %cst_715 {dimension_numbers = #tpu.dot_dimension_numbers<[1], [0], [0], [1], [0, 0, 1, 1], [], []>} : vector<128x32xbf16>, vector<32x32xbf16>, vector<128x32xf32> -> vector<128x32xf32>
    %763 = arith.truncf %762 : vector<128x32xf32> to vector<128x32xbf16>
    %c8_716 = arith.constant 8 : index
    %c0_717 = arith.constant 0 : index
    %c0_718 = arith.constant 0 : index
    %764 = vector.load %arg21[%c8_716, %c0_717, %c0_718] : memref<9x32x16xbf16, #tpu.memory_space<vmem>>, vector<1x32x16xbf16>
    %765 = vector.shape_cast %764 : vector<1x32x16xbf16> to vector<32x16xbf16>
    %cst_719 = arith.constant dense<0.000000e+00> : vector<128x16xf32>
    %766 = tpu.matmul %763, %765, %cst_719 {dimension_numbers = #tpu.dot_dimension_numbers<[1], [0], [0], [1], [0, 0, 1, 1], [], []>} : vector<128x32xbf16>, vector<32x16xbf16>, vector<128x16xf32> -> vector<128x16xf32>
    %767 = arith.addf %759, %766 : vector<128x16xf32>
    %768 = arith.addf %274, %767 : vector<128x16xf32>
    %c0_720 = arith.constant 0 : index
    %c0_721 = arith.constant 0 : index
    %769 = vector.load %arg22[%c0_720, %c0_721] : memref<1x16xf32, #tpu.memory_space<vmem>>, vector<1x16xf32>
    %770 = vector.broadcast %769 : vector<1x16xf32> to vector<128x16xf32>
    %771 = arith.addf %768, %770 : vector<128x16xf32>
    %cst_722 = arith.constant 0.000000e+00 : f32
    %772 = vector.broadcast %cst_722 : f32 to vector<128x16xf32>
    %773 = arith.maximumf %771, %772 : vector<128x16xf32>
    %774 = arith.truncf %773 : vector<128x16xf32> to vector<128x16xbf16>
    %c0_723 = arith.constant 0 : index
    %c0_724 = arith.constant 0 : index
    %775 = vector.load %arg23[%c0_723, %c0_724] : memref<16x4xbf16, #tpu.memory_space<vmem>>, vector<16x4xbf16>
    %cst_725 = arith.constant dense<0.000000e+00> : vector<128x4xf32>
    %776 = tpu.matmul %774, %775, %cst_725 {dimension_numbers = #tpu.dot_dimension_numbers<[1], [0], [0], [1], [0, 0, 1, 1], [], []>} : vector<128x16xbf16>, vector<16x4xbf16>, vector<128x4xf32> -> vector<128x4xf32>
    %c0_726 = arith.constant 0 : index
    %c0_727 = arith.constant 0 : index
    %777 = vector.load %arg24[%c0_726, %c0_727] : memref<1x4xf32, #tpu.memory_space<vmem>>, vector<1x4xf32>
    %778 = vector.broadcast %777 : vector<1x4xf32> to vector<128x4xf32>
    %779 = arith.addf %776, %778 : vector<128x4xf32>
    %c1_728 = arith.constant 1 : index
    %c0_729 = arith.constant 0 : index
    %c0_730 = arith.constant 0 : index
    %780 = vector.load %arg25[%c1_728, %c0_729, %c0_730] : memref<2x128x4xf32, #tpu.memory_space<vmem>>, vector<1x128x4xf32>
    %781 = vector.shape_cast %780 : vector<1x128x4xf32> to vector<128x4xf32>
    %782 = vector.shape_cast %779 : vector<128x4xf32> to vector<1x128x4xf32>
    tpu.vector_store %arg25[%c1_728, %c0_729, %c0_730], %782 {strides = array<i32>} : memref<2x128x4xf32, #tpu.memory_space<vmem>>, vector<1x128x4xf32>,
    return
  }
}

</mosaic_0001>

<bundles_post_ra>
// kernel: generator_forward.1
= control target key start
LH: loop header
LB: loop body
LE: loop exit
PB: predicated region body
PF: predicated region fallthrough
CT: control target
= control target key end

     0   :  { %v23543_v0 = vmov 0   ;;  %vm248_vm0 = vcmask 130048   ;;  %vm417_vm1 = vcmask 261120   ;;  %vm1169_vm2 = vcmask 588800   ;;  %s26990_s6 = inlined_call_operand.vmem [shape: bf16[144,32], index: 6, kind: input, shape index: {}]   ;;  %s26991_s0 = inlined_call_operand.vmem [shape: bf16[128,144], index: 0, kind: input, shape index: {}]   ;;  %s26992_s8 = inlined_call_operand.vmem [shape: bf16[32,16], index: 8, kind: input, shape index: {}]   ;;  %s26993_s7 = inlined_call_operand.vmem [shape: f32[1,32], index: 7, kind: input, shape index: {}]   ;;  %s26994_s4 = inlined_call_operand.vmem [shape: bf16[4,32,128], index: 4, kind: input, shape index: {}]   ;;  %s26995_s9 = inlined_call_operand.vmem [shape: f32[1,16], index: 9, kind: input, shape index: {}]   ;;  %s26996_s10 = inlined_call_operand.vmem [shape: bf16[4,16,32], index: 10, kind: input, shape index: {}]   ;;  %s26997_s12 = inlined_call_operand.vmem [shape: bf16[72,32], index: 12, kind: input, shape index: {}]   ;;  %s26998_s1 = inlined_call_operand.vmem [shape: bf16[32,72], index: 1, kind: input, shape index: {}]   ;;  %s26999_s2 = inlined_call_operand.vmem [shape: bf16[9,32,32], index: 2, kind: input, shape index: {}]   ;;  %s27000_s13 = inlined_call_operand.vmem [shape: f32[1,32], index: 13, kind: input, shape index: {}]   ;;  %s27001_s14 = inlined_call_operand.vmem [shape: bf16[9,32,64], index: 14, kind: input, shape index: {}]   ;;  %s27002_s17 = inlined_call_operand.vmem [shape: bf16[9,32,32], index: 17, kind: input, shape index: {}]   ;;  %s27003_s3 = inlined_call_operand.vmem [shape: bf16[9,128,128], index: 3, kind: input, shape index: {}]   ;;  %s27004_s11 = inlined_call_operand.vmem [shape: f32[1,32], index: 11, kind: input, shape index: {}]   ;;  %s27005_s20 = inlined_call_operand.vmem [shape: bf16[9,16,16], index: 20, kind: input, shape index: {}]   ;;  %s27006_s15 = inlined_call_operand.vmem [shape: bf16[9,32,64], index: 15, kind: input, shape index: {}]   ;;  %s27007_s16 = inlined_call_operand.vmem [shape: f32[1,64], index: 16, kind: input, shape index: {}]   ;;  %s27008_s18 = inlined_call_operand.vmem [shape: bf16[9,32,32], index: 18, kind: input, shape index: {}]   ;;  %s27009_s19 = inlined_call_operand.vmem [shape: f32[1,32], index: 19, kind: input, shape index: {}]   ;;  %s27010_s5 = inlined_call_operand.vmem [shape: bf16[9,128,32], index: 5, kind: input, shape index: {}]   ;;  %s27011_s21 = inlined_call_operand.vmem [shape: bf16[9,32,16], index: 21, kind: input, shape index: {}]   ;;  %s27012_s23 = inlined_call_operand.vmem [shape: bf16[16,4], index: 23, kind: input, shape index: {}]   ;;  %s27013_s22 = inlined_call_operand.vmem [shape: f32[1,16], index: 22, kind: input, shape index: {}]   ;;  %s27014_s24 = inlined_call_operand.vmem [shape: f32[1,4], index: 24, kind: input, shape index: {}]   ;;  %s27015_s25 = inlined_call_operand.vmem [shape: f32[2,128,4], index: 25, kind: output, shape index: {}]  }
   0x1   :  { %27048 = sst [smem:[#allocation26_spill]] %s26990_s6  ;;  %273 = vmatprep.subr.bf16.mxu0 %v23543_v0  ;;  %vm1176_vm3 = vcmask 1043456   ;;  %vm11605_vm4 = vcmask 31744  }
   0x2   :  { %27049 = sst [smem:[#allocation27_spill]] %s26991_s0 }
   0x3   :  { %27050 = sst [smem:[#allocation28_spill]] %s26992_s8 }
   0x4   :  { %27051 = sst [smem:[#allocation29_spill]] %s26993_s7 }
   0x5   :  { %27052 = sst [smem:[#allocation30_spill]] %s26994_s4  ;;  %s27059_s4 = sld [smem:[#allocation27_spill]] }
   0x6   :  { %27053 = sst [smem:[#allocation31_spill]] %s26995_s9  ;;  %s27060_s9 = sld [smem:[#allocation28_spill]] }
   0x7   :  { %27054 = sst [smem:[#allocation32_spill]] %s26996_s10  ;;  %s27058_s10 = sld [smem:[#allocation26_spill]] }
   0x8   :  { %27055 = sst [smem:[#allocation33_spill]] %s26997_s12  ;;  %s27061_s30 = sld [smem:[#allocation29_spill]] }
   0x9   :  { %27056 = sst [smem:[#allocation34_spill]] %s26998_s1  ;;  %s27062_s7 = sld [smem:[#allocation30_spill]] }
   0xa   :  { %27057 = sst [smem:[#allocation35_spill]] %s26999_s2  ;;  %s27063_s2 = sld [smem:[#allocation31_spill]] }
   0xb   :  { %v23040_v5 = vld [vmem:[%s27059_s4 + $0x4] ss:$8 sps:$4 sm:$0xff]   ;;  %v23038_v11 = vld [vmem:[%s27059_s4] ss:$8 sps:$4 sm:$0xff]   ;;  %v23041_v12 = vld [vmem:[%s27059_s4 + $0x14] ss:$8 sps:$4 sm:$0xff]  }
   0xc   :  { %17432 = vmatprep.mubr.msk.bf16.mxu0 %vm248_vm0, %v23040_v5  ;;  %v23043_v13 = vld [vmem:[%s27059_s4 + $0x10] ss:$8 sps:$4 sm:$0xff]   ;;  %v23044_v14 = vld [vmem:[%s27059_s4 + $0x24] ss:$8 sps:$4 sm:$0xff]   ;;  %v23046_v15 = vld [vmem:[%s27059_s4 + $0x20] ss:$8 sps:$4 sm:$0xff]  }
   0xd   :  { %v23029_v1 = vld [vmem:[%s27058_s10] sm:$0xff]   ;;  %v23030_v2 = vld [vmem:[%s27058_s10 + $0x8] sm:$0xff]   ;;  %v23031_v3 = vld [vmem:[%s27058_s10 + $0x10] sm:$0xff]   ;;  %s27064_s0 = sld [smem:[#allocation32_spill]]  ;;  %s27067_s1 = sld [smem:[#allocation35_spill]] }
   0xe   :  { %274 = vmatpush1.bf16.msra.mxu0 %v23029_v1  ;;  %v23032_v4 = vld [vmem:[%s27058_s10 + $0x18] sm:$0xff]   ;;  %v23033_v6 = vld [vmem:[%s27058_s10 + $0x20] sm:$0xff]   ;;  %v23034_v7 = vld [vmem:[%s27058_s10 + $0x28] sm:$0xff]  }
   0xf   :  { %275 = vmatprep.subr.bf16.mxu0 %v23543_v0  ;;  %v23035_v8 = vld [vmem:[%s27058_s10 + $0x30] sm:$0xff]   ;;  %v23036_v9 = vld [vmem:[%s27058_s10 + $0x38] sm:$0xff]   ;;  %v23037_v10 = vld [vmem:[%s27058_s10 + $0x40] sm:$0xff]  }
  0x10   :  { %v23047_v16 = vld [vmem:[%s27059_s4 + $0x34] ss:$8 sps:$4 sm:$0xff]   ;;  %v23049_v17 = vld [vmem:[%s27059_s4 + $0x30] ss:$8 sps:$4 sm:$0xff]   ;;  %v23050_v18 = vld [vmem:[%s27059_s4 + $0x44] ss:$8 sps:$4 sm:$0xff]  }
  0x11   :  { %v23052_v19 = vld [vmem:[%s27059_s4 + $0x40] ss:$8 sps:$4 sm:$0xff]   ;;  %v23053_v20 = vld [vmem:[%s27059_s4 + $0x54] ss:$8 sps:$4 sm:$0xff]   ;;  %v23055_v21 = vld [vmem:[%s27059_s4 + $0x50] ss:$8 sps:$4 sm:$0xff]  }
  0x12   :  { %276 = vmatpush1.bf16.msra.mxu0 %v23030_v2  ;;  %v23056_v22 = vld [vmem:[%s27059_s4 + $0x64] ss:$8 sps:$4 sm:$0xff]   ;;  %v23058_v23 = vld [vmem:[%s27059_s4 + $0x60] ss:$8 sps:$4 sm:$0xff]   ;;  %v23059_v24 = vld [vmem:[%s27059_s4 + $0x74] ss:$8 sps:$4 sm:$0xff]  }
  0x13   :  { %277 = vmatprep.subr.bf16.mxu0 %v23543_v0  ;;  %v23061_v25 = vld [vmem:[%s27059_s4 + $0x70] ss:$8 sps:$4 sm:$0xff]   ;;  %v23062_v26 = vld [vmem:[%s27060_s9] sm:$0xff]   ;;  %v23063_v27 = vld [vmem:[%s27060_s9 + $0x8] sm:$0xff]  }
  0x14   :  { %20301 = vmatprep.subr.bf16.mxu1 %v23062_v26  ;;  %v23768_v28 = vld [vmem:[%s27061_s30] ss:$0 sm:$0xff]  ;;  %s27066_s30 = sld [smem:[#allocation34_spill]] }
  0x15   :  { %20302 = vmatpush3.bf16.msra.mxu1 %v23062_v26 }
  0x16   :  { %278 = vmatpush1.bf16.msra.mxu0 %v23031_v3  ;;  %20303 = vmatprep.subr.bf16.mxu1 %v23063_v27 }
  0x17   :  { %279 = vmatprep.subr.bf16.mxu0 %v23543_v0 }
  0x19   :  { %20304 = vmatpush3.bf16.msra.mxu1 %v23063_v27 }
  0x1a   :  { %280 = vmatpush1.bf16.msra.mxu0 %v23032_v4 }
  0x1b   :  { %281 = vmatprep.subr.bf16.mxu0 %v23543_v0 }
  0x1e   :  { %282 = vmatpush1.bf16.msra.mxu0 %v23033_v6 }
  0x1f   :  { %283 = vmatprep.subr.bf16.mxu0 %v23543_v0 }
  0x22   :  { %284 = vmatpush1.bf16.msra.mxu0 %v23034_v7 }
  0x23   :  { %285 = vmatprep.subr.bf16.mxu0 %v23543_v0 }
  0x26   :  { %286 = vmatpush1.bf16.msra.mxu0 %v23035_v8 }
  0x27   :  { %287 = vmatprep.subr.bf16.mxu0 %v23543_v0 }
  0x2a   :  { %288 = vmatpush1.bf16.msra.mxu0 %v23036_v9 }
  0x2b   :  { %289 = vmatprep.subr.bf16.mxu0 %v23543_v0 }
  0x2e   :  { %290 = vmatpush1.bf16.msra.mxu0 %v23037_v10 }
  0x31   :  { %306 = vmatmul.mubr.bf16.vlgmr.msra.gmra.mrb[0].mxu0 %v23038_v11 }
  0x32   :  { %17433 = vmatprep.mubr.msk.bf16.mxu0 %vm248_vm0, %v23041_v12 }
  0x39   :  { %314 = vmatmul.mubr.bf16.gmra.mrb[4].mxu0 %v23043_v13 }
  0x3a   :  { %17434 = vmatprep.mubr.msk.bf16.mxu0 %vm248_vm0, %v23044_v14 }
  0x41   :  { %322 = vmatmul.mubr.bf16.gmra.mrb[8].mxu0 %v23046_v15 }
  0x42   :  { %17435 = vmatprep.mubr.msk.bf16.mxu0 %vm248_vm0, %v23047_v16 }
  0x49   :  { %330 = vmatmul.mubr.bf16.gmra.mrb[12].mxu0 %v23049_v17 }
  0x4a   :  { %17436 = vmatprep.mubr.msk.bf16.mxu0 %vm248_vm0, %v23050_v18 }
  0x51   :  { %338 = vmatmul.mubr.bf16.gmra.mrb[16].mxu0 %v23052_v19 }
  0x52   :  { %17437 = vmatprep.mubr.msk.bf16.mxu0 %vm248_vm0, %v23053_v20 }
  0x59   :  { %346 = vmatmul.mubr.bf16.gmra.mrb[20].mxu0 %v23055_v21 }
  0x5a   :  { %17438 = vmatprep.mubr.msk.bf16.mxu0 %vm248_vm0, %v23056_v22 }
  0x61   :  { %354 = vmatmul.mubr.bf16.gmra.mrb[24].mxu0 %v23058_v23 }
  0x62   :  { %17439 = vmatprep.mubr.msk.bf16.mxu0 %vm248_vm0, %v23059_v24 }
  0x69   :  { %362 = vmatmul.mubr.bf16.gmra.mrb[28].mxu0 %v23061_v25 }
 0x104   :  { %v307_v29 = vpop.f32.mrb[0].mxu0 }
 0x105   :  { %v308_v30 = vadd.f32 %v23768_v28, %v307_v29  ;;  %v309_v31 = vpop.f32.mrb[1].mxu0 }
 0x106   :  { %v310_v32 = vpop.f32.mrb[2].mxu0 }
 0x107   :  { %v311_v33 = vadd.f32 %v23768_v28, %v310_v32  ;;  %v312_v34 = vpop.f32.mrb[3].mxu0  ;;  %v370_v35 = vmax.f32 %v308_v30, 0.0 }
 0x109   :  { %v371_v36 = vmax.f32 %v311_v33, 0.0 }
 0x10b   :  { %v386_v37 = vpack.c.bf16 %v371_v36, %v370_v35 }
 0x10c   :  { %v315_v38 = vpop.f32.mrb[4].mxu0 }
 0x10d   :  { %v316_v39 = vadd.f32 %v23768_v28, %v315_v38  ;;  %v317_v40 = vpop.f32.mrb[5].mxu0  ;;  %20305 = vmatprep.mubr.msk.bf16.mxu1 %vm417_vm1, %v386_v37  ;;  %v23064_v38 = vld [vmem:[%s27062_s7] sm:$0xff]  }
 0x10e   :  { %v318_v41 = vpop.f32.mrb[6].mxu0 }
 0x10f   :  { %v319_v42 = vadd.f32 %v23768_v28, %v318_v41  ;;  %v320_v43 = vpop.f32.mrb[7].mxu0  ;;  %v372_v44 = vmax.f32 %v316_v39, 0.0  ;;  %v23065_v39 = vld [vmem:[%s27062_s7 + $0x20] sm:$0xff]  }
 0x110   :  { %20389 = vmatprep.mubr.bf16.mxu0 %v23065_v39  ;;  %v23078_v39 = vld [vmem:[%s27064_s0 + $0x8] sm:$0xff]  }
 0x111   :  { %v373_v45 = vmax.f32 %v319_v42, 0.0 }
 0x113   :  { %v387_v46 = vpack.c.bf16 %v373_v45, %v372_v44 }
 0x114   :  { %v323_v47 = vpop.f32.mrb[8].mxu0 }
 0x115   :  { %v324_v48 = vadd.f32 %v23768_v28, %v323_v47  ;;  %v325_v49 = vpop.f32.mrb[9].mxu0  ;;  %20306 = vmatmul.mubr.msk.bf16.vlgmr.msra.gmra.mrb[0].mxu1 %vm417_vm1, %v387_v46 }
 0x116   :  { %v326_v50 = vpop.f32.mrb[10].mxu0 }
 0x117   :  { %v327_v51 = vadd.f32 %v23768_v28, %v326_v50  ;;  %v328_v52 = vpop.f32.mrb[11].mxu0  ;;  %v374_v53 = vmax.f32 %v324_v48, 0.0 }
 0x119   :  { %v375_v54 = vmax.f32 %v327_v51, 0.0 }
 0x11b   :  { %v388_v55 = vpack.c.bf16 %v375_v54, %v374_v53 }
 0x11c   :  { %v331_v56 = vpop.f32.mrb[12].mxu0 }
 0x11d   :  { %v332_v57 = vadd.f32 %v23768_v28, %v331_v56  ;;  %v333_v58 = vpop.f32.mrb[13].mxu0  ;;  %20309 = vmatprep.mubr.msk.bf16.mxu1 %vm417_vm1, %v388_v55 }
 0x11e   :  { %v334_v59 = vpop.f32.mrb[14].mxu0 }
 0x11f   :  { %v335_v60 = vadd.f32 %v23768_v28, %v334_v59  ;;  %v336_v61 = vpop.f32.mrb[15].mxu0  ;;  %v376_v62 = vmax.f32 %v332_v57, 0.0 }
 0x121   :  { %v377_v63 = vmax.f32 %v335_v60, 0.0 }
 0x123   :  { %v389_v0 = vpack.c.bf16 %v377_v63, %v376_v62 }
 0x124   :  { %v339_v1 = vpop.f32.mrb[16].mxu0 }
 0x125   :  { %v340_v2 = vadd.f32 %v23768_v28, %v339_v1  ;;  %v341_v3 = vpop.f32.mrb[17].mxu0  ;;  %20310 = vmatmul.mubr.msk.bf16.gmra.mrb[4].mxu1 %vm417_vm1, %v389_v0 }
 0x126   :  { %v342_v4 = vpop.f32.mrb[18].mxu0 }
 0x127   :  { %v343_v5 = vadd.f32 %v23768_v28, %v342_v4  ;;  %v344_v6 = vpop.f32.mrb[19].mxu0  ;;  %v378_v7 = vmax.f32 %v340_v2, 0.0 }
 0x129   :  { %v379_v8 = vmax.f32 %v343_v5, 0.0 }
 0x12b   :  { %v390_v9 = vpack.c.bf16 %v379_v8, %v378_v7 }
 0x12c   :  { %v347_v10 = vpop.f32.mrb[20].mxu0 }
 0x12d   :  { %v348_v11 = vadd.f32 %v23768_v28, %v347_v10  ;;  %v349_v12 = vpop.f32.mrb[21].mxu0  ;;  %20313 = vmatprep.mubr.msk.bf16.mxu1 %vm417_vm1, %v390_v9 }
 0x12e   :  { %v350_v13 = vpop.f32.mrb[22].mxu0 }
 0x12f   :  { %v351_v14 = vadd.f32 %v23768_v28, %v350_v13  ;;  %v352_v15 = vpop.f32.mrb[23].mxu0  ;;  %v380_v16 = vmax.f32 %v348_v11, 0.0 }
 0x131   :  { %v381_v17 = vmax.f32 %v351_v14, 0.0 }
 0x133   :  { %v391_v18 = vpack.c.bf16 %v381_v17, %v380_v16 }
 0x134   :  { %v355_v19 = vpop.f32.mrb[24].mxu0 }
 0x135   :  { %v356_v20 = vadd.f32 %v23768_v28, %v355_v19  ;;  %v357_v21 = vpop.f32.mrb[25].mxu0  ;;  %20314 = vmatmul.mubr.msk.bf16.gmra.mrb[8].mxu1 %vm417_vm1, %v391_v18 }
 0x136   :  { %v358_v22 = vpop.f32.mrb[26].mxu0 }
 0x137   :  { %v359_v23 = vadd.f32 %v23768_v28, %v358_v22  ;;  %v360_v24 = vpop.f32.mrb[27].mxu0  ;;  %v382_v25 = vmax.f32 %v356_v20, 0.0 }
 0x139   :  { %v383_v26 = vmax.f32 %v359_v23, 0.0 }
 0x13b   :  { %v392_v27 = vpack.c.bf16 %v383_v26, %v382_v25 }
 0x13c   :  { %v363_v29 = vpop.f32.mrb[28].mxu0 }
 0x13d   :  { %v364_v30 = vadd.f32 %v23768_v28, %v363_v29  ;;  %v365_v31 = vpop.f32.mrb[29].mxu0  ;;  %20317 = vmatprep.mubr.msk.bf16.mxu1 %vm417_vm1, %v392_v27 }
 0x13e   :  { %v366_v32 = vpop.f32.mrb[30].mxu0 }
 0x13f   :  { %v367_v33 = vadd.f32 %v23768_v28, %v366_v32  ;;  %v368_v34 = vpop.f32.mrb[31].mxu0  ;;  %v384_v35 = vmax.f32 %v364_v30, 0.0  ;;  %v23803_v28 = vld [vmem:[%s27063_s2] ss:$0 sm:$0xff]  ;;  %s27065_s2 = sld [smem:[#allocation33_spill]] }
 0x140   :  { %v23067_v34 = vld [vmem:[%s27062_s7 + $0x28] sm:$0xff]  }
 0x141   :  { %v385_v36 = vmax.f32 %v367_v33, 0.0  ;;  %v23066_v33 = vld [vmem:[%s27062_s7 + $0x8] sm:$0xff]  }
 0x143   :  { %v393_v37 = vpack.c.bf16 %v385_v36, %v384_v35  ;;  %v23068_v35 = vld [vmem:[%s27062_s7 + $0x10] sm:$0xff]   ;;  %v23069_v36 = vld [vmem:[%s27062_s7 + $0x18] sm:$0xff]  }
 0x145   :  { %20318 = vmatmul.mubr.msk.bf16.gmra.mrb[12].mxu1 %vm417_vm1, %v393_v37  ;;  %v23070_v37 = vld [vmem:[%s27064_s0 + $0x10] sm:$0xff]  }
 0x146   :  { %20337 = vmatprep.mubr.bf16.mxu1 %v23064_v38  ;;  %v23071_v38 = vld [vmem:[%s27065_s2] sm:$0xff]  }
 0x1e8   :  { %v20307_v40 = vpop.f32.mrb[0].mxu1 }
 0x1e9   :  { %v485_v41 = vadd.f32 %v20307_v40, %v23803_v28  ;;  %v476_v42 = vpop.f32.mrb[1].mxu1 }
 0x1ea   :  { %v477_v43 = vadd.f32 %v23803_v28, %v476_v42  ;;  %v20308_v44 = vpop.f32.mrb[2].mxu1 }
 0x1eb   :  { %v488_v45 = vadd.f32 %v20308_v44, %v23803_v28  ;;  %v479_v46 = vpop.f32.mrb[3].mxu1  ;;  %v541_v48 = vmax.f32 %v485_v41, 0.0 }
 0x1ec   :  { %v480_v47 = vadd.f32 %v23803_v28, %v479_v46  ;;  %v539_v50 = vmax.f32 %v477_v43, 0.0 }
 0x1ed   :  { %v542_v49 = vmax.f32 %v488_v45, 0.0 }
 0x1ee   :  { %v540_v51 = vmax.f32 %v480_v47, 0.0 }
 0x1ef   :  { %v23809_v52 = vpack.c.bf16 %v542_v49, %v541_v48 }
 0x1f0   :  { %v23811_v53 = vpack.c.bf16 %v540_v51, %v539_v50 }
 0x1f2   :  { %20321 = vmatprep.subr.bf16.mxu1 %v23811_v53  ;;  %20373 = vmatprep.subr.bf16.mxu0 %v23811_v53 }
 0x1f3   :  { %20322 = vmatpush3.bf16.msra.mxu1 %v23811_v53  ;;  %20374 = vmatpush3.bf16.msra.mxu0 %v23811_v53 }
 0x1f4   :  { %20323 = vmatprep.subr.bf16.mxu1 %v23809_v52  ;;  %20375 = vmatprep.subr.bf16.mxu0 %v23809_v52 }
 0x1f7   :  { %20324 = vmatpush3.bf16.msra.mxu1 %v23809_v52  ;;  %20376 = vmatpush3.bf16.msra.mxu0 %v23809_v52 }
 0x1f8   :  { %v20311_v54 = vpop.f32.mrb[4].mxu1 }
 0x1f9   :  { %v501_v55 = vadd.f32 %v20311_v54, %v23803_v28  ;;  %v492_v56 = vpop.f32.mrb[5].mxu1  ;;  %v23076_v54 = vld [vmem:[%s27066_s30] sm:$0xff]  }
 0x1fa   :  { %v493_v57 = vadd.f32 %v23803_v28, %v492_v56  ;;  %v20312_v58 = vpop.f32.mrb[6].mxu1  ;;  %v23073_v56 = vld [vmem:[%s27065_s2 + $0x10] sm:$0xff]  }
 0x1fb   :  { %v504_v59 = vadd.f32 %v20312_v58, %v23803_v28  ;;  %v495_v60 = vpop.f32.mrb[7].mxu1  ;;  %v545_v62 = vmax.f32 %v501_v55, 0.0  ;;  %v23072_v55 = vld [vmem:[%s27065_s2 + $0x8] sm:$0xff]   ;;  %v23075_v58 = vld [vmem:[%s27065_s2 + $0x20] ss:$0 sps:$4 sm:$0xff]  }
 0x1fc   :  { %v496_v61 = vadd.f32 %v23803_v28, %v495_v60  ;;  %v543_v0 = vmax.f32 %v493_v57, 0.0  ;;  %v23074_v57 = vld [vmem:[%s27065_s2 + $0x18] sm:$0xff]   ;;  %v23077_v60 = vld [vmem:[%s27066_s30 + $0x8] sm:$0xff]  }
 0x1fd   :  { %v546_v63 = vmax.f32 %v504_v59, 0.0  ;;  %v1178_v59 = vsel %vm1176_vm3, %v23075_v58, 0 }
 0x1fe   :  { %v544_v1 = vmax.f32 %v496_v61, 0.0 }
 0x1ff   :  { %v23825_v2 = vpack.c.bf16 %v546_v63, %v545_v62 }
 0x200   :  { %v23827_v3 = vpack.c.bf16 %v544_v1, %v543_v0 }
 0x202   :  { %20325 = vmatprep.subr.bf16.mxu1 %v23827_v3  ;;  %20377 = vmatprep.subr.bf16.mxu0 %v23827_v3 }
 0x203   :  { %20326 = vmatpush3.bf16.msra.mxu1 %v23827_v3  ;;  %20378 = vmatpush3.bf16.msra.mxu0 %v23827_v3 }
 0x204   :  { %20327 = vmatprep.subr.bf16.mxu1 %v23825_v2  ;;  %20379 = vmatprep.subr.bf16.mxu0 %v23825_v2 }
 0x207   :  { %20328 = vmatpush3.bf16.msra.mxu1 %v23825_v2  ;;  %20380 = vmatpush3.bf16.msra.mxu0 %v23825_v2 }
 0x208   :  { %v20315_v4 = vpop.f32.mrb[8].mxu1 }
 0x209   :  { %v517_v5 = vadd.f32 %v20315_v4, %v23803_v28  ;;  %v508_v6 = vpop.f32.mrb[9].mxu1 }
 0x20a   :  { %v509_v7 = vadd.f32 %v23803_v28, %v508_v6  ;;  %v20316_v8 = vpop.f32.mrb[10].mxu1  ;;  %v23081_v6 = vld [vmem:[%s27062_s7 + $0x38] sm:$0xff]  }
 0x20b   :  { %v520_v9 = vadd.f32 %v20316_v8, %v23803_v28  ;;  %v511_v10 = vpop.f32.mrb[11].mxu1  ;;  %v549_v12 = vmax.f32 %v517_v5, 0.0  ;;  %v23080_v5 = vld [vmem:[%s27062_s7 + $0x30] sm:$0xff]   ;;  %v23085_v8 = vld [vmem:[%s27064_s0 + $0x18] sm:$0xff]  }
 0x20c   :  { %v512_v11 = vadd.f32 %v23803_v28, %v511_v10  ;;  %v547_v14 = vmax.f32 %v509_v7, 0.0  ;;  %v23082_v7 = vld [vmem:[%s27067_s1] sm:$0xff]  }
 0x20d   :  { %v550_v13 = vmax.f32 %v520_v9, 0.0 }
 0x20e   :  { %v548_v15 = vmax.f32 %v512_v11, 0.0 }
 0x20f   :  { %v23841_v16 = vpack.c.bf16 %v550_v13, %v549_v12  ;;  %v17490_v13 = vld [vmem:[%s27000_s13] ss:$0 sm:$0xff]  ;;  %s23545_s13 = smov 96  }
 0x210   :  { %v23843_v17 = vpack.c.bf16 %v548_v15, %v547_v14 }
 0x212   :  { %20329 = vmatprep.subr.bf16.mxu1 %v23843_v17  ;;  %20381 = vmatprep.subr.bf16.mxu0 %v23843_v17 }
 0x213   :  { %20330 = vmatpush3.bf16.msra.mxu1 %v23843_v17  ;;  %20382 = vmatpush3.bf16.msra.mxu0 %v23843_v17 }
 0x214   :  { %20331 = vmatprep.subr.bf16.mxu1 %v23841_v16  ;;  %20383 = vmatprep.subr.bf16.mxu0 %v23841_v16 }
 0x217   :  { %20332 = vmatpush3.bf16.msra.mxu1 %v23841_v16  ;;  %20384 = vmatpush3.bf16.msra.mxu0 %v23841_v16 }
 0x218   :  { %v20319_v18 = vpop.f32.mrb[12].mxu1 }
 0x219   :  { %v533_v19 = vadd.f32 %v20319_v18, %v23803_v28  ;;  %v524_v20 = vpop.f32.mrb[13].mxu1 }
 0x21a   :  { %v525_v21 = vadd.f32 %v23803_v28, %v524_v20  ;;  %v20320_v22 = vpop.f32.mrb[14].mxu1 }
 0x21b   :  { %v536_v23 = vadd.f32 %v20320_v22, %v23803_v28  ;;  %v527_v24 = vpop.f32.mrb[15].mxu1  ;;  %v553_v26 = vmax.f32 %v533_v19, 0.0 }
 0x21c   :  { %v528_v25 = vadd.f32 %v23803_v28, %v527_v24  ;;  %v551_v29 = vmax.f32 %v525_v21, 0.0  ;;  %v23079_v28 = vld [vmem:[%s27064_s0] sm:$0xff]  }
 0x21d   :  { %v554_v27 = vmax.f32 %v536_v23, 0.0 }
 0x21e   :  { %v552_v30 = vmax.f32 %v528_v25, 0.0 }
 0x21f   :  { %v23857_v31 = vpack.c.bf16 %v554_v27, %v553_v26 }
 0x220   :  { %v23859_v32 = vpack.c.bf16 %v552_v30, %v551_v29 }
 0x222   :  { %20333 = vmatprep.subr.bf16.mxu1 %v23859_v32  ;;  %20385 = vmatprep.subr.bf16.mxu0 %v23859_v32 }
 0x223   :  { %20334 = vmatpush3.bf16.msra.mxu1 %v23859_v32  ;;  %20386 = vmatpush3.bf16.msra.mxu0 %v23859_v32 }
 0x224   :  { %20335 = vmatprep.subr.bf16.mxu1 %v23857_v31  ;;  %20387 = vmatprep.subr.bf16.mxu0 %v23857_v31 }
 0x227   :  { %20336 = vmatpush3.bf16.msra.mxu1 %v23857_v31  ;;  %20388 = vmatpush3.bf16.msra.mxu0 %v23857_v31 }
 0x228   :  { %20341 = vmatprep.subr.bf16.mxu1 %v23811_v53  ;;  %20393 = vmatprep.subr.bf16.mxu0 %v23070_v37 }
 0x22a   :  { %20338 = vmatmul.mubr.bf16.vlgmr.msra.gmra.mrb[16].mxu1 %v23066_v33  ;;  %20390 = vmatmul.mubr.bf16.vlgmr.msra.gmra.mrb[32].mxu0 %v23067_v34  ;;  %v23083_v33 = vld [vmem:[%s27067_s1 + $0x8] sm:$0xff]   ;;  %v23084_v34 = vld [vmem:[%s27067_s1 + $0x10] sm:$0xff]  }
 0x22b   :  { %20342 = vmatpush3.bf16.msra.mxu1 %v23811_v53  ;;  %20357 = vmatprep.mubr.bf16.mxu1 %v23068_v35  ;;  %v23086_v35 = vld [vmem:[%s27067_s1 + $0x18] sm:$0xff]  }
 0x22c   :  { %20343 = vmatprep.subr.bf16.mxu1 %v23809_v52  ;;  %20394 = vmatpush3.bf16.msra.mxu0 %v23070_v37 }
 0x22d   :  { %20425 = vmatprep.subr.bf16.mxu0 %v23071_v38 }
 0x22f   :  { %20344 = vmatpush3.bf16.msra.mxu1 %v23809_v52 }
 0x230   :  { %20345 = vmatprep.subr.bf16.mxu1 %v23827_v3 }
 0x233   :  { %20346 = vmatpush3.bf16.msra.mxu1 %v23827_v3 }
 0x234   :  { %20347 = vmatprep.subr.bf16.mxu1 %v23825_v2 }
 0x237   :  { %20348 = vmatpush3.bf16.msra.mxu1 %v23825_v2 }
 0x238   :  { %20349 = vmatprep.subr.bf16.mxu1 %v23843_v17 }
 0x23b   :  { %20350 = vmatpush3.bf16.msra.mxu1 %v23843_v17 }
 0x23c   :  { %20351 = vmatprep.subr.bf16.mxu1 %v23841_v16 }
 0x23f   :  { %20352 = vmatpush3.bf16.msra.mxu1 %v23841_v16 }
 0x240   :  { %20353 = vmatprep.subr.bf16.mxu1 %v23859_v32 }
 0x243   :  { %20354 = vmatpush3.bf16.msra.mxu1 %v23859_v32 }
 0x244   :  { %20355 = vmatprep.subr.bf16.mxu1 %v23857_v31 }
 0x247   :  { %20356 = vmatpush3.bf16.msra.mxu1 %v23857_v31 }
 0x248   :  { %20361 = vmatprep.subr.bf16.mxu1 %v23078_v39 }
 0x24a   :  { %20358 = vmatmul.mubr.bf16.vlgmr.msra.gmra.mrb[20].mxu1 %v23069_v36 }
 0x24b   :  { %20362 = vmatpush3.bf16.msra.mxu1 %v23078_v39 }
 0x24c   :  { %20367 = vmatprep.subr.bf16.mxu1 %v23079_v28 }
 0x2fd   :  { %v20339_v40 = vpop.f32.mrb[16].mxu1  ;;  %v20391_v41 = vpop.f32.mrb[32].mxu0 }
 0x2fe   :  { %v613_v42 = vpop.f32.mrb[17].mxu1  ;;  %v876_v43 = vpop.f32.mrb[33].mxu0 }
 0x2ff   :  { %v20340_v44 = vpop.f32.mrb[18].mxu1  ;;  %v20392_v45 = vpop.f32.mrb[34].mxu0 }
 0x300   :  { %v629_v46 = vpack.c.bf16 %v20340_v44, %v20339_v40  ;;  %v892_v47 = vpack.c.bf16 %v20392_v45, %v20391_v41  ;;  %v616_v48 = vpop.f32.mrb[19].mxu1  ;;  %v879_v49 = vpop.f32.mrb[35].mxu0 }
 0x301   :  { %v628_v50 = vpack.c.bf16 %v616_v48, %v613_v42  ;;  %v891_v51 = vpack.c.bf16 %v879_v49, %v876_v43  ;;  %v23087_v49 = vld [vmem:[%s27067_s1 + $0x20] sm:$0xff]  }
 0x303   :  { %20395 = vmatprep.mubr.msk.bf16.mxu0 %vm248_vm0, %v891_v51  ;;  %v23089_v51 = vld [vmem:[%s27067_s1 + $0x30] sm:$0xff]  }
 0x304   :  { %20396 = vmatmul.mubr.msk.bf16.vlgmr.msra.gmra.mrb[36].mxu0 %vm248_vm0, %v892_v47 }
 0x305   :  { %20426 = vmatpush3.bf16.msra.mxu0 %v23071_v38  ;;  %20435 = vmatprep.mubr.msk.bf16.mxu0 %vm1169_vm2, %v23076_v54  ;;  %v23090_v54 = vld [vmem:[%s27067_s1 + $0x38] sm:$0xff]  }
 0x306   :  { %20427 = vmatprep.subr.bf16.mxu0 %v23072_v55 }
 0x309   :  { %20428 = vmatpush3.bf16.msra.mxu0 %v23072_v55  ;;  %v23091_v55 = vld [vmem:[%s27067_s1 + $0x40] sm:$0xff]  }
 0x30a   :  { %20429 = vmatprep.subr.bf16.mxu0 %v23073_v56 }
 0x30d   :  { %20430 = vmatpush3.bf16.msra.mxu0 %v23073_v56  ;;  %v23092_v56 = vld [vmem:[%s27067_s1 + $0x48] sm:$0xff]  }
 0x30e   :  { %20431 = vmatprep.subr.bf16.mxu0 %v23074_v57 }
 0x311   :  { %20432 = vmatpush3.bf16.msra.mxu0 %v23074_v57  ;;  %v23093_v57 = vld [vmem:[%s27067_s1 + $0x50] sm:$0xff]  }
 0x312   :  { %23025 = vmatprep.subr.msk.bf16.mxu0 %vm1176_vm3, %v23075_v58  ;;  %v23094_v58 = vld [vmem:[%s27067_s1 + $0x58] sm:$0xff]  }
 0x315   :  { %20434 = vmatpush3.bf16.msra.mxu0 %v1178_v59  ;;  %v23095_v59 = vld [vmem:[%s27067_s1 + $0x60] sm:$0xff]  }
 0x318   :  { %20436 = vmatmul.mubr.msk.bf16.vlgmr.msra.gmra.mrb[40].mxu0 %vm1169_vm2, %v23077_v60  ;;  %v23096_v60 = vld [vmem:[%s27067_s1 + $0x68] sm:$0xff]  }
 0x319   :  { %20443 = vmatprep.mubr.msk.bf16.mxu0 %vm417_vm1, %v23082_v7  ;;  %v23104_v7 = vld [vmem:[%s27002_s17 + $0x18] sm:$0xff]  }
 0x31d   :  { %v20359_v61 = vpop.f32.mrb[20].mxu1 }
 0x31e   :  { %v683_v62 = vpop.f32.mrb[21].mxu1 }
 0x31f   :  { %v20360_v63 = vpop.f32.mrb[22].mxu1 }
 0x320   :  { %v699_v0 = vpack.c.bf16 %v20360_v63, %v20359_v61  ;;  %v686_v1 = vpop.f32.mrb[23].mxu1  ;;  %v23097_v61 = vld [vmem:[%s27067_s1 + $0x70] sm:$0xff]  }
 0x321   :  { %v698_v4 = vpack.c.bf16 %v686_v1, %v683_v62  ;;  %v23098_v62 = vld [vmem:[%s27067_s1 + $0x78] sm:$0xff]   ;;  %v23101_v63 = vld [vmem:[%s27001_s14 + $0x10] sm:$0xff]  }
 0x322   :  { %v23102_v1 = vld [vmem:[%s27002_s17 + $0x10] sm:$0xff]  }
 0x323   :  { %20363 = vmatprep.mubr.msk.bf16.mxu1 %vm248_vm0, %v698_v4  ;;  %v23103_v4 = vld [vmem:[%s27001_s14 + $0x18] sm:$0xff]  }
 0x324   :  { %20364 = vmatmul.mubr.msk.bf16.vlgmr.msra.gmra.mrb[24].mxu1 %vm248_vm0, %v699_v0  ;;  %v23099_v0 = vld [vmem:[%s27067_s1 + $0x80] sm:$0xff]  }
 0x325   :  { %20368 = vmatpush3.bf16.msra.mxu1 %v23079_v28  ;;  %20369 = vmatprep.mubr.msk.bf16.mxu1 %vm248_vm0, %v628_v50  ;;  %v23088_v50 = vld [vmem:[%s27067_s1 + $0x28] sm:$0xff]  }
 0x326   :  { %20399 = vmatprep.subr.bf16.mxu1 %v23811_v53 }
 0x330   :  { %20370 = vmatmul.mubr.msk.bf16.vlgmr.msra.gmra.mrb[24].mxu1 %vm248_vm0, %v629_v46 }
 0x331   :  { %20400 = vmatpush3.bf16.msra.mxu1 %v23811_v53  ;;  %20415 = vmatprep.mubr.bf16.mxu1 %v23080_v5  ;;  %v23100_v5 = vld [vmem:[%s27067_s1 + $0x88] sm:$0xff]  }
 0x332   :  { %20401 = vmatprep.subr.bf16.mxu1 %v23809_v52 }
 0x335   :  { %20402 = vmatpush3.bf16.msra.mxu1 %v23809_v52 }
 0x336   :  { %20403 = vmatprep.subr.bf16.mxu1 %v23827_v3 }
 0x339   :  { %20404 = vmatpush3.bf16.msra.mxu1 %v23827_v3 }
 0x33a   :  { %20405 = vmatprep.subr.bf16.mxu1 %v23825_v2 }
 0x33d   :  { %20406 = vmatpush3.bf16.msra.mxu1 %v23825_v2 }
 0x33e   :  { %20407 = vmatprep.subr.bf16.mxu1 %v23843_v17 }
 0x341   :  { %20408 = vmatpush3.bf16.msra.mxu1 %v23843_v17 }
 0x342   :  { %20409 = vmatprep.subr.bf16.mxu1 %v23841_v16 }
 0x345   :  { %20410 = vmatpush3.bf16.msra.mxu1 %v23841_v16 }
 0x346   :  { %20411 = vmatprep.subr.bf16.mxu1 %v23859_v32 }
 0x349   :  { %20412 = vmatpush3.bf16.msra.mxu1 %v23859_v32 }
 0x34a   :  { %20413 = vmatprep.subr.bf16.mxu1 %v23857_v31 }
 0x34d   :  { %20414 = vmatpush3.bf16.msra.mxu1 %v23857_v31 }
 0x34e   :  { %20419 = vmatprep.subr.bf16.mxu1 %v23085_v8 }
 0x350   :  { %20416 = vmatmul.mubr.bf16.vlgmr.msra.gmra.mrb[28].mxu1 %v23081_v6  ;;  %v23105_v6 = vld [vmem:[%s27001_s14] sm:$0xff]  }
 0x351   :  { %20420 = vmatpush3.bf16.msra.mxu1 %v23085_v8  ;;  %v23106_v8 = vld [vmem:[%s27002_s17] sm:$0xff]  }
 0x3d7   :  { %v20397_v9 = vpop.f32.mrb[36].mxu0 }
 0x3d8   :  { %v942_v10 = vpop.f32.mrb[37].mxu0 }
 0x3d9   :  { %v20398_v11 = vpop.f32.mrb[38].mxu0 }
 0x3da   :  { %v945_v12 = vpop.f32.mrb[39].mxu0 }
 0x3eb   :  { %v20437_v14 = vpop.f32.mrb[40].mxu0 }
 0x3ec   :  { %v1223_v15 = vadd.f32 %v20437_v14, %v17490_v13  ;;  %v1214_v18 = vpop.f32.mrb[41].mxu0 }
 0x3ed   :  { %v1215_v19 = vadd.f32 %v17490_v13, %v1214_v18  ;;  %v20438_v20 = vpop.f32.mrb[42].mxu0 }
 0x3ee   :  { %v1231_v21 = vmax.f32 %v1223_v15, 0.0  ;;  %v1226_v22 = vadd.f32 %v20438_v20, %v17490_v13  ;;  %v1217_v23 = vpop.f32.mrb[43].mxu0 }
 0x3ef   :  { %v1229_v24 = vmax.f32 %v1215_v19, 0.0  ;;  %v1218_v25 = vadd.f32 %v17490_v13, %v1217_v23  ;;  %v23107_v23 = vld [vmem:[%s27001_s14 + $0x8] sm:$0xff]  }
 0x3f0   :  { %v1232_v26 = vmax.f32 %v1226_v22, 0.0 }
 0x3f1   :  { %v1230_v27 = vmax.f32 %v1218_v25, 0.0  ;;  %v23109_v25 = vld [vmem:[%s27001_s14 + $0x20] sm:$0xff]  }
 0x3f2   :  { %v23967_v29 = vpack.c.bf16 %v1232_v26, %v1231_v21  ;;  %v23110_v26 = vld [vmem:[%s27002_s17 + $0x20] sm:$0xff]  }
 0x3f3   :  { %v23969_v30 = vpack.c.bf16 %v1230_v27, %v1229_v24  ;;  %v23108_v24 = vld [vmem:[%s27002_s17 + $0x8] sm:$0xff]  }
 0x3f4   :  { %v23111_v27 = vld [vmem:[%s27001_s14 + $0x28] sm:$0xff]  }
 0x3f5   :  { %20439 = vmatprep.subr.bf16.mxu0 %v23969_v30  ;;  %20471 = vmatprep.subr.bf16.mxu1 %v23969_v30 }
 0x3f6   :  { %20440 = vmatpush3.bf16.msra.mxu0 %v23969_v30 }
 0x3f7   :  { %20441 = vmatprep.subr.bf16.mxu0 %v23967_v29 }
 0x3fa   :  { %20442 = vmatpush3.bf16.msra.mxu0 %v23967_v29 }
 0x3fb   :  { %20447 = vmatprep.subr.bf16.mxu0 %v23969_v30 }
 0x3fd   :  { %20444 = vmatmul.mubr.msk.bf16.vlgmr.msra.gmra.mrb[44].mxu0 %vm417_vm1, %v23083_v33  ;;  %v23114_v33 = vld [vmem:[%s27002_s17 + $0x30] sm:$0xff]  }
 0x3fe   :  { %20448 = vmatpush3.bf16.msra.mxu0 %v23969_v30  ;;  %20451 = vmatprep.mubr.msk.bf16.mxu0 %vm417_vm1, %v23084_v34  ;;  %v17489_v34 = vld [vmem:[%s27004_s11] ss:$0 sm:$0xff]  ;;  %s23544_s11 = smov 32  }
 0x3ff   :  { %20449 = vmatprep.subr.bf16.mxu0 %v23967_v29 }
 0x402   :  { %20450 = vmatpush3.bf16.msra.mxu0 %v23967_v29 }
 0x403   :  { %v20371_v36 = vpop.f32.mrb[24].mxu1  ;;  %20455 = vmatprep.subr.bf16.mxu0 %v23101_v63 }
 0x404   :  { %v23991_v37 = vadd.f32 %v20397_v9, %v20371_v36  ;;  %v810_v38 = vpop.f32.mrb[25].mxu1 }
 0x405   :  { %v23993_v39 = vadd.f32 %v942_v10, %v810_v38  ;;  %20452 = vmatmul.mubr.msk.bf16.vlgmr.msra.gmra.mrb[48].mxu0 %vm417_vm1, %v23086_v35  ;;  %v20372_v28 = vpop.f32.mrb[26].mxu1 }
 0x406   :  { %v23996_v40 = vadd.f32 %v20398_v11, %v20372_v28  ;;  %v813_v41 = vpop.f32.mrb[27].mxu1  ;;  %20456 = vmatpush3.bf16.msra.mxu0 %v23101_v63 }
 0x407   :  { %v23998_v42 = vadd.f32 %v945_v12, %v813_v41  ;;  %20457 = vmatprep.subr.bf16.mxu0 %v23103_v4 }
 0x40a   :  { %20458 = vmatpush3.bf16.msra.mxu0 %v23103_v4  ;;  %v23118_v4 = vld [vmem:[%s27002_s17 + $0x40] sm:$0xff]  }
 0x40b   :  { %20463 = vmatprep.subr.bf16.mxu0 %v23105_v6 }
 0x423   :  { %v20417_v43 = vpop.f32.mrb[28].mxu1 }
 0x424   :  { %v1012_v44 = vpop.f32.mrb[29].mxu1 }
 0x425   :  { %v20418_v45 = vpop.f32.mrb[30].mxu1 }
 0x426   :  { %v1028_v46 = vpack.c.bf16 %v20418_v45, %v20417_v43  ;;  %v1015_v47 = vpop.f32.mrb[31].mxu1 }
 0x427   :  { %v1027_v48 = vpack.c.bf16 %v1015_v47, %v1012_v44 }
 0x429   :  { %20421 = vmatprep.mubr.msk.bf16.mxu1 %vm248_vm0, %v1027_v48 }
 0x42a   :  { %20422 = vmatmul.mubr.msk.bf16.vlgmr.msra.gmra.mrb[32].mxu1 %vm248_vm0, %v1028_v46 }
 0x42b   :  { %20472 = vmatpush3.bf16.msra.mxu1 %v23969_v30  ;;  %20475 = vmatprep.mubr.msk.bf16.mxu1 %vm417_vm1, %v23087_v49 }
 0x42c   :  { %20473 = vmatprep.subr.bf16.mxu1 %v23967_v29 }
 0x42f   :  { %20474 = vmatpush3.bf16.msra.mxu1 %v23967_v29 }
 0x430   :  { %20487 = vmatprep.subr.bf16.mxu1 %v23969_v30 }
 0x432   :  { %20476 = vmatmul.mubr.msk.bf16.vlgmr.msra.gmra.mrb[36].mxu1 %vm417_vm1, %v23088_v50 }
 0x433   :  { %20488 = vmatpush3.bf16.msra.mxu1 %v23969_v30  ;;  %20491 = vmatprep.mubr.msk.bf16.mxu1 %vm417_vm1, %v23089_v51 }
 0x434   :  { %20489 = vmatprep.subr.bf16.mxu1 %v23967_v29 }
 0x437   :  { %20490 = vmatpush3.bf16.msra.mxu1 %v23967_v29 }
 0x438   :  { %20503 = vmatprep.subr.bf16.mxu1 %v23969_v30 }
 0x43a   :  { %20492 = vmatmul.mubr.msk.bf16.vlgmr.msra.gmra.mrb[40].mxu1 %vm417_vm1, %v23090_v54 }
 0x43b   :  { %20504 = vmatpush3.bf16.msra.mxu1 %v23969_v30  ;;  %20507 = vmatprep.mubr.msk.bf16.mxu1 %vm417_vm1, %v23091_v55 }
 0x43c   :  { %20505 = vmatprep.subr.bf16.mxu1 %v23967_v29 }
 0x43f   :  { %20506 = vmatpush3.bf16.msra.mxu1 %v23967_v29 }
 0x440   :  { %20519 = vmatprep.subr.bf16.mxu1 %v23969_v30 }
 0x442   :  { %20508 = vmatmul.mubr.msk.bf16.vlgmr.msra.gmra.mrb[44].mxu1 %vm417_vm1, %v23092_v56 }
 0x443   :  { %20520 = vmatpush3.bf16.msra.mxu1 %v23969_v30  ;;  %20523 = vmatprep.mubr.msk.bf16.mxu1 %vm417_vm1, %v23093_v57  ;;  %v23115_v57 = vld [vmem:[%s27001_s14 + $0x38] sm:$0xff]  }
 0x444   :  { %20521 = vmatprep.subr.bf16.mxu1 %v23967_v29 }
 0x447   :  { %20522 = vmatpush3.bf16.msra.mxu1 %v23967_v29 }
 0x448   :  { %20535 = vmatprep.subr.bf16.mxu1 %v23969_v30 }
 0x44a   :  { %20524 = vmatmul.mubr.msk.bf16.vlgmr.msra.gmra.mrb[48].mxu1 %vm417_vm1, %v23094_v58 }
 0x44b   :  { %20536 = vmatpush3.bf16.msra.mxu1 %v23969_v30  ;;  %20539 = vmatprep.mubr.msk.bf16.mxu1 %vm417_vm1, %v23095_v59  ;;  %v23116_v59 = vld [vmem:[%s27002_s17 + $0x38] sm:$0xff]  }
 0x44c   :  { %20537 = vmatprep.subr.bf16.mxu1 %v23967_v29 }
 0x44f   :  { %20538 = vmatpush3.bf16.msra.mxu1 %v23967_v29 }
 0x450   :  { %20551 = vmatprep.subr.bf16.mxu1 %v23969_v30 }
 0x452   :  { %20540 = vmatmul.mubr.msk.bf16.vlgmr.msra.gmra.mrb[52].mxu1 %vm417_vm1, %v23096_v60 }
 0x453   :  { %20552 = vmatpush3.bf16.msra.mxu1 %v23969_v30  ;;  %20555 = vmatprep.mubr.msk.bf16.mxu1 %vm417_vm1, %v23097_v61 }
 0x454   :  { %20553 = vmatprep.subr.bf16.mxu1 %v23967_v29 }
 0x457   :  { %20554 = vmatpush3.bf16.msra.mxu1 %v23967_v29 }
 0x458   :  { %20567 = vmatprep.subr.bf16.mxu1 %v23969_v30 }
 0x45a   :  { %20556 = vmatmul.mubr.msk.bf16.vlgmr.msra.gmra.mrb[56].mxu1 %vm417_vm1, %v23098_v62  ;;  %v23117_v62 = vld [vmem:[%s27001_s14 + $0x40] sm:$0xff]  }
 0x45b   :  { %20568 = vmatpush3.bf16.msra.mxu1 %v23969_v30  ;;  %20571 = vmatprep.mubr.msk.bf16.mxu1 %vm417_vm1, %v23099_v0  ;;  %v23113_v30 = vld [vmem:[%s27001_s14 + $0x30] sm:$0xff]  }
 0x45c   :  { %20569 = vmatprep.subr.bf16.mxu1 %v23967_v29 }
 0x45f   :  { %20570 = vmatpush3.bf16.msra.mxu1 %v23967_v29  ;;  %v23112_v29 = vld [vmem:[%s27002_s17 + $0x28] sm:$0xff]  }
 0x460   :  { %20583 = vmatprep.subr.bf16.mxu1 %v23102_v1 }
 0x462   :  { %20572 = vmatmul.mubr.msk.bf16.vlgmr.msra.gmra.mrb[60].mxu1 %vm417_vm1, %v23100_v5 }
 0x463   :  { %20584 = vmatpush3.bf16.msra.mxu1 %v23102_v1 }
 0x464   :  { %20585 = vmatprep.subr.bf16.mxu1 %v23104_v7 }
 0x467   :  { %20586 = vmatpush3.bf16.msra.mxu1 %v23104_v7  ;;  %v23119_v7 = vld [vmem:[%s27001_s14 + $0x48] sm:$0xff]  }
 0x468   :  { %20591 = vmatprep.subr.bf16.mxu1 %v23106_v8 }
 0x4d0   :  { %v20445_v9 = vpop.f32.mrb[44].mxu0 }
 0x4d1   :  { %v1289_v10 = vpop.f32.mrb[45].mxu0 }
 0x4d2   :  { %v20446_v11 = vpop.f32.mrb[46].mxu0 }
 0x4d3   :  { %v1305_v12 = vpack.c.bf16 %v20446_v11, %v20445_v9  ;;  %v1292_v13 = vpop.f32.mrb[47].mxu0  ;;  %v23120_v9 = vld [vmem:[%s27002_s17 + $0x48] sm:$0xff]  }
 0x4d4   :  { %v1304_v14 = vpack.c.bf16 %v1292_v13, %v1289_v10 }
 0x4d8   :  { %v20453_v15 = vpop.f32.mrb[48].mxu0 }
 0x4d9   :  { %v1365_v18 = vpop.f32.mrb[49].mxu0 }
 0x4da   :  { %v20454_v19 = vpop.f32.mrb[50].mxu0 }
 0x4db   :  { %v1381_v20 = vpack.c.bf16 %v20454_v19, %v20453_v15  ;;  %v1368_v21 = vpop.f32.mrb[51].mxu0  ;;  %v23122_v15 = vld [vmem:[%s27002_s17 + $0x50] sm:$0xff]  }
 0x4dc   :  { %v1380_v22 = vpack.c.bf16 %v1368_v21, %v1365_v18 }
 0x4de   :  { %20459 = vmatprep.mubr.msk.bf16.mxu0 %vm417_vm1, %v1380_v22  ;;  %20587 = vmatprep.mubr.msk.bf16.mxu1 %vm417_vm1, %v1380_v22 }
 0x4df   :  { %20460 = vmatmul.mubr.msk.bf16.vlgmr.msra.gmra.mrb[52].mxu0 %vm417_vm1, %v1381_v20  ;;  %20588 = vmatmul.mubr.msk.bf16.vlgmr.msra.gmra.mrb[64].mxu1 %vm417_vm1, %v1381_v20 }
 0x4e0   :  { %20464 = vmatpush3.bf16.msra.mxu0 %v23105_v6  ;;  %20592 = vmatpush3.bf16.msra.mxu1 %v23106_v8 }
 0x4e1   :  { %20465 = vmatprep.subr.bf16.mxu0 %v23107_v23  ;;  %20593 = vmatprep.subr.bf16.mxu1 %v23108_v24 }
 0x4e2   :  { %20467 = vmatprep.mubr.msk.bf16.mxu0 %vm417_vm1, %v1304_v14  ;;  %20595 = vmatprep.mubr.msk.bf16.mxu1 %vm417_vm1, %v1304_v14  ;;  %v23121_v14 = vld [vmem:[%s27001_s14 + $0x50] sm:$0xff]  }
 0x4e4   :  { %20466 = vmatpush3.bf16.msra.mxu0 %v23107_v23  ;;  %20594 = vmatpush3.bf16.msra.mxu1 %v23108_v24  ;;  %v23123_v24 = vld [vmem:[%s27001_s14 + $0x58] sm:$0xff]  }
 0x4e5   :  { %20479 = vmatprep.subr.bf16.mxu0 %v23109_v25  ;;  %20599 = vmatprep.subr.bf16.mxu1 %v23110_v26 }
 0x4eb   :  { %20468 = vmatmul.mubr.msk.bf16.vlgmr.msra.gmra.mrb[52].mxu0 %vm417_vm1, %v1305_v12  ;;  %20596 = vmatmul.mubr.msk.bf16.vlgmr.msra.gmra.mrb[64].mxu1 %vm417_vm1, %v1305_v12 }
 0x4ec   :  { %20480 = vmatpush3.bf16.msra.mxu0 %v23109_v25  ;;  %20600 = vmatpush3.bf16.msra.mxu1 %v23110_v26  ;;  %v23124_v25 = vld [vmem:[%s27002_s17 + $0x58] sm:$0xff]   ;;  %v23125_v26 = vld [vmem:[%s27001_s14 + $0x60] sm:$0xff]  }
 0x4ed   :  { %20481 = vmatprep.subr.bf16.mxu0 %v23111_v27  ;;  %20601 = vmatprep.subr.bf16.mxu1 %v23112_v29 }
 0x4f0   :  { %20482 = vmatpush3.bf16.msra.mxu0 %v23111_v27  ;;  %20602 = vmatpush3.bf16.msra.mxu1 %v23112_v29 }
 0x4f1   :  { %20495 = vmatprep.subr.bf16.mxu0 %v23113_v30  ;;  %20607 = vmatprep.subr.bf16.mxu1 %v23114_v33 }
 0x4fd   :  { %v20423_v35 = vpop.f32.mrb[32].mxu1 }
 0x4fe   :  { %v22438_v36 = vadd.f32 %v23991_v37, %v20423_v35  ;;  %v1078_v38 = vpop.f32.mrb[33].mxu1 }
 0x4ff   :  { %v22440_v28 = vadd.f32 %v23993_v39, %v1078_v38  ;;  %v20424_v41 = vpop.f32.mrb[34].mxu1 }
 0x500   :  { %v1106_v43 = vadd.f32 %v22438_v36, %v17489_v34  ;;  %v22442_v44 = vadd.f32 %v23996_v40, %v20424_v41  ;;  %v1081_v45 = vpop.f32.mrb[35].mxu1 }
 0x501   :  { %v22444_v46 = vadd.f32 %v23998_v42, %v1081_v45  ;;  %v1104_v48 = vadd.f32 %v22440_v28, %v17489_v34  ;;  %v23127_v28 = vld [vmem:[%s27001_s14 + $0x68] sm:$0xff]  }
 0x502   :  { %v24142_v47 = vmax.f32 %v1106_v43, 0.0  ;;  %v1107_v49 = vadd.f32 %v22442_v44, %v17489_v34  ;;  %v23128_v43 = vld [vmem:[%s27002_s17 + $0x68] sm:$0xff]  }
 0x503   :  { %v24148_v51 = vmax.f32 %v1104_v48, 0.0  ;;  %v1105_v39 = vadd.f32 %v22444_v46, %v17489_v34 }
 0x504   :  { %v24144_v50 = vmax.f32 %v1107_v49, 0.0  ;;  %8330 = vrot.lane.b32.xlu0 %v24142_v47, %s23544_s11  ;;  %v23129_v49 = vld [vmem:[%s27001_s14 + $0x70] sm:$0xff]  }
 0x505   :  { %v20477_v37 = vpop.f32.mrb[36].mxu1  ;;  %v24157_v58 = vmax.f32 %v1105_v39, 0.0 }
 0x506   :  { %8332 = vrot.lane.b32.xlu1 %v24144_v50, %s23544_s11  ;;  %v1576_v40 = vpop.f32.mrb[37].mxu1 }
 0x507   :  { %v20478_v54 = vpop.f32.mrb[38].mxu1 }
 0x508   :  { %v1592_v42 = vpack.c.bf16 %v20478_v54, %v20477_v37  ;;  %8326 = vrot.lane.b32.xlu0 %v24148_v51, %s23544_s11  ;;  %v1579_v55 = vpop.f32.mrb[39].mxu1  ;;  %v23130_v37 = vld [vmem:[%s27002_s17 + $0x70] sm:$0xff]  }
 0x509   :  { %v1591_v56 = vpack.c.bf16 %v1579_v55, %v1576_v40 }
 0x50b   :  { %20483 = vmatprep.mubr.msk.bf16.mxu0 %vm417_vm1, %v1591_v56  ;;  %20603 = vmatprep.mubr.msk.bf16.mxu1 %vm417_vm1, %v1591_v56 }
 0x50c   :  { %20484 = vmatmul.mubr.msk.bf16.vlgmr.msra.gmra.mrb[52].mxu0 %vm417_vm1, %v1592_v42  ;;  %20604 = vmatmul.mubr.msk.bf16.vlgmr.msra.gmra.mrb[64].mxu1 %vm417_vm1, %v1592_v42 }
 0x50d   :  { %8328 = vrot.lane.b32.xlu0 %v24157_v58, %s23544_s11  ;;  %20496 = vmatpush3.bf16.msra.mxu0 %v23113_v30  ;;  %v20493_v60 = vpop.f32.mrb[40].mxu1  ;;  %v23126_v30 = vld [vmem:[%s27002_s17 + $0x60] sm:$0xff]  }
 0x50e   :  { %v1724_v61 = vpop.f32.mrb[41].mxu1  ;;  %20608 = vmatpush3.bf16.msra.mxu1 %v23114_v33  ;;  %20497 = vmatprep.subr.bf16.mxu0 %v23115_v57 }
 0x50f   :  { %v20494_v63 = vpop.f32.mrb[42].mxu1  ;;  %20609 = vmatprep.subr.bf16.mxu1 %v23116_v59 }
 0x510   :  { %v1740_v0 = vpack.c.bf16 %v20494_v63, %v20493_v60  ;;  %v1727_v1 = vpop.f32.mrb[43].mxu1  ;;  %v23133_v60 = vld [vmem:[%s27001_s14 + $0x80] sm:$0xff]   ;;  %v23136_v63 = vld [vmem:[%s27002_s17 + $0x88] sm:$0xff]  }
 0x511   :  { %v1739_v5 = vpack.c.bf16 %v1727_v1, %v1724_v61  ;;  %20498 = vmatpush3.bf16.msra.mxu0 %v23115_v57  ;;  %v23131_v57 = vld [vmem:[%s27001_s14 + $0x78] sm:$0xff]   ;;  %v23135_v61 = vld [vmem:[%s27002_s17 + $0x80] sm:$0xff]   ;;  %v23138_v1 = vld [vmem:[%s27003_s3 + $0x8] sm:$0xff]  }
 0x512   :  { %20610 = vmatpush3.bf16.msra.mxu1 %v23116_v59  ;;  %20511 = vmatprep.subr.bf16.mxu0 %v23117_v62  ;;  %v23132_v59 = vld [vmem:[%s27002_s17 + $0x78] sm:$0xff]  }
 0x513   :  { %20499 = vmatprep.mubr.msk.bf16.mxu0 %vm417_vm1, %v1739_v5  ;;  %20611 = vmatprep.mubr.msk.bf16.mxu1 %vm417_vm1, %v1739_v5  ;;  %v23140_v5 = vld [vmem:[%s27003_s3 + $0x18] sm:$0xff]  }
 0x514   :  { %20615 = vmatprep.subr.bf16.mxu1 %v23118_v4 }
 0x515   :  { %v20509_v6 = vpop.f32.mrb[44].mxu1 }
 0x516   :  { %v1872_v8 = vpop.f32.mrb[45].mxu1 }
 0x517   :  { %v20510_v10 = vpop.f32.mrb[46].mxu1 }
 0x518   :  { %20500 = vmatmul.mubr.msk.bf16.vlgmr.msra.gmra.mrb[52].mxu0 %vm417_vm1, %v1740_v0  ;;  %20612 = vmatmul.mubr.msk.bf16.vlgmr.msra.gmra.mrb[64].mxu1 %vm417_vm1, %v1740_v0  ;;  %v1888_v11 = vpack.c.bf16 %v20510_v10, %v20509_v6  ;;  %v1875_v12 = vpop.f32.mrb[47].mxu1  ;;  %v23137_v0 = vld [vmem:[%s27003_s3] sm:$0xff]  }
 0x519   :  { %20512 = vmatpush3.bf16.msra.mxu0 %v23117_v62  ;;  %v1887_v13 = vpack.c.bf16 %v1875_v12, %v1872_v8  ;;  %20616 = vmatpush3.bf16.msra.mxu1 %v23118_v4  ;;  %v23134_v62 = vld [vmem:[%s27001_s14 + $0x88] sm:$0xff]   ;;  %v23139_v4 = vld [vmem:[%s27003_s3 + $0x10] sm:$0xff]   ;;  %v23141_v6 = vld [vmem:[%s27003_s3 + $0x20] sm:$0xff]  }
 0x51a   :  { %20513 = vmatprep.subr.bf16.mxu0 %v23119_v7  ;;  %20617 = vmatprep.subr.bf16.mxu1 %v23120_v9  ;;  %v23143_v8 = vld [vmem:[%s27003_s3 + $0x30] sm:$0xff]   ;;  %v23145_v10 = vld [vmem:[%s27003_s3 + $0x40] sm:$0xff]  }
 0x51b   :  { %20515 = vmatprep.mubr.msk.bf16.mxu0 %vm417_vm1, %v1887_v13  ;;  %20619 = vmatprep.mubr.msk.bf16.mxu1 %vm417_vm1, %v1887_v13  ;;  %v23147_v12 = vld [vmem:[%s27003_s3 + $0x50] sm:$0xff]   ;;  %v23148_v13 = vld [vmem:[%s27003_s3 + $0x58] sm:$0xff]  }
 0x51d   :  { %20514 = vmatpush3.bf16.msra.mxu0 %v23119_v7  ;;  %20618 = vmatpush3.bf16.msra.mxu1 %v23120_v9  ;;  %v20525_v18 = vpop.f32.mrb[48].mxu1  ;;  %v23142_v7 = vld [vmem:[%s27003_s3 + $0x28] sm:$0xff]   ;;  %v23144_v9 = vld [vmem:[%s27003_s3 + $0x38] sm:$0xff]  }
 0x51e   :  { %20527 = vmatprep.subr.bf16.mxu0 %v23121_v14  ;;  %v2020_v19 = vpop.f32.mrb[49].mxu1  ;;  %20623 = vmatprep.subr.bf16.mxu1 %v23122_v15 }
 0x51f   :  { %v20526_v20 = vpop.f32.mrb[50].mxu1 }
 0x520   :  { %v2036_v21 = vpack.c.bf16 %v20526_v20, %v20525_v18  ;;  %v2023_v22 = vpop.f32.mrb[51].mxu1  ;;  %v23151_v18 = vld [vmem:[%s27003_s3 + $0x70] sm:$0xff]   ;;  %v23153_v20 = vld [vmem:[%s27003_s3 + $0x80] sm:$0xff]  }
 0x521   :  { %v2035_v23 = vpack.c.bf16 %v2023_v22, %v2020_v19  ;;  %v23152_v19 = vld [vmem:[%s27003_s3 + $0x78] sm:$0xff]   ;;  %v23155_v22 = vld [vmem:[%s27003_s3 + $0x90] sm:$0xff]  }
 0x524   :  { %20516 = vmatmul.mubr.msk.bf16.vlgmr.msra.gmra.mrb[52].mxu0 %vm417_vm1, %v1888_v11  ;;  %20620 = vmatmul.mubr.msk.bf16.vlgmr.msra.gmra.mrb[64].mxu1 %vm417_vm1, %v1888_v11  ;;  %v23146_v11 = vld [vmem:[%s27003_s3 + $0x48] sm:$0xff]  }
 0x525   :  { %20528 = vmatpush3.bf16.msra.mxu0 %v23121_v14  ;;  %20624 = vmatpush3.bf16.msra.mxu1 %v23122_v15  ;;  %v20541_v27 = vpop.f32.mrb[52].mxu1  ;;  %v23149_v14 = vld [vmem:[%s27003_s3 + $0x60] sm:$0xff]   ;;  %v23150_v15 = vld [vmem:[%s27003_s3 + $0x68] sm:$0xff]  }
 0x526   :  { %20529 = vmatprep.subr.bf16.mxu0 %v23123_v24  ;;  %20531 = vmatprep.mubr.msk.bf16.mxu0 %vm417_vm1, %v2035_v23  ;;  %v2168_v29 = vpop.f32.mrb[53].mxu1 }
 0x527   :  { %20625 = vmatprep.subr.bf16.mxu1 %v23124_v25  ;;  %20627 = vmatprep.mubr.msk.bf16.mxu1 %vm417_vm1, %v2035_v23  ;;  %v20542_v33 = vpop.f32.mrb[54].mxu1  ;;  %v23156_v23 = vld [vmem:[%s27003_s3 + $0x98] sm:$0xff]  }
 0x528   :  { %v2184_v34 = vpack.c.bf16 %v20542_v33, %v20541_v27  ;;  %v2171_v35 = vpop.f32.mrb[55].mxu1  ;;  %v23160_v27 = vld [vmem:[%s27003_s3 + $0xb8] sm:$0xff]   ;;  %v23163_v33 = vld [vmem:[%s27003_s3 + $0xd0] sm:$0xff]  }
 0x529   :  { %20530 = vmatpush3.bf16.msra.mxu0 %v23123_v24  ;;  %20626 = vmatpush3.bf16.msra.mxu1 %v23124_v25  ;;  %v2183_v36 = vpack.c.bf16 %v2171_v35, %v2168_v29  ;;  %v23157_v24 = vld [vmem:[%s27003_s3 + $0xa0] sm:$0xff]   ;;  %v23158_v25 = vld [vmem:[%s27003_s3 + $0xa8] sm:$0xff]  }
 0x52a   :  { %20543 = vmatprep.subr.bf16.mxu0 %v23125_v26  ;;  %20631 = vmatprep.subr.bf16.mxu1 %v23126_v30  ;;  %v23161_v29 = vld [vmem:[%s27003_s3 + $0xc0] sm:$0xff]  }
 0x52b   :  { %v23165_v35 = vld [vmem:[%s27003_s3 + $0xe0] sm:$0xff]  }
 0x52d   :  { %v20557_v38 = vpop.f32.mrb[56].mxu1 }
 0x52e   :  { %v2316_v41 = vpop.f32.mrb[57].mxu1 }
 0x52f   :  { %v20558_v44 = vpop.f32.mrb[58].mxu1 }
 0x530   :  { %20532 = vmatmul.mubr.msk.bf16.vlgmr.msra.gmra.mrb[52].mxu0 %vm417_vm1, %v2036_v21  ;;  %20628 = vmatmul.mubr.msk.bf16.vlgmr.msra.gmra.mrb[64].mxu1 %vm417_vm1, %v2036_v21  ;;  %v2332_v45 = vpack.c.bf16 %v20558_v44, %v20557_v38  ;;  %v2319_v46 = vpop.f32.mrb[59].mxu1  ;;  %v23154_v21 = vld [vmem:[%s27003_s3 + $0x88] sm:$0xff]   ;;  %v23167_v38 = vld [vmem:[%s27003_s3 + $0xf0] sm:$0xff]  }
 0x531   :  { %20544 = vmatpush3.bf16.msra.mxu0 %v23125_v26  ;;  %20632 = vmatpush3.bf16.msra.mxu1 %v23126_v30  ;;  %v2331_v48 = vpack.c.bf16 %v2319_v46, %v2316_v41  ;;  %v23159_v26 = vld [vmem:[%s27003_s3 + $0xb0] sm:$0xff]   ;;  %v23162_v30 = vld [vmem:[%s27003_s3 + $0xc8] sm:$0xff]   ;;  %v24446_v46 = vld [vmem:[%s27005_s20] sm:$0xff]  }
 0x532   :  { %20545 = vmatprep.subr.bf16.mxu0 %v23127_v28  ;;  %20547 = vmatprep.mubr.msk.bf16.mxu0 %vm417_vm1, %v2183_v36  ;;  %v23199_v41 = vld [vmem:[%s27005_s20 + $0x8] sm:$0xff]  }
 0x533   :  { %20633 = vmatprep.subr.bf16.mxu1 %v23128_v43  ;;  %20635 = vmatprep.mubr.msk.bf16.mxu1 %vm417_vm1, %v2183_v36  ;;  %v23166_v36 = vld [vmem:[%s27003_s3 + $0xe8] sm:$0xff]  }
 0x534   :  { %v23170_v44 = vld [vmem:[%s27003_s3 + $0x108] sm:$0xff]  }
 0x535   :  { %20546 = vmatpush3.bf16.msra.mxu0 %v23127_v28  ;;  %20634 = vmatpush3.bf16.msra.mxu1 %v23128_v43  ;;  %v20573_v39 = vpop.f32.mrb[60].mxu1  ;;  %v23168_v28 = vld [vmem:[%s27003_s3 + $0xf8] sm:$0xff]   ;;  %v23169_v43 = vld [vmem:[%s27003_s3 + $0x100] sm:$0xff]  }
 0x536   :  { %20559 = vmatprep.subr.bf16.mxu0 %v23129_v49  ;;  %20639 = vmatprep.subr.bf16.mxu1 %v23130_v37  ;;  %v2464_v40 = vpop.f32.mrb[61].mxu1 }
 0x537   :  { %v20574_v54 = vpop.f32.mrb[62].mxu1 }
 0x538   :  { %v2480_v42 = vpack.c.bf16 %v20574_v54, %v20573_v39  ;;  %v2467_v55 = vpop.f32.mrb[63].mxu1  ;;  %v23175_v39 = vld [vmem:[%s27003_s3 + $0x130] sm:$0xff]   ;;  %v23177_v54 = vld [vmem:[%s27003_s3 + $0x140] sm:$0xff]  }
 0x539   :  { %v2479_v56 = vpack.c.bf16 %v2467_v55, %v2464_v40  ;;  %v23176_v40 = vld [vmem:[%s27003_s3 + $0x138] sm:$0xff]   ;;  %v23179_v55 = vld [vmem:[%s27003_s3 + $0x150] sm:$0xff]  }
 0x53c   :  { %20548 = vmatmul.mubr.msk.bf16.vlgmr.msra.gmra.mrb[52].mxu0 %vm417_vm1, %v2184_v34  ;;  %20636 = vmatmul.mubr.msk.bf16.vlgmr.msra.gmra.mrb[64].mxu1 %vm417_vm1, %v2184_v34  ;;  %v23164_v34 = vld [vmem:[%s27003_s3 + $0xd8] sm:$0xff]  }
 0x53d   :  { %20560 = vmatpush3.bf16.msra.mxu0 %v23129_v49  ;;  %20640 = vmatpush3.bf16.msra.mxu1 %v23130_v37  ;;  %v23173_v49 = vld [vmem:[%s27003_s3 + $0x120] sm:$0xff]   ;;  %v23174_v37 = vld [vmem:[%s27003_s3 + $0x128] sm:$0xff]  }
 0x53e   :  { %20561 = vmatprep.subr.bf16.mxu0 %v23131_v57  ;;  %20563 = vmatprep.mubr.msk.bf16.mxu0 %vm417_vm1, %v2331_v48 }
 0x53f   :  { %20641 = vmatprep.subr.bf16.mxu1 %v23132_v59  ;;  %20643 = vmatprep.mubr.msk.bf16.mxu1 %vm417_vm1, %v2331_v48  ;;  %v23172_v48 = vld [vmem:[%s27003_s3 + $0x118] sm:$0xff]  }
 0x541   :  { %20562 = vmatpush3.bf16.msra.mxu0 %v23131_v57  ;;  %20642 = vmatpush3.bf16.msra.mxu1 %v23132_v59  ;;  %v23181_v57 = vld [vmem:[%s27003_s3 + $0x160] sm:$0xff]   ;;  %v23182_v59 = vld [vmem:[%s27003_s3 + $0x168] sm:$0xff]  }
 0x542   :  { %20575 = vmatprep.subr.bf16.mxu0 %v23133_v60  ;;  %20647 = vmatprep.subr.bf16.mxu1 %v23135_v61 }
 0x548   :  { %20564 = vmatmul.mubr.msk.bf16.vlgmr.msra.gmra.mrb[52].mxu0 %vm417_vm1, %v2332_v45  ;;  %20644 = vmatmul.mubr.msk.bf16.vlgmr.msra.gmra.mrb[64].mxu1 %vm417_vm1, %v2332_v45  ;;  %v23171_v45 = vld [vmem:[%s27003_s3 + $0x110] sm:$0xff]  }
 0x549   :  { %20576 = vmatpush3.bf16.msra.mxu0 %v23133_v60  ;;  %20648 = vmatpush3.bf16.msra.mxu1 %v23135_v61  ;;  %v23183_v60 = vld [vmem:[%s27003_s3 + $0x170] sm:$0xff]  }
 0x54a   :  { %20577 = vmatprep.subr.bf16.mxu0 %v23134_v62  ;;  %20579 = vmatprep.mubr.msk.bf16.mxu0 %vm417_vm1, %v2479_v56 }
 0x54b   :  { %20649 = vmatprep.subr.bf16.mxu1 %v23136_v63  ;;  %20651 = vmatprep.mubr.msk.bf16.mxu1 %vm417_vm1, %v2479_v56  ;;  %v23180_v56 = vld [vmem:[%s27003_s3 + $0x158] sm:$0xff]  }
 0x54d   :  { %20578 = vmatpush3.bf16.msra.mxu0 %v23134_v62  ;;  %20650 = vmatpush3.bf16.msra.mxu1 %v23136_v63 }
 0x54e   :  { %20655 = vmatprep.subr.bf16.mxu0 %v23811_v53  ;;  %20719 = vmatprep.subr.bf16.mxu1 %v23199_v41 }
 0x554   :  { %20580 = vmatmul.mubr.msk.bf16.vlgmr.msra.gmra.mrb[52].mxu0 %vm417_vm1, %v2480_v42  ;;  %20652 = vmatmul.mubr.msk.bf16.vlgmr.msra.gmra.mrb[64].mxu1 %vm417_vm1, %v2480_v42  ;;  %v23178_v42 = vld [vmem:[%s27003_s3 + $0x148] sm:$0xff]  }
 0x555   :  { %20656 = vmatpush3.bf16.msra.mxu0 %v23811_v53  ;;  %20671 = vmatprep.mubr.bf16.mxu0 %v23137_v0 }
 0x556   :  { %20657 = vmatprep.subr.bf16.mxu0 %v23809_v52  ;;  %20720 = vmatpush3.bf16.msra.mxu1 %v23199_v41 }
 0x557   :  { %20737 = vmatprep.subr.bf16.mxu1 %v24446_v46 }
 0x559   :  { %20658 = vmatpush3.bf16.msra.mxu0 %v23809_v52 }
 0x55a   :  { %20659 = vmatprep.subr.bf16.mxu0 %v23827_v3 }
 0x55d   :  { %20660 = vmatpush3.bf16.msra.mxu0 %v23827_v3 }
 0x55e   :  { %20661 = vmatprep.subr.bf16.mxu0 %v23825_v2 }
 0x561   :  { %20662 = vmatpush3.bf16.msra.mxu0 %v23825_v2 }
 0x562   :  { %20663 = vmatprep.subr.bf16.mxu0 %v23843_v17 }
 0x565   :  { %20664 = vmatpush3.bf16.msra.mxu0 %v23843_v17 }
 0x566   :  { %20665 = vmatprep.subr.bf16.mxu0 %v23841_v16 }
 0x569   :  { %20666 = vmatpush3.bf16.msra.mxu0 %v23841_v16 }
 0x56a   :  { %20667 = vmatprep.subr.bf16.mxu0 %v23859_v32 }
 0x56d   :  { %20668 = vmatpush3.bf16.msra.mxu0 %v23859_v32 }
 0x56e   :  { %20669 = vmatprep.subr.bf16.mxu0 %v23857_v31 }
 0x571   :  { %20670 = vmatpush3.bf16.msra.mxu0 %v23857_v31 }
 0x572   :  { %20687 = vmatprep.subr.bf16.mxu0 %v23811_v53 }
 0x574   :  { %20672 = vmatmul.mubr.bf16.vlgmr.msra.gmra.mrb[56].mxu0 %v23138_v1  ;;  %v23184_v1 = vld [vmem:[%s27003_s3 + $0x178] sm:$0xff]  }
 0x575   :  { %20688 = vmatpush3.bf16.msra.mxu0 %v23811_v53  ;;  %20675 = vmatprep.mubr.bf16.mxu0 %v23139_v4 }
 0x576   :  { %20689 = vmatprep.subr.bf16.mxu0 %v23809_v52 }
 0x579   :  { %20690 = vmatpush3.bf16.msra.mxu0 %v23809_v52 }
 0x57a   :  { %20691 = vmatprep.subr.bf16.mxu0 %v23827_v3 }
 0x57c   :  { %20676 = vmatmul.mubr.bf16.gmra.mrb[60].mxu0 %v23140_v5 }
 0x57d   :  { %20692 = vmatpush3.bf16.msra.mxu0 %v23827_v3  ;;  %20679 = vmatprep.mubr.bf16.mxu0 %v23141_v6  ;;  %v23185_v6 = vld [vmem:[%s27003_s3 + $0x180] sm:$0xff]  }
 0x57e   :  { %20693 = vmatprep.subr.bf16.mxu0 %v23825_v2 }
 0x581   :  { %20694 = vmatpush3.bf16.msra.mxu0 %v23825_v2 }
 0x582   :  { %20695 = vmatprep.subr.bf16.mxu0 %v23843_v17 }
 0x584   :  { %20680 = vmatmul.mubr.bf16.gmra.mrb[64].mxu0 %v23142_v7 }
 0x585   :  { %20696 = vmatpush3.bf16.msra.mxu0 %v23843_v17  ;;  %20683 = vmatprep.mubr.bf16.mxu0 %v23143_v8 }
 0x586   :  { %20697 = vmatprep.subr.bf16.mxu0 %v23841_v16 }
 0x589   :  { %20698 = vmatpush3.bf16.msra.mxu0 %v23841_v16 }
 0x58a   :  { %20699 = vmatprep.subr.bf16.mxu0 %v23859_v32 }
 0x58c   :  { %20684 = vmatmul.mubr.bf16.gmra.mrb[68].mxu0 %v23144_v9  ;;  %v23186_v9 = vld [vmem:[%s27003_s3 + $0x188] sm:$0xff]  }
 0x58d   :  { %20700 = vmatpush3.bf16.msra.mxu0 %v23859_v32  ;;  %20703 = vmatprep.mubr.bf16.mxu0 %v23145_v10  ;;  %v23187_v10 = vld [vmem:[%s27003_s3 + $0x190] sm:$0xff]  }
 0x58e   :  { %20701 = vmatprep.subr.bf16.mxu0 %v23857_v31 }
 0x591   :  { %20702 = vmatpush3.bf16.msra.mxu0 %v23857_v31 }
 0x592   :  { %20755 = vmatprep.subr.bf16.mxu0 %v23811_v53 }
 0x594   :  { %20704 = vmatmul.mubr.bf16.vlgmr.msra.gmra.mrb[72].mxu0 %v23146_v11  ;;  %v23188_v11 = vld [vmem:[%s27003_s3 + $0x198] sm:$0xff]  }
 0x595   :  { %20756 = vmatpush3.bf16.msra.mxu0 %v23811_v53  ;;  %20707 = vmatprep.mubr.bf16.mxu0 %v23147_v12  ;;  %v23189_v12 = vld [vmem:[%s27003_s3 + $0x1a0] sm:$0xff]  }
 0x596   :  { %20757 = vmatprep.subr.bf16.mxu0 %v23809_v52 }
 0x599   :  { %20758 = vmatpush3.bf16.msra.mxu0 %v23809_v52 }
 0x59a   :  { %20759 = vmatprep.subr.bf16.mxu0 %v23827_v3 }
 0x59c   :  { %20708 = vmatmul.mubr.bf16.gmra.mrb[76].mxu0 %v23148_v13  ;;  %v23190_v13 = vld [vmem:[%s27003_s3 + $0x1a8] sm:$0xff]  }
 0x59d   :  { %20760 = vmatpush3.bf16.msra.mxu0 %v23827_v3  ;;  %20711 = vmatprep.mubr.bf16.mxu0 %v23149_v14  ;;  %v23191_v14 = vld [vmem:[%s27003_s3 + $0x1b0] sm:$0xff]  }
 0x59e   :  { %20761 = vmatprep.subr.bf16.mxu0 %v23825_v2 }
 0x5a1   :  { %20762 = vmatpush3.bf16.msra.mxu0 %v23825_v2 }
 0x5a2   :  { %20763 = vmatprep.subr.bf16.mxu0 %v23843_v17 }
 0x5a4   :  { %20712 = vmatmul.mubr.bf16.gmra.mrb[80].mxu0 %v23150_v15 }
 0x5a5   :  { %20764 = vmatpush3.bf16.msra.mxu0 %v23843_v17  ;;  %20715 = vmatprep.mubr.bf16.mxu0 %v23151_v18 }
 0x5a6   :  { %20765 = vmatprep.subr.bf16.mxu0 %v23841_v16 }
 0x5a9   :  { %20766 = vmatpush3.bf16.msra.mxu0 %v23841_v16 }
 0x5aa   :  { %20767 = vmatprep.subr.bf16.mxu0 %v23859_v32 }
 0x5ac   :  { %20716 = vmatmul.mubr.bf16.gmra.mrb[84].mxu0 %v23152_v19  ;;  %v23192_v19 = vld [vmem:[%s27003_s3 + $0x1b8] sm:$0xff]  }
 0x5ad   :  { %20768 = vmatpush3.bf16.msra.mxu0 %v23859_v32  ;;  %20771 = vmatprep.mubr.bf16.mxu0 %v23153_v20 }
 0x5ae   :  { %20769 = vmatprep.subr.bf16.mxu0 %v23857_v31 }
 0x5b1   :  { %20770 = vmatpush3.bf16.msra.mxu0 %v23857_v31 }
 0x5b2   :  { %20805 = vmatprep.subr.bf16.mxu0 %v23811_v53 }
 0x5b4   :  { %20772 = vmatmul.mubr.bf16.vlgmr.msra.gmra.mrb[88].mxu0 %v23154_v21  ;;  %v23193_v21 = vld [vmem:[%s27003_s3 + $0x1c0] sm:$0xff]  }
 0x5b5   :  { %20806 = vmatpush3.bf16.msra.mxu0 %v23811_v53  ;;  %20775 = vmatprep.mubr.bf16.mxu0 %v23155_v22 }
 0x5b6   :  { %20807 = vmatprep.subr.bf16.mxu0 %v23809_v52 }
 0x5b9   :  { %20808 = vmatpush3.bf16.msra.mxu0 %v23809_v52 }
 0x5ba   :  { %20809 = vmatprep.subr.bf16.mxu0 %v23827_v3 }
 0x5bc   :  { %20776 = vmatmul.mubr.bf16.gmra.mrb[92].mxu0 %v23156_v23 }
 0x5bd   :  { %20810 = vmatpush3.bf16.msra.mxu0 %v23827_v3  ;;  %20779 = vmatprep.mubr.bf16.mxu0 %v23157_v24 }
 0x5be   :  { %20811 = vmatprep.subr.bf16.mxu0 %v23825_v2 }
 0x5c1   :  { %20812 = vmatpush3.bf16.msra.mxu0 %v23825_v2 }
 0x5c2   :  { %20813 = vmatprep.subr.bf16.mxu0 %v23843_v17 }
 0x5c4   :  { %20780 = vmatmul.mubr.bf16.gmra.mrb[96].mxu0 %v23158_v25 }
 0x5c5   :  { %20814 = vmatpush3.bf16.msra.mxu0 %v23843_v17  ;;  %20783 = vmatprep.mubr.bf16.mxu0 %v23159_v26 }
 0x5c6   :  { %20815 = vmatprep.subr.bf16.mxu0 %v23841_v16 }
 0x5c9   :  { %20816 = vmatpush3.bf16.msra.mxu0 %v23841_v16 }
 0x5ca   :  { %20817 = vmatprep.subr.bf16.mxu0 %v23859_v32 }
 0x5cc   :  { %20784 = vmatmul.mubr.bf16.gmra.mrb[100].mxu0 %v23160_v27  ;;  %v23194_v27 = vld [vmem:[%s27003_s3 + $0x1c8] sm:$0xff]  }
 0x5cd   :  { %20818 = vmatpush3.bf16.msra.mxu0 %v23859_v32  ;;  %20821 = vmatprep.mubr.bf16.mxu0 %v23161_v29 }
 0x5ce   :  { %20819 = vmatprep.subr.bf16.mxu0 %v23857_v31 }
 0x5d1   :  { %20820 = vmatpush3.bf16.msra.mxu0 %v23857_v31 }
 0x5d2   :  { %20855 = vmatprep.subr.bf16.mxu0 %v23811_v53 }
 0x5d4   :  { %20822 = vmatmul.mubr.bf16.vlgmr.msra.gmra.mrb[104].mxu0 %v23162_v30  ;;  %v23195_v30 = vld [vmem:[%s27003_s3 + $0x1d0] sm:$0xff]  }
 0x5d5   :  { %20856 = vmatpush3.bf16.msra.mxu0 %v23811_v53  ;;  %20825 = vmatprep.mubr.bf16.mxu0 %v23163_v33 }
 0x5d6   :  { %20857 = vmatprep.subr.bf16.mxu0 %v23809_v52 }
 0x5d9   :  { %20858 = vmatpush3.bf16.msra.mxu0 %v23809_v52 }
 0x5da   :  { %20859 = vmatprep.subr.bf16.mxu0 %v23827_v3 }
 0x5dc   :  { %20826 = vmatmul.mubr.bf16.gmra.mrb[108].mxu0 %v23164_v34 }
 0x5dd   :  { %20860 = vmatpush3.bf16.msra.mxu0 %v23827_v3  ;;  %20829 = vmatprep.mubr.bf16.mxu0 %v23165_v35 }
 0x5de   :  { %20861 = vmatprep.subr.bf16.mxu0 %v23825_v2 }
 0x5e1   :  { %20862 = vmatpush3.bf16.msra.mxu0 %v23825_v2 }
 0x5e2   :  { %20863 = vmatprep.subr.bf16.mxu0 %v23843_v17 }
 0x5e4   :  { %20830 = vmatmul.mubr.bf16.gmra.mrb[112].mxu0 %v23166_v36 }
 0x5e5   :  { %20864 = vmatpush3.bf16.msra.mxu0 %v23843_v17  ;;  %20833 = vmatprep.mubr.bf16.mxu0 %v23167_v38 }
 0x5e6   :  { %20865 = vmatprep.subr.bf16.mxu0 %v23841_v16 }
 0x5e9   :  { %20866 = vmatpush3.bf16.msra.mxu0 %v23841_v16 }
 0x5ea   :  { %20867 = vmatprep.subr.bf16.mxu0 %v23859_v32 }
 0x5ec   :  { %20834 = vmatmul.mubr.bf16.gmra.mrb[116].mxu0 %v23168_v28  ;;  %v23196_v28 = vld [vmem:[%s27003_s3 + $0x1d8] sm:$0xff]  }
 0x5ed   :  { %20868 = vmatpush3.bf16.msra.mxu0 %v23859_v32  ;;  %20871 = vmatprep.mubr.bf16.mxu0 %v23169_v43  ;;  %v23197_v43 = vld [vmem:[%s27003_s3 + $0x1e0] sm:$0xff]  }
 0x5ee   :  { %20869 = vmatprep.subr.bf16.mxu0 %v23857_v31 }
 0x5f1   :  { %20870 = vmatpush3.bf16.msra.mxu0 %v23857_v31 }
 0x5f2   :  { %20905 = vmatprep.subr.bf16.mxu0 %v23811_v53 }
 0x5f4   :  { %20872 = vmatmul.mubr.bf16.vlgmr.msra.gmra.mrb[120].mxu0 %v23170_v44 }
 0x5f5   :  { %20906 = vmatpush3.bf16.msra.mxu0 %v23811_v53  ;;  %20875 = vmatprep.mubr.bf16.mxu0 %v23171_v45 }
 0x5f6   :  { %20907 = vmatprep.subr.bf16.mxu0 %v23809_v52 }
 0x5f9   :  { %20908 = vmatpush3.bf16.msra.mxu0 %v23809_v52 }
 0x5fa   :  { %20909 = vmatprep.subr.bf16.mxu0 %v23827_v3 }
 0x5fc   :  { %20876 = vmatmul.mubr.bf16.gmra.mrb[124].mxu0 %v23172_v48 }
 0x5fd   :  { %20910 = vmatpush3.bf16.msra.mxu0 %v23827_v3  ;;  %20879 = vmatprep.mubr.bf16.mxu0 %v23173_v49  ;;  %v23198_v49 = vld [vmem:[%s27003_s3 + $0x1e8] sm:$0xff]  }
 0x5fe   :  { %20911 = vmatprep.subr.bf16.mxu0 %v23825_v2 }
 0x601   :  { %20912 = vmatpush3.bf16.msra.mxu0 %v23825_v2 }
 0x602   :  { %20913 = vmatprep.subr.bf16.mxu0 %v23843_v17 }
 0x604   :  { %20880 = vmatmul.mubr.bf16.gmra.mrb[128].mxu0 %v23174_v37 }
 0x605   :  { %20914 = vmatpush3.bf16.msra.mxu0 %v23843_v17  ;;  %20883 = vmatprep.mubr.bf16.mxu0 %v23175_v39  ;;  %v23200_v39 = vld [vmem:[%s27003_s3 + $0x1f0] sm:$0xff]  }
 0x606   :  { %20915 = vmatprep.subr.bf16.mxu0 %v23841_v16 }
 0x609   :  { %20916 = vmatpush3.bf16.msra.mxu0 %v23841_v16 }
 0x60a   :  { %20917 = vmatprep.subr.bf16.mxu0 %v23859_v32 }
 0x60c   :  { %20884 = vmatmul.mubr.bf16.gmra.mrb[132].mxu0 %v23176_v40 }
 0x60d   :  { %20918 = vmatpush3.bf16.msra.mxu0 %v23859_v32  ;;  %20921 = vmatprep.mubr.bf16.mxu0 %v23177_v54 }
 0x60e   :  { %20919 = vmatprep.subr.bf16.mxu0 %v23857_v31 }
 0x611   :  { %20920 = vmatpush3.bf16.msra.mxu0 %v23857_v31 }
 0x612   :  { %20955 = vmatprep.subr.bf16.mxu0 %v23811_v53 }
 0x614   :  { %20922 = vmatmul.mubr.bf16.vlgmr.msra.gmra.mrb[136].mxu0 %v23178_v42 }
 0x615   :  { %20956 = vmatpush3.bf16.msra.mxu0 %v23811_v53  ;;  %20925 = vmatprep.mubr.bf16.mxu0 %v23179_v55  ;;  %v23201_v55 = vld [vmem:[%s27003_s3 + $0x1f8] sm:$0xff]  }
 0x616   :  { %20957 = vmatprep.subr.bf16.mxu0 %v23809_v52 }
 0x619   :  { %20958 = vmatpush3.bf16.msra.mxu0 %v23809_v52 }
 0x61a   :  { %20959 = vmatprep.subr.bf16.mxu0 %v23827_v3 }
 0x61c   :  { %20926 = vmatmul.mubr.bf16.gmra.mrb[140].mxu0 %v23180_v56 }
 0x61d   :  { %20960 = vmatpush3.bf16.msra.mxu0 %v23827_v3  ;;  %20929 = vmatprep.mubr.bf16.mxu0 %v23181_v57 }
 0x61e   :  { %20961 = vmatprep.subr.bf16.mxu0 %v23825_v2 }
 0x621   :  { %20962 = vmatpush3.bf16.msra.mxu0 %v23825_v2 }
 0x622   :  { %20963 = vmatprep.subr.bf16.mxu0 %v23843_v17 }
 0x624   :  { %20930 = vmatmul.mubr.bf16.gmra.mrb[144].mxu0 %v23182_v59 }
 0x625   :  { %20964 = vmatpush3.bf16.msra.mxu0 %v23843_v17  ;;  %20933 = vmatprep.mubr.bf16.mxu0 %v23183_v60 }
 0x626   :  { %20965 = vmatprep.subr.bf16.mxu0 %v23841_v16 }
 0x627   :  { %v24509_v61 = vpop.f32.mrb[52].mxu0  ;;  %v24511_v62 = vpop.f32.mrb[64].mxu1 }
 0x628   :  { %27068 = vst [vmem:[#allocation2_spill] sm:$0xff] %v24511_v62  ;;  %v24513_v63 = vpop.f32.mrb[53].mxu0  ;;  %v24515_v0 = vpop.f32.mrb[65].mxu1 }
 0x629   :  { %27069 = vst [vmem:[#allocation3_spill] sm:$0xff] %v24515_v0  ;;  %20966 = vmatpush3.bf16.msra.mxu0 %v23841_v16  ;;  %v24521_v4 = vpop.f32.mrb[54].mxu0  ;;  %v24523_v5 = vpop.f32.mrb[66].mxu1 }
 0x62a   :  { %27070 = vst [vmem:[#allocation4_spill] sm:$0xff] %v24523_v5  ;;  %20967 = vmatprep.subr.bf16.mxu0 %v23859_v32  ;;  %v24529_v7 = vpop.f32.mrb[55].mxu0  ;;  %v24531_v8 = vpop.f32.mrb[67].mxu1 }
 0x62b   :  { %27071 = vst [vmem:[#allocation5_spill] sm:$0xff] %v24531_v8 }
 0x62c   :  { %20934 = vmatmul.mubr.bf16.gmra.mrb[148].mxu0 %v23184_v1  ;;  %v24664_v1 = vld [vmem:[%s27005_s20 + $0x10] sm:$0xff]  }
 0x62d   :  { %20968 = vmatpush3.bf16.msra.mxu0 %v23859_v32  ;;  %20971 = vmatprep.mubr.bf16.mxu0 %v23185_v6  ;;  %v24673_v6 = vpack.c.bf16 %v24157_v58, %v24148_v51 }
 0x62e   :  { %20969 = vmatprep.subr.bf16.mxu0 %v23857_v31 }
 0x631   :  { %20970 = vmatpush3.bf16.msra.mxu0 %v23857_v31 }
 0x632   :  { %21005 = vmatprep.subr.bf16.mxu0 %v23811_v53 }
 0x634   :  { %20972 = vmatmul.mubr.bf16.vlgmr.msra.gmra.mrb[152].mxu0 %v23186_v9 }
 0x635   :  { %21006 = vmatpush3.bf16.msra.mxu0 %v23811_v53  ;;  %20975 = vmatprep.mubr.bf16.mxu0 %v23187_v10  ;;  %v23203_v10 = vld [vmem:[%s27003_s3 + $0x208] sm:$0xff]  }
 0x636   :  { %21007 = vmatprep.subr.bf16.mxu0 %v23809_v52 }
 0x639   :  { %21008 = vmatpush3.bf16.msra.mxu0 %v23809_v52 }
 0x63a   :  { %21009 = vmatprep.subr.bf16.mxu0 %v23827_v3 }
 0x63c   :  { %20976 = vmatmul.mubr.bf16.gmra.mrb[156].mxu0 %v23188_v11 }
 0x63d   :  { %21010 = vmatpush3.bf16.msra.mxu0 %v23827_v3  ;;  %20979 = vmatprep.mubr.bf16.mxu0 %v23189_v12 }
 0x63e   :  { %21011 = vmatprep.subr.bf16.mxu0 %v23825_v2 }
 0x641   :  { %21012 = vmatpush3.bf16.msra.mxu0 %v23825_v2 }
 0x642   :  { %21013 = vmatprep.subr.bf16.mxu0 %v23843_v17 }
 0x644   :  { %20980 = vmatmul.mubr.bf16.gmra.mrb[160].mxu0 %v23190_v13 }
 0x645   :  { %21014 = vmatpush3.bf16.msra.mxu0 %v23843_v17  ;;  %20983 = vmatprep.mubr.bf16.mxu0 %v23191_v14  ;;  %v24686_v14 = vpack.c.bf16 %v24144_v50, %v24142_v47 }
 0x646   :  { %21015 = vmatprep.subr.bf16.mxu0 %v23841_v16 }
 0x647   :  { %v24565_v15 = vpop.f32.mrb[56].mxu0 }
 0x648   :  { %v24567_v18 = vpop.f32.mrb[57].mxu0 }
 0x649   :  { %v24572_v20 = vpop.f32.mrb[58].mxu0  ;;  %21016 = vmatpush3.bf16.msra.mxu0 %v23841_v16 }
 0x64a   :  { %v3340_v22 = vpack.c.bf16 %v24572_v20, %v24565_v15  ;;  %v24580_v23 = vpop.f32.mrb[59].mxu0  ;;  %21017 = vmatprep.subr.bf16.mxu0 %v23859_v32  ;;  %v23523_v15 = vld [vmem:[%s27067_s1 + $0x8] sm:$0xff]   ;;  %v23524_v20 = vld [vmem:[%s27067_s1 + $0x10] sm:$0xff]  }
 0x64b   :  { %v3339_v24 = vpack.c.bf16 %v24580_v23, %v24567_v18  ;;  %v24723_v18 = vld [vmem:[%s27067_s1] sm:$0xff]  }
 0x64c   :  { %20984 = vmatmul.mubr.bf16.gmra.mrb[164].mxu0 %v23192_v19 }
 0x64d   :  { %21018 = vmatpush3.bf16.msra.mxu0 %v23859_v32  ;;  %21021 = vmatprep.mubr.bf16.mxu0 %v23193_v21  ;;  %v23206_v21 = vld [vmem:[%s27003_s3 + $0x218] sm:$0xff]  }
 0x64e   :  { %21019 = vmatprep.subr.bf16.mxu0 %v23857_v31 }
 0x64f   :  { %v24587_v25 = vpop.f32.mrb[60].mxu0 }
 0x650   :  { %v24589_v26 = vpop.f32.mrb[61].mxu0 }
 0x651   :  { %v24594_v29 = vpop.f32.mrb[62].mxu0  ;;  %21020 = vmatpush3.bf16.msra.mxu0 %v23857_v31 }
 0x652   :  { %v3342_v33 = vpack.c.bf16 %v24594_v29, %v24587_v25  ;;  %v24602_v34 = vpop.f32.mrb[63].mxu0  ;;  %21055 = vmatprep.subr.bf16.mxu0 %v23811_v53 }
 0x653   :  { %v3341_v35 = vpack.c.bf16 %v24602_v34, %v24589_v26 }
 0x654   :  { %21022 = vmatmul.mubr.bf16.vlgmr.msra.gmra.mrb[168].mxu0 %v23194_v27 }
 0x655   :  { %21056 = vmatpush3.bf16.msra.mxu0 %v23811_v53  ;;  %21025 = vmatprep.mubr.bf16.mxu0 %v23195_v30  ;;  %v23207_v30 = vld [vmem:[%s27003_s3 + $0x220] sm:$0xff]  }
 0x656   :  { %21057 = vmatprep.subr.bf16.mxu0 %v23809_v52 }
 0x657   :  { %v24609_v36 = vpop.f32.mrb[64].mxu0 }
 0x658   :  { %v24611_v38 = vpop.f32.mrb[65].mxu0 }
 0x659   :  { %v24616_v41 = vpop.f32.mrb[66].mxu0  ;;  %21058 = vmatpush3.bf16.msra.mxu0 %v23809_v52 }
 0x65a   :  { %v3344_v53 = vpack.c.bf16 %v24616_v41, %v24609_v36  ;;  %v24624_v44 = vpop.f32.mrb[67].mxu0  ;;  %21059 = vmatprep.subr.bf16.mxu0 %v23827_v3 }
 0x65b   :  { %v3343_v45 = vpack.c.bf16 %v24624_v44, %v24611_v38 }
 0x65c   :  { %21026 = vmatmul.mubr.bf16.gmra.mrb[172].mxu0 %v23196_v28 }
 0x65d   :  { %21060 = vmatpush3.bf16.msra.mxu0 %v23827_v3  ;;  %21029 = vmatprep.mubr.bf16.mxu0 %v23197_v43 }
 0x65e   :  { %21061 = vmatprep.subr.bf16.mxu0 %v23825_v2 }
 0x65f   :  { %v24631_v52 = vpop.f32.mrb[68].mxu0 }
 0x660   :  { %v24633_v48 = vpop.f32.mrb[69].mxu0 }
 0x661   :  { %v24638_v37 = vpop.f32.mrb[70].mxu0  ;;  %21062 = vmatpush3.bf16.msra.mxu0 %v23825_v2 }
 0x662   :  { %v3346_v3 = vpack.c.bf16 %v24638_v37, %v24631_v52  ;;  %v24646_v40 = vpop.f32.mrb[71].mxu0  ;;  %21063 = vmatprep.subr.bf16.mxu0 %v23843_v17 }
 0x663   :  { %v3345_v54 = vpack.c.bf16 %v24646_v40, %v24633_v48 }
 0x664   :  { %21030 = vmatmul.mubr.bf16.gmra.mrb[176].mxu0 %v23198_v49 }
 0x665   :  { %21064 = vmatpush3.bf16.msra.mxu0 %v23843_v17  ;;  %21033 = vmatprep.mubr.bf16.mxu0 %v23200_v39  ;;  %v23202_v17 = vld [vmem:[%s27003_s3 + $0x200] sm:$0xff]  }
 0x666   :  { %21065 = vmatprep.subr.bf16.mxu0 %v23841_v16 }
 0x667   :  { %v20705_v2 = vpop.f32.mrb[72].mxu0 }
 0x668   :  { %v3448_v42 = vpop.f32.mrb[73].mxu0 }
 0x669   :  { %v20706_v56 = vpop.f32.mrb[74].mxu0  ;;  %21066 = vmatpush3.bf16.msra.mxu0 %v23841_v16 }
 0x66a   :  { %v3512_v57 = vpack.c.bf16 %v20706_v56, %v20705_v2  ;;  %v3451_v59 = vpop.f32.mrb[75].mxu0  ;;  %21067 = vmatprep.subr.bf16.mxu0 %v23859_v32  ;;  %v23209_v56 = vld [vmem:[%s27003_s3 + $0x230] sm:$0xff]  }
 0x66b   :  { %v3511_v60 = vpack.c.bf16 %v3451_v59, %v3448_v42  ;;  %v23208_v42 = vld [vmem:[%s27003_s3 + $0x228] sm:$0xff]  }
 0x66c   :  { %21034 = vmatmul.mubr.bf16.gmra.mrb[180].mxu0 %v23201_v55 }
 0x66d   :  { %20721 = vmatprep.mubr.msk.bf16.mxu1 %vm248_vm0, %v3511_v60  ;;  %21068 = vmatpush3.bf16.msra.mxu0 %v23859_v32 }
 0x66e   :  { %20722 = vmatmul.mubr.msk.bf16.vlgmr.msra.gmra.mrb[68].mxu1 %vm248_vm0, %v3512_v57  ;;  %21069 = vmatprep.subr.bf16.mxu0 %v23857_v31 }
 0x66f   :  { %v20709_v16 = vpop.f32.mrb[76].mxu0  ;;  %21071 = vmatprep.mubr.bf16.mxu0 %v23202_v17  ;;  %20738 = vmatpush3.bf16.msra.mxu1 %v24446_v46  ;;  %v23205_v46 = vld [vmem:[%s27003_s3 + $0x210] sm:$0xff]  }
 0x670   :  { %v3464_v9 = vpop.f32.mrb[77].mxu0  ;;  %20787 = vmatprep.subr.bf16.mxu1 %v24664_v1 }
 0x671   :  { %v20710_v32 = vpop.f32.mrb[78].mxu0  ;;  %21070 = vmatpush3.bf16.msra.mxu0 %v23857_v31 }
 0x672   :  { %v3514_v11 = vpack.c.bf16 %v20710_v32, %v20709_v16  ;;  %v3467_v12 = vpop.f32.mrb[79].mxu0  ;;  %21105 = vmatprep.subr.bf16.mxu0 %v24673_v6 }
 0x673   :  { %v3513_v13 = vpack.c.bf16 %v3467_v12, %v3464_v9  ;;  %v23210_v9 = vld [vmem:[%s27003_s3 + $0x238] sm:$0xff]  }
 0x674   :  { %21072 = vmatmul.mubr.bf16.vlgmr.msra.gmra.mrb[184].mxu0 %v23203_v10 }
 0x675   :  { %20725 = vmatprep.mubr.msk.bf16.mxu1 %vm248_vm0, %v3513_v13  ;;  %21106 = vmatpush3.bf16.msra.mxu0 %v24673_v6  ;;  %v23212_v13 = vld [vmem:[%s27005_s20 + $0x18] sm:$0xff]  }
 0x676   :  { %20726 = vmatmul.mubr.msk.bf16.gmra.mrb[72].mxu1 %vm248_vm0, %v3514_v11  ;;  %21107 = vmatprep.subr.bf16.mxu0 %v24686_v14 }
 0x677   :  { %v20713_v31 = vpop.f32.mrb[80].mxu0  ;;  %21075 = vmatprep.mubr.bf16.mxu0 %v23205_v46 }
 0x678   :  { %v3480_v19 = vpop.f32.mrb[81].mxu0 }
 0x679   :  { %v20714_v27 = vpop.f32.mrb[82].mxu0  ;;  %21108 = vmatpush3.bf16.msra.mxu0 %v24686_v14 }
 0x67a   :  { %v3516_v28 = vpack.c.bf16 %v20714_v27, %v20713_v31  ;;  %v3483_v43 = vpop.f32.mrb[83].mxu0  ;;  %21113 = vmatprep.subr.bf16.mxu0 %v24673_v6 }
 0x67b   :  { %v3515_v49 = vpack.c.bf16 %v3483_v43, %v3480_v19 }
 0x67c   :  { %21076 = vmatmul.mubr.bf16.gmra.mrb[188].mxu0 %v23206_v21 }
 0x67d   :  { %20729 = vmatprep.mubr.msk.bf16.mxu1 %vm248_vm0, %v3515_v49  ;;  %21079 = vmatprep.mubr.bf16.mxu0 %v23207_v30  ;;  %v23525_v30 = vld [vmem:[%s27067_s1 + $0x18] sm:$0xff]  }
 0x67e   :  { %20730 = vmatmul.mubr.msk.bf16.gmra.mrb[76].mxu1 %vm248_vm0, %v3516_v28 }
 0x67f   :  { %v20717_v39 = vpop.f32.mrb[84].mxu0 }
 0x680   :  { %v3496_v2 = vpop.f32.mrb[85].mxu0 }
 0x681   :  { %v20718_v55 = vpop.f32.mrb[86].mxu0 }
 0x682   :  { %v3518_v57 = vpack.c.bf16 %v20718_v55, %v20717_v39  ;;  %v3499_v59 = vpop.f32.mrb[87].mxu0 }
 0x683   :  { %v3517_v60 = vpack.c.bf16 %v3499_v59, %v3496_v2 }
 0x684   :  { %21080 = vmatmul.mubr.bf16.gmra.mrb[192].mxu0 %v23208_v42 }
 0x685   :  { %20733 = vmatprep.mubr.msk.bf16.mxu1 %vm248_vm0, %v3517_v60  ;;  %21083 = vmatprep.mubr.bf16.mxu0 %v23209_v56 }
 0x686   :  { %20734 = vmatmul.mubr.msk.bf16.gmra.mrb[80].mxu1 %vm248_vm0, %v3518_v57 }
 0x687   :  { %20739 = vmatprep.mubr.msk.bf16.mxu1 %vm248_vm0, %v3339_v24  ;;  %v20773_v17 = vpop.f32.mrb[88].mxu0 }
 0x688   :  { %v3875_v16 = vpop.f32.mrb[89].mxu0 }
 0x689   :  { %v20774_v10 = vpop.f32.mrb[90].mxu0 }
 0x68a   :  { %v3939_v32 = vpack.c.bf16 %v20774_v10, %v20773_v17  ;;  %v3878_v11 = vpop.f32.mrb[91].mxu0 }
 0x68b   :  { %v3938_v12 = vpack.c.bf16 %v3878_v11, %v3875_v16 }
 0x68c   :  { %21084 = vmatmul.mubr.bf16.gmra.mrb[196].mxu0 %v23210_v9 }
 0x68d   :  { %21109 = vmatprep.mubr.msk.bf16.mxu0 %vm417_vm1, %v24723_v18 }
 0x68e   :  { %20740 = vmatmul.mubr.msk.bf16.vlgmr.msra.gmra.mrb[68].mxu1 %vm248_vm0, %v3340_v22 }
 0x68f   :  { %20743 = vmatprep.mubr.msk.bf16.mxu1 %vm248_vm0, %v3341_v35  ;;  %v20777_v23 = vpop.f32.mrb[92].mxu0  ;;  %20788 = vmatpush3.bf16.msra.mxu1 %v24664_v1 }
 0x690   :  { %v3891_v24 = vpop.f32.mrb[93].mxu0  ;;  %20837 = vmatprep.subr.bf16.mxu1 %v23212_v13 }
 0x691   :  { %v20778_v46 = vpop.f32.mrb[94].mxu0 }
 0x692   :  { %v3941_v31 = vpack.c.bf16 %v20778_v46, %v20777_v23  ;;  %v3894_v19 = vpop.f32.mrb[95].mxu0 }
 0x693   :  { %v3940_v21 = vpack.c.bf16 %v3894_v19, %v3891_v24 }
 0x694   :  { %21110 = vmatmul.mubr.msk.bf16.vlgmr.msra.gmra.mrb[200].mxu0 %vm417_vm1, %v23523_v15 }
 0x695   :  { %21114 = vmatpush3.bf16.msra.mxu0 %v24673_v6  ;;  %21117 = vmatprep.mubr.msk.bf16.mxu0 %vm417_vm1, %v23524_v20 }
 0x696   :  { %21115 = vmatprep.subr.bf16.mxu0 %v24686_v14  ;;  %20744 = vmatmul.mubr.msk.bf16.gmra.mrb[72].mxu1 %vm248_vm0, %v3342_v33 }
 0x697   :  { %20747 = vmatprep.mubr.msk.bf16.mxu1 %vm248_vm0, %v3343_v45  ;;  %v20781_v22 = vpop.f32.mrb[96].mxu0 }
 0x698   :  { %v3907_v26 = vpop.f32.mrb[97].mxu0 }
 0x699   :  { %21116 = vmatpush3.bf16.msra.mxu0 %v24686_v14  ;;  %v20782_v34 = vpop.f32.mrb[98].mxu0 }
 0x69a   :  { %v3943_v35 = vpack.c.bf16 %v20782_v34, %v20781_v22  ;;  %v3910_v1 = vpop.f32.mrb[99].mxu0 }
 0x69b   :  { %v3942_v27 = vpack.c.bf16 %v3910_v1, %v3907_v26 }
 0x69c   :  { %21118 = vmatmul.mubr.msk.bf16.vlgmr.msra.gmra.mrb[204].mxu0 %vm417_vm1, %v23525_v30 }
 0x69e   :  { %20748 = vmatmul.mubr.msk.bf16.gmra.mrb[76].mxu1 %vm248_vm0, %v3344_v53 }
 0x69f   :  { %20751 = vmatprep.mubr.msk.bf16.mxu1 %vm248_vm0, %v3345_v54  ;;  %v20785_v25 = vpop.f32.mrb[100].mxu0  ;;  %v23213_v54 = vld [vmem:[%s27005_s20 + $0x20] sm:$0xff]  }
 0x6a0   :  { %v3923_v29 = vpop.f32.mrb[101].mxu0 }
 0x6a1   :  { %v20786_v33 = vpop.f32.mrb[102].mxu0 }
 0x6a2   :  { %v3945_v38 = vpack.c.bf16 %v20786_v33, %v20785_v25  ;;  %v3926_v44 = vpop.f32.mrb[103].mxu0 }
 0x6a3   :  { %v3944_v45 = vpack.c.bf16 %v3926_v44, %v3923_v29 }
 0x6a6   :  { %20752 = vmatmul.mubr.msk.bf16.gmra.mrb[80].mxu1 %vm248_vm0, %v3346_v3 }
 0x6a7   :  { %20789 = vmatprep.mubr.msk.bf16.mxu1 %vm248_vm0, %v3938_v12  ;;  %v20823_v36 = vpop.f32.mrb[104].mxu0 }
 0x6a8   :  { %v4191_v41 = vpop.f32.mrb[105].mxu0 }
 0x6a9   :  { %v20824_v53 = vpop.f32.mrb[106].mxu0 }
 0x6aa   :  { %v4255_v28 = vpack.c.bf16 %v20824_v53, %v20823_v36  ;;  %v4194_v48 = vpop.f32.mrb[107].mxu0 }
 0x6ab   :  { %v4254_v40 = vpack.c.bf16 %v4194_v48, %v4191_v41 }
 0x6ae   :  { %20790 = vmatmul.mubr.msk.bf16.vlgmr.msra.gmra.mrb[68].mxu1 %vm248_vm0, %v3939_v32 }
 0x6af   :  { %20793 = vmatprep.mubr.msk.bf16.mxu1 %vm248_vm0, %v3940_v21  ;;  %v20827_v43 = vpop.f32.mrb[108].mxu0  ;;  %20838 = vmatpush3.bf16.msra.mxu1 %v23212_v13 }
 0x6b0   :  { %v4207_v52 = vpop.f32.mrb[109].mxu0  ;;  %20887 = vmatprep.subr.bf16.mxu1 %v23213_v54 }
 0x6b1   :  { %v20828_v37 = vpop.f32.mrb[110].mxu0 }
 0x6b2   :  { %v4257_v3 = vpack.c.bf16 %v20828_v37, %v20827_v43  ;;  %v4210_v49 = vpop.f32.mrb[111].mxu0  ;;  %v23215_v43 = vld [vmem:[%s27005_s20 + $0x30] sm:$0xff]  }
 0x6b3   :  { %v4256_v39 = vpack.c.bf16 %v4210_v49, %v4207_v52  ;;  %v23218_v52 = vld [vmem:[%s27006_s15 + $0x10] sm:$0xff]   ;;  %v23219_v49 = vld [vmem:[%s27006_s15 + $0x18] sm:$0xff]  }
 0x6b4   :  { %21121 = vmatprep.subr.bf16.mxu0 %v23218_v52 }
 0x6b5   :  { %21122 = vmatpush3.bf16.msra.mxu0 %v23218_v52 }
 0x6b6   :  { %20794 = vmatmul.mubr.msk.bf16.gmra.mrb[72].mxu1 %vm248_vm0, %v3941_v31  ;;  %v23214_v31 = vld [vmem:[%s27005_s20 + $0x28] sm:$0xff]   ;;  %21123 = vmatprep.subr.bf16.mxu0 %v23219_v49 }
 0x6b7   :  { %20797 = vmatprep.mubr.msk.bf16.mxu1 %vm248_vm0, %v3942_v27  ;;  %v20831_v2 = vpop.f32.mrb[112].mxu0 }
 0x6b8   :  { %v4223_v42 = vpop.f32.mrb[113].mxu0 }
 0x6b9   :  { %v20832_v55 = vpop.f32.mrb[114].mxu0  ;;  %21124 = vmatpush3.bf16.msra.mxu0 %v23219_v49  ;;  %v23217_v49 = vld [vmem:[%s27005_s20 + $0x40] sm:$0xff]  }
 0x6ba   :  { %v4259_v56 = vpack.c.bf16 %v20832_v55, %v20831_v2  ;;  %v4226_v57 = vpop.f32.mrb[115].mxu0 }
 0x6bb   :  { %v4258_v59 = vpack.c.bf16 %v4226_v57, %v4223_v42 }
 0x6be   :  { %20798 = vmatmul.mubr.msk.bf16.gmra.mrb[76].mxu1 %vm248_vm0, %v3943_v35 }
 0x6bf   :  { %20801 = vmatprep.mubr.msk.bf16.mxu1 %vm248_vm0, %v3944_v45  ;;  %v20835_v60 = vpop.f32.mrb[116].mxu0 }
 0x6c0   :  { %v4239_v17 = vpop.f32.mrb[117].mxu0 }
 0x6c1   :  { %v20836_v16 = vpop.f32.mrb[118].mxu0 }
 0x6c2   :  { %v4242_v9 = vpop.f32.mrb[119].mxu0  ;;  %v4261_v10 = vpack.c.bf16 %v20836_v16, %v20835_v60 }
 0x6c3   :  { %v4260_v32 = vpack.c.bf16 %v4242_v9, %v4239_v17 }
 0x6c6   :  { %20802 = vmatmul.mubr.msk.bf16.gmra.mrb[80].mxu1 %vm248_vm0, %v3945_v38 }
 0x6c7   :  { %20839 = vmatprep.mubr.msk.bf16.mxu1 %vm248_vm0, %v4254_v40  ;;  %v20873_v11 = vpop.f32.mrb[120].mxu0 }
 0x6c8   :  { %v4507_v12 = vpop.f32.mrb[121].mxu0 }
 0x6c9   :  { %v20874_v13 = vpop.f32.mrb[122].mxu0 }
 0x6ca   :  { %v4510_v23 = vpop.f32.mrb[123].mxu0  ;;  %v4571_v24 = vpack.c.bf16 %v20874_v13, %v20873_v11 }
 0x6cb   :  { %v4570_v46 = vpack.c.bf16 %v4510_v23, %v4507_v12 }
 0x6ce   :  { %20840 = vmatmul.mubr.msk.bf16.vlgmr.msra.gmra.mrb[68].mxu1 %vm248_vm0, %v4255_v28 }
 0x6cf   :  { %20843 = vmatprep.mubr.msk.bf16.mxu1 %vm248_vm0, %v4256_v39  ;;  %v20877_v19 = vpop.f32.mrb[124].mxu0  ;;  %20888 = vmatpush3.bf16.msra.mxu1 %v23213_v54 }
 0x6d0   :  { %v4523_v21 = vpop.f32.mrb[125].mxu0  ;;  %20937 = vmatprep.subr.bf16.mxu1 %v23214_v31 }
 0x6d1   :  { %v20878_v15 = vpop.f32.mrb[126].mxu0 }
 0x6d2   :  { %v4573_v20 = vpack.c.bf16 %v20878_v15, %v20877_v19  ;;  %v4526_v22 = vpop.f32.mrb[127].mxu0 }
 0x6d3   :  { %v4572_v26 = vpack.c.bf16 %v4526_v22, %v4523_v21 }
 0x6d6   :  { %20844 = vmatmul.mubr.msk.bf16.gmra.mrb[72].mxu1 %vm248_vm0, %v4257_v3 }
 0x6d7   :  { %20847 = vmatprep.mubr.msk.bf16.mxu1 %vm248_vm0, %v4258_v59  ;;  %v20881_v34 = vpop.f32.mrb[128].mxu0 }
 0x6d8   :  { %v4539_v35 = vpop.f32.mrb[129].mxu0 }
 0x6d9   :  { %v20882_v1 = vpop.f32.mrb[130].mxu0 }
 0x6da   :  { %v4575_v27 = vpack.c.bf16 %v20882_v1, %v20881_v34  ;;  %v4542_v30 = vpop.f32.mrb[131].mxu0 }
 0x6db   :  { %v4574_v25 = vpack.c.bf16 %v4542_v30, %v4539_v35 }
 0x6de   :  { %20848 = vmatmul.mubr.msk.bf16.gmra.mrb[76].mxu1 %vm248_vm0, %v4259_v56  ;;  %v24808_v56 = vld [vmem:[%s27006_s15] sm:$0xff]  }
 0x6df   :  { %20851 = vmatprep.mubr.msk.bf16.mxu1 %vm248_vm0, %v4260_v32  ;;  %v20885_v29 = vpop.f32.mrb[132].mxu0  ;;  %21129 = vmatprep.subr.bf16.mxu0 %v24808_v56 }
 0x6e0   :  { %v4555_v33 = vpop.f32.mrb[133].mxu0 }
 0x6e1   :  { %v20886_v38 = vpop.f32.mrb[134].mxu0 }
 0x6e2   :  { %v4577_v44 = vpack.c.bf16 %v20886_v38, %v20885_v29  ;;  %v4558_v45 = vpop.f32.mrb[135].mxu0 }
 0x6e3   :  { %v4576_v36 = vpack.c.bf16 %v4558_v45, %v4555_v33 }
 0x6e6   :  { %20852 = vmatmul.mubr.msk.bf16.gmra.mrb[80].mxu1 %vm248_vm0, %v4261_v10 }
 0x6e7   :  { %20889 = vmatprep.mubr.msk.bf16.mxu1 %vm248_vm0, %v4570_v46  ;;  %v20923_v41 = vpop.f32.mrb[136].mxu0 }
 0x6e8   :  { %v4823_v53 = vpop.f32.mrb[137].mxu0 }
 0x6e9   :  { %v20924_v28 = vpop.f32.mrb[138].mxu0 }
 0x6ea   :  { %v4887_v48 = vpack.c.bf16 %v20924_v28, %v20923_v41  ;;  %v4826_v40 = vpop.f32.mrb[139].mxu0 }
 0x6eb   :  { %v4886_v54 = vpack.c.bf16 %v4826_v40, %v4823_v53 }
 0x6ee   :  { %20890 = vmatmul.mubr.msk.bf16.vlgmr.msra.gmra.mrb[68].mxu1 %vm248_vm0, %v4571_v24 }
 0x6ef   :  { %20893 = vmatprep.mubr.msk.bf16.mxu1 %vm248_vm0, %v4572_v26  ;;  %v20927_v37 = vpop.f32.mrb[140].mxu0  ;;  %20938 = vmatpush3.bf16.msra.mxu1 %v23214_v31 }
 0x6f0   :  { %v4839_v3 = vpop.f32.mrb[141].mxu0  ;;  %20987 = vmatprep.subr.bf16.mxu1 %v23215_v43 }
 0x6f1   :  { %v20928_v39 = vpop.f32.mrb[142].mxu0 }
 0x6f2   :  { %v4889_v2 = vpack.c.bf16 %v20928_v39, %v20927_v37  ;;  %v4842_v42 = vpop.f32.mrb[143].mxu0 }
 0x6f3   :  { %v4888_v55 = vpack.c.bf16 %v4842_v42, %v4839_v3 }
 0x6f6   :  { %20894 = vmatmul.mubr.msk.bf16.gmra.mrb[72].mxu1 %vm248_vm0, %v4573_v20  ;;  %v23216_v20 = vld [vmem:[%s27005_s20 + $0x38] sm:$0xff]  }
 0x6f7   :  { %20897 = vmatprep.mubr.msk.bf16.mxu1 %vm248_vm0, %v4574_v25  ;;  %v20931_v57 = vpop.f32.mrb[144].mxu0 }
 0x6f8   :  { %v4855_v59 = vpop.f32.mrb[145].mxu0 }
 0x6f9   :  { %v20932_v60 = vpop.f32.mrb[146].mxu0 }
 0x6fa   :  { %v4891_v17 = vpack.c.bf16 %v20932_v60, %v20931_v57  ;;  %v4858_v16 = vpop.f32.mrb[147].mxu0 }
 0x6fb   :  { %v4890_v9 = vpack.c.bf16 %v4858_v16, %v4855_v59 }
 0x6fe   :  { %20898 = vmatmul.mubr.msk.bf16.gmra.mrb[76].mxu1 %vm248_vm0, %v4575_v27 }
 0x6ff   :  { %20901 = vmatprep.mubr.msk.bf16.mxu1 %vm248_vm0, %v4576_v36  ;;  %v20935_v10 = vpop.f32.mrb[148].mxu0 }
 0x700   :  { %v4871_v32 = vpop.f32.mrb[149].mxu0 }
 0x701   :  { %v20936_v11 = vpop.f32.mrb[150].mxu0 }
 0x702   :  { %v4893_v12 = vpack.c.bf16 %v20936_v11, %v20935_v10  ;;  %v4874_v13 = vpop.f32.mrb[151].mxu0 }
 0x703   :  { %v4892_v23 = vpack.c.bf16 %v4874_v13, %v4871_v32 }
 0x706   :  { %20902 = vmatmul.mubr.msk.bf16.gmra.mrb[80].mxu1 %vm248_vm0, %v4577_v44 }
 0x707   :  { %20939 = vmatprep.mubr.msk.bf16.mxu1 %vm248_vm0, %v4886_v54  ;;  %v20973_v24 = vpop.f32.mrb[152].mxu0 }
 0x708   :  { %v5139_v46 = vpop.f32.mrb[153].mxu0 }
 0x709   :  { %v20974_v31 = vpop.f32.mrb[154].mxu0 }
 0x70a   :  { %v5203_v19 = vpack.c.bf16 %v20974_v31, %v20973_v24  ;;  %v5142_v21 = vpop.f32.mrb[155].mxu0 }
 0x70b   :  { %v5202_v15 = vpack.c.bf16 %v5142_v21, %v5139_v46 }
 0x70e   :  { %20940 = vmatmul.mubr.msk.bf16.vlgmr.msra.gmra.mrb[68].mxu1 %vm248_vm0, %v4887_v48 }
 0x70f   :  { %20943 = vmatprep.mubr.msk.bf16.mxu1 %vm248_vm0, %v4888_v55  ;;  %v20977_v22 = vpop.f32.mrb[156].mxu0  ;;  %20988 = vmatpush3.bf16.msra.mxu1 %v23215_v43 }
 0x710   :  { %v5155_v26 = vpop.f32.mrb[157].mxu0  ;;  %21037 = vmatprep.subr.bf16.mxu1 %v23216_v20 }
 0x711   :  { %v20978_v34 = vpop.f32.mrb[158].mxu0 }
 0x712   :  { %v5205_v35 = vpack.c.bf16 %v20978_v34, %v20977_v22  ;;  %v5158_v1 = vpop.f32.mrb[159].mxu0 }
 0x713   :  { %v5204_v27 = vpack.c.bf16 %v5158_v1, %v5155_v26 }
 0x716   :  { %20944 = vmatmul.mubr.msk.bf16.gmra.mrb[72].mxu1 %vm248_vm0, %v4889_v2 }
 0x717   :  { %20947 = vmatprep.mubr.msk.bf16.mxu1 %vm248_vm0, %v4890_v9  ;;  %v20981_v30 = vpop.f32.mrb[160].mxu0 }
 0x718   :  { %v5171_v25 = vpop.f32.mrb[161].mxu0 }
 0x719   :  { %v20982_v29 = vpop.f32.mrb[162].mxu0 }
 0x71a   :  { %v5207_v33 = vpack.c.bf16 %v20982_v29, %v20981_v30  ;;  %v5174_v38 = vpop.f32.mrb[163].mxu0 }
 0x71b   :  { %v5206_v44 = vpack.c.bf16 %v5174_v38, %v5171_v25 }
 0x71e   :  { %20948 = vmatmul.mubr.msk.bf16.gmra.mrb[76].mxu1 %vm248_vm0, %v4891_v17 }
 0x71f   :  { %20951 = vmatprep.mubr.msk.bf16.mxu1 %vm248_vm0, %v4892_v23  ;;  %v20985_v45 = vpop.f32.mrb[164].mxu0 }
 0x720   :  { %v5187_v36 = vpop.f32.mrb[165].mxu0 }
 0x721   :  { %v20986_v41 = vpop.f32.mrb[166].mxu0 }
 0x722   :  { %v5209_v53 = vpack.c.bf16 %v20986_v41, %v20985_v45  ;;  %v5190_v28 = vpop.f32.mrb[167].mxu0 }
 0x723   :  { %v5208_v48 = vpack.c.bf16 %v5190_v28, %v5187_v36 }
 0x726   :  { %20952 = vmatmul.mubr.msk.bf16.gmra.mrb[80].mxu1 %vm248_vm0, %v4893_v12 }
 0x727   :  { %20989 = vmatprep.mubr.msk.bf16.mxu1 %vm248_vm0, %v5202_v15  ;;  %v21023_v40 = vpop.f32.mrb[168].mxu0 }
 0x728   :  { %v5455_v54 = vpop.f32.mrb[169].mxu0 }
 0x729   :  { %v21024_v43 = vpop.f32.mrb[170].mxu0 }
 0x72a   :  { %v5519_v52 = vpack.c.bf16 %v21024_v43, %v21023_v40  ;;  %v5458_v37 = vpop.f32.mrb[171].mxu0 }
 0x72b   :  { %v5518_v3 = vpack.c.bf16 %v5458_v37, %v5455_v54 }
 0x72e   :  { %20990 = vmatmul.mubr.msk.bf16.vlgmr.msra.gmra.mrb[68].mxu1 %vm248_vm0, %v5203_v19 }
 0x72f   :  { %20993 = vmatprep.mubr.msk.bf16.mxu1 %vm248_vm0, %v5204_v27  ;;  %v21027_v39 = vpop.f32.mrb[172].mxu0  ;;  %21038 = vmatpush3.bf16.msra.mxu1 %v23216_v20 }
 0x730   :  { %v5471_v2 = vpop.f32.mrb[173].mxu0  ;;  %21087 = vmatprep.subr.bf16.mxu1 %v23217_v49 }
 0x731   :  { %v21028_v42 = vpop.f32.mrb[174].mxu0 }
 0x732   :  { %v5521_v55 = vpack.c.bf16 %v21028_v42, %v21027_v39  ;;  %v5474_v57 = vpop.f32.mrb[175].mxu0 }
 0x733   :  { %v5520_v59 = vpack.c.bf16 %v5474_v57, %v5471_v2 }
 0x736   :  { %20994 = vmatmul.mubr.msk.bf16.gmra.mrb[72].mxu1 %vm248_vm0, %v5205_v35 }
 0x737   :  { %20997 = vmatprep.mubr.msk.bf16.mxu1 %vm248_vm0, %v5206_v44  ;;  %v21031_v60 = vpop.f32.mrb[176].mxu0 }
 0x738   :  { %v5487_v17 = vpop.f32.mrb[177].mxu0 }
 0x739   :  { %v21032_v16 = vpop.f32.mrb[178].mxu0 }
 0x73a   :  { %v5523_v9 = vpack.c.bf16 %v21032_v16, %v21031_v60  ;;  %v5490_v10 = vpop.f32.mrb[179].mxu0  ;;  %v23221_v60 = vld [vmem:[%s27006_s15 + $0x8] sm:$0xff]  }
 0x73b   :  { %v5522_v32 = vpack.c.bf16 %v5490_v10, %v5487_v17  ;;  %v24881_v17 = vld [vmem:[%s27067_s1 + $0x30] sm:$0xff]   ;;  %v24888_v16 = vld [vmem:[%s27067_s1 + $0x28] sm:$0xff]   ;;  %v24903_v10 = vld [vmem:[%s27067_s1 + $0x40] sm:$0xff]  }
 0x73e   :  { %20998 = vmatmul.mubr.msk.bf16.gmra.mrb[76].mxu1 %vm248_vm0, %v5207_v33 }
 0x73f   :  { %21001 = vmatprep.mubr.msk.bf16.mxu1 %vm248_vm0, %v5208_v48  ;;  %v21035_v11 = vpop.f32.mrb[180].mxu0 }
 0x740   :  { %v5503_v12 = vpop.f32.mrb[181].mxu0 }
 0x741   :  { %v21036_v13 = vpop.f32.mrb[182].mxu0 }
 0x742   :  { %v5525_v23 = vpack.c.bf16 %v21036_v13, %v21035_v11  ;;  %v5506_v24 = vpop.f32.mrb[183].mxu0  ;;  %v24921_v11 = vld [vmem:[%s27067_s1 + $0x50] sm:$0xff]   ;;  %v24939_v13 = vld [vmem:[%s27067_s1 + $0x60] sm:$0xff]  }
 0x743   :  { %v5524_v46 = vpack.c.bf16 %v5506_v24, %v5503_v12  ;;  %v24931_v12 = vld [vmem:[%s27067_s1 + $0x58] sm:$0xff]   ;;  %v24957_v24 = vld [vmem:[%s27067_s1 + $0x70] sm:$0xff]  }
 0x746   :  { %21002 = vmatmul.mubr.msk.bf16.gmra.mrb[80].mxu1 %vm248_vm0, %v5209_v53 }
 0x747   :  { %21039 = vmatprep.mubr.msk.bf16.mxu1 %vm248_vm0, %v5518_v3  ;;  %v21073_v31 = vpop.f32.mrb[184].mxu0 }
 0x748   :  { %v5771_v19 = vpop.f32.mrb[185].mxu0 }
 0x749   :  { %v21074_v21 = vpop.f32.mrb[186].mxu0 }
 0x74a   :  { %v5835_v15 = vpack.c.bf16 %v21074_v21, %v21073_v31  ;;  %v5774_v20 = vpop.f32.mrb[187].mxu0  ;;  %v24975_v31 = vld [vmem:[%s27067_s1 + $0x80] sm:$0xff]   ;;  %v23224_v21 = vld [vmem:[%s27006_s15 + $0x30] sm:$0xff]  }
 0x74b   :  { %v5834_v22 = vpack.c.bf16 %v5774_v20, %v5771_v19  ;;  %v24984_v19 = vld [vmem:[%s27067_s1 + $0x88] sm:$0xff]  }
 0x74e   :  { %21040 = vmatmul.mubr.msk.bf16.vlgmr.msra.gmra.mrb[68].mxu1 %vm248_vm0, %v5519_v52 }
 0x74f   :  { %21088 = vmatpush3.bf16.msra.mxu1 %v23217_v49  ;;  %21043 = vmatprep.mubr.msk.bf16.mxu1 %vm248_vm0, %v5520_v59  ;;  %v21077_v26 = vpop.f32.mrb[188].mxu0 }
 0x750   :  { %21153 = vmatprep.subr.bf16.mxu1 %v24673_v6  ;;  %v5787_v34 = vpop.f32.mrb[189].mxu0 }
 0x751   :  { %v21078_v35 = vpop.f32.mrb[190].mxu0 }
 0x752   :  { %v5837_v1 = vpack.c.bf16 %v21078_v35, %v21077_v26  ;;  %v5790_v27 = vpop.f32.mrb[191].mxu0 }
 0x753   :  { %v5836_v30 = vpack.c.bf16 %v5790_v27, %v5787_v34 }
 0x756   :  { %21044 = vmatmul.mubr.msk.bf16.gmra.mrb[72].mxu1 %vm248_vm0, %v5521_v55 }
 0x757   :  { %21047 = vmatprep.mubr.msk.bf16.mxu1 %vm248_vm0, %v5522_v32  ;;  %v21081_v25 = vpop.f32.mrb[192].mxu0  ;;  %v24913_v32 = vld [vmem:[%s27067_s1 + $0x48] sm:$0xff]  }
 0x758   :  { %v5803_v29 = vpop.f32.mrb[193].mxu0 }
 0x759   :  { %v21082_v33 = vpop.f32.mrb[194].mxu0 }
 0x75a   :  { %v5839_v38 = vpack.c.bf16 %v21082_v33, %v21081_v25  ;;  %v5806_v44 = vpop.f32.mrb[195].mxu0 }
 0x75b   :  { %v5838_v45 = vpack.c.bf16 %v5806_v44, %v5803_v29 }
 0x75e   :  { %21048 = vmatmul.mubr.msk.bf16.gmra.mrb[76].mxu1 %vm248_vm0, %v5523_v9  ;;  %v24895_v9 = vld [vmem:[%s27067_s1 + $0x38] sm:$0xff]  }
 0x75f   :  { %21051 = vmatprep.mubr.msk.bf16.mxu1 %vm248_vm0, %v5524_v46  ;;  %v21085_v36 = vpop.f32.mrb[196].mxu0  ;;  %v24967_v46 = vld [vmem:[%s27067_s1 + $0x78] sm:$0xff]  }
 0x760   :  { %v5819_v41 = vpop.f32.mrb[197].mxu0 }
 0x761   :  { %v21086_v53 = vpop.f32.mrb[198].mxu0 }
 0x762   :  { %v5841_v28 = vpack.c.bf16 %v21086_v53, %v21085_v36  ;;  %v5822_v48 = vpop.f32.mrb[199].mxu0 }
 0x763   :  { %v5840_v40 = vpack.c.bf16 %v5822_v48, %v5819_v41 }
 0x766   :  { %21052 = vmatmul.mubr.msk.bf16.gmra.mrb[80].mxu1 %vm248_vm0, %v5525_v23  ;;  %v24949_v23 = vld [vmem:[%s27067_s1 + $0x68] sm:$0xff]  }
 0x767   :  { %21089 = vmatprep.mubr.msk.bf16.mxu1 %vm248_vm0, %v5834_v22  ;;  %v21111_v54 = vpop.f32.mrb[200].mxu0 }
 0x768   :  { %v6024_v43 = vpop.f32.mrb[201].mxu0 }
 0x769   :  { %v21112_v52 = vpop.f32.mrb[202].mxu0 }
 0x76a   :  { %v6040_v37 = vpack.c.bf16 %v21112_v52, %v21111_v54  ;;  %v6027_v3 = vpop.f32.mrb[203].mxu0  ;;  %v23225_v52 = vld [vmem:[%s27006_s15 + $0x38] sm:$0xff]  }
 0x76b   :  { %v6039_v49 = vpack.c.bf16 %v6027_v3, %v6024_v43 }
 0x76e   :  { %21090 = vmatmul.mubr.msk.bf16.vlgmr.msra.gmra.mrb[68].mxu1 %vm248_vm0, %v5835_v15 }
 0x76f   :  { %21154 = vmatpush3.bf16.msra.mxu1 %v24673_v6  ;;  %21093 = vmatprep.mubr.msk.bf16.mxu1 %vm248_vm0, %v5836_v30  ;;  %v21119_v39 = vpop.f32.mrb[204].mxu0 }
 0x770   :  { %21155 = vmatprep.subr.bf16.mxu1 %v24686_v14  ;;  %v6079_v2 = vpop.f32.mrb[205].mxu0 }
 0x771   :  { %v21120_v42 = vpop.f32.mrb[206].mxu0 }
 0x772   :  { %v6095_v55 = vpack.c.bf16 %v21120_v42, %v21119_v39  ;;  %v6082_v57 = vpop.f32.mrb[207].mxu0 }
 0x773   :  { %v6094_v59 = vpack.c.bf16 %v6082_v57, %v6079_v2  ;;  %21156 = vmatpush3.bf16.msra.mxu1 %v24686_v14  ;;  %v23226_v2 = vld [vmem:[%s27006_s15 + $0x40] sm:$0xff]  }
 0x774   :  { %21169 = vmatprep.subr.bf16.mxu1 %v24673_v6 }
 0x775   :  { %21125 = vmatprep.mubr.msk.bf16.mxu0 %vm417_vm1, %v6094_v59 }
 0x776   :  { %21094 = vmatmul.mubr.msk.bf16.gmra.mrb[72].mxu1 %vm248_vm0, %v5837_v1  ;;  %21126 = vmatmul.mubr.msk.bf16.vlgmr.msra.gmra.mrb[208].mxu0 %vm417_vm1, %v6095_v55 }
 0x777   :  { %21130 = vmatpush3.bf16.msra.mxu0 %v24808_v56  ;;  %21097 = vmatprep.mubr.msk.bf16.mxu1 %vm248_vm0, %v5838_v45  ;;  %v24871_v56 = vld [vmem:[%s27067_s1 + $0x20] sm:$0xff]  }
 0x778   :  { %21133 = vmatprep.mubr.msk.bf16.mxu0 %vm417_vm1, %v6039_v49  ;;  %21131 = vmatprep.subr.bf16.mxu0 %v23221_v60 }
 0x77b   :  { %21132 = vmatpush3.bf16.msra.mxu0 %v23221_v60 }
 0x77c   :  { %21137 = vmatprep.subr.bf16.mxu0 %v24673_v6 }
 0x77e   :  { %21098 = vmatmul.mubr.msk.bf16.gmra.mrb[76].mxu1 %vm248_vm0, %v5839_v38 }
 0x77f   :  { %21101 = vmatprep.mubr.msk.bf16.mxu1 %vm248_vm0, %v5840_v40 }
 0x782   :  { %21134 = vmatmul.mubr.msk.bf16.vlgmr.msra.gmra.mrb[208].mxu0 %vm417_vm1, %v6040_v37 }
 0x783   :  { %21138 = vmatpush3.bf16.msra.mxu0 %v24673_v6  ;;  %21141 = vmatprep.mubr.msk.bf16.mxu0 %vm417_vm1, %v24871_v56 }
 0x784   :  { %21139 = vmatprep.subr.bf16.mxu0 %v24686_v14 }
 0x786   :  { %21102 = vmatmul.mubr.msk.bf16.gmra.mrb[80].mxu1 %vm248_vm0, %v5841_v28 }
 0x787   :  { %21140 = vmatpush3.bf16.msra.mxu0 %v24686_v14  ;;  %21157 = vmatprep.mubr.msk.bf16.mxu1 %vm417_vm1, %v24881_v17 }
 0x78a   :  { %21142 = vmatmul.mubr.msk.bf16.vlgmr.msra.gmra.mrb[212].mxu0 %vm417_vm1, %v24888_v16 }
 0x78e   :  { %21158 = vmatmul.mubr.msk.bf16.vlgmr.msra.gmra.mrb[84].mxu1 %vm417_vm1, %v24895_v9 }
 0x78f   :  { %21170 = vmatpush3.bf16.msra.mxu1 %v24673_v6  ;;  %21173 = vmatprep.mubr.msk.bf16.mxu1 %vm417_vm1, %v24903_v10 }
 0x790   :  { %21171 = vmatprep.subr.bf16.mxu1 %v24686_v14 }
 0x793   :  { %21172 = vmatpush3.bf16.msra.mxu1 %v24686_v14 }
 0x794   :  { %21185 = vmatprep.subr.bf16.mxu1 %v24673_v6 }
 0x796   :  { %21174 = vmatmul.mubr.msk.bf16.vlgmr.msra.gmra.mrb[88].mxu1 %vm417_vm1, %v24913_v32 }
 0x797   :  { %21186 = vmatpush3.bf16.msra.mxu1 %v24673_v6  ;;  %21189 = vmatprep.mubr.msk.bf16.mxu1 %vm417_vm1, %v24921_v11 }
 0x798   :  { %21187 = vmatprep.subr.bf16.mxu1 %v24686_v14 }
 0x79b   :  { %21188 = vmatpush3.bf16.msra.mxu1 %v24686_v14 }
 0x79c   :  { %21201 = vmatprep.subr.bf16.mxu1 %v24673_v6 }
 0x79e   :  { %21190 = vmatmul.mubr.msk.bf16.vlgmr.msra.gmra.mrb[92].mxu1 %vm417_vm1, %v24931_v12 }
 0x79f   :  { %21202 = vmatpush3.bf16.msra.mxu1 %v24673_v6  ;;  %21205 = vmatprep.mubr.msk.bf16.mxu1 %vm417_vm1, %v24939_v13 }
 0x7a0   :  { %21203 = vmatprep.subr.bf16.mxu1 %v24686_v14 }
 0x7a3   :  { %21204 = vmatpush3.bf16.msra.mxu1 %v24686_v14 }
 0x7a4   :  { %21217 = vmatprep.subr.bf16.mxu1 %v24673_v6 }
 0x7a6   :  { %21206 = vmatmul.mubr.msk.bf16.vlgmr.msra.gmra.mrb[96].mxu1 %vm417_vm1, %v24949_v23 }
 0x7a7   :  { %21218 = vmatpush3.bf16.msra.mxu1 %v24673_v6  ;;  %21221 = vmatprep.mubr.msk.bf16.mxu1 %vm417_vm1, %v24957_v24 }
 0x7a8   :  { %21219 = vmatprep.subr.bf16.mxu1 %v24686_v14 }
 0x7ab   :  { %21220 = vmatpush3.bf16.msra.mxu1 %v24686_v14 }
 0x7ac   :  { %21233 = vmatprep.subr.bf16.mxu1 %v24673_v6 }
 0x7ae   :  { %21222 = vmatmul.mubr.msk.bf16.vlgmr.msra.gmra.mrb[100].mxu1 %vm417_vm1, %v24967_v46 }
 0x7af   :  { %21234 = vmatpush3.bf16.msra.mxu1 %v24673_v6  ;;  %21237 = vmatprep.mubr.msk.bf16.mxu1 %vm417_vm1, %v24975_v31  ;;  %v23222_v6 = vld [vmem:[%s27006_s15 + $0x20] sm:$0xff]  }
 0x7b0   :  { %21235 = vmatprep.subr.bf16.mxu1 %v24686_v14  ;;  %21145 = vmatprep.subr.bf16.mxu0 %v23222_v6 }
 0x7b1   :  { %21146 = vmatpush3.bf16.msra.mxu0 %v23222_v6 }
 0x7b3   :  { %21236 = vmatpush3.bf16.msra.mxu1 %v24686_v14  ;;  %v23223_v14 = vld [vmem:[%s27006_s15 + $0x28] sm:$0xff]  }
 0x7b4   :  { %21147 = vmatprep.subr.bf16.mxu0 %v23223_v14 }
 0x7b5   :  { %21148 = vmatpush3.bf16.msra.mxu0 %v23223_v14  ;;  %v23227_v14 = vld [vmem:[%s27006_s15 + $0x48] sm:$0xff]  }
 0x7b6   :  { %21238 = vmatmul.mubr.msk.bf16.vlgmr.msra.gmra.mrb[104].mxu1 %vm417_vm1, %v24984_v19  ;;  %21161 = vmatprep.subr.bf16.mxu0 %v23224_v21 }
 0x7b7   :  { %21253 = vmatprep.mubr.msk.bf16.mxu1 %vm417_vm1, %v24723_v18 }
 0x841   :  { %v24999_v15 = vpop.f32.mrb[68].mxu1 }
 0x842   :  { %27072 = vst [vmem:[#allocation6_spill] sm:$0xff] %v24999_v15  ;;  %v25001_v18 = vpop.f32.mrb[69].mxu1 }
 0x843   :  { %27073 = vst [vmem:[#allocation7_spill] sm:$0xff] %v25001_v18  ;;  %v25003_v20 = vpop.f32.mrb[70].mxu1 }
 0x844   :  { %27074 = vst [vmem:[#allocation8_spill] sm:$0xff] %v25003_v20  ;;  %v25005_v22 = vpop.f32.mrb[71].mxu1 }
 0x845   :  { %27075 = vst [vmem:[#allocation9_spill] sm:$0xff] %v25005_v22 }
 0x849   :  { %v25007_v26 = vpop.f32.mrb[72].mxu1 }
 0x84a   :  { %27076 = vst [vmem:[#allocation10_spill] sm:$0xff] %v25007_v26  ;;  %v25009_v34 = vpop.f32.mrb[73].mxu1 }
 0x84b   :  { %27077 = vst [vmem:[#allocation11_spill] sm:$0xff] %v25009_v34  ;;  %v25011_v35 = vpop.f32.mrb[74].mxu1 }
 0x84c   :  { %27078 = vst [vmem:[#allocation12_spill] sm:$0xff] %v25011_v35  ;;  %v25013_v1 = vpop.f32.mrb[75].mxu1 }
 0x84d   :  { %27079 = vst [vmem:[#allocation13_spill] sm:$0xff] %v25013_v1 }
 0x851   :  { %v25015_v27 = vpop.f32.mrb[76].mxu1 }
 0x852   :  { %27080 = vst [vmem:[#allocation14_spill] sm:$0xff] %v25015_v27  ;;  %v25017_v30 = vpop.f32.mrb[77].mxu1 }
 0x853   :  { %27081 = vst [vmem:[#allocation15_spill] sm:$0xff] %v25017_v30  ;;  %v25019_v25 = vpop.f32.mrb[78].mxu1 }
 0x854   :  { %27082 = vst [vmem:[#allocation16_spill] sm:$0xff] %v25019_v25  ;;  %v25021_v29 = vpop.f32.mrb[79].mxu1 }
 0x855   :  { %27083 = vst [vmem:[#allocation17_spill] sm:$0xff] %v25021_v29 }
 0x859   :  { %v25023_v33 = vpop.f32.mrb[80].mxu1 }
 0x85a   :  { %27084 = vst [vmem:[#allocation18_spill] sm:$0xff] %v25023_v33  ;;  %v25025_v38 = vpop.f32.mrb[81].mxu1 }
 0x85b   :  { %27085 = vst [vmem:[#allocation19_spill] sm:$0xff] %v25025_v38  ;;  %v25027_v44 = vpop.f32.mrb[82].mxu1 }
 0x85c   :  { %27086 = vst [vmem:[#allocation20_spill] sm:$0xff] %v25027_v44  ;;  %v25029_v45 = vpop.f32.mrb[83].mxu1 }
 0x85d   :  { %27087 = vst [vmem:[#allocation21_spill] sm:$0xff] %v25029_v45  ;;  %v21143_v36 = vpop.f32.mrb[212].mxu0 }
 0x85e   :  { %v6269_v41 = vpop.f32.mrb[213].mxu0 }
 0x85f   :  { %v21144_v53 = vpop.f32.mrb[214].mxu0 }
 0x860   :  { %v6285_v28 = vpack.c.bf16 %v21144_v53, %v21143_v36  ;;  %v6272_v48 = vpop.f32.mrb[215].mxu0  ;;  %v23228_v36 = vld [vmem:[%s27006_s15 + $0x50] sm:$0xff]  }
 0x861   :  { %v6284_v40 = vpack.c.bf16 %v6272_v48, %v6269_v41  ;;  %v21159_v54 = vpop.f32.mrb[84].mxu1 }
 0x862   :  { %v6396_v43 = vpop.f32.mrb[85].mxu1 }
 0x863   :  { %21149 = vmatprep.mubr.msk.bf16.mxu0 %vm417_vm1, %v6284_v40  ;;  %v21160_v37 = vpop.f32.mrb[86].mxu1 }
 0x864   :  { %21150 = vmatmul.mubr.msk.bf16.vlgmr.msra.gmra.mrb[208].mxu0 %vm417_vm1, %v6285_v28  ;;  %v6412_v3 = vpack.c.bf16 %v21160_v37, %v21159_v54  ;;  %v6399_v49 = vpop.f32.mrb[87].mxu1 }
 0x865   :  { %21162 = vmatpush3.bf16.msra.mxu0 %v23224_v21  ;;  %v6411_v39 = vpack.c.bf16 %v6399_v49, %v6396_v43  ;;  %v23229_v43 = vld [vmem:[%s27006_s15 + $0x58] sm:$0xff]  }
 0x866   :  { %21163 = vmatprep.subr.bf16.mxu0 %v23225_v52 }
 0x867   :  { %21165 = vmatprep.mubr.msk.bf16.mxu0 %vm417_vm1, %v6411_v39 }
 0x869   :  { %21164 = vmatpush3.bf16.msra.mxu0 %v23225_v52  ;;  %v21175_v42 = vpop.f32.mrb[88].mxu1 }
 0x86a   :  { %21177 = vmatprep.subr.bf16.mxu0 %v23226_v2  ;;  %v6523_v55 = vpop.f32.mrb[89].mxu1 }
 0x86b   :  { %v21176_v57 = vpop.f32.mrb[90].mxu1 }
 0x86c   :  { %v6539_v59 = vpack.c.bf16 %v21176_v57, %v21175_v42  ;;  %v6526_v60 = vpop.f32.mrb[91].mxu1 }
 0x86d   :  { %v6538_v6 = vpack.c.bf16 %v6526_v60, %v6523_v55 }
 0x870   :  { %21166 = vmatmul.mubr.msk.bf16.vlgmr.msra.gmra.mrb[208].mxu0 %vm417_vm1, %v6412_v3 }
 0x871   :  { %21178 = vmatpush3.bf16.msra.mxu0 %v23226_v2  ;;  %21181 = vmatprep.mubr.msk.bf16.mxu0 %vm417_vm1, %v6538_v6  ;;  %v21191_v21 = vpop.f32.mrb[92].mxu1  ;;  %v23230_v2 = vld [vmem:[%s27006_s15 + $0x60] sm:$0xff]  }
 0x872   :  { %21179 = vmatprep.subr.bf16.mxu0 %v23227_v14  ;;  %v6650_v41 = vpop.f32.mrb[93].mxu1 }
 0x873   :  { %v21192_v53 = vpop.f32.mrb[94].mxu1 }
 0x874   :  { %v6666_v28 = vpack.c.bf16 %v21192_v53, %v21191_v21  ;;  %v6653_v48 = vpop.f32.mrb[95].mxu1 }
 0x875   :  { %21180 = vmatpush3.bf16.msra.mxu0 %v23227_v14  ;;  %v6665_v40 = vpack.c.bf16 %v6653_v48, %v6650_v41 }
 0x876   :  { %21193 = vmatprep.subr.bf16.mxu0 %v23228_v36 }
 0x879   :  { %v21207_v54 = vpop.f32.mrb[96].mxu1 }
 0x87a   :  { %v6777_v52 = vpop.f32.mrb[97].mxu1 }
 0x87b   :  { %v21208_v37 = vpop.f32.mrb[98].mxu1 }
 0x87c   :  { %21182 = vmatmul.mubr.msk.bf16.vlgmr.msra.gmra.mrb[208].mxu0 %vm417_vm1, %v6539_v59  ;;  %v6793_v3 = vpack.c.bf16 %v21208_v37, %v21207_v54  ;;  %v6780_v49 = vpop.f32.mrb[99].mxu1  ;;  %v23231_v59 = vld [vmem:[%s27006_s15 + $0x68] sm:$0xff]  }
 0x87d   :  { %21194 = vmatpush3.bf16.msra.mxu0 %v23228_v36  ;;  %21197 = vmatprep.mubr.msk.bf16.mxu0 %vm417_vm1, %v6665_v40  ;;  %v6792_v39 = vpack.c.bf16 %v6780_v49, %v6777_v52  ;;  %v23232_v36 = vld [vmem:[%s27006_s15 + $0x70] sm:$0xff]   ;;  %v23235_v52 = vld [vmem:[%s27006_s15 + $0x88] sm:$0xff]  }
 0x87e   :  { %21195 = vmatprep.subr.bf16.mxu0 %v23229_v43 }
 0x881   :  { %21196 = vmatpush3.bf16.msra.mxu0 %v23229_v43  ;;  %v21223_v42 = vpop.f32.mrb[100].mxu1  ;;  %v23234_v43 = vld [vmem:[%s27006_s15 + $0x80] sm:$0xff]  }
 0x882   :  { %21209 = vmatprep.subr.bf16.mxu0 %v23230_v2  ;;  %v6904_v55 = vpop.f32.mrb[101].mxu1 }
 0x883   :  { %v21224_v57 = vpop.f32.mrb[102].mxu1 }
 0x884   :  { %v6920_v60 = vpack.c.bf16 %v21224_v57, %v21223_v42  ;;  %v6907_v6 = vpop.f32.mrb[103].mxu1 }
 0x885   :  { %v6919_v14 = vpack.c.bf16 %v6907_v6, %v6904_v55 }
 0x888   :  { %21198 = vmatmul.mubr.msk.bf16.vlgmr.msra.gmra.mrb[208].mxu0 %vm417_vm1, %v6666_v28  ;;  %v23233_v28 = vld [vmem:[%s27006_s15 + $0x78] sm:$0xff]  }
 0x889   :  { %21210 = vmatpush3.bf16.msra.mxu0 %v23230_v2  ;;  %21213 = vmatprep.mubr.msk.bf16.mxu0 %vm417_vm1, %v6792_v39  ;;  %v21239_v21 = vpop.f32.mrb[104].mxu1 }
 0x88a   :  { %21211 = vmatprep.subr.bf16.mxu0 %v23231_v59  ;;  %v7031_v41 = vpop.f32.mrb[105].mxu1 }
 0x88b   :  { %v21240_v53 = vpop.f32.mrb[106].mxu1 }
 0x88c   :  { %v7047_v48 = vpack.c.bf16 %v21240_v53, %v21239_v21  ;;  %v7034_v40 = vpop.f32.mrb[107].mxu1 }
 0x88d   :  { %21212 = vmatpush3.bf16.msra.mxu0 %v23231_v59  ;;  %v7046_v54 = vpack.c.bf16 %v7034_v40, %v7031_v41 }
 0x88e   :  { %21225 = vmatprep.subr.bf16.mxu0 %v23232_v36 }
 0x894   :  { %21214 = vmatmul.mubr.msk.bf16.vlgmr.msra.gmra.mrb[208].mxu0 %vm417_vm1, %v6793_v3  ;;  %v18087_v3 = vld [vmem:[%s27007_s16] ss:$0 sm:$0xff] }
 0x895   :  { %21226 = vmatpush3.bf16.msra.mxu0 %v23232_v36  ;;  %21229 = vmatprep.mubr.msk.bf16.mxu0 %vm417_vm1, %v6919_v14 }
 0x896   :  { %21227 = vmatprep.subr.bf16.mxu0 %v23233_v28 }
 0x899   :  { %21228 = vmatpush3.bf16.msra.mxu0 %v23233_v28 }
 0x89a   :  { %21241 = vmatprep.subr.bf16.mxu0 %v23234_v43 }
 0x8a0   :  { %21230 = vmatmul.mubr.msk.bf16.vlgmr.msra.gmra.mrb[208].mxu0 %vm417_vm1, %v6920_v60 }
 0x8a1   :  { %21242 = vmatpush3.bf16.msra.mxu0 %v23234_v43  ;;  %21245 = vmatprep.mubr.msk.bf16.mxu0 %vm417_vm1, %v7046_v54 }
 0x8a2   :  { %21243 = vmatprep.subr.bf16.mxu0 %v23235_v52 }
 0x8a5   :  { %21244 = vmatpush3.bf16.msra.mxu0 %v23235_v52 }
 0x8ac   :  { %21246 = vmatmul.mubr.msk.bf16.vlgmr.msra.gmra.mrb[208].mxu0 %vm417_vm1, %v7047_v48 }
 0x97f   :  { %v21247_v37 = vpop.f32.mrb[208].mxu0 }
 0x980   :  { %v7126_v49 = vadd.f32 %v21247_v37, %v24509_v61  ;;  %v7105_v39 = vpop.f32.mrb[209].mxu0 }
 0x981   :  { %v7124_v2 = vadd.f32 %v7105_v39, %v24513_v63  ;;  %v21248_v42 = vpop.f32.mrb[210].mxu0 }
 0x982   :  { %v7137_v55 = vadd.f32 %v18087_v3, %v7126_v49  ;;  %v7127_v57 = vadd.f32 %v21248_v42, %v24521_v4  ;;  %v7108_v60 = vpop.f32.mrb[211].mxu0 }
 0x983   :  { %v7135_v6 = vadd.f32 %v18087_v3, %v7124_v2  ;;  %v7125_v14 = vadd.f32 %v7108_v60, %v24529_v7 }
 0x984   :  { %v18090_v59 = vmul.f32 -1.442695, %v7137_v55  ;;  %v7138_v21 = vadd.f32 %v18087_v3, %v7127_v57 }
 0x985   :  { %v18088_v36 = vmul.f32 -1.442695, %v7135_v6  ;;  %v7136_v41 = vadd.f32 %v18087_v3, %v7125_v14 }
 0x986   :  { %23490 = vpow2.f32 %v18090_v59  ;;  %v18091_v53 = vmul.f32 -1.442695, %v7138_v21 }
 0x987   :  { %23492 = vpow2.f32 %v18088_v36  ;;  %v18089_v48 = vmul.f32 -1.442695, %v7136_v41  ;;  %v23239_v36 = vld [vmem:[%s27008_s18 + $0x8] sm:$0xff]  }
 0x988   :  { %23494 = vpow2.f32 %v18091_v53  ;;  %v23240_v53 = vld [vmem:[%s27008_s18 + $0x20] sm:$0xff]  }
 0x989   :  { %23496 = vpow2.f32 %v18089_v48 }
 0x990   :  { %v23491_v40 = vpop.eup %23490 }
 0x991   :  { %v23493_v54 = vpop.eup %23492  ;;  %v7153_v28 = vadd.f32 1.0, %v23491_v40 }
 0x992   :  { %v23495_v43 = vpop.eup %23494  ;;  %v7151_v52 = vadd.f32 1.0, %v23493_v54 }
 0x993   :  { %v23497_v37 = vpop.eup %23496  ;;  %23498 = vrcp.f32 %v7153_v28  ;;  %v7154_v49 = vadd.f32 1.0, %v23495_v43 }
 0x994   :  { %23500 = vrcp.f32 %v7151_v52  ;;  %v7152_v39 = vadd.f32 1.0, %v23497_v37  ;;  %v23241_v37 = vld [vmem:[%s27008_s18 + $0x28] sm:$0xff]  }
 0x995   :  { %23502 = vrcp.f32 %v7154_v49 }
 0x996   :  { %23504 = vrcp.f32 %v7152_v39 }
 0x99d   :  { %v25085_v2 = vpop.eup %23498 }
 0x99e   :  { %v25087_v3 = vpop.eup %23500  ;;  %v7165_v57 = vmul.f32 %v25085_v2, %v24142_v47  ;;  %v23540_v47 = vld [vmem:[%s27067_s1 + $0x8] sm:$0xff]  }
 0x99f   :  { %v25089_v42 = vpop.eup %23502  ;;  %v7163_v6 = vmul.f32 %v25087_v3, %v24148_v51  ;;  %v23542_v51 = vld [vmem:[%s27067_s1 + $0x18] sm:$0xff]  }
 0x9a0   :  { %v25091_v55 = vpop.eup %23504  ;;  %v7166_v60 = vmul.f32 %v25089_v42, %v24144_v50  ;;  %v23541_v50 = vld [vmem:[%s27067_s1 + $0x10] sm:$0xff]  }
 0x9a1   :  { %v7164_v14 = vmul.f32 %v25091_v55, %v24157_v58  ;;  %v23236_v58 = vld [vmem:[%s27008_s18 + $0x10] sm:$0xff]  }
 0x9a2   :  { %v7168_v59 = vpack.c.bf16 %v7166_v60, %v7165_v57  ;;  %21265 = vmatprep.subr.bf16.mxu0 %v23236_v58 }
 0x9a3   :  { %v7167_v21 = vpack.c.bf16 %v7164_v14, %v7163_v6  ;;  %21266 = vmatpush3.bf16.msra.mxu0 %v23236_v58  ;;  %v23242_v14 = vld [vmem:[%s27008_s18 + $0x30] sm:$0xff]  }
 0x9a5   :  { %21249 = vmatprep.subr.bf16.mxu1 %v7167_v21 }
 0x9a6   :  { %21250 = vmatpush3.bf16.msra.mxu1 %v7167_v21 }
 0x9a7   :  { %21251 = vmatprep.subr.bf16.mxu1 %v7168_v59 }
 0x9aa   :  { %21252 = vmatpush3.bf16.msra.mxu1 %v7168_v59 }
 0x9ab   :  { %21257 = vmatprep.subr.bf16.mxu1 %v7167_v21 }
 0x9ad   :  { %21254 = vmatmul.mubr.msk.bf16.vlgmr.msra.gmra.mrb[108].mxu1 %vm417_vm1, %v23540_v47 }
 0x9ae   :  { %21258 = vmatpush3.bf16.msra.mxu1 %v7167_v21  ;;  %21261 = vmatprep.mubr.msk.bf16.mxu1 %vm417_vm1, %v23541_v50 }
 0x9af   :  { %21259 = vmatprep.subr.bf16.mxu1 %v7168_v59 }
 0x9b2   :  { %21260 = vmatpush3.bf16.msra.mxu1 %v7168_v59 }
 0x9b3   :  { %21281 = vmatprep.subr.bf16.mxu1 %v7167_v21 }
 0x9b5   :  { %21262 = vmatmul.mubr.msk.bf16.vlgmr.msra.gmra.mrb[112].mxu1 %vm417_vm1, %v23542_v51 }
 0x9b6   :  { %21282 = vmatpush3.bf16.msra.mxu1 %v7167_v21  ;;  %21285 = vmatprep.mubr.msk.bf16.mxu1 %vm417_vm1, %v24871_v56  ;;  %v23237_v56 = vld [vmem:[%s27008_s18 + $0x18] sm:$0xff]  }
 0x9b7   :  { %21283 = vmatprep.subr.bf16.mxu1 %v7168_v59  ;;  %21267 = vmatprep.subr.bf16.mxu0 %v23237_v56 }
 0x9b8   :  { %21268 = vmatpush3.bf16.msra.mxu0 %v23237_v56  ;;  %v23243_v56 = vld [vmem:[%s27008_s18 + $0x38] sm:$0xff]  }
 0x9ba   :  { %21284 = vmatpush3.bf16.msra.mxu1 %v7168_v59 }
 0x9bb   :  { %21297 = vmatprep.subr.bf16.mxu1 %v7167_v21 }
 0x9bd   :  { %21286 = vmatmul.mubr.msk.bf16.vlgmr.msra.gmra.mrb[116].mxu1 %vm417_vm1, %v24888_v16 }
 0x9be   :  { %21298 = vmatpush3.bf16.msra.mxu1 %v7167_v21  ;;  %21301 = vmatprep.mubr.msk.bf16.mxu1 %vm417_vm1, %v24881_v17  ;;  %v23238_v17 = vld [vmem:[%s27008_s18] sm:$0xff]  }
 0x9bf   :  { %21299 = vmatprep.subr.bf16.mxu1 %v7168_v59  ;;  %21273 = vmatprep.subr.bf16.mxu0 %v23238_v17 }
 0x9c2   :  { %21300 = vmatpush3.bf16.msra.mxu1 %v7168_v59 }
 0x9c3   :  { %21313 = vmatprep.subr.bf16.mxu1 %v7167_v21 }
 0x9c5   :  { %21302 = vmatmul.mubr.msk.bf16.vlgmr.msra.gmra.mrb[120].mxu1 %vm417_vm1, %v24895_v9 }
 0x9c6   :  { %21314 = vmatpush3.bf16.msra.mxu1 %v7167_v21  ;;  %21317 = vmatprep.mubr.msk.bf16.mxu1 %vm417_vm1, %v24903_v10 }
 0x9c7   :  { %21315 = vmatprep.subr.bf16.mxu1 %v7168_v59 }
 0x9ca   :  { %21316 = vmatpush3.bf16.msra.mxu1 %v7168_v59 }
 0x9cb   :  { %21329 = vmatprep.subr.bf16.mxu1 %v7167_v21 }
 0x9cd   :  { %21318 = vmatmul.mubr.msk.bf16.vlgmr.msra.gmra.mrb[124].mxu1 %vm417_vm1, %v24913_v32 }
 0x9ce   :  { %21330 = vmatpush3.bf16.msra.mxu1 %v7167_v21  ;;  %21333 = vmatprep.mubr.msk.bf16.mxu1 %vm417_vm1, %v24921_v11 }
 0x9cf   :  { %21331 = vmatprep.subr.bf16.mxu1 %v7168_v59 }
 0x9d2   :  { %21332 = vmatpush3.bf16.msra.mxu1 %v7168_v59 }
 0x9d3   :  { %21345 = vmatprep.subr.bf16.mxu1 %v7167_v21 }
 0x9d5   :  { %21334 = vmatmul.mubr.msk.bf16.vlgmr.msra.gmra.mrb[128].mxu1 %vm417_vm1, %v24931_v12 }
 0x9d6   :  { %21346 = vmatpush3.bf16.msra.mxu1 %v7167_v21  ;;  %21349 = vmatprep.mubr.msk.bf16.mxu1 %vm417_vm1, %v24939_v13 }
 0x9d7   :  { %21347 = vmatprep.subr.bf16.mxu1 %v7168_v59 }
 0x9da   :  { %21348 = vmatpush3.bf16.msra.mxu1 %v7168_v59 }
 0x9db   :  { %21361 = vmatprep.subr.bf16.mxu1 %v7167_v21 }
 0x9dd   :  { %21350 = vmatmul.mubr.msk.bf16.vlgmr.msra.gmra.mrb[132].mxu1 %vm417_vm1, %v24949_v23 }
 0x9de   :  { %21362 = vmatpush3.bf16.msra.mxu1 %v7167_v21  ;;  %21365 = vmatprep.mubr.msk.bf16.mxu1 %vm417_vm1, %v24957_v24 }
 0x9df   :  { %21363 = vmatprep.subr.bf16.mxu1 %v7168_v59 }
 0x9e2   :  { %21364 = vmatpush3.bf16.msra.mxu1 %v7168_v59 }
 0x9e3   :  { %21377 = vmatprep.subr.bf16.mxu1 %v7167_v21 }
 0x9e5   :  { %21366 = vmatmul.mubr.msk.bf16.vlgmr.msra.gmra.mrb[136].mxu1 %vm417_vm1, %v24967_v46 }
 0x9e6   :  { %21378 = vmatpush3.bf16.msra.mxu1 %v7167_v21  ;;  %21381 = vmatprep.mubr.msk.bf16.mxu1 %vm417_vm1, %v24975_v31 }
 0x9e7   :  { %21379 = vmatprep.subr.bf16.mxu1 %v7168_v59 }
 0x9ea   :  { %21380 = vmatpush3.bf16.msra.mxu1 %v7168_v59 }
 0x9ed   :  { %21382 = vmatmul.mubr.msk.bf16.vlgmr.msra.gmra.mrb[140].mxu1 %vm417_vm1, %v24984_v19 }
 0xa80   :  { %v21255_v16 = vpop.f32.mrb[108].mxu1 }
 0xa81   :  { %v7203_v9 = vpop.f32.mrb[109].mxu1 }
 0xa82   :  { %v21256_v10 = vpop.f32.mrb[110].mxu1 }
 0xa83   :  { %v7219_v32 = vpack.c.bf16 %v21256_v10, %v21255_v16  ;;  %v7206_v11 = vpop.f32.mrb[111].mxu1  ;;  %v23244_v16 = vld [vmem:[%s27008_s18 + $0x40] sm:$0xff]  }
 0xa84   :  { %v7218_v12 = vpack.c.bf16 %v7206_v11, %v7203_v9 }
 0xa88   :  { %v21263_v13 = vpop.f32.mrb[112].mxu1 }
 0xa89   :  { %v7258_v23 = vpop.f32.mrb[113].mxu1 }
 0xa8a   :  { %v21264_v24 = vpop.f32.mrb[114].mxu1 }
 0xa8b   :  { %v7274_v46 = vpack.c.bf16 %v21264_v24, %v21263_v13  ;;  %v7261_v31 = vpop.f32.mrb[115].mxu1 }
 0xa8c   :  { %v7273_v19 = vpack.c.bf16 %v7261_v31, %v7258_v23  ;;  %v23245_v23 = vld [vmem:[%s27008_s18 + $0x48] sm:$0xff]  }
 0xa8e   :  { %21269 = vmatprep.mubr.msk.bf16.mxu0 %vm417_vm1, %v7273_v19 }
 0xa8f   :  { %21270 = vmatmul.mubr.msk.bf16.vlgmr.msra.gmra.mrb[216].mxu0 %vm417_vm1, %v7274_v46 }
 0xa90   :  { %21274 = vmatpush3.bf16.msra.mxu0 %v23238_v17  ;;  %21277 = vmatprep.mubr.msk.bf16.mxu0 %vm417_vm1, %v7218_v12  ;;  %v21287_v41 = vpop.f32.mrb[116].mxu1 }
 0xa91   :  { %21275 = vmatprep.subr.bf16.mxu0 %v23239_v36  ;;  %v7448_v48 = vpop.f32.mrb[117].mxu1 }
 0xa92   :  { %v21288_v40 = vpop.f32.mrb[118].mxu1 }
 0xa93   :  { %v7464_v54 = vpack.c.bf16 %v21288_v40, %v21287_v41  ;;  %v7451_v28 = vpop.f32.mrb[119].mxu1  ;;  %v23246_v41 = vld [vmem:[%s27008_s18 + $0x50] sm:$0xff]  }
 0xa94   :  { %21276 = vmatpush3.bf16.msra.mxu0 %v23239_v36  ;;  %v7463_v43 = vpack.c.bf16 %v7451_v28, %v7448_v48 }
 0xa95   :  { %21289 = vmatprep.subr.bf16.mxu0 %v23240_v53 }
 0xa98   :  { %v21303_v52 = vpop.f32.mrb[120].mxu1 }
 0xa99   :  { %v7575_v49 = vpop.f32.mrb[121].mxu1 }
 0xa9a   :  { %v21304_v39 = vpop.f32.mrb[122].mxu1 }
 0xa9b   :  { %21278 = vmatmul.mubr.msk.bf16.vlgmr.msra.gmra.mrb[216].mxu0 %vm417_vm1, %v7219_v32  ;;  %v7591_v57 = vpack.c.bf16 %v21304_v39, %v21303_v52  ;;  %v7578_v60 = vpop.f32.mrb[123].mxu1  ;;  %v23247_v52 = vld [vmem:[%s27008_s18 + $0x58] sm:$0xff]  }
 0xa9c   :  { %21290 = vmatpush3.bf16.msra.mxu0 %v23240_v53  ;;  %21293 = vmatprep.mubr.msk.bf16.mxu0 %vm417_vm1, %v7463_v43  ;;  %v7590_v6 = vpack.c.bf16 %v7578_v60, %v7575_v49  ;;  %v23248_v49 = vld [vmem:[%s27008_s18 + $0x60] sm:$0xff]  }
 0xa9d   :  { %21291 = vmatprep.subr.bf16.mxu0 %v23241_v37 }
 0xaa0   :  { %21292 = vmatpush3.bf16.msra.mxu0 %v23241_v37  ;;  %v21319_v59 = vpop.f32.mrb[124].mxu1 }
 0xaa1   :  { %21305 = vmatprep.subr.bf16.mxu0 %v23242_v14  ;;  %v7702_v21 = vpop.f32.mrb[125].mxu1 }
 0xaa2   :  { %v21320_v47 = vpop.f32.mrb[126].mxu1 }
 0xaa3   :  { %v7718_v50 = vpack.c.bf16 %v21320_v47, %v21319_v59  ;;  %v7705_v51 = vpop.f32.mrb[127].mxu1  ;;  %v23249_v59 = vld [vmem:[%s27008_s18 + $0x68] sm:$0xff]   ;;  %v23251_v47 = vld [vmem:[%s27008_s18 + $0x78] sm:$0xff]  }
 0xaa4   :  { %v7717_v58 = vpack.c.bf16 %v7705_v51, %v7702_v21  ;;  %v23250_v21 = vld [vmem:[%s27008_s18 + $0x70] sm:$0xff]   ;;  %v23253_v51 = vld [vmem:[%s27008_s18 + $0x88] sm:$0xff]  }
 0xaa7   :  { %21294 = vmatmul.mubr.msk.bf16.vlgmr.msra.gmra.mrb[216].mxu0 %vm417_vm1, %v7464_v54 }
 0xaa8   :  { %21306 = vmatpush3.bf16.msra.mxu0 %v23242_v14  ;;  %21309 = vmatprep.mubr.msk.bf16.mxu0 %vm417_vm1, %v7590_v6  ;;  %v21335_v17 = vpop.f32.mrb[128].mxu1 }
 0xaa9   :  { %21307 = vmatprep.subr.bf16.mxu0 %v23243_v56  ;;  %v7829_v9 = vpop.f32.mrb[129].mxu1 }
 0xaaa   :  { %v21336_v10 = vpop.f32.mrb[130].mxu1 }
 0xaab   :  { %v7845_v32 = vpack.c.bf16 %v21336_v10, %v21335_v17  ;;  %v7832_v11 = vpop.f32.mrb[131].mxu1 }
 0xaac   :  { %21308 = vmatpush3.bf16.msra.mxu0 %v23243_v56  ;;  %v7844_v12 = vpack.c.bf16 %v7832_v11, %v7829_v9  ;;  %v18178_v56 = vld [vmem:[%s27009_s19] ss:$0 sm:$0xff] }
 0xaad   :  { %21321 = vmatprep.subr.bf16.mxu0 %v23244_v16 }
 0xab0   :  { %v21351_v13 = vpop.f32.mrb[132].mxu1 }
 0xab1   :  { %v7956_v24 = vpop.f32.mrb[133].mxu1 }
 0xab2   :  { %v21352_v46 = vpop.f32.mrb[134].mxu1 }
 0xab3   :  { %21310 = vmatmul.mubr.msk.bf16.vlgmr.msra.gmra.mrb[216].mxu0 %vm417_vm1, %v7591_v57  ;;  %v7972_v31 = vpack.c.bf16 %v21352_v46, %v21351_v13  ;;  %v7959_v19 = vpop.f32.mrb[135].mxu1 }
 0xab4   :  { %21322 = vmatpush3.bf16.msra.mxu0 %v23244_v16  ;;  %21325 = vmatprep.mubr.msk.bf16.mxu0 %vm417_vm1, %v7717_v58  ;;  %v7971_v36 = vpack.c.bf16 %v7959_v19, %v7956_v24 }
 0xab5   :  { %21323 = vmatprep.subr.bf16.mxu0 %v23245_v23 }
 0xab8   :  { %21324 = vmatpush3.bf16.msra.mxu0 %v23245_v23  ;;  %v21367_v53 = vpop.f32.mrb[136].mxu1 }
 0xab9   :  { %21337 = vmatprep.subr.bf16.mxu0 %v23246_v41  ;;  %v8083_v48 = vpop.f32.mrb[137].mxu1 }
 0xaba   :  { %v21368_v40 = vpop.f32.mrb[138].mxu1 }
 0xabb   :  { %v8099_v54 = vpack.c.bf16 %v21368_v40, %v21367_v53  ;;  %v8086_v28 = vpop.f32.mrb[139].mxu1  ;;  %v8331_v53 = vpop.permute.xlu0 %8330 }
 0xabc   :  { %v8098_v43 = vpack.c.bf16 %v8086_v28, %v8083_v48  ;;  %v8333_v40 = vpop.permute.xlu1 %8332 }
 0xabf   :  { %21326 = vmatmul.mubr.msk.bf16.vlgmr.msra.gmra.mrb[216].mxu0 %vm417_vm1, %v7718_v50  ;;  %v23252_v50 = vld [vmem:[%s27008_s18 + $0x80] sm:$0xff]   ;;  %v8327_v48 = vpop.permute.xlu0 %8326 }
 0xac0   :  { %21338 = vmatpush3.bf16.msra.mxu0 %v23246_v41  ;;  %21341 = vmatprep.mubr.msk.bf16.mxu0 %vm417_vm1, %v7844_v12  ;;  %v21383_v37 = vpop.f32.mrb[140].mxu1 }
 0xac1   :  { %21339 = vmatprep.subr.bf16.mxu0 %v23247_v52  ;;  %v8210_v39 = vpop.f32.mrb[141].mxu1 }
 0xac2   :  { %v21384_v57 = vpop.f32.mrb[142].mxu1 }
 0xac3   :  { %v8226_v60 = vpack.c.bf16 %v21384_v57, %v21383_v37  ;;  %v8213_v6 = vpop.f32.mrb[143].mxu1  ;;  %v8343_v37 = vsub.f32 1.0, %v25091_v55 }
 0xac4   :  { %21340 = vmatpush3.bf16.msra.mxu0 %v23247_v52  ;;  %v8225_v14 = vpack.c.bf16 %v8213_v6, %v8210_v39  ;;  %v8338_v6 = vmul.f32 %v25087_v3, %v8327_v48  ;;  %v23274_v48 = vld [vmem:[%s27010_s5 + $0x30] sm:$0xff]  }
 0xac5   :  { %21353 = vmatprep.subr.bf16.mxu0 %v23248_v49 }
 0xacb   :  { %21342 = vmatmul.mubr.msk.bf16.vlgmr.msra.gmra.mrb[216].mxu0 %vm417_vm1, %v7845_v32 }
 0xacc   :  { %21354 = vmatpush3.bf16.msra.mxu0 %v23248_v49  ;;  %21357 = vmatprep.mubr.msk.bf16.mxu0 %vm417_vm1, %v7971_v36  ;;  %v8344_v49 = vsub.f32 1.0, %v25085_v2 }
 0xacd   :  { %21355 = vmatprep.subr.bf16.mxu0 %v23249_v59 }
 0xad0   :  { %21356 = vmatpush3.bf16.msra.mxu0 %v23249_v59 }
 0xad1   :  { %21369 = vmatprep.subr.bf16.mxu0 %v23250_v21 }
 0xad7   :  { %21358 = vmatmul.mubr.msk.bf16.vlgmr.msra.gmra.mrb[216].mxu0 %vm417_vm1, %v7972_v31 }
 0xad8   :  { %21370 = vmatpush3.bf16.msra.mxu0 %v23250_v21  ;;  %21373 = vmatprep.mubr.msk.bf16.mxu0 %vm417_vm1, %v8098_v43  ;;  %v8342_v43 = vsub.f32 1.0, %v25087_v3  ;;  %v8345_v21 = vsub.f32 1.0, %v25089_v42 }
 0xad9   :  { %21371 = vmatprep.subr.bf16.mxu0 %v23251_v47 }
 0xadc   :  { %21372 = vmatpush3.bf16.msra.mxu0 %v23251_v47 }
 0xadd   :  { %21385 = vmatprep.subr.bf16.mxu0 %v23252_v50 }
 0xae3   :  { %21374 = vmatmul.mubr.msk.bf16.vlgmr.msra.gmra.mrb[216].mxu0 %vm417_vm1, %v8099_v54  ;;  %v8329_v54 = vpop.permute.xlu0 %8328 }
 0xae4   :  { %21386 = vmatpush3.bf16.msra.mxu0 %v23252_v50  ;;  %21389 = vmatprep.mubr.msk.bf16.mxu0 %vm417_vm1, %v8225_v14  ;;  %v8339_v14 = vmul.f32 %v25091_v55, %v8329_v54  ;;  %v23275_v54 = vld [vmem:[%s27010_s5 + $0x38] sm:$0xff]  }
 0xae5   :  { %21387 = vmatprep.subr.bf16.mxu0 %v23253_v51 }
 0xae8   :  { %21388 = vmatpush3.bf16.msra.mxu0 %v23253_v51 }
 0xaef   :  { %21390 = vmatmul.mubr.msk.bf16.vlgmr.msra.gmra.mrb[216].mxu0 %vm417_vm1, %v8226_v60  ;;  %v23254_v60 = vld [vmem:[%s27010_s5 + $0x40] sm:$0xff]  }
 0xaf0   :  { %21417 = vmatprep.mubr.msk.bf16.mxu0 %vm417_vm1, %v23254_v60  ;;  %v23277_v60 = vld [vmem:[%s27010_s5 + $0xb8] sm:$0xff]  }
 0xbc2   :  { %v21391_v58 = vpop.f32.mrb[216].mxu0 }
 0xbc3   :  { %v8305_v17 = vadd.f32 %v21391_v58, %v24511_v62  ;;  %v8284_v16 = vpop.f32.mrb[217].mxu0 }
 0xbc4   :  { %v8303_v9 = vadd.f32 %v8284_v16, %v24515_v0  ;;  %v21392_v10 = vpop.f32.mrb[218].mxu0 }
 0xbc5   :  { %v8306_v32 = vadd.f32 %v21392_v10, %v24523_v5  ;;  %v8287_v11 = vpop.f32.mrb[219].mxu0  ;;  %v8316_v12 = vadd.f32 %v18178_v56, %v8305_v17  ;;  %v8341_v17 = vmul.f32 %v25089_v42, %v8333_v40  ;;  %v23261_v40 = vld [vmem:[%s27010_s5 + $0x78] sm:$0xff]  }
 0xbc6   :  { %v8304_v13 = vadd.f32 %v8287_v11, %v24531_v8  ;;  %v8314_v23 = vadd.f32 %v18178_v56, %v8303_v9  ;;  %v23255_v11 = vld [vmem:[%s27010_s5 + $0x48] sm:$0xff]  }
 0xbc7   :  { %v8320_v24 = vmax.f32 %v8316_v12, 0.0  ;;  %v8317_v36 = vadd.f32 %v18178_v56, %v8306_v32  ;;  %v23263_v12 = vld [vmem:[%s27010_s5 + $0x8] sm:$0xff]  }
 0xbc8   :  { %v8318_v46 = vmax.f32 %v8314_v23, 0.0  ;;  %v8315_v31 = vadd.f32 %v18178_v56, %v8304_v13  ;;  %v8340_v56 = vmul.f32 %v25085_v2, %v8331_v53  ;;  %v23262_v2 = vld [vmem:[%s27010_s5] sm:$0xff]   ;;  %v23256_v13 = vld [vmem:[%s27010_s5 + $0x50] sm:$0xff]  }
 0xbc9   :  { %8354 = vrot.lane.b32.xlu0 %v8320_v24, %s23544_s11  ;;  %v8321_v41 = vmax.f32 %v8317_v36, 0.0  ;;  %21397 = vmatprep.mubr.msk.bf16.mxu1 %vm417_vm1, %v23262_v2  ;;  %v23266_v23 = vld [vmem:[%s27010_s5 + $0x10] sm:$0xff]   ;;  %v23257_v24 = vld [vmem:[%s27010_s5 + $0x58] sm:$0xff]   ;;  %v23259_v36 = vld [vmem:[%s27010_s5 + $0x68] sm:$0xff]  }
 0xbca   :  { %8350 = vrot.lane.b32.xlu1 %v8318_v46, %s23544_s11  ;;  %v8319_v19 = vmax.f32 %v8315_v31, 0.0  ;;  %v23267_v46 = vld [vmem:[%s27010_s5 + $0x18] sm:$0xff]   ;;  %v23258_v31 = vld [vmem:[%s27010_s5 + $0x60] sm:$0xff]   ;;  %v23260_v53 = vld [vmem:[%s27010_s5 + $0x70] sm:$0xff]  }
 0xbcb   :  { %v25420_v2 = vld [vmem:[%s27011_s21] sm:$0xff]  }
 0xbce   :  { %8352 = vrot.lane.b32.xlu1 %v8319_v19, %s23544_s11  ;;  %v23270_v19 = vld [vmem:[%s27010_s5 + $0x20] sm:$0xff]  }
 0xbd2   :  { %8356 = vrot.lane.b32.xlu1 %v8321_v41, %s23544_s11  ;;  %v23271_v41 = vld [vmem:[%s27010_s5 + $0x28] sm:$0xff]  }
 0xc3b   :  { %v8355_v39 = vpop.permute.xlu0 %8354 }
 0xc3c   :  { %v8351_v28 = vpop.permute.xlu1 %8350  ;;  %v8364_v47 = vmul.f32 %v8355_v39, %v8344_v49  ;;  %v23272_v49 = vld [vmem:[%s27010_s5 + $0xa0] sm:$0xff]   ;;  %v23273_v39 = vld [vmem:[%s27010_s5 + $0xa8] sm:$0xff]  }
 0xc3d   :  { %v8362_v52 = vmul.f32 %v8351_v28, %v8342_v43  ;;  %v23264_v28 = vld [vmem:[%s27010_s5 + $0x80] sm:$0xff]   ;;  %v23265_v43 = vld [vmem:[%s27010_s5 + $0x88] sm:$0xff]  }
 0xc3e   :  { %v25242_v55 = vadd.f32 %v8364_v47, %v8340_v56  ;;  %v23281_v47 = vld [vmem:[%s27010_s5 + $0xd8] sm:$0xff]  }
 0xc3f   :  { %v25234_v50 = vadd.f32 %v8362_v52, %v8338_v6  ;;  %v23268_v52 = vld [vmem:[%s27010_s5 + $0x90] sm:$0xff]   ;;  %v23278_v6 = vld [vmem:[%s27010_s5 + $0xc0] sm:$0xff]   ;;  %v23315_v56 = vld [vmem:[%s27011_s21 + $0x18] sm:$0xff]  }
 0xc40   :  { %v8353_v57 = vpop.permute.xlu1 %8352  ;;  %27090 = vst [vmem:[#allocation24_spill] sm:$0xff] %v25242_v55 }
 0xc41   :  { %v8363_v59 = vmul.f32 %v8353_v57, %v8343_v37  ;;  %27088 = vst [vmem:[#allocation22_spill] sm:$0xff] %v25234_v50  ;;  %v23269_v37 = vld [vmem:[%s27010_s5 + $0x98] sm:$0xff]   ;;  %v23276_v57 = vld [vmem:[%s27010_s5 + $0xb0] sm:$0xff]  }
 0xc43   :  { %v25236_v51 = vadd.f32 %v8363_v59, %v8339_v14  ;;  %v23310_v14 = vld [vmem:[%s27011_s21 + $0x10] sm:$0xff]   ;;  %v23279_v59 = vld [vmem:[%s27010_s5 + $0xc8] sm:$0xff]  }
 0xc44   :  { %v8357_v58 = vpop.permute.xlu1 %8356 }
 0xc45   :  { %27089 = vst [vmem:[#allocation23_spill] sm:$0xff] %v25236_v51  ;;  %v8365_v16 = vmul.f32 %v8357_v58, %v8345_v21  ;;  %v8370_v3 = vpack.c.bf16 %v25236_v51, %v25234_v50  ;;  %v23280_v21 = vld [vmem:[%s27010_s5 + $0xd0] sm:$0xff]   ;;  %v23282_v58 = vld [vmem:[%s27010_s5 + $0xe0] sm:$0xff]  }
 0xc47   :  { %v25244_v9 = vadd.f32 %v8365_v16, %v8341_v17  ;;  %8430 = vrot.lane.b32.xlu0 %v8370_v3, %s23545_s13  ;;  %v23283_v17 = vld [vmem:[%s27010_s5 + $0xe8] sm:$0xff]   ;;  %v23284_v16 = vld [vmem:[%s27010_s5 + $0xf0] sm:$0xff]   ;;  %v23285_v3 = vld [vmem:[%s27010_s5 + $0xf8] sm:$0xff]  }
 0xc49   :  { %27091 = vst [vmem:[#allocation25_spill] sm:$0xff] %v25244_v9  ;;  %v8371_v10 = vpack.c.bf16 %v25244_v9, %v25242_v55 }
 0xc4b   :  { %12971 = vrot.lane.b32.xlu0 %v25234_v50, %s23545_s13  ;;  %8432 = vrot.lane.b32.xlu1 %v8371_v10, %s23545_s13  ;;  %v23286_v10 = vld [vmem:[%s27010_s5 + $0x100] sm:$0xff]  }
 0xc4f   :  { %12975 = vrot.lane.b32.xlu0 %v25242_v55, %s23545_s13  ;;  %12973 = vrot.lane.b32.xlu1 %v25236_v51, %s23545_s13 }
 0xc53   :  { %12977 = vrot.lane.b32.xlu1 %v25244_v9, %s23545_s13 }
 0xcb9   :  { %v25262_v42 = vpop.permute.xlu0 %8430 }
 0xcba   :  { %21393 = vmatprep.subr.bf16.mxu1 %v25262_v42  ;;  %21413 = vmatprep.subr.bf16.mxu0 %v25262_v42 }
 0xcbb   :  { %21394 = vmatpush3.bf16.msra.mxu1 %v25262_v42  ;;  %21414 = vmatpush3.bf16.msra.mxu0 %v25262_v42 }
 0xcbd   :  { %v25268_v32 = vpop.permute.xlu1 %8432 }
 0xcbe   :  { %21395 = vmatprep.subr.bf16.mxu1 %v25268_v32  ;;  %21415 = vmatprep.subr.bf16.mxu0 %v25268_v32 }
 0xcbf   :  { %21396 = vmatpush3.bf16.msra.mxu1 %v25268_v32  ;;  %21416 = vmatpush3.bf16.msra.mxu0 %v25268_v32 }
 0xcc0   :  { %21473 = vmatprep.subr.bf16.mxu0 %v25262_v42  ;;  %21433 = vmatprep.subr.bf16.mxu1 %v23310_v14 }
 0xcc2   :  { %21418 = vmatmul.mubr.msk.bf16.vlgmr.msra.gmra.mrb[220].mxu0 %vm417_vm1, %v23255_v11  ;;  %21398 = vmatmul.mubr.msk.bf16.vlgmr.msra.gmra.mrb[144].mxu1 %vm417_vm1, %v23263_v12  ;;  %v23287_v11 = vld [vmem:[%s27010_s5 + $0x108] sm:$0xff]   ;;  %v23288_v12 = vld [vmem:[%s27010_s5 + $0x110] sm:$0xff]  }
 0xcc3   :  { %21474 = vmatpush3.bf16.msra.mxu0 %v25262_v42  ;;  %21421 = vmatprep.mubr.msk.bf16.mxu0 %vm417_vm1, %v23256_v13  ;;  %v23289_v13 = vld [vmem:[%s27010_s5 + $0x118] sm:$0xff]  }
 0xcc4   :  { %21475 = vmatprep.subr.bf16.mxu0 %v25268_v32  ;;  %21401 = vmatprep.mubr.msk.bf16.mxu1 %vm417_vm1, %v23266_v23  ;;  %v23290_v23 = vld [vmem:[%s27010_s5 + $0x120] sm:$0xff]  }
 0xcc5   :  { %21434 = vmatpush3.bf16.msra.mxu1 %v23310_v14  ;;  %v23311_v14 = vld [vmem:[%s27010_s5 + $0x1c0] sm:$0xff]  }
 0xcc6   :  { %21435 = vmatprep.subr.bf16.mxu1 %v23315_v56 }
 0xcc7   :  { %21476 = vmatpush3.bf16.msra.mxu0 %v25268_v32 }
 0xcc8   :  { %21513 = vmatprep.subr.bf16.mxu0 %v25262_v42 }
 0xcc9   :  { %21436 = vmatpush3.bf16.msra.mxu1 %v23315_v56  ;;  %v23316_v56 = vld [vmem:[%s27010_s5 + $0x1e0] sm:$0xff]  }
 0xcca   :  { %21422 = vmatmul.mubr.msk.bf16.gmra.mrb[224].mxu0 %vm417_vm1, %v23257_v24  ;;  %21402 = vmatmul.mubr.msk.bf16.gmra.mrb[148].mxu1 %vm417_vm1, %v23267_v46  ;;  %v23291_v24 = vld [vmem:[%s27010_s5 + $0x128] sm:$0xff]   ;;  %v23292_v46 = vld [vmem:[%s27010_s5 + $0x130] sm:$0xff]  }
 0xccb   :  { %21425 = vmatprep.mubr.msk.bf16.mxu0 %vm417_vm1, %v23258_v31  ;;  %21405 = vmatprep.mubr.msk.bf16.mxu1 %vm417_vm1, %v23270_v19  ;;  %v23293_v31 = vld [vmem:[%s27010_s5 + $0x138] sm:$0xff]   ;;  %v23294_v19 = vld [vmem:[%s27010_s5 + $0x140] sm:$0xff]  }
 0xccc   :  { %21453 = vmatprep.subr.bf16.mxu1 %v25420_v2 }
 0xcd2   :  { %21426 = vmatmul.mubr.msk.bf16.gmra.mrb[228].mxu0 %vm417_vm1, %v23259_v36  ;;  %21406 = vmatmul.mubr.msk.bf16.gmra.mrb[152].mxu1 %vm417_vm1, %v23271_v41  ;;  %v23295_v36 = vld [vmem:[%s27010_s5 + $0x148] sm:$0xff]   ;;  %v23296_v41 = vld [vmem:[%s27010_s5 + $0x150] sm:$0xff]  }
 0xcd3   :  { %21429 = vmatprep.mubr.msk.bf16.mxu0 %vm417_vm1, %v23260_v53  ;;  %21409 = vmatprep.mubr.msk.bf16.mxu1 %vm417_vm1, %v23274_v48  ;;  %v23297_v53 = vld [vmem:[%s27010_s5 + $0x158] sm:$0xff]   ;;  %v23298_v48 = vld [vmem:[%s27010_s5 + $0x160] sm:$0xff]  }
 0xcda   :  { %21430 = vmatmul.mubr.msk.bf16.gmra.mrb[232].mxu0 %vm417_vm1, %v23261_v40  ;;  %21410 = vmatmul.mubr.msk.bf16.gmra.mrb[156].mxu1 %vm417_vm1, %v23275_v54  ;;  %v23299_v40 = vld [vmem:[%s27010_s5 + $0x168] sm:$0xff]   ;;  %v23300_v54 = vld [vmem:[%s27010_s5 + $0x170] sm:$0xff]  }
 0xcdb   :  { %21477 = vmatprep.mubr.msk.bf16.mxu0 %vm417_vm1, %v23264_v28  ;;  %v23301_v28 = vld [vmem:[%s27010_s5 + $0x178] sm:$0xff]  }
 0xce2   :  { %21478 = vmatmul.mubr.msk.bf16.vlgmr.msra.gmra.mrb[236].mxu0 %vm417_vm1, %v23265_v43  ;;  %v23302_v43 = vld [vmem:[%s27010_s5 + $0x180] sm:$0xff]  }
 0xce3   :  { %21514 = vmatpush3.bf16.msra.mxu0 %v25262_v42  ;;  %21481 = vmatprep.mubr.msk.bf16.mxu0 %vm417_vm1, %v23268_v52  ;;  %v23303_v52 = vld [vmem:[%s27010_s5 + $0x188] sm:$0xff]  }
 0xce4   :  { %21515 = vmatprep.subr.bf16.mxu0 %v25268_v32 }
 0xce7   :  { %21516 = vmatpush3.bf16.msra.mxu0 %v25268_v32 }
 0xce8   :  { %21553 = vmatprep.subr.bf16.mxu0 %v25262_v42 }
 0xcea   :  { %21482 = vmatmul.mubr.msk.bf16.gmra.mrb[240].mxu0 %vm417_vm1, %v23269_v37  ;;  %v23304_v37 = vld [vmem:[%s27010_s5 + $0x190] sm:$0xff]  }
 0xceb   :  { %21485 = vmatprep.mubr.msk.bf16.mxu0 %vm417_vm1, %v23272_v49  ;;  %v23305_v49 = vld [vmem:[%s27010_s5 + $0x198] sm:$0xff]  }
 0xcf2   :  { %21486 = vmatmul.mubr.msk.bf16.gmra.mrb[244].mxu0 %vm417_vm1, %v23273_v39  ;;  %v23306_v39 = vld [vmem:[%s27010_s5 + $0x1a0] sm:$0xff]  }
 0xcf3   :  { %21489 = vmatprep.mubr.msk.bf16.mxu0 %vm417_vm1, %v23276_v57  ;;  %v23307_v57 = vld [vmem:[%s27010_s5 + $0x1a8] sm:$0xff]  }
 0xcfa   :  { %21490 = vmatmul.mubr.msk.bf16.gmra.mrb[248].mxu0 %vm417_vm1, %v23277_v60  ;;  %v23308_v60 = vld [vmem:[%s27010_s5 + $0x1b0] sm:$0xff]  }
 0xcfb   :  { %21517 = vmatprep.mubr.msk.bf16.mxu0 %vm417_vm1, %v23278_v6  ;;  %v23309_v6 = vld [vmem:[%s27010_s5 + $0x1b8] sm:$0xff]  }
 0xd02   :  { %21518 = vmatmul.mubr.msk.bf16.vlgmr.msra.gmra.mrb[252].mxu0 %vm417_vm1, %v23279_v59  ;;  %v23312_v59 = vld [vmem:[%s27010_s5 + $0x1c8] sm:$0xff]  }
 0xd03   :  { %21554 = vmatpush3.bf16.msra.mxu0 %v25262_v42  ;;  %21521 = vmatprep.mubr.msk.bf16.mxu0 %vm417_vm1, %v23280_v21  ;;  %v23313_v21 = vld [vmem:[%s27010_s5 + $0x1d0] sm:$0xff]  }
 0xd04   :  { %21555 = vmatprep.subr.bf16.mxu0 %v25268_v32 }
 0xd07   :  { %21556 = vmatpush3.bf16.msra.mxu0 %v25268_v32 }
 0xd08   :  { %21593 = vmatprep.subr.bf16.mxu0 %v25262_v42 }
 0xd0a   :  { %21522 = vmatmul.mubr.msk.bf16.gmra.mrb[0].mxu0 %vm417_vm1, %v23281_v47  ;;  %v23322_v47 = vld [vmem:[%s27012_s23] sm:$0xff]  }
 0xd0b   :  { %21525 = vmatprep.mubr.msk.bf16.mxu0 %vm417_vm1, %v23282_v58  ;;  %v23314_v58 = vld [vmem:[%s27010_s5 + $0x1d8] sm:$0xff]  }
 0xd12   :  { %21526 = vmatmul.mubr.msk.bf16.gmra.mrb[4].mxu0 %vm417_vm1, %v23283_v17  ;;  %v23317_v17 = vld [vmem:[%s27010_s5 + $0x1e8] sm:$0xff]  }
 0xd13   :  { %21529 = vmatprep.mubr.msk.bf16.mxu0 %vm417_vm1, %v23284_v16  ;;  %v23318_v16 = vld [vmem:[%s27010_s5 + $0x1f0] sm:$0xff]  }
 0xd1a   :  { %21530 = vmatmul.mubr.msk.bf16.gmra.mrb[8].mxu0 %vm417_vm1, %v23285_v3 }
 0xd1b   :  { %21557 = vmatprep.mubr.msk.bf16.mxu0 %vm417_vm1, %v23286_v10 }
 0xd22   :  { %21558 = vmatmul.mubr.msk.bf16.vlgmr.msra.gmra.mrb[12].mxu0 %vm417_vm1, %v23287_v11 }
 0xd23   :  { %21594 = vmatpush3.bf16.msra.mxu0 %v25262_v42  ;;  %21561 = vmatprep.mubr.msk.bf16.mxu0 %vm417_vm1, %v23288_v12  ;;  %v23319_v12 = vld [vmem:[%s27010_s5 + $0x1f8] sm:$0xff]  }
 0xd24   :  { %21595 = vmatprep.subr.bf16.mxu0 %v25268_v32 }
 0xd27   :  { %21596 = vmatpush3.bf16.msra.mxu0 %v25268_v32 }
 0xd28   :  { %21633 = vmatprep.subr.bf16.mxu0 %v25262_v42 }
 0xd2a   :  { %21562 = vmatmul.mubr.msk.bf16.gmra.mrb[16].mxu0 %vm417_vm1, %v23289_v13 }
 0xd2b   :  { %21565 = vmatprep.mubr.msk.bf16.mxu0 %vm417_vm1, %v23290_v23 }
 0xd32   :  { %21566 = vmatmul.mubr.msk.bf16.gmra.mrb[20].mxu0 %vm417_vm1, %v23291_v24  ;;  %v23321_v24 = vld [vmem:[%s27010_s5 + $0x200] sm:$0xff]  }
 0xd33   :  { %21569 = vmatprep.mubr.msk.bf16.mxu0 %vm417_vm1, %v23292_v46 }
 0xd3a   :  { %21570 = vmatmul.mubr.msk.bf16.gmra.mrb[24].mxu0 %vm417_vm1, %v23293_v31 }
 0xd3b   :  { %21597 = vmatprep.mubr.msk.bf16.mxu0 %vm417_vm1, %v23294_v19 }
 0xd42   :  { %21598 = vmatmul.mubr.msk.bf16.vlgmr.msra.gmra.mrb[28].mxu0 %vm417_vm1, %v23295_v36 }
 0xd43   :  { %21634 = vmatpush3.bf16.msra.mxu0 %v25262_v42  ;;  %21601 = vmatprep.mubr.msk.bf16.mxu0 %vm417_vm1, %v23296_v41 }
 0xd44   :  { %21635 = vmatprep.subr.bf16.mxu0 %v25268_v32 }
 0xd47   :  { %21636 = vmatpush3.bf16.msra.mxu0 %v25268_v32 }
 0xd48   :  { %21673 = vmatprep.subr.bf16.mxu0 %v25262_v42 }
 0xd4a   :  { %21602 = vmatmul.mubr.msk.bf16.gmra.mrb[32].mxu0 %vm417_vm1, %v23297_v53 }
 0xd4b   :  { %21605 = vmatprep.mubr.msk.bf16.mxu0 %vm417_vm1, %v23298_v48 }
 0xd52   :  { %21606 = vmatmul.mubr.msk.bf16.gmra.mrb[36].mxu0 %vm417_vm1, %v23299_v40  ;;  %v23324_v40 = vld [vmem:[%s27011_s21 + $0x8] sm:$0xff]  }
 0xd53   :  { %21609 = vmatprep.mubr.msk.bf16.mxu0 %vm417_vm1, %v23300_v54 }
 0xd5a   :  { %21610 = vmatmul.mubr.msk.bf16.gmra.mrb[40].mxu0 %vm417_vm1, %v23301_v28 }
 0xd5b   :  { %21637 = vmatprep.mubr.msk.bf16.mxu0 %vm417_vm1, %v23302_v43 }
 0xd62   :  { %21638 = vmatmul.mubr.msk.bf16.vlgmr.msra.gmra.mrb[44].mxu0 %vm417_vm1, %v23303_v52  ;;  %v23323_v52 = vld [vmem:[%s27010_s5 + $0x208] sm:$0xff]  }
 0xd63   :  { %21674 = vmatpush3.bf16.msra.mxu0 %v25262_v42  ;;  %21641 = vmatprep.mubr.msk.bf16.mxu0 %vm417_vm1, %v23304_v37 }
 0xd64   :  { %21675 = vmatprep.subr.bf16.mxu0 %v25268_v32 }
 0xd67   :  { %21676 = vmatpush3.bf16.msra.mxu0 %v25268_v32 }
 0xd68   :  { %21713 = vmatprep.subr.bf16.mxu0 %v25262_v42 }
 0xd6a   :  { %21642 = vmatmul.mubr.msk.bf16.gmra.mrb[48].mxu0 %vm417_vm1, %v23305_v49  ;;  %v25597_v49 = vld [vmem:[%s27011_s21 + $0x20] sm:$0xff]  }
 0xd6b   :  { %21645 = vmatprep.mubr.msk.bf16.mxu0 %vm417_vm1, %v23306_v39 }
 0xd72   :  { %21646 = vmatmul.mubr.msk.bf16.gmra.mrb[52].mxu0 %vm417_vm1, %v23307_v57 }
 0xd73   :  { %21649 = vmatprep.mubr.msk.bf16.mxu0 %vm417_vm1, %v23308_v60 }
 0xd7a   :  { %21650 = vmatmul.mubr.msk.bf16.gmra.mrb[56].mxu0 %vm417_vm1, %v23309_v6 }
 0xd7b   :  { %21677 = vmatprep.mubr.msk.bf16.mxu0 %vm417_vm1, %v23311_v14 }
 0xd82   :  { %21678 = vmatmul.mubr.msk.bf16.vlgmr.msra.gmra.mrb[60].mxu0 %vm417_vm1, %v23312_v59 }
 0xd83   :  { %21714 = vmatpush3.bf16.msra.mxu0 %v25262_v42  ;;  %21681 = vmatprep.mubr.msk.bf16.mxu0 %vm417_vm1, %v23313_v21 }
 0xd84   :  { %21715 = vmatprep.subr.bf16.mxu0 %v25268_v32 }
 0xd87   :  { %21716 = vmatpush3.bf16.msra.mxu0 %v25268_v32 }
 0xd88   :  { %21753 = vmatprep.subr.bf16.mxu0 %v23322_v47 }
 0xd8a   :  { %21682 = vmatmul.mubr.msk.bf16.gmra.mrb[64].mxu0 %vm417_vm1, %v23314_v58  ;;  %v23326_v58 = vld [vmem:[%s27010_s5 + $0x210] sm:$0xff]  }
 0xd8b   :  { %21685 = vmatprep.mubr.msk.bf16.mxu0 %vm417_vm1, %v23316_v56 }
 0xd92   :  { %21686 = vmatmul.mubr.msk.bf16.gmra.mrb[68].mxu0 %vm417_vm1, %v23317_v17 }
 0xd93   :  { %21689 = vmatprep.mubr.msk.bf16.mxu0 %vm417_vm1, %v23318_v16 }
 0xd95   :  { %v21419_v3 = vpop.f32.mrb[220].mxu0  ;;  %v25561_v10 = vpop.f32.mrb[144].mxu1 }
 0xd96   :  { %v8684_v11 = vpop.f32.mrb[221].mxu0  ;;  %v25566_v13 = vpop.f32.mrb[145].mxu1 }
 0xd97   :  { %v21420_v23 = vpop.f32.mrb[222].mxu0  ;;  %v25571_v46 = vpop.f32.mrb[146].mxu1 }
 0xd98   :  { %v8748_v31 = vpack.c.bf16 %v21420_v23, %v21419_v3  ;;  %v8687_v19 = vpop.f32.mrb[223].mxu0  ;;  %v8558_v36 = vpack.c.bf16 %v25571_v46, %v25561_v10  ;;  %v25575_v41 = vpop.f32.mrb[147].mxu1 }
 0xd99   :  { %v8747_v53 = vpack.c.bf16 %v8687_v19, %v8684_v11  ;;  %v8557_v48 = vpack.c.bf16 %v25575_v41, %v25566_v13  ;;  %v23327_v11 = vld [vmem:[%s27010_s5 + $0x218] sm:$0xff]  }
 0xd9a   :  { %21690 = vmatmul.mubr.msk.bf16.gmra.mrb[72].mxu0 %vm417_vm1, %v23319_v12 }
 0xd9b   :  { %21437 = vmatprep.mubr.msk.bf16.mxu1 %vm417_vm1, %v8747_v53  ;;  %21717 = vmatprep.mubr.msk.bf16.mxu0 %vm417_vm1, %v23321_v24 }
 0xd9c   :  { %21438 = vmatmul.mubr.msk.bf16.vlgmr.msra.gmra.mrb[160].mxu1 %vm417_vm1, %v8748_v31 }
 0xd9d   :  { %v21423_v54 = vpop.f32.mrb[224].mxu0  ;;  %21454 = vmatpush3.bf16.msra.mxu1 %v25420_v2  ;;  %v25587_v28 = vpop.f32.mrb[148].mxu1 }
 0xd9e   :  { %v8700_v43 = vpop.f32.mrb[225].mxu0  ;;  %21455 = vmatprep.subr.bf16.mxu1 %v23324_v40  ;;  %v25592_v37 = vpop.f32.mrb[149].mxu1 }
 0xd9f   :  { %v21424_v39 = vpop.f32.mrb[226].mxu0  ;;  %v25599_v57 = vpop.f32.mrb[150].mxu1 }
 0xda0   :  { %v8750_v60 = vpack.c.bf16 %v21424_v39, %v21423_v54  ;;  %v8703_v2 = vpop.f32.mrb[227].mxu0  ;;  %v8560_v6 = vpack.c.bf16 %v25599_v57, %v25587_v28  ;;  %v8513_v14 = vpop.f32.mrb[151].mxu1 }
 0xda1   :  { %v8749_v59 = vpack.c.bf16 %v8703_v2, %v8700_v43  ;;  %21456 = vmatpush3.bf16.msra.mxu1 %v23324_v40  ;;  %v8559_v21 = vpack.c.bf16 %v8513_v14, %v25592_v37 }
 0xda2   :  { %21718 = vmatmul.mubr.msk.bf16.vlgmr.msra.gmra.mrb[76].mxu0 %vm417_vm1, %v23323_v52  ;;  %21493 = vmatprep.subr.bf16.mxu1 %v25597_v49 }
 0xda3   :  { %21754 = vmatpush3.bf16.msra.mxu0 %v23322_v47  ;;  %21441 = vmatprep.mubr.msk.bf16.mxu1 %vm417_vm1, %v8749_v59  ;;  %v23329_v47 = vld [vmem:[%s27010_s5 + $0x220] sm:$0xff]   ;;  %v23331_v59 = vld [vmem:[%s27010_s5 + $0x230] sm:$0xff]  }
 0xda4   :  { %21771 = vmatprep.subr.bf16.mxu0 %v25262_v42  ;;  %21442 = vmatmul.mubr.msk.bf16.gmra.mrb[164].mxu1 %vm417_vm1, %v8750_v60  ;;  %v23330_v60 = vld [vmem:[%s27010_s5 + $0x228] sm:$0xff]  }
 0xda5   :  { %v21427_v56 = vpop.f32.mrb[228].mxu0  ;;  %v25612_v17 = vpop.f32.mrb[152].mxu1  ;;  %21721 = vmatprep.mubr.msk.bf16.mxu0 %vm417_vm1, %v23326_v58 }
 0xda6   :  { %v8716_v16 = vpop.f32.mrb[229].mxu0  ;;  %v8526_v3 = vpop.f32.mrb[153].mxu1 }
 0xda7   :  { %v21428_v12 = vpop.f32.mrb[230].mxu0  ;;  %v21408_v23 = vpop.f32.mrb[154].mxu1 }
 0xda8   :  { %v8752_v24 = vpack.c.bf16 %v21428_v12, %v21427_v56  ;;  %v8719_v31 = vpop.f32.mrb[231].mxu0  ;;  %v8562_v19 = vpack.c.bf16 %v21408_v23, %v25612_v17  ;;  %v8529_v53 = vpop.f32.mrb[155].mxu1 }
 0xda9   :  { %v8751_v40 = vpack.c.bf16 %v8719_v31, %v8716_v16  ;;  %v8561_v54 = vpack.c.bf16 %v8529_v53, %v8526_v3 }
 0xdaa   :  { %21722 = vmatmul.mubr.msk.bf16.gmra.mrb[80].mxu0 %vm417_vm1, %v23327_v11 }
 0xdab   :  { %21445 = vmatprep.mubr.msk.bf16.mxu1 %vm417_vm1, %v8751_v40  ;;  %21725 = vmatprep.mubr.msk.bf16.mxu0 %vm417_vm1, %v23329_v47  ;;  %v23332_v47 = vld [vmem:[%s27010_s5 + $0x238] sm:$0xff]  }
 0xdac   :  { %21446 = vmatmul.mubr.msk.bf16.gmra.mrb[168].mxu1 %vm417_vm1, %v8752_v24 }
 0xdad   :  { %v21431_v43 = vpop.f32.mrb[232].mxu0  ;;  %v21411_v52 = vpop.f32.mrb[156].mxu1 }
 0xdae   :  { %v8732_v37 = vpop.f32.mrb[233].mxu0  ;;  %v8542_v39 = vpop.f32.mrb[157].mxu1 }
 0xdaf   :  { %v21432_v2 = vpop.f32.mrb[234].mxu0  ;;  %v21412_v14 = vpop.f32.mrb[158].mxu1 }
 0xdb0   :  { %v8754_v58 = vpack.c.bf16 %v21432_v2, %v21431_v43  ;;  %v8735_v56 = vpop.f32.mrb[235].mxu0  ;;  %v8564_v17 = vpack.c.bf16 %v21412_v14, %v21411_v52  ;;  %v8545_v16 = vpop.f32.mrb[159].mxu1  ;;  %v23328_v43 = vld [vmem:[%s27011_s21 + $0x28] sm:$0xff]  }
 0xdb1   :  { %v8753_v3 = vpack.c.bf16 %v8735_v56, %v8732_v37  ;;  %v8563_v11 = vpack.c.bf16 %v8545_v16, %v8542_v39 }
 0xdb2   :  { %21726 = vmatmul.mubr.msk.bf16.gmra.mrb[84].mxu0 %vm417_vm1, %v23330_v60 }
 0xdb3   :  { %21449 = vmatprep.mubr.msk.bf16.mxu1 %vm417_vm1, %v8753_v3  ;;  %21729 = vmatprep.mubr.msk.bf16.mxu0 %vm417_vm1, %v23331_v59 }
 0xdb4   :  { %21450 = vmatmul.mubr.msk.bf16.gmra.mrb[172].mxu1 %vm417_vm1, %v8754_v58 }
 0xdb5   :  { %21457 = vmatprep.mubr.msk.bf16.mxu1 %vm417_vm1, %v8557_v48  ;;  %v21479_v12 = vpop.f32.mrb[236].mxu0  ;;  %v23333_v48 = vld [vmem:[%s27011_s21 + $0x30] sm:$0xff]  }
 0xdb6   :  { %v9141_v23 = vpop.f32.mrb[237].mxu0 }
 0xdb7   :  { %v21480_v24 = vpop.f32.mrb[238].mxu0 }
 0xdb8   :  { %v9205_v31 = vpack.c.bf16 %v21480_v24, %v21479_v12  ;;  %v9144_v53 = vpop.f32.mrb[239].mxu0 }
 0xdb9   :  { %v9204_v40 = vpack.c.bf16 %v9144_v53, %v9141_v23 }
 0xdba   :  { %21730 = vmatmul.mubr.msk.bf16.gmra.mrb[88].mxu0 %vm417_vm1, %v23332_v47  ;;  %v23335_v47 = vld [vmem:[%s27011_s21 + $0x40] sm:$0xff]  }
 0xdbc   :  { %21458 = vmatmul.mubr.msk.bf16.vlgmr.msra.gmra.mrb[160].mxu1 %vm417_vm1, %v8558_v36 }
 0xdbd   :  { %21494 = vmatpush3.bf16.msra.mxu1 %v25597_v49  ;;  %21461 = vmatprep.mubr.msk.bf16.mxu1 %vm417_vm1, %v8559_v21  ;;  %v21483_v13 = vpop.f32.mrb[240].mxu0 }
 0xdbe   :  { %21495 = vmatprep.subr.bf16.mxu1 %v23328_v43  ;;  %v9157_v41 = vpop.f32.mrb[241].mxu0 }
 0xdbf   :  { %v21484_v52 = vpop.f32.mrb[242].mxu0 }
 0xdc0   :  { %v9207_v37 = vpack.c.bf16 %v21484_v52, %v21483_v13  ;;  %v9160_v39 = vpop.f32.mrb[243].mxu0 }
 0xdc1   :  { %21496 = vmatpush3.bf16.msra.mxu1 %v23328_v43  ;;  %v9206_v60 = vpack.c.bf16 %v9160_v39, %v9157_v41 }
 0xdc2   :  { %21533 = vmatprep.subr.bf16.mxu1 %v23333_v48 }
 0xdc4   :  { %21462 = vmatmul.mubr.msk.bf16.gmra.mrb[164].mxu1 %vm417_vm1, %v8560_v6 }
 0xdc5   :  { %21465 = vmatprep.mubr.msk.bf16.mxu1 %vm417_vm1, %v8561_v54  ;;  %v21487_v10 = vpop.f32.mrb[244].mxu0 }
 0xdc6   :  { %v9173_v46 = vpop.f32.mrb[245].mxu0 }
 0xdc7   :  { %v21488_v36 = vpop.f32.mrb[246].mxu0 }
 0xdc8   :  { %v9209_v49 = vpack.c.bf16 %v21488_v36, %v21487_v10  ;;  %v9176_v21 = vpop.f32.mrb[247].mxu0 }
 0xdc9   :  { %v9208_v2 = vpack.c.bf16 %v9176_v21, %v9173_v46 }
 0xdcc   :  { %21466 = vmatmul.mubr.msk.bf16.gmra.mrb[168].mxu1 %vm417_vm1, %v8562_v19  ;;  %v23334_v19 = vld [vmem:[%s27011_s21 + $0x38] sm:$0xff]  }
 0xdcd   :  { %21469 = vmatprep.mubr.msk.bf16.mxu1 %vm417_vm1, %v8563_v11  ;;  %v21491_v14 = vpop.f32.mrb[248].mxu0 }
 0xdce   :  { %v9189_v59 = vpop.f32.mrb[249].mxu0 }
 0xdcf   :  { %v21492_v58 = vpop.f32.mrb[250].mxu0 }
 0xdd0   :  { %v9211_v56 = vpack.c.bf16 %v21492_v58, %v21491_v14  ;;  %v9192_v16 = vpop.f32.mrb[251].mxu0 }
 0xdd1   :  { %v9210_v28 = vpack.c.bf16 %v9192_v16, %v9189_v59 }
 0xdd4   :  { %21470 = vmatmul.mubr.msk.bf16.gmra.mrb[172].mxu1 %vm417_vm1, %v8564_v17 }
 0xdd5   :  { %21497 = vmatprep.mubr.msk.bf16.mxu1 %vm417_vm1, %v9204_v40  ;;  %v21519_v57 = vpop.f32.mrb[252].mxu0 }
 0xdd6   :  { %v9481_v6 = vpop.f32.mrb[253].mxu0 }
 0xdd7   :  { %v21520_v54 = vpop.f32.mrb[254].mxu0 }
 0xdd8   :  { %v9545_v3 = vpack.c.bf16 %v21520_v54, %v21519_v57  ;;  %v9484_v12 = vpop.f32.mrb[255].mxu0 }
 0xdd9   :  { %v9544_v23 = vpack.c.bf16 %v9484_v12, %v9481_v6  ;;  %v23337_v6 = vld [vmem:[%s27011_s21 + $0x50] sm:$0xff]  }
 0xddc   :  { %21498 = vmatmul.mubr.msk.bf16.vlgmr.msra.gmra.mrb[160].mxu1 %vm417_vm1, %v9205_v31 }
 0xddd   :  { %21534 = vmatpush3.bf16.msra.mxu1 %v23333_v48  ;;  %21501 = vmatprep.mubr.msk.bf16.mxu1 %vm417_vm1, %v9206_v60  ;;  %v21523_v11 = vpop.f32.mrb[0].mxu0 }
 0xdde   :  { %21535 = vmatprep.subr.bf16.mxu1 %v23334_v19  ;;  %v9497_v17 = vpop.f32.mrb[1].mxu0 }
 0xddf   :  { %v21524_v24 = vpop.f32.mrb[2].mxu0 }
 0xde0   :  { %v9547_v53 = vpack.c.bf16 %v21524_v24, %v21523_v11  ;;  %v9500_v40 = vpop.f32.mrb[3].mxu0 }
 0xde1   :  { %21536 = vmatpush3.bf16.msra.mxu1 %v23334_v19  ;;  %v9546_v43 = vpack.c.bf16 %v9500_v40, %v9497_v17 }
 0xde2   :  { %21573 = vmatprep.subr.bf16.mxu1 %v23335_v47 }
 0xde4   :  { %21502 = vmatmul.mubr.msk.bf16.gmra.mrb[164].mxu1 %vm417_vm1, %v9207_v37 }
 0xde5   :  { %21505 = vmatprep.mubr.msk.bf16.mxu1 %vm417_vm1, %v9208_v2  ;;  %v21527_v31 = vpop.f32.mrb[4].mxu0 }
 0xde6   :  { %v9513_v13 = vpop.f32.mrb[5].mxu0 }
 0xde7   :  { %v21528_v41 = vpop.f32.mrb[6].mxu0 }
 0xde8   :  { %v9549_v48 = vpack.c.bf16 %v21528_v41, %v21527_v31  ;;  %v9516_v52 = vpop.f32.mrb[7].mxu0 }
 0xde9   :  { %v9548_v39 = vpack.c.bf16 %v9516_v52, %v9513_v13 }
 0xdec   :  { %21506 = vmatmul.mubr.msk.bf16.gmra.mrb[168].mxu1 %vm417_vm1, %v9209_v49  ;;  %v23336_v49 = vld [vmem:[%s27011_s21 + $0x48] sm:$0xff]  }
 0xded   :  { %21509 = vmatprep.mubr.msk.bf16.mxu1 %vm417_vm1, %v9210_v28  ;;  %v21531_v60 = vpop.f32.mrb[8].mxu0 }
 0xdee   :  { %v9529_v10 = vpop.f32.mrb[9].mxu0 }
 0xdef   :  { %v21532_v46 = vpop.f32.mrb[10].mxu0 }
 0xdf0   :  { %v9551_v36 = vpack.c.bf16 %v21532_v46, %v21531_v60  ;;  %v9532_v21 = vpop.f32.mrb[11].mxu0 }
 0xdf1   :  { %v9550_v14 = vpack.c.bf16 %v9532_v21, %v9529_v10 }
 0xdf4   :  { %21510 = vmatmul.mubr.msk.bf16.gmra.mrb[172].mxu1 %vm417_vm1, %v9211_v56 }
 0xdf5   :  { %21537 = vmatprep.mubr.msk.bf16.mxu1 %vm417_vm1, %v9544_v23  ;;  %v21559_v37 = vpop.f32.mrb[12].mxu0 }
 0xdf6   :  { %v9821_v2 = vpop.f32.mrb[13].mxu0 }
 0xdf7   :  { %v21560_v59 = vpop.f32.mrb[14].mxu0 }
 0xdf8   :  { %v9885_v58 = vpack.c.bf16 %v21560_v59, %v21559_v37  ;;  %v9824_v16 = vpop.f32.mrb[15].mxu0 }
 0xdf9   :  { %v9884_v57 = vpack.c.bf16 %v9824_v16, %v9821_v2  ;;  %v23339_v2 = vld [vmem:[%s27011_s21 + $0x60] sm:$0xff]  }
 0xdfc   :  { %21538 = vmatmul.mubr.msk.bf16.vlgmr.msra.gmra.mrb[160].mxu1 %vm417_vm1, %v9545_v3 }
 0xdfd   :  { %21574 = vmatpush3.bf16.msra.mxu1 %v23335_v47  ;;  %21541 = vmatprep.mubr.msk.bf16.mxu1 %vm417_vm1, %v9546_v43  ;;  %v21563_v28 = vpop.f32.mrb[16].mxu0 }
 0xdfe   :  { %21575 = vmatprep.subr.bf16.mxu1 %v23336_v49  ;;  %v9837_v56 = vpop.f32.mrb[17].mxu0 }
 0xdff   :  { %v21564_v54 = vpop.f32.mrb[18].mxu0 }
 0xe00   :  { %v9887_v12 = vpack.c.bf16 %v21564_v54, %v21563_v28  ;;  %v9840_v23 = vpop.f32.mrb[19].mxu0 }
 0xe01   :  { %21576 = vmatpush3.bf16.msra.mxu1 %v23336_v49  ;;  %v9886_v19 = vpack.c.bf16 %v9840_v23, %v9837_v56 }
 0xe02   :  { %21613 = vmatprep.subr.bf16.mxu1 %v23337_v6 }
 0xe04   :  { %21542 = vmatmul.mubr.msk.bf16.gmra.mrb[164].mxu1 %vm417_vm1, %v9547_v53 }
 0xe05   :  { %21545 = vmatprep.mubr.msk.bf16.mxu1 %vm417_vm1, %v9548_v39  ;;  %v21567_v3 = vpop.f32.mrb[20].mxu0 }
 0xe06   :  { %v9853_v11 = vpop.f32.mrb[21].mxu0 }
 0xe07   :  { %v21568_v17 = vpop.f32.mrb[22].mxu0 }
 0xe08   :  { %v9889_v47 = vpack.c.bf16 %v21568_v17, %v21567_v3  ;;  %v9856_v24 = vpop.f32.mrb[23].mxu0 }
 0xe09   :  { %v9888_v40 = vpack.c.bf16 %v9856_v24, %v9853_v11 }
 0xe0c   :  { %21546 = vmatmul.mubr.msk.bf16.gmra.mrb[168].mxu1 %vm417_vm1, %v9549_v48  ;;  %v23338_v48 = vld [vmem:[%s27011_s21 + $0x58] sm:$0xff]  }
 0xe0d   :  { %21549 = vmatprep.mubr.msk.bf16.mxu1 %vm417_vm1, %v9550_v14  ;;  %v21571_v43 = vpop.f32.mrb[24].mxu0 }
 0xe0e   :  { %v9869_v31 = vpop.f32.mrb[25].mxu0 }
 0xe0f   :  { %v21572_v13 = vpop.f32.mrb[26].mxu0 }
 0xe10   :  { %v9891_v41 = vpack.c.bf16 %v21572_v13, %v21571_v43  ;;  %v9872_v52 = vpop.f32.mrb[27].mxu0 }
 0xe11   :  { %v9890_v60 = vpack.c.bf16 %v9872_v52, %v9869_v31 }
 0xe14   :  { %21550 = vmatmul.mubr.msk.bf16.gmra.mrb[172].mxu1 %vm417_vm1, %v9551_v36 }
 0xe15   :  { %21577 = vmatprep.mubr.msk.bf16.mxu1 %vm417_vm1, %v9884_v57  ;;  %v21599_v53 = vpop.f32.mrb[28].mxu0 }
 0xe16   :  { %v10161_v39 = vpop.f32.mrb[29].mxu0 }
 0xe17   :  { %v21600_v10 = vpop.f32.mrb[30].mxu0 }
 0xe18   :  { %v10225_v46 = vpack.c.bf16 %v21600_v10, %v21599_v53  ;;  %v10164_v21 = vpop.f32.mrb[31].mxu0 }
 0xe19   :  { %v10224_v37 = vpack.c.bf16 %v10164_v21, %v10161_v39  ;;  %v23341_v39 = vld [vmem:[%s27011_s21 + $0x70] sm:$0xff]  }
 0xe1c   :  { %21578 = vmatmul.mubr.msk.bf16.vlgmr.msra.gmra.mrb[160].mxu1 %vm417_vm1, %v9885_v58 }
 0xe1d   :  { %21614 = vmatpush3.bf16.msra.mxu1 %v23337_v6  ;;  %21581 = vmatprep.mubr.msk.bf16.mxu1 %vm417_vm1, %v9886_v19  ;;  %v21603_v14 = vpop.f32.mrb[32].mxu0 }
 0xe1e   :  { %21615 = vmatprep.subr.bf16.mxu1 %v23338_v48  ;;  %v10177_v36 = vpop.f32.mrb[33].mxu0 }
 0xe1f   :  { %v21604_v59 = vpop.f32.mrb[34].mxu0 }
 0xe20   :  { %v10227_v16 = vpack.c.bf16 %v21604_v59, %v21603_v14  ;;  %v10180_v57 = vpop.f32.mrb[35].mxu0 }
 0xe21   :  { %21616 = vmatpush3.bf16.msra.mxu1 %v23338_v48  ;;  %v10226_v49 = vpack.c.bf16 %v10180_v57, %v10177_v36 }
 0xe22   :  { %21653 = vmatprep.subr.bf16.mxu1 %v23339_v2 }
 0xe24   :  { %21582 = vmatmul.mubr.msk.bf16.gmra.mrb[164].mxu1 %vm417_vm1, %v9887_v12 }
 0xe25   :  { %21585 = vmatprep.mubr.msk.bf16.mxu1 %vm417_vm1, %v9888_v40  ;;  %v21607_v58 = vpop.f32.mrb[36].mxu0 }
 0xe26   :  { %v10193_v28 = vpop.f32.mrb[37].mxu0 }
 0xe27   :  { %v21608_v56 = vpop.f32.mrb[38].mxu0 }
 0xe28   :  { %v10229_v6 = vpack.c.bf16 %v21608_v56, %v21607_v58  ;;  %v10196_v54 = vpop.f32.mrb[39].mxu0 }
 0xe29   :  { %v10228_v23 = vpack.c.bf16 %v10196_v54, %v10193_v28 }
 0xe2c   :  { %21586 = vmatmul.mubr.msk.bf16.gmra.mrb[168].mxu1 %vm417_vm1, %v9889_v47  ;;  %v23340_v47 = vld [vmem:[%s27011_s21 + $0x68] sm:$0xff]  }
 0xe2d   :  { %21589 = vmatprep.mubr.msk.bf16.mxu1 %vm417_vm1, %v9890_v60  ;;  %v21611_v19 = vpop.f32.mrb[40].mxu0 }
 0xe2e   :  { %v10209_v3 = vpop.f32.mrb[41].mxu0 }
 0xe2f   :  { %v21612_v11 = vpop.f32.mrb[42].mxu0 }
 0xe30   :  { %v10231_v17 = vpack.c.bf16 %v21612_v11, %v21611_v19  ;;  %v10212_v24 = vpop.f32.mrb[43].mxu0 }
 0xe31   :  { %v10230_v43 = vpack.c.bf16 %v10212_v24, %v10209_v3 }
 0xe34   :  { %21590 = vmatmul.mubr.msk.bf16.gmra.mrb[172].mxu1 %vm417_vm1, %v9891_v41 }
 0xe35   :  { %21617 = vmatprep.mubr.msk.bf16.mxu1 %vm417_vm1, %v10224_v37  ;;  %v21639_v12 = vpop.f32.mrb[44].mxu0 }
 0xe36   :  { %v10501_v40 = vpop.f32.mrb[45].mxu0 }
 0xe37   :  { %v21640_v31 = vpop.f32.mrb[46].mxu0 }
 0xe38   :  { %v10565_v13 = vpack.c.bf16 %v21640_v31, %v21639_v12  ;;  %v10504_v52 = vpop.f32.mrb[47].mxu0 }
 0xe39   :  { %v10564_v53 = vpack.c.bf16 %v10504_v52, %v10501_v40  ;;  %v23343_v40 = vld [vmem:[%s27011_s21 + $0x80] sm:$0xff]  }
 0xe3c   :  { %21618 = vmatmul.mubr.msk.bf16.vlgmr.msra.gmra.mrb[160].mxu1 %vm417_vm1, %v10225_v46 }
 0xe3d   :  { %21654 = vmatpush3.bf16.msra.mxu1 %v23339_v2  ;;  %21621 = vmatprep.mubr.msk.bf16.mxu1 %vm417_vm1, %v10226_v49  ;;  %v21643_v60 = vpop.f32.mrb[48].mxu0 }
 0xe3e   :  { %21655 = vmatprep.subr.bf16.mxu1 %v23340_v47  ;;  %v10517_v41 = vpop.f32.mrb[49].mxu0 }
 0xe3f   :  { %v21644_v10 = vpop.f32.mrb[50].mxu0 }
 0xe40   :  { %v10567_v21 = vpack.c.bf16 %v21644_v10, %v21643_v60  ;;  %v10520_v37 = vpop.f32.mrb[51].mxu0 }
 0xe41   :  { %21656 = vmatpush3.bf16.msra.mxu1 %v23340_v47  ;;  %v10566_v48 = vpack.c.bf16 %v10520_v37, %v10517_v41 }
 0xe42   :  { %21693 = vmatprep.subr.bf16.mxu1 %v23341_v39 }
 0xe44   :  { %21622 = vmatmul.mubr.msk.bf16.gmra.mrb[164].mxu1 %vm417_vm1, %v10227_v16 }
 0xe45   :  { %21625 = vmatprep.mubr.msk.bf16.mxu1 %vm417_vm1, %v10228_v23  ;;  %v21647_v46 = vpop.f32.mrb[52].mxu0 }
 0xe46   :  { %v10533_v14 = vpop.f32.mrb[53].mxu0 }
 0xe47   :  { %v21648_v36 = vpop.f32.mrb[54].mxu0 }
 0xe48   :  { %v10569_v2 = vpack.c.bf16 %v21648_v36, %v21647_v46  ;;  %v10536_v59 = vpop.f32.mrb[55].mxu0 }
 0xe49   :  { %v10568_v57 = vpack.c.bf16 %v10536_v59, %v10533_v14 }
 0xe4c   :  { %21626 = vmatmul.mubr.msk.bf16.gmra.mrb[168].mxu1 %vm417_vm1, %v10229_v6  ;;  %v23342_v6 = vld [vmem:[%s27011_s21 + $0x78] sm:$0xff]  }
 0xe4d   :  { %21629 = vmatprep.mubr.msk.bf16.mxu1 %vm417_vm1, %v10230_v43  ;;  %v21651_v49 = vpop.f32.mrb[56].mxu0 }
 0xe4e   :  { %v10549_v58 = vpop.f32.mrb[57].mxu0 }
 0xe4f   :  { %v21652_v28 = vpop.f32.mrb[58].mxu0 }
 0xe50   :  { %v10571_v56 = vpack.c.bf16 %v21652_v28, %v21651_v49  ;;  %v10552_v54 = vpop.f32.mrb[59].mxu0 }
 0xe51   :  { %v10570_v19 = vpack.c.bf16 %v10552_v54, %v10549_v58 }
 0xe54   :  { %21630 = vmatmul.mubr.msk.bf16.gmra.mrb[172].mxu1 %vm417_vm1, %v10231_v17 }
 0xe55   :  { %21657 = vmatprep.mubr.msk.bf16.mxu1 %vm417_vm1, %v10564_v53  ;;  %v21679_v16 = vpop.f32.mrb[60].mxu0 }
 0xe56   :  { %v10841_v23 = vpop.f32.mrb[61].mxu0 }
 0xe57   :  { %v21680_v3 = vpop.f32.mrb[62].mxu0 }
 0xe58   :  { %v10905_v11 = vpack.c.bf16 %v21680_v3, %v21679_v16  ;;  %v10844_v24 = vpop.f32.mrb[63].mxu0 }
 0xe59   :  { %v10904_v12 = vpack.c.bf16 %v10844_v24, %v10841_v23 }
 0xe5c   :  { %21658 = vmatmul.mubr.msk.bf16.vlgmr.msra.gmra.mrb[160].mxu1 %vm417_vm1, %v10565_v13 }
 0xe5d   :  { %21694 = vmatpush3.bf16.msra.mxu1 %v23341_v39  ;;  %21661 = vmatprep.mubr.msk.bf16.mxu1 %vm417_vm1, %v10566_v48  ;;  %v21683_v43 = vpop.f32.mrb[64].mxu0 }
 0xe5e   :  { %21695 = vmatprep.subr.bf16.mxu1 %v23342_v6  ;;  %v10857_v17 = vpop.f32.mrb[65].mxu0 }
 0xe5f   :  { %v21684_v31 = vpop.f32.mrb[66].mxu0 }
 0xe60   :  { %v10907_v52 = vpack.c.bf16 %v21684_v31, %v21683_v43  ;;  %v10860_v53 = vpop.f32.mrb[67].mxu0 }
 0xe61   :  { %21696 = vmatpush3.bf16.msra.mxu1 %v23342_v6  ;;  %v10906_v47 = vpack.c.bf16 %v10860_v53, %v10857_v17 }
 0xe62   :  { %21733 = vmatprep.subr.bf16.mxu1 %v23343_v40 }
 0xe64   :  { %21662 = vmatmul.mubr.msk.bf16.gmra.mrb[164].mxu1 %vm417_vm1, %v10567_v21 }
 0xe65   :  { %21665 = vmatprep.mubr.msk.bf16.mxu1 %vm417_vm1, %v10568_v57  ;;  %v21687_v13 = vpop.f32.mrb[68].mxu0 }
 0xe66   :  { %v10873_v60 = vpop.f32.mrb[69].mxu0 }
 0xe67   :  { %v21688_v41 = vpop.f32.mrb[70].mxu0 }
 0xe68   :  { %v10909_v39 = vpack.c.bf16 %v21688_v41, %v21687_v13  ;;  %v10876_v10 = vpop.f32.mrb[71].mxu0 }
 0xe69   :  { %v10908_v37 = vpack.c.bf16 %v10876_v10, %v10873_v60 }
 0xe6c   :  { %21666 = vmatmul.mubr.msk.bf16.gmra.mrb[168].mxu1 %vm417_vm1, %v10569_v2  ;;  %v23344_v2 = vld [vmem:[%s27011_s21 + $0x88] sm:$0xff]  }
 0xe6d   :  { %21669 = vmatprep.mubr.msk.bf16.mxu1 %vm417_vm1, %v10570_v19  ;;  %v21691_v48 = vpop.f32.mrb[72].mxu0 }
 0xe6e   :  { %v10889_v46 = vpop.f32.mrb[73].mxu0 }
 0xe6f   :  { %v21692_v14 = vpop.f32.mrb[74].mxu0 }
 0xe70   :  { %v10911_v36 = vpack.c.bf16 %v21692_v14, %v21691_v48  ;;  %v10892_v59 = vpop.f32.mrb[75].mxu0  ;;  %v25784_v48 = vld [vmem:[%s27067_s1 + $0x38] sm:$0xff]   ;;  %v25802_v14 = vld [vmem:[%s27067_s1 + $0x48] sm:$0xff]  }
 0xe71   :  { %v10910_v49 = vpack.c.bf16 %v10892_v59, %v10889_v46  ;;  %v25790_v46 = vld [vmem:[%s27067_s1 + $0x40] sm:$0xff]   ;;  %v25820_v59 = vld [vmem:[%s27067_s1 + $0x58] sm:$0xff]  }
 0xe74   :  { %21670 = vmatmul.mubr.msk.bf16.gmra.mrb[172].mxu1 %vm417_vm1, %v10571_v56 }
 0xe75   :  { %21697 = vmatprep.mubr.msk.bf16.mxu1 %vm417_vm1, %v10904_v12  ;;  %v21719_v21 = vpop.f32.mrb[76].mxu0 }
 0xe76   :  { %v11181_v57 = vpop.f32.mrb[77].mxu0 }
 0xe77   :  { %v21720_v58 = vpop.f32.mrb[78].mxu0 }
 0xe78   :  { %v11245_v28 = vpack.c.bf16 %v21720_v58, %v21719_v21  ;;  %v11184_v54 = vpop.f32.mrb[79].mxu0  ;;  %v25838_v21 = vld [vmem:[%s27067_s1 + $0x68] sm:$0xff]   ;;  %v25856_v58 = vld [vmem:[%s27067_s1 + $0x78] sm:$0xff]  }
 0xe79   :  { %v11244_v16 = vpack.c.bf16 %v11184_v54, %v11181_v57  ;;  %v25844_v57 = vld [vmem:[%s27067_s1 + $0x70] sm:$0xff]   ;;  %v25873_v54 = vld [vmem:[%s27067_s1 + $0x88] sm:$0xff]  }
 0xe7c   :  { %21698 = vmatmul.mubr.msk.bf16.vlgmr.msra.gmra.mrb[160].mxu1 %vm417_vm1, %v10905_v11 }
 0xe7d   :  { %21734 = vmatpush3.bf16.msra.mxu1 %v23343_v40  ;;  %21701 = vmatprep.mubr.msk.bf16.mxu1 %vm417_vm1, %v10906_v47  ;;  %v21723_v19 = vpop.f32.mrb[80].mxu0 }
 0xe7e   :  { %21735 = vmatprep.subr.bf16.mxu1 %v23344_v2  ;;  %v11197_v56 = vpop.f32.mrb[81].mxu0 }
 0xe7f   :  { %v21724_v23 = vpop.f32.mrb[82].mxu0 }
 0xe80   :  { %v11247_v3 = vpack.c.bf16 %v21724_v23, %v21723_v19  ;;  %v11200_v24 = vpop.f32.mrb[83].mxu0  ;;  %v25889_v19 = vld [vmem:[%s27013_s22] ss:$0 sm:$0xff] }
 0xe81   :  { %21736 = vmatpush3.bf16.msra.mxu1 %v23344_v2  ;;  %v11246_v12 = vpack.c.bf16 %v11200_v24, %v11197_v56 }
 0xe82   :  { %21803 = vmatprep.subr.bf16.mxu1 %v25262_v42 }
 0xe84   :  { %21702 = vmatmul.mubr.msk.bf16.gmra.mrb[164].mxu1 %vm417_vm1, %v10907_v52  ;;  %v25760_v52 = vld [vmem:[%s27067_s1 + $0x20] sm:$0xff]  }
 0xe85   :  { %21705 = vmatprep.mubr.msk.bf16.mxu1 %vm417_vm1, %v10908_v37  ;;  %v21727_v6 = vpop.f32.mrb[84].mxu0  ;;  %v25773_v37 = vld [vmem:[%s27067_s1 + $0x30] sm:$0xff]  }
 0xe86   :  { %v11213_v43 = vpop.f32.mrb[85].mxu0 }
 0xe87   :  { %v21728_v11 = vpop.f32.mrb[86].mxu0 }
 0xe88   :  { %v11249_v17 = vpack.c.bf16 %v21728_v11, %v21727_v6  ;;  %v11216_v40 = vpop.f32.mrb[87].mxu0 }
 0xe89   :  { %v11248_v31 = vpack.c.bf16 %v11216_v40, %v11213_v43 }
 0xe8c   :  { %21706 = vmatmul.mubr.msk.bf16.gmra.mrb[168].mxu1 %vm417_vm1, %v10909_v39  ;;  %v25768_v39 = vld [vmem:[%s27067_s1 + $0x28] sm:$0xff]  }
 0xe8d   :  { %21709 = vmatprep.mubr.msk.bf16.mxu1 %vm417_vm1, %v10910_v49  ;;  %v21731_v53 = vpop.f32.mrb[88].mxu0  ;;  %v25826_v49 = vld [vmem:[%s27067_s1 + $0x60] sm:$0xff]  }
 0xe8e   :  { %v11229_v47 = vpop.f32.mrb[89].mxu0 }
 0xe8f   :  { %v21732_v13 = vpop.f32.mrb[90].mxu0 }
 0xe90   :  { %v11251_v60 = vpack.c.bf16 %v21732_v13, %v21731_v53  ;;  %v11232_v41 = vpop.f32.mrb[91].mxu0 }
 0xe91   :  { %v11250_v10 = vpack.c.bf16 %v11232_v41, %v11229_v47 }
 0xe94   :  { %21710 = vmatmul.mubr.msk.bf16.gmra.mrb[172].mxu1 %vm417_vm1, %v10911_v36  ;;  %v25808_v36 = vld [vmem:[%s27067_s1 + $0x50] sm:$0xff]  }
 0xe95   :  { %21737 = vmatprep.mubr.msk.bf16.mxu1 %vm417_vm1, %v11244_v16  ;;  %v25878_v16 = vld [vmem:[%s27067_s1] sm:$0xff]  }
 0xe9c   :  { %21738 = vmatmul.mubr.msk.bf16.vlgmr.msra.gmra.mrb[160].mxu1 %vm417_vm1, %v11245_v28  ;;  %v25868_v28 = vld [vmem:[%s27067_s1 + $0x80] sm:$0xff]  }
 0xe9d   :  { %21804 = vmatpush3.bf16.msra.mxu1 %v25262_v42  ;;  %21741 = vmatprep.mubr.msk.bf16.mxu1 %vm417_vm1, %v11246_v12 }
 0xe9e   :  { %21805 = vmatprep.subr.bf16.mxu1 %v25268_v32 }
 0xea1   :  { %21806 = vmatpush3.bf16.msra.mxu1 %v25268_v32 }
 0xea2   :  { %21819 = vmatprep.subr.bf16.mxu1 %v25262_v42 }
 0xea4   :  { %21742 = vmatmul.mubr.msk.bf16.gmra.mrb[164].mxu1 %vm417_vm1, %v11247_v3 }
 0xea5   :  { %21745 = vmatprep.mubr.msk.bf16.mxu1 %vm417_vm1, %v11248_v31 }
 0xeac   :  { %21746 = vmatmul.mubr.msk.bf16.gmra.mrb[168].mxu1 %vm417_vm1, %v11249_v17 }
 0xead   :  { %21749 = vmatprep.mubr.msk.bf16.mxu1 %vm417_vm1, %v11250_v10 }
 0xeb4   :  { %21750 = vmatmul.mubr.msk.bf16.gmra.mrb[172].mxu1 %vm417_vm1, %v11251_v60 }
 0xeb5   :  { %21807 = vmatprep.mubr.msk.bf16.mxu1 %vm417_vm1, %v25760_v52 }
 0xebc   :  { %21808 = vmatmul.mubr.msk.bf16.vlgmr.msra.gmra.mrb[176].mxu1 %vm417_vm1, %v25768_v39 }
 0xebd   :  { %21820 = vmatpush3.bf16.msra.mxu1 %v25262_v42  ;;  %21823 = vmatprep.mubr.msk.bf16.mxu1 %vm417_vm1, %v25773_v37 }
 0xebe   :  { %21821 = vmatprep.subr.bf16.mxu1 %v25268_v32 }
 0xec1   :  { %21822 = vmatpush3.bf16.msra.mxu1 %v25268_v32 }
 0xec2   :  { %21835 = vmatprep.subr.bf16.mxu1 %v25262_v42 }
 0xec4   :  { %21824 = vmatmul.mubr.msk.bf16.vlgmr.msra.gmra.mrb[180].mxu1 %vm417_vm1, %v25784_v48 }
 0xec5   :  { %21836 = vmatpush3.bf16.msra.mxu1 %v25262_v42  ;;  %21839 = vmatprep.mubr.msk.bf16.mxu1 %vm417_vm1, %v25790_v46 }
 0xec6   :  { %21837 = vmatprep.subr.bf16.mxu1 %v25268_v32 }
 0xec9   :  { %21838 = vmatpush3.bf16.msra.mxu1 %v25268_v32 }
 0xeca   :  { %21851 = vmatprep.subr.bf16.mxu1 %v25262_v42 }
 0xecc   :  { %21840 = vmatmul.mubr.msk.bf16.vlgmr.msra.gmra.mrb[184].mxu1 %vm417_vm1, %v25802_v14 }
 0xecd   :  { %21852 = vmatpush3.bf16.msra.mxu1 %v25262_v42  ;;  %21855 = vmatprep.mubr.msk.bf16.mxu1 %vm417_vm1, %v25808_v36 }
 0xece   :  { %21853 = vmatprep.subr.bf16.mxu1 %v25268_v32 }
 0xed1   :  { %21854 = vmatpush3.bf16.msra.mxu1 %v25268_v32 }
 0xed2   :  { %21867 = vmatprep.subr.bf16.mxu1 %v25262_v42 }
 0xed4   :  { %21856 = vmatmul.mubr.msk.bf16.vlgmr.msra.gmra.mrb[188].mxu1 %vm417_vm1, %v25820_v59 }
 0xed5   :  { %21868 = vmatpush3.bf16.msra.mxu1 %v25262_v42  ;;  %21871 = vmatprep.mubr.msk.bf16.mxu1 %vm417_vm1, %v25826_v49 }
 0xed6   :  { %21869 = vmatprep.subr.bf16.mxu1 %v25268_v32 }
 0xed9   :  { %21870 = vmatpush3.bf16.msra.mxu1 %v25268_v32 }
 0xeda   :  { %21883 = vmatprep.subr.bf16.mxu1 %v25262_v42 }
 0xedc   :  { %21872 = vmatmul.mubr.msk.bf16.vlgmr.msra.gmra.mrb[192].mxu1 %vm417_vm1, %v25838_v21 }
 0xedd   :  { %21884 = vmatpush3.bf16.msra.mxu1 %v25262_v42  ;;  %21887 = vmatprep.mubr.msk.bf16.mxu1 %vm417_vm1, %v25844_v57 }
 0xede   :  { %21885 = vmatprep.subr.bf16.mxu1 %v25268_v32 }
 0xee1   :  { %21886 = vmatpush3.bf16.msra.mxu1 %v25268_v32 }
 0xee2   :  { %21899 = vmatprep.subr.bf16.mxu1 %v25262_v42 }
 0xee4   :  { %21888 = vmatmul.mubr.msk.bf16.vlgmr.msra.gmra.mrb[196].mxu1 %vm417_vm1, %v25856_v58 }
 0xee5   :  { %21900 = vmatpush3.bf16.msra.mxu1 %v25262_v42  ;;  %21903 = vmatprep.mubr.msk.bf16.mxu1 %vm417_vm1, %v25868_v28 }
 0xee6   :  { %21901 = vmatprep.subr.bf16.mxu1 %v25268_v32 }
 0xee9   :  { %21902 = vmatpush3.bf16.msra.mxu1 %v25268_v32 }
 0xeec   :  { %21904 = vmatmul.mubr.msk.bf16.vlgmr.msra.gmra.mrb[200].mxu1 %vm417_vm1, %v25873_v54 }
 0xeed   :  { %21919 = vmatprep.mubr.msk.bf16.mxu1 %vm417_vm1, %v25878_v16 }
 0xf6f   :  { %v21739_v2 = vpop.f32.mrb[160].mxu1 }
 0xf70   :  { %v11408_v56 = vadd.f32 %v21739_v2, %v24999_v15  ;;  %v11327_v23 = vpop.f32.mrb[161].mxu1 }
 0xf71   :  { %v11406_v3 = vadd.f32 %v11327_v23, %v25001_v18  ;;  %v21740_v24 = vpop.f32.mrb[162].mxu1 }
 0xf72   :  { %v11431_v12 = vadd.f32 %v25889_v19, %v11408_v56  ;;  %v11409_v6 = vadd.f32 %v21740_v24, %v25003_v20  ;;  %v11330_v43 = vpop.f32.mrb[163].mxu1 }
 0xf73   :  { %v11429_v11 = vadd.f32 %v25889_v19, %v11406_v3  ;;  %v11407_v17 = vadd.f32 %v11330_v43, %v25005_v22 }
 0xf74   :  { %v11432_v40 = vadd.f32 %v25889_v19, %v11409_v6  ;;  %v11447_v53 = vmax.f32 %v11431_v12, 0.0 }
 0xf75   :  { %v11430_v31 = vadd.f32 %v25889_v19, %v11407_v17  ;;  %v11445_v13 = vmax.f32 %v11429_v11, 0.0 }
 0xf76   :  { %v11448_v47 = vmax.f32 %v11432_v40, 0.0 }
 0xf77   :  { %v11446_v60 = vmax.f32 %v11430_v31, 0.0  ;;  %v21743_v41 = vpop.f32.mrb[164].mxu1 }
 0xf78   :  { %v11462_v10 = vpack.c.bf16 %v11448_v47, %v11447_v53  ;;  %v11412_v2 = vadd.f32 %v21743_v41, %v25007_v26  ;;  %v11343_v56 = vpop.f32.mrb[165].mxu1 }
 0xf79   :  { %v11461_v23 = vpack.c.bf16 %v11446_v60, %v11445_v13  ;;  %v11410_v24 = vadd.f32 %v11343_v56, %v25009_v34  ;;  %v21744_v20 = vpop.f32.mrb[166].mxu1 }
 0xf7a   :  { %v11435_v3 = vadd.f32 %v25889_v19, %v11412_v2  ;;  %v11413_v43 = vadd.f32 %v21744_v20, %v25011_v35  ;;  %v11346_v6 = vpop.f32.mrb[167].mxu1 }
 0xf7b   :  { %v11433_v17 = vadd.f32 %v25889_v19, %v11410_v24  ;;  %v11411_v12 = vadd.f32 %v11346_v6, %v25013_v1  ;;  %21755 = vmatprep.mubr.msk.bf16.mxu0 %vm248_vm0, %v11461_v23 }
 0xf7c   :  { %v11436_v11 = vadd.f32 %v25889_v19, %v11413_v43  ;;  %21756 = vmatmul.mubr.msk.bf16.vlgmr.msra.gmra.mrb[92].mxu0 %vm248_vm0, %v11462_v10  ;;  %v11451_v31 = vmax.f32 %v11435_v3, 0.0 }
 0xf7d   :  { %v11434_v40 = vadd.f32 %v25889_v19, %v11411_v12  ;;  %21772 = vmatpush3.bf16.msra.mxu0 %v25262_v42  ;;  %v11449_v20 = vmax.f32 %v11433_v17, 0.0 }
 0xf7e   :  { %v11452_v53 = vmax.f32 %v11436_v11, 0.0  ;;  %21773 = vmatprep.subr.bf16.mxu0 %v25268_v32 }
 0xf7f   :  { %v11450_v47 = vmax.f32 %v11434_v40, 0.0  ;;  %v21747_v13 = vpop.f32.mrb[168].mxu1 }
 0xf80   :  { %v11464_v60 = vpack.c.bf16 %v11452_v53, %v11451_v31  ;;  %v11416_v41 = vadd.f32 %v21747_v13, %v25015_v27  ;;  %v11359_v2 = vpop.f32.mrb[169].mxu1 }
 0xf81   :  { %v11463_v56 = vpack.c.bf16 %v11450_v47, %v11449_v20  ;;  %v11414_v23 = vadd.f32 %v11359_v2, %v25017_v30  ;;  %21774 = vmatpush3.bf16.msra.mxu0 %v25268_v32  ;;  %v21748_v10 = vpop.f32.mrb[170].mxu1 }
 0xf82   :  { %v11439_v24 = vadd.f32 %v25889_v19, %v11416_v41  ;;  %v11417_v3 = vadd.f32 %v21748_v10, %v25019_v25  ;;  %21779 = vmatprep.subr.bf16.mxu0 %v25262_v42  ;;  %v11362_v43 = vpop.f32.mrb[171].mxu1 }
 0xf83   :  { %v11437_v6 = vadd.f32 %v25889_v19, %v11414_v23  ;;  %v11415_v17 = vadd.f32 %v11362_v43, %v25021_v29  ;;  %21759 = vmatprep.mubr.msk.bf16.mxu0 %vm248_vm0, %v11463_v56 }
 0xf84   :  { %v11440_v12 = vadd.f32 %v25889_v19, %v11417_v3  ;;  %21760 = vmatmul.mubr.msk.bf16.gmra.mrb[96].mxu0 %vm248_vm0, %v11464_v60  ;;  %v11455_v40 = vmax.f32 %v11439_v24, 0.0 }
 0xf85   :  { %v11438_v11 = vadd.f32 %v25889_v19, %v11415_v17  ;;  %v11453_v53 = vmax.f32 %v11437_v6, 0.0 }
 0xf86   :  { %v11456_v31 = vmax.f32 %v11440_v12, 0.0 }
 0xf87   :  { %v11454_v20 = vmax.f32 %v11438_v11, 0.0  ;;  %v21751_v47 = vpop.f32.mrb[172].mxu1 }
 0xf88   :  { %v11466_v13 = vpack.c.bf16 %v11456_v31, %v11455_v40  ;;  %v11420_v41 = vadd.f32 %v21751_v47, %v25023_v33  ;;  %v11375_v2 = vpop.f32.mrb[173].mxu1 }
 0xf89   :  { %v11465_v23 = vpack.c.bf16 %v11454_v20, %v11453_v53  ;;  %v11418_v10 = vadd.f32 %v11375_v2, %v25025_v38  ;;  %v21752_v43 = vpop.f32.mrb[174].mxu1  ;;  %v25970_v2 = vld [vmem:[%s27006_s15] sm:$0xff]  }
 0xf8a   :  { %v11443_v56 = vadd.f32 %v25889_v19, %v11420_v41  ;;  %v11421_v3 = vadd.f32 %v21752_v43, %v25027_v44  ;;  %v11378_v60 = vpop.f32.mrb[175].mxu1  ;;  %v25940_v41 = vld [vmem:[%s27067_s1 + $0x8] sm:$0xff]  }
 0xf8b   :  { %v11441_v17 = vadd.f32 %v25889_v19, %v11418_v10  ;;  %v11419_v24 = vadd.f32 %v11378_v60, %v25029_v45  ;;  %21763 = vmatprep.mubr.msk.bf16.mxu0 %vm248_vm0, %v11465_v23 }
 0xf8c   :  { %v11444_v6 = vadd.f32 %v25889_v19, %v11421_v3  ;;  %21764 = vmatmul.mubr.msk.bf16.gmra.mrb[100].mxu0 %vm248_vm0, %v11466_v13  ;;  %v11459_v11 = vmax.f32 %v11443_v56, 0.0  ;;  %v23363_v13 = vld [vmem:[%s27006_s15 + $0x10] sm:$0xff]  }
 0xf8d   :  { %v11442_v12 = vadd.f32 %v25889_v19, %v11419_v24  ;;  %v11457_v31 = vmax.f32 %v11441_v17, 0.0  ;;  %v25945_v19 = vld [vmem:[%s27067_s1 + $0x10] sm:$0xff]  }
 0xf8e   :  { %v11460_v40 = vmax.f32 %v11444_v6, 0.0 }
 0xf8f   :  { %v11458_v53 = vmax.f32 %v11442_v12, 0.0 }
 0xf90   :  { %v11468_v20 = vpack.c.bf16 %v11460_v40, %v11459_v11 }
 0xf91   :  { %v11467_v47 = vpack.c.bf16 %v11458_v53, %v11457_v31 }
 0xf93   :  { %21767 = vmatprep.mubr.msk.bf16.mxu0 %vm248_vm0, %v11467_v47 }
 0xf94   :  { %21768 = vmatmul.mubr.msk.bf16.gmra.mrb[104].mxu0 %vm248_vm0, %v11468_v20 }
 0xf95   :  { %21775 = vmatprep.mubr.msk.bf16.mxu0 %vm417_vm1, %v25878_v16  ;;  %v25956_v16 = vld [vmem:[%s27067_s1 + $0x18] sm:$0xff]  }
 0xf9c   :  { %21776 = vmatmul.mubr.msk.bf16.vlgmr.msra.gmra.mrb[108].mxu0 %vm417_vm1, %v25940_v41 }
 0xf9d   :  { %21780 = vmatpush3.bf16.msra.mxu0 %v25262_v42  ;;  %21783 = vmatprep.mubr.msk.bf16.mxu0 %vm417_vm1, %v25945_v19  ;;  %v23364_v42 = vld [vmem:[%s27006_s15 + $0x18] sm:$0xff]  }
 0xf9e   :  { %21781 = vmatprep.subr.bf16.mxu0 %v25268_v32 }
 0xfa1   :  { %21782 = vmatpush3.bf16.msra.mxu0 %v25268_v32  ;;  %v25973_v32 = vpop.f32.mrb[176].mxu1 }
 0xfa2   :  { %21787 = vmatprep.subr.bf16.mxu0 %v23363_v13  ;;  %v25975_v23 = vpop.f32.mrb[177].mxu1 }
 0xfa3   :  { %v25977_v10 = vpop.f32.mrb[178].mxu1 }
 0xfa4   :  { %21784 = vmatmul.mubr.msk.bf16.vlgmr.msra.gmra.mrb[112].mxu0 %vm417_vm1, %v25956_v16  ;;  %v25981_v56 = vpop.f32.mrb[179].mxu1 }
 0xfa5   :  { %21788 = vmatpush3.bf16.msra.mxu0 %v23363_v13  ;;  %v25985_v60 = vpop.f32.mrb[180].mxu1  ;;  %v18574_v13 = vld [vmem:[%s27014_s24] ss:$0 sm:$0xff] }
 0xfa6   :  { %21789 = vmatprep.subr.bf16.mxu0 %v23364_v42  ;;  %v25987_v17 = vpop.f32.mrb[181].mxu1 }
 0xfa7   :  { %v25989_v24 = vpop.f32.mrb[182].mxu1 }
 0xfa8   :  { %v25993_v12 = vpop.f32.mrb[183].mxu1 }
 0xfa9   :  { %21790 = vmatpush3.bf16.msra.mxu0 %v23364_v42  ;;  %v25997_v40 = vpop.f32.mrb[184].mxu1 }
 0xfaa   :  { %21795 = vmatprep.subr.bf16.mxu0 %v25970_v2  ;;  %v25999_v31 = vpop.f32.mrb[185].mxu1 }
 0xfab   :  { %v26001_v53 = vpop.f32.mrb[186].mxu1 }
 0xfac   :  { %v26005_v47 = vpop.f32.mrb[187].mxu1 }
 0xfad   :  { %v26009_v42 = vpop.f32.mrb[188].mxu1 }
 0xfae   :  { %v26011_v6 = vpop.f32.mrb[189].mxu1 }
 0xfaf   :  { %v26013_v43 = vpop.f32.mrb[190].mxu1 }
 0xfb0   :  { %v26017_v3 = vpop.f32.mrb[191].mxu1 }
 0xfb1   :  { %v26021_v20 = vpop.f32.mrb[192].mxu1 }
 0xfb2   :  { %v26023_v44 = vpop.f32.mrb[193].mxu1 }
 0xfb3   :  { %v26025_v38 = vpop.f32.mrb[194].mxu1 }
 0xfb4   :  { %v26029_v33 = vpop.f32.mrb[195].mxu1 }
 0xfb7   :  { %v26033_v11 = vpop.f32.mrb[196].mxu1 }
 0xfb8   :  { %v26035_v25 = vpop.f32.mrb[197].mxu1 }
 0xfb9   :  { %v26037_v30 = vpop.f32.mrb[198].mxu1 }
 0xfba   :  { %v26041_v27 = vpop.f32.mrb[199].mxu1 }
 0xfbf   :  { %v26056_v15 = vpop.f32.mrb[200].mxu1 }
0x104f   :  { %v21757_v35 = vpop.f32.mrb[92].mxu0 }
0x1050   :  { %v11551_v29 = vadd.f32 %v21757_v35, %v18574_v13  ;;  %v11542_v34 = vpop.f32.mrb[93].mxu0 }
0x1051   :  { %v11543_v26 = vadd.f32 %v18574_v13, %v11542_v34  ;;  %v21758_v22 = vpop.f32.mrb[94].mxu0  ;;  %v26062_v34 = vpop.f32.mrb[201].mxu1 }
0x1052   :  { %11608 = vst.msk [vmem:[%s27015_s25 + $0x10] sm:$0xff] %vm11605_vm4, %v11551_v29  ;;  %v11554_v45 = vadd.f32 %v21758_v22, %v18574_v13  ;;  %v11545_v18 = vpop.f32.mrb[95].mxu0  ;;  %v26068_v22 = vpop.f32.mrb[202].mxu1 }
0x1053   :  { %11606 = vst.msk [vmem:[%s27015_s25] sm:$0xff] %vm11605_vm4, %v11543_v26  ;;  %v11546_v1 = vadd.f32 %v18574_v13, %v11545_v18  ;;  %v26072_v18 = vpop.f32.mrb[203].mxu1 }
0x1054   :  { %11609 = vst.msk [vmem:[%s27015_s25 + $0x18] sm:$0xff] %vm11605_vm4, %v11554_v45 }
0x1055   :  { %11607 = vst.msk [vmem:[%s27015_s25 + $0x8] sm:$0xff] %vm11605_vm4, %v11546_v1 }
0x1057   :  { %v21761_v35 = vpop.f32.mrb[96].mxu0 }
0x1058   :  { %v11567_v9 = vadd.f32 %v21761_v35, %v18574_v13  ;;  %v11558_v45 = vpop.f32.mrb[97].mxu0 }
0x1059   :  { %v11559_v55 = vadd.f32 %v18574_v13, %v11558_v45  ;;  %v21762_v51 = vpop.f32.mrb[98].mxu0 }
0x105a   :  { %11612 = vst.msk [vmem:[%s27015_s25 + $0x30] sm:$0xff] %vm11605_vm4, %v11567_v9  ;;  %v11570_v1 = vadd.f32 %v21762_v51, %v18574_v13  ;;  %v11561_v50 = vpop.f32.mrb[99].mxu0 }
0x105b   :  { %11610 = vst.msk [vmem:[%s27015_s25 + $0x20] sm:$0xff] %vm11605_vm4, %v11559_v55  ;;  %v11562_v26 = vadd.f32 %v18574_v13, %v11561_v50 }
0x105c   :  { %11613 = vst.msk [vmem:[%s27015_s25 + $0x38] sm:$0xff] %vm11605_vm4, %v11570_v1 }
0x105d   :  { %11611 = vst.msk [vmem:[%s27015_s25 + $0x28] sm:$0xff] %vm11605_vm4, %v11562_v26 }
0x105f   :  { %v21765_v35 = vpop.f32.mrb[100].mxu0 }
0x1060   :  { %v11583_v9 = vadd.f32 %v21765_v35, %v18574_v13  ;;  %v11574_v51 = vpop.f32.mrb[101].mxu0 }
0x1061   :  { %v11575_v45 = vadd.f32 %v18574_v13, %v11574_v51  ;;  %v21766_v29 = vpop.f32.mrb[102].mxu0 }
0x1062   :  { %11616 = vst.msk [vmem:[%s27015_s25 + $0x50] sm:$0xff] %vm11605_vm4, %v11583_v9  ;;  %v11586_v50 = vadd.f32 %v21766_v29, %v18574_v13  ;;  %v11577_v55 = vpop.f32.mrb[103].mxu0 }
0x1063   :  { %11614 = vst.msk [vmem:[%s27015_s25 + $0x40] sm:$0xff] %vm11605_vm4, %v11575_v45  ;;  %v11578_v1 = vadd.f32 %v18574_v13, %v11577_v55 }
0x1064   :  { %11617 = vst.msk [vmem:[%s27015_s25 + $0x58] sm:$0xff] %vm11605_vm4, %v11586_v50 }
0x1065   :  { %11615 = vst.msk [vmem:[%s27015_s25 + $0x48] sm:$0xff] %vm11605_vm4, %v11578_v1 }
0x1067   :  { %v21769_v26 = vpop.f32.mrb[104].mxu0 }
0x1068   :  { %v11599_v35 = vadd.f32 %v21769_v26, %v18574_v13  ;;  %v11590_v29 = vpop.f32.mrb[105].mxu0 }
0x1069   :  { %v11591_v9 = vadd.f32 %v18574_v13, %v11590_v29  ;;  %v21770_v51 = vpop.f32.mrb[106].mxu0 }
0x106a   :  { %11620 = vst.msk [vmem:[%s27015_s25 + $0x70] sm:$0xff] %vm11605_vm4, %v11599_v35  ;;  %v11602_v45 = vadd.f32 %v21770_v51, %v18574_v13  ;;  %v11593_v55 = vpop.f32.mrb[107].mxu0 }
0x106b   :  { %11618 = vst.msk [vmem:[%s27015_s25 + $0x60] sm:$0xff] %vm11605_vm4, %v11591_v9  ;;  %v11594_v50 = vadd.f32 %v18574_v13, %v11593_v55 }
0x106c   :  { %11621 = vst.msk [vmem:[%s27015_s25 + $0x78] sm:$0xff] %vm11605_vm4, %v11602_v45  ;;  %v23366_v45 = vld [vmem:[%s27006_s15 + $0x8] sm:$0xff]  }
0x106d   :  { %11619 = vst.msk [vmem:[%s27015_s25 + $0x68] sm:$0xff] %vm11605_vm4, %v11594_v50  ;;  %v23367_v50 = vld [vmem:[%s27006_s15 + $0x20] sm:$0xff]  }
0x106f   :  { %v21777_v1 = vpop.f32.mrb[108].mxu0 }
0x1070   :  { %v11676_v26 = vpop.f32.mrb[109].mxu0 }
0x1071   :  { %v21778_v35 = vpop.f32.mrb[110].mxu0 }
0x1072   :  { %v11692_v29 = vpack.c.bf16 %v21778_v35, %v21777_v1  ;;  %v11679_v51 = vpop.f32.mrb[111].mxu0  ;;  %v23372_v1 = vld [vmem:[%s27006_s15 + $0x48] sm:$0xff]  }
0x1073   :  { %v11691_v8 = vpack.c.bf16 %v11679_v51, %v11676_v26 }
0x1077   :  { %v21785_v5 = vpop.f32.mrb[112].mxu0 }
0x1078   :  { %v11751_v0 = vpop.f32.mrb[113].mxu0 }
0x1079   :  { %v21786_v9 = vpop.f32.mrb[114].mxu0 }
0x107a   :  { %v11767_v13 = vpack.c.bf16 %v21786_v9, %v21785_v5  ;;  %v11754_v55 = vpop.f32.mrb[115].mxu0  ;;  %v23369_v5 = vld [vmem:[%s27006_s15 + $0x30] sm:$0xff]  }
0x107b   :  { %v11766_v62 = vpack.c.bf16 %v11754_v55, %v11751_v0  ;;  %v23368_v0 = vld [vmem:[%s27006_s15 + $0x28] sm:$0xff]  }
0x107d   :  { %21791 = vmatprep.mubr.msk.bf16.mxu0 %vm417_vm1, %v11766_v62  ;;  %v27092_v62 = vpack.c.bf16 %v25981_v56, %v25975_v23  ;;  %v27094_v23 = vpack.c.bf16 %v25993_v12, %v25987_v17  ;;  %v23371_v56 = vld [vmem:[%s27006_s15 + $0x40] sm:$0xff]   ;;  %v23373_v17 = vld [vmem:[%s27006_s15 + $0x50] sm:$0xff]   ;;  %v23374_v12 = vld [vmem:[%s27006_s15 + $0x58] sm:$0xff]  }
0x107e   :  { %21792 = vmatmul.mubr.msk.bf16.vlgmr.msra.gmra.mrb[116].mxu0 %vm417_vm1, %v11767_v13 }
0x107f   :  { %21796 = vmatpush3.bf16.msra.mxu0 %v25970_v2  ;;  %21799 = vmatprep.mubr.msk.bf16.mxu0 %vm417_vm1, %v11691_v8  ;;  %v23370_v8 = vld [vmem:[%s27006_s15 + $0x38] sm:$0xff]   ;;  %v27093_v2 = vpack.c.bf16 %v25977_v10, %v25973_v32  ;;  %v27095_v32 = vpack.c.bf16 %v25989_v24, %v25985_v60  ;;  %v27096_v10 = vpack.c.bf16 %v26005_v47, %v25999_v31  ;;  %v23375_v31 = vld [vmem:[%s27006_s15 + $0x60] sm:$0xff]   ;;  %v23376_v47 = vld [vmem:[%s27006_s15 + $0x68] sm:$0xff]  }
0x1080   :  { %21797 = vmatprep.subr.bf16.mxu0 %v23366_v45  ;;  %v27097_v60 = vpack.c.bf16 %v26001_v53, %v25997_v40  ;;  %v27098_v24 = vpack.c.bf16 %v26017_v3, %v26011_v6  ;;  %v27099_v40 = vpack.c.bf16 %v26013_v43, %v26009_v42  ;;  %v27100_v3 = vpack.c.bf16 %v26029_v33, %v26023_v44  ;;  %v23377_v6 = vld [vmem:[%s27006_s15 + $0x70] sm:$0xff]   ;;  %v23378_v53 = vld [vmem:[%s27006_s15 + $0x78] sm:$0xff]   ;;  %v23379_v44 = vld [vmem:[%s27006_s15 + $0x80] sm:$0xff]  }
0x1081   :  { %v27101_v43 = vpack.c.bf16 %v26025_v38, %v26021_v20  ;;  %v27102_v33 = vpack.c.bf16 %v26041_v27, %v26035_v25  ;;  %v23380_v42 = vld [vmem:[%s27006_s15 + $0x88] sm:$0xff]   ;;  %v27103_v38 = vpack.c.bf16 %v26037_v30, %v26033_v11  ;;  %v27104_v27 = vpack.c.bf16 %v26072_v18, %v26062_v34  ;;  %v18720_v30 = vld [vmem:[%s27007_s16] ss:$0 sm:$0xff] }
0x1082   :  { %v27105_v25 = vpack.c.bf16 %v26068_v22, %v26056_v15 }
0x1083   :  { %21798 = vmatpush3.bf16.msra.mxu0 %v23366_v45 }
0x1084   :  { %21811 = vmatprep.subr.bf16.mxu0 %v23367_v50 }
0x108a   :  { %21800 = vmatmul.mubr.msk.bf16.vlgmr.msra.gmra.mrb[116].mxu0 %vm417_vm1, %v11692_v29 }
0x108b   :  { %21812 = vmatpush3.bf16.msra.mxu0 %v23367_v50  ;;  %21815 = vmatprep.mubr.msk.bf16.mxu0 %vm417_vm1, %v27092_v62 }
0x108c   :  { %21813 = vmatprep.subr.bf16.mxu0 %v23368_v0 }
0x108f   :  { %21814 = vmatpush3.bf16.msra.mxu0 %v23368_v0 }
0x1090   :  { %21827 = vmatprep.subr.bf16.mxu0 %v23369_v5 }
0x1096   :  { %21816 = vmatmul.mubr.msk.bf16.vlgmr.msra.gmra.mrb[116].mxu0 %vm417_vm1, %v27093_v2 }
0x1097   :  { %21828 = vmatpush3.bf16.msra.mxu0 %v23369_v5  ;;  %21831 = vmatprep.mubr.msk.bf16.mxu0 %vm417_vm1, %v27094_v23  ;;  %v12972_v23 = vpop.permute.xlu0 %12971 }
0x1098   :  { %21829 = vmatprep.subr.bf16.mxu0 %v23370_v8 }
0x109b   :  { %21830 = vmatpush3.bf16.msra.mxu0 %v23370_v8 }
0x109c   :  { %21843 = vmatprep.subr.bf16.mxu0 %v23371_v56 }
0x10a2   :  { %21832 = vmatmul.mubr.msk.bf16.vlgmr.msra.gmra.mrb[116].mxu0 %vm417_vm1, %v27095_v32 }
0x10a3   :  { %21844 = vmatpush3.bf16.msra.mxu0 %v23371_v56  ;;  %21847 = vmatprep.mubr.msk.bf16.mxu0 %vm417_vm1, %v27096_v10  ;;  %v12974_v56 = vpop.permute.xlu1 %12973 }
0x10a4   :  { %21845 = vmatprep.subr.bf16.mxu0 %v23372_v1 }
0x10a7   :  { %21846 = vmatpush3.bf16.msra.mxu0 %v23372_v1 }
0x10a8   :  { %21859 = vmatprep.subr.bf16.mxu0 %v23373_v17 }
0x10ae   :  { %21848 = vmatmul.mubr.msk.bf16.vlgmr.msra.gmra.mrb[116].mxu0 %vm417_vm1, %v27097_v60 }
0x10af   :  { %21860 = vmatpush3.bf16.msra.mxu0 %v23373_v17  ;;  %21863 = vmatprep.mubr.msk.bf16.mxu0 %vm417_vm1, %v27098_v24  ;;  %v12976_v17 = vpop.permute.xlu0 %12975 }
0x10b0   :  { %21861 = vmatprep.subr.bf16.mxu0 %v23374_v12 }
0x10b3   :  { %21862 = vmatpush3.bf16.msra.mxu0 %v23374_v12  ;;  %v12978_v12 = vpop.permute.xlu1 %12977 }
0x10b4   :  { %21875 = vmatprep.subr.bf16.mxu0 %v23375_v31 }
0x10ba   :  { %21864 = vmatmul.mubr.msk.bf16.vlgmr.msra.gmra.mrb[116].mxu0 %vm417_vm1, %v27099_v40 }
0x10bb   :  { %21876 = vmatpush3.bf16.msra.mxu0 %v23375_v31  ;;  %21879 = vmatprep.mubr.msk.bf16.mxu0 %vm417_vm1, %v27100_v3 }
0x10bc   :  { %21877 = vmatprep.subr.bf16.mxu0 %v23376_v47 }
0x10bf   :  { %21878 = vmatpush3.bf16.msra.mxu0 %v23376_v47 }
0x10c0   :  { %21891 = vmatprep.subr.bf16.mxu0 %v23377_v6 }
0x10c6   :  { %21880 = vmatmul.mubr.msk.bf16.vlgmr.msra.gmra.mrb[116].mxu0 %vm417_vm1, %v27101_v43 }
0x10c7   :  { %21892 = vmatpush3.bf16.msra.mxu0 %v23377_v6  ;;  %21895 = vmatprep.mubr.msk.bf16.mxu0 %vm417_vm1, %v27102_v33 }
0x10c8   :  { %21893 = vmatprep.subr.bf16.mxu0 %v23378_v53 }
0x10cb   :  { %21894 = vmatpush3.bf16.msra.mxu0 %v23378_v53  ;;  %v23385_v53 = vld [vmem:[%s27008_s18 + $0x20] sm:$0xff]  }
0x10cc   :  { %21907 = vmatprep.subr.bf16.mxu0 %v23379_v44 }
0x10d2   :  { %21896 = vmatmul.mubr.msk.bf16.vlgmr.msra.gmra.mrb[116].mxu0 %vm417_vm1, %v27103_v38 }
0x10d3   :  { %21908 = vmatpush3.bf16.msra.mxu0 %v23379_v44  ;;  %21911 = vmatprep.mubr.msk.bf16.mxu0 %vm417_vm1, %v27104_v27 }
0x10d4   :  { %21909 = vmatprep.subr.bf16.mxu0 %v23380_v42 }
0x10d7   :  { %21910 = vmatpush3.bf16.msra.mxu0 %v23380_v42 }
0x10de   :  { %21912 = vmatmul.mubr.msk.bf16.vlgmr.msra.gmra.mrb[116].mxu0 %vm417_vm1, %v27105_v25  ;;  %v23386_v25 = vld [vmem:[%s27008_s18 + $0x28] sm:$0xff]  }
0x11b1   :  { %v21913_v20 = vpop.f32.mrb[116].mxu0 }
0x11b2   :  { %v12930_v11 = vadd.f32 %v21913_v20, %v24509_v61  ;;  %v12909_v26 = vpop.f32.mrb[117].mxu0 }
0x11b3   :  { %v12928_v35 = vadd.f32 %v12909_v26, %v24513_v63  ;;  %v21914_v34 = vpop.f32.mrb[118].mxu0 }
0x11b4   :  { %v12941_v18 = vadd.f32 %v18720_v30, %v12930_v11  ;;  %v12931_v29 = vadd.f32 %v21914_v34, %v24521_v4  ;;  %v12912_v51 = vpop.f32.mrb[119].mxu0  ;;  %v23387_v34 = vld [vmem:[%s27008_s18 + $0x30] sm:$0xff]  }
0x11b5   :  { %v12939_v9 = vadd.f32 %v18720_v30, %v12928_v35  ;;  %v12929_v15 = vadd.f32 %v12912_v51, %v24529_v7 }
0x11b6   :  { %v18723_v22 = vmul.f32 -1.442695, %v12941_v18  ;;  %v12942_v13 = vadd.f32 %v18720_v30, %v12931_v29 }
0x11b7   :  { %v18721_v55 = vmul.f32 -1.442695, %v12939_v9  ;;  %v12940_v45 = vadd.f32 %v18720_v30, %v12929_v15 }
0x11b8   :  { %23506 = vpow2.f32 %v18723_v22  ;;  %v18724_v50 = vmul.f32 -1.442695, %v12942_v13  ;;  %v23388_v13 = vld [vmem:[%s27008_s18 + $0x38] sm:$0xff]  }
0x11b9   :  { %23508 = vpow2.f32 %v18721_v55  ;;  %v18722_v0 = vmul.f32 -1.442695, %v12940_v45  ;;  %v23389_v45 = vld [vmem:[%s27008_s18 + $0x40] sm:$0xff]  }
0x11ba   :  { %23510 = vpow2.f32 %v18724_v50 }
0x11bb   :  { %23512 = vpow2.f32 %v18722_v0 }
0x11c2   :  { %v23507_v61 = vpop.eup %23506 }
0x11c3   :  { %v23509_v63 = vpop.eup %23508  ;;  %v12957_v62 = vadd.f32 1.0, %v23507_v61 }
0x11c4   :  { %v23511_v5 = vpop.eup %23510  ;;  %v12955_v8 = vadd.f32 1.0, %v23509_v63 }
0x11c5   :  { %v23513_v4 = vpop.eup %23512  ;;  %23514 = vrcp.f32 %v12957_v62  ;;  %v12958_v2 = vadd.f32 1.0, %v23511_v5 }
0x11c6   :  { %23516 = vrcp.f32 %v12955_v8  ;;  %v12956_v7 = vadd.f32 1.0, %v23513_v4  ;;  %v23390_v8 = vld [vmem:[%s27008_s18 + $0x48] sm:$0xff]  }
0x11c7   :  { %23518 = vrcp.f32 %v12958_v2 }
0x11c8   :  { %23520 = vrcp.f32 %v12956_v7 }
0x11cf   :  { %v26237_v1 = vpop.eup %23514 }
0x11d0   :  { %v26239_v32 = vpop.eup %23516  ;;  %v12985_v24 = vmul.f32 %v26237_v1, %v12976_v17  ;;  %v23391_v17 = vld [vmem:[%s27008_s18 + $0x50] sm:$0xff]  }
0x11d1   :  { %v26241_v10 = vpop.eup %23518  ;;  %v12983_v47 = vmul.f32 %v26239_v32, %v12972_v23 }
0x11d2   :  { %v26243_v60 = vpop.eup %23520  ;;  %v12986_v31 = vmul.f32 %v26241_v10, %v12978_v12 }
0x11d3   :  { %v12984_v40 = vmul.f32 %v26243_v60, %v12974_v56 }
0x11d4   :  { %v12988_v3 = vpack.c.bf16 %v12986_v31, %v12985_v24 }
0x11d5   :  { %v12987_v6 = vpack.c.bf16 %v12984_v40, %v12983_v47 }
0x11d7   :  { %21915 = vmatprep.subr.bf16.mxu1 %v12987_v6 }
0x11d8   :  { %21916 = vmatpush3.bf16.msra.mxu1 %v12987_v6 }
0x11d9   :  { %21917 = vmatprep.subr.bf16.mxu1 %v12988_v3 }
0x11dc   :  { %21918 = vmatpush3.bf16.msra.mxu1 %v12988_v3 }
0x11dd   :  { %21923 = vmatprep.subr.bf16.mxu1 %v12987_v6 }
0x11df   :  { %21920 = vmatmul.mubr.msk.bf16.vlgmr.msra.gmra.mrb[204].mxu1 %vm417_vm1, %v25940_v41 }
0x11e0   :  { %21924 = vmatpush3.bf16.msra.mxu1 %v12987_v6  ;;  %21927 = vmatprep.mubr.msk.bf16.mxu1 %vm417_vm1, %v25945_v19  ;;  %v23384_v19 = vld [vmem:[%s27008_s18 + $0x8] sm:$0xff]  }
0x11e1   :  { %21925 = vmatprep.subr.bf16.mxu1 %v12988_v3 }
0x11e4   :  { %21926 = vmatpush3.bf16.msra.mxu1 %v12988_v3 }
0x11e5   :  { %21947 = vmatprep.subr.bf16.mxu1 %v12987_v6 }
0x11e7   :  { %21928 = vmatmul.mubr.msk.bf16.vlgmr.msra.gmra.mrb[208].mxu1 %vm417_vm1, %v25956_v16 }
0x11e8   :  { %21948 = vmatpush3.bf16.msra.mxu1 %v12987_v6  ;;  %21951 = vmatprep.mubr.msk.bf16.mxu1 %vm417_vm1, %v25760_v52  ;;  %v23381_v52 = vld [vmem:[%s27008_s18 + $0x10] sm:$0xff]  }
0x11e9   :  { %21949 = vmatprep.subr.bf16.mxu1 %v12988_v3  ;;  %21931 = vmatprep.subr.bf16.mxu0 %v23381_v52 }
0x11ea   :  { %21932 = vmatpush3.bf16.msra.mxu0 %v23381_v52 }
0x11ec   :  { %21950 = vmatpush3.bf16.msra.mxu1 %v12988_v3 }
0x11ed   :  { %21963 = vmatprep.subr.bf16.mxu1 %v12987_v6 }
0x11ef   :  { %21952 = vmatmul.mubr.msk.bf16.vlgmr.msra.gmra.mrb[212].mxu1 %vm417_vm1, %v25768_v39  ;;  %v23382_v39 = vld [vmem:[%s27008_s18 + $0x18] sm:$0xff]  }
0x11f0   :  { %21964 = vmatpush3.bf16.msra.mxu1 %v12987_v6  ;;  %21967 = vmatprep.mubr.msk.bf16.mxu1 %vm417_vm1, %v25773_v37  ;;  %v23383_v37 = vld [vmem:[%s27008_s18] sm:$0xff]  }
0x11f1   :  { %21965 = vmatprep.subr.bf16.mxu1 %v12988_v3  ;;  %21933 = vmatprep.subr.bf16.mxu0 %v23382_v39 }
0x11f2   :  { %21934 = vmatpush3.bf16.msra.mxu0 %v23382_v39  ;;  %v23393_v39 = vld [vmem:[%s27008_s18 + $0x60] sm:$0xff]  }
0x11f3   :  { %21939 = vmatprep.subr.bf16.mxu0 %v23383_v37 }
0x11f4   :  { %21966 = vmatpush3.bf16.msra.mxu1 %v12988_v3 }
0x11f5   :  { %21979 = vmatprep.subr.bf16.mxu1 %v12987_v6 }
0x11f7   :  { %21968 = vmatmul.mubr.msk.bf16.vlgmr.msra.gmra.mrb[216].mxu1 %vm417_vm1, %v25784_v48 }
0x11f8   :  { %21980 = vmatpush3.bf16.msra.mxu1 %v12987_v6  ;;  %21983 = vmatprep.mubr.msk.bf16.mxu1 %vm417_vm1, %v25790_v46 }
0x11f9   :  { %21981 = vmatprep.subr.bf16.mxu1 %v12988_v3 }
0x11fc   :  { %21982 = vmatpush3.bf16.msra.mxu1 %v12988_v3 }
0x11fd   :  { %21995 = vmatprep.subr.bf16.mxu1 %v12987_v6 }
0x11ff   :  { %21984 = vmatmul.mubr.msk.bf16.vlgmr.msra.gmra.mrb[220].mxu1 %vm417_vm1, %v25802_v14 }
0x1200   :  { %21996 = vmatpush3.bf16.msra.mxu1 %v12987_v6  ;;  %21999 = vmatprep.mubr.msk.bf16.mxu1 %vm417_vm1, %v25808_v36 }
0x1201   :  { %21997 = vmatprep.subr.bf16.mxu1 %v12988_v3 }
0x1204   :  { %21998 = vmatpush3.bf16.msra.mxu1 %v12988_v3 }
0x1205   :  { %22011 = vmatprep.subr.bf16.mxu1 %v12987_v6 }
0x1207   :  { %22000 = vmatmul.mubr.msk.bf16.vlgmr.msra.gmra.mrb[224].mxu1 %vm417_vm1, %v25820_v59 }
0x1208   :  { %22012 = vmatpush3.bf16.msra.mxu1 %v12987_v6  ;;  %22015 = vmatprep.mubr.msk.bf16.mxu1 %vm417_vm1, %v25826_v49 }
0x1209   :  { %22013 = vmatprep.subr.bf16.mxu1 %v12988_v3 }
0x120c   :  { %22014 = vmatpush3.bf16.msra.mxu1 %v12988_v3 }
0x120d   :  { %22027 = vmatprep.subr.bf16.mxu1 %v12987_v6 }
0x120f   :  { %22016 = vmatmul.mubr.msk.bf16.vlgmr.msra.gmra.mrb[228].mxu1 %vm417_vm1, %v25838_v21 }
0x1210   :  { %22028 = vmatpush3.bf16.msra.mxu1 %v12987_v6  ;;  %22031 = vmatprep.mubr.msk.bf16.mxu1 %vm417_vm1, %v25844_v57 }
0x1211   :  { %22029 = vmatprep.subr.bf16.mxu1 %v12988_v3 }
0x1214   :  { %22030 = vmatpush3.bf16.msra.mxu1 %v12988_v3 }
0x1215   :  { %22043 = vmatprep.subr.bf16.mxu1 %v12987_v6 }
0x1217   :  { %22032 = vmatmul.mubr.msk.bf16.vlgmr.msra.gmra.mrb[232].mxu1 %vm417_vm1, %v25856_v58 }
0x1218   :  { %22044 = vmatpush3.bf16.msra.mxu1 %v12987_v6  ;;  %22047 = vmatprep.mubr.msk.bf16.mxu1 %vm417_vm1, %v25868_v28  ;;  %v23392_v6 = vld [vmem:[%s27008_s18 + $0x58] sm:$0xff]  }
0x1219   :  { %22045 = vmatprep.subr.bf16.mxu1 %v12988_v3 }
0x121c   :  { %22046 = vmatpush3.bf16.msra.mxu1 %v12988_v3 }
0x121f   :  { %22048 = vmatmul.mubr.msk.bf16.vlgmr.msra.gmra.mrb[236].mxu1 %vm417_vm1, %v25873_v54 }
0x12b2   :  { %v21921_v48 = vpop.f32.mrb[204].mxu1 }
0x12b3   :  { %v13023_v46 = vpop.f32.mrb[205].mxu1 }
0x12b4   :  { %v21922_v14 = vpop.f32.mrb[206].mxu1 }
0x12b5   :  { %v13039_v36 = vpack.c.bf16 %v21922_v14, %v21921_v48  ;;  %v13026_v59 = vpop.f32.mrb[207].mxu1 }
0x12b6   :  { %v13038_v49 = vpack.c.bf16 %v13026_v59, %v13023_v46  ;;  %v23394_v59 = vld [vmem:[%s27008_s18 + $0x68] sm:$0xff]  }
0x12ba   :  { %v21929_v21 = vpop.f32.mrb[208].mxu1 }
0x12bb   :  { %v13078_v57 = vpop.f32.mrb[209].mxu1 }
0x12bc   :  { %v21930_v58 = vpop.f32.mrb[210].mxu1 }
0x12bd   :  { %v13094_v28 = vpack.c.bf16 %v21930_v58, %v21929_v21  ;;  %v13081_v54 = vpop.f32.mrb[211].mxu1  ;;  %v23396_v21 = vld [vmem:[%s27008_s18 + $0x78] sm:$0xff]   ;;  %v23398_v58 = vld [vmem:[%s27008_s18 + $0x88] sm:$0xff]  }
0x12be   :  { %v13093_v41 = vpack.c.bf16 %v13081_v54, %v13078_v57  ;;  %v23397_v57 = vld [vmem:[%s27008_s18 + $0x80] sm:$0xff]  }
0x12bf   :  { %v27106_v54 = vld [vmem:[#allocation2_spill] sm:$0xff] }
0x12c0   :  { %21935 = vmatprep.mubr.msk.bf16.mxu0 %vm417_vm1, %v13093_v41 }
0x12c1   :  { %21936 = vmatmul.mubr.msk.bf16.vlgmr.msra.gmra.mrb[120].mxu0 %vm417_vm1, %v13094_v28 }
0x12c2   :  { %21940 = vmatpush3.bf16.msra.mxu0 %v23383_v37  ;;  %21943 = vmatprep.mubr.msk.bf16.mxu0 %vm417_vm1, %v13038_v49  ;;  %v21953_v16 = vpop.f32.mrb[212].mxu1  ;;  %v23395_v49 = vld [vmem:[%s27008_s18 + $0x70] sm:$0xff]  }
0x12c3   :  { %21941 = vmatprep.subr.bf16.mxu0 %v23384_v19  ;;  %v13267_v43 = vpop.f32.mrb[213].mxu1 }
0x12c4   :  { %v21954_v33 = vpop.f32.mrb[214].mxu1 }
0x12c5   :  { %v13283_v44 = vpack.c.bf16 %v21954_v33, %v21953_v16  ;;  %v13270_v42 = vpop.f32.mrb[215].mxu1 }
0x12c6   :  { %21942 = vmatpush3.bf16.msra.mxu0 %v23384_v19  ;;  %v13282_v38 = vpack.c.bf16 %v13270_v42, %v13267_v43  ;;  %v18811_v19 = vld [vmem:[%s27009_s19] ss:$0 sm:$0xff] }
0x12c7   :  { %21955 = vmatprep.subr.bf16.mxu0 %v23385_v53 }
0x12ca   :  { %v21969_v27 = vpop.f32.mrb[216].mxu1 }
0x12cb   :  { %v13393_v20 = vpop.f32.mrb[217].mxu1 }
0x12cc   :  { %v21970_v30 = vpop.f32.mrb[218].mxu1 }
0x12cd   :  { %21944 = vmatmul.mubr.msk.bf16.vlgmr.msra.gmra.mrb[120].mxu0 %vm417_vm1, %v13039_v36  ;;  %v13409_v11 = vpack.c.bf16 %v21970_v30, %v21969_v27  ;;  %v13396_v26 = vpop.f32.mrb[219].mxu1 }
0x12ce   :  { %21956 = vmatpush3.bf16.msra.mxu0 %v23385_v53  ;;  %21959 = vmatprep.mubr.msk.bf16.mxu0 %vm417_vm1, %v13282_v38  ;;  %v13408_v35 = vpack.c.bf16 %v13396_v26, %v13393_v20  ;;  %v27107_v53 = vld [vmem:[#allocation3_spill] sm:$0xff] }
0x12cf   :  { %21957 = vmatprep.subr.bf16.mxu0 %v23386_v25 }
0x12d2   :  { %21958 = vmatpush3.bf16.msra.mxu0 %v23386_v25  ;;  %v21985_v18 = vpop.f32.mrb[220].mxu1  ;;  %v27109_v25 = vld [vmem:[#allocation5_spill] sm:$0xff] }
0x12d3   :  { %21971 = vmatprep.subr.bf16.mxu0 %v23387_v34  ;;  %v13519_v29 = vpop.f32.mrb[221].mxu1 }
0x12d4   :  { %v21986_v51 = vpop.f32.mrb[222].mxu1 }
0x12d5   :  { %v13535_v9 = vpack.c.bf16 %v21986_v51, %v21985_v18  ;;  %v13522_v15 = vpop.f32.mrb[223].mxu1  ;;  %v14138_v51 = vsub.f32 1.0, %v26239_v32 }
0x12d6   :  { %v13534_v22 = vpack.c.bf16 %v13522_v15, %v13519_v29 }
0x12d9   :  { %21960 = vmatmul.mubr.msk.bf16.vlgmr.msra.gmra.mrb[120].mxu0 %vm417_vm1, %v13283_v44  ;;  %v27108_v44 = vld [vmem:[#allocation4_spill] sm:$0xff] }
0x12da   :  { %21972 = vmatpush3.bf16.msra.mxu0 %v23387_v34  ;;  %21975 = vmatprep.mubr.msk.bf16.mxu0 %vm417_vm1, %v13408_v35  ;;  %v22001_v55 = vpop.f32.mrb[224].mxu1 }
0x12db   :  { %21973 = vmatprep.subr.bf16.mxu0 %v23388_v13  ;;  %v13645_v50 = vpop.f32.mrb[225].mxu1 }
0x12dc   :  { %v22002_v0 = vpop.f32.mrb[226].mxu1 }
0x12dd   :  { %v13661_v61 = vpack.c.bf16 %v22002_v0, %v22001_v55  ;;  %v13648_v63 = vpop.f32.mrb[227].mxu1  ;;  %v23399_v55 = vld [vmem:[%s27010_s5 + $0x40] sm:$0xff]   ;;  %v27111_v0 = vld [vmem:[#allocation23_spill] sm:$0xff] }
0x12de   :  { %21974 = vmatpush3.bf16.msra.mxu0 %v23388_v13  ;;  %v13660_v62 = vpack.c.bf16 %v13648_v63, %v13645_v50 }
0x12df   :  { %21987 = vmatprep.subr.bf16.mxu0 %v23389_v45 }
0x12e2   :  { %v22017_v5 = vpop.f32.mrb[228].mxu1 }
0x12e3   :  { %v13771_v4 = vpop.f32.mrb[229].mxu1 }
0x12e4   :  { %v22018_v2 = vpop.f32.mrb[230].mxu1 }
0x12e5   :  { %21976 = vmatmul.mubr.msk.bf16.vlgmr.msra.gmra.mrb[120].mxu0 %vm417_vm1, %v13409_v11  ;;  %v13787_v7 = vpack.c.bf16 %v22018_v2, %v22017_v5  ;;  %v13774_v23 = vpop.f32.mrb[231].mxu1 }
0x12e6   :  { %21988 = vmatpush3.bf16.msra.mxu0 %v23389_v45  ;;  %21991 = vmatprep.mubr.msk.bf16.mxu0 %vm417_vm1, %v13534_v22  ;;  %v13786_v56 = vpack.c.bf16 %v13774_v23, %v13771_v4  ;;  %v14139_v22 = vsub.f32 1.0, %v26243_v60  ;;  %v27110_v45 = vld [vmem:[#allocation22_spill] sm:$0xff] }
0x12e7   :  { %21989 = vmatprep.subr.bf16.mxu0 %v23390_v8  ;;  %v14134_v50 = vmul.f32 %v26239_v32, %v27110_v45  ;;  %v23438_v45 = vld [vmem:[%s27010_s5 + $0x138] sm:$0xff]  }
0x12ea   :  { %21990 = vmatpush3.bf16.msra.mxu0 %v23390_v8  ;;  %v22033_v12 = vpop.f32.mrb[232].mxu1 }
0x12eb   :  { %22003 = vmatprep.subr.bf16.mxu0 %v23391_v17  ;;  %v13897_v24 = vpop.f32.mrb[233].mxu1 }
0x12ec   :  { %v22034_v31 = vpop.f32.mrb[234].mxu1 }
0x12ed   :  { %v13913_v47 = vpack.c.bf16 %v22034_v31, %v22033_v12  ;;  %v13900_v40 = vpop.f32.mrb[235].mxu1  ;;  %v27113_v12 = vld [vmem:[#allocation25_spill] sm:$0xff] }
0x12ee   :  { %v13912_v3 = vpack.c.bf16 %v13900_v40, %v13897_v24  ;;  %v14137_v32 = vmul.f32 %v26241_v10, %v27113_v12  ;;  %v23452_v12 = vld [vmem:[%s27010_s5 + $0x1a8] sm:$0xff]  }
0x12f1   :  { %21992 = vmatmul.mubr.msk.bf16.vlgmr.msra.gmra.mrb[120].mxu0 %vm417_vm1, %v13535_v9 }
0x12f2   :  { %22004 = vmatpush3.bf16.msra.mxu0 %v23391_v17  ;;  %22007 = vmatprep.mubr.msk.bf16.mxu0 %vm417_vm1, %v13660_v62  ;;  %v22049_v52 = vpop.f32.mrb[236].mxu1  ;;  %v14140_v62 = vsub.f32 1.0, %v26237_v1 }
0x12f3   :  { %22005 = vmatprep.subr.bf16.mxu0 %v23392_v6  ;;  %v14023_v37 = vpop.f32.mrb[237].mxu1 }
0x12f4   :  { %v22050_v48 = vpop.f32.mrb[238].mxu1 }
0x12f5   :  { %v14039_v46 = vpack.c.bf16 %v22050_v48, %v22049_v52  ;;  %v14026_v14 = vpop.f32.mrb[239].mxu1  ;;  %v23408_v52 = vld [vmem:[%s27010_s5 + $0x8] sm:$0xff]   ;;  %v23402_v48 = vld [vmem:[%s27010_s5 + $0x58] sm:$0xff]  }
0x12f6   :  { %22006 = vmatpush3.bf16.msra.mxu0 %v23392_v6  ;;  %v14038_v36 = vpack.c.bf16 %v14026_v14, %v14023_v37  ;;  %v23411_v37 = vld [vmem:[%s27010_s5 + $0x10] sm:$0xff]   ;;  %v23403_v14 = vld [vmem:[%s27010_s5 + $0x60] sm:$0xff]  }
0x12f7   :  { %22019 = vmatprep.subr.bf16.mxu0 %v23393_v39 }
0x12fd   :  { %22008 = vmatmul.mubr.msk.bf16.vlgmr.msra.gmra.mrb[120].mxu0 %vm417_vm1, %v13661_v61  ;;  %v14135_v61 = vmul.f32 %v26243_v60, %v27111_v0  ;;  %v23440_v0 = vld [vmem:[%s27010_s5 + $0x148] sm:$0xff]  }
0x12fe   :  { %22020 = vmatpush3.bf16.msra.mxu0 %v23393_v39  ;;  %22023 = vmatprep.mubr.msk.bf16.mxu0 %vm417_vm1, %v13786_v56  ;;  %v27112_v56 = vld [vmem:[#allocation24_spill] sm:$0xff] }
0x12ff   :  { %22021 = vmatprep.subr.bf16.mxu0 %v23394_v59  ;;  %v14136_v17 = vmul.f32 %v26237_v1, %v27112_v56  ;;  %v23401_v39 = vld [vmem:[%s27010_s5 + $0x50] sm:$0xff]   ;;  %v23450_v56 = vld [vmem:[%s27010_s5 + $0x198] sm:$0xff]  }
0x1302   :  { %22022 = vmatpush3.bf16.msra.mxu0 %v23394_v59  ;;  %v23404_v59 = vld [vmem:[%s27010_s5 + $0x68] sm:$0xff]  }
0x1303   :  { %22035 = vmatprep.subr.bf16.mxu0 %v23395_v49 }
0x1309   :  { %22024 = vmatmul.mubr.msk.bf16.vlgmr.msra.gmra.mrb[120].mxu0 %vm417_vm1, %v13787_v7  ;;  %v14141_v7 = vsub.f32 1.0, %v26241_v10  ;;  %v23400_v10 = vld [vmem:[%s27010_s5 + $0x48] sm:$0xff]  }
0x130a   :  { %22036 = vmatpush3.bf16.msra.mxu0 %v23395_v49  ;;  %22039 = vmatprep.mubr.msk.bf16.mxu0 %vm417_vm1, %v13912_v3  ;;  %v23407_v3 = vld [vmem:[%s27010_s5] sm:$0xff]   ;;  %v23416_v49 = vld [vmem:[%s27010_s5 + $0x28] sm:$0xff]  }
0x130b   :  { %22037 = vmatprep.subr.bf16.mxu0 %v23396_v21  ;;  %22063 = vmatprep.mubr.msk.bf16.mxu1 %vm417_vm1, %v23407_v3  ;;  %v23463_v3 = vld [vmem:[%s27010_s5 + $0x1e0] sm:$0xff]  }
0x130e   :  { %22038 = vmatpush3.bf16.msra.mxu0 %v23396_v21  ;;  %v23405_v21 = vld [vmem:[%s27010_s5 + $0x70] sm:$0xff]  }
0x130f   :  { %22051 = vmatprep.subr.bf16.mxu0 %v23397_v57 }
0x1315   :  { %22040 = vmatmul.mubr.msk.bf16.vlgmr.msra.gmra.mrb[120].mxu0 %vm417_vm1, %v13913_v47 }
0x1316   :  { %22052 = vmatpush3.bf16.msra.mxu0 %v23397_v57  ;;  %22055 = vmatprep.mubr.msk.bf16.mxu0 %vm417_vm1, %v14038_v36  ;;  %v23415_v36 = vld [vmem:[%s27010_s5 + $0x20] sm:$0xff]   ;;  %v23419_v57 = vld [vmem:[%s27010_s5 + $0x30] sm:$0xff]  }
0x1317   :  { %22053 = vmatprep.subr.bf16.mxu0 %v23398_v58 }
0x131a   :  { %22054 = vmatpush3.bf16.msra.mxu0 %v23398_v58  ;;  %v23406_v58 = vld [vmem:[%s27010_s5 + $0x78] sm:$0xff]  }
0x1321   :  { %22056 = vmatmul.mubr.msk.bf16.vlgmr.msra.gmra.mrb[120].mxu0 %vm417_vm1, %v14039_v46  ;;  %v23412_v46 = vld [vmem:[%s27010_s5 + $0x18] sm:$0xff]  }
0x1322   :  { %22083 = vmatprep.mubr.msk.bf16.mxu0 %vm417_vm1, %v23399_v55  ;;  %v23437_v55 = vld [vmem:[%s27010_s5 + $0x130] sm:$0xff]  }
0x13f4   :  { %v22057_v28 = vpop.f32.mrb[120].mxu0 }
0x13f5   :  { %v14117_v41 = vadd.f32 %v22057_v28, %v27106_v54  ;;  %v14096_v16 = vpop.f32.mrb[121].mxu0  ;;  %v23420_v28 = vld [vmem:[%s27010_s5 + $0x38] sm:$0xff]   ;;  %v23409_v54 = vld [vmem:[%s27010_s5 + $0x80] sm:$0xff]  }
0x13f6   :  { %v14115_v43 = vadd.f32 %v14096_v16, %v27107_v53  ;;  %v22058_v33 = vpop.f32.mrb[122].mxu0  ;;  %v23414_v16 = vld [vmem:[%s27010_s5 + $0x98] sm:$0xff]   ;;  %v23417_v53 = vld [vmem:[%s27010_s5 + $0xa0] sm:$0xff]  }
0x13f7   :  { %v14118_v42 = vadd.f32 %v22058_v33, %v27108_v44  ;;  %v14099_v38 = vpop.f32.mrb[123].mxu0  ;;  %v14128_v30 = vadd.f32 %v18811_v19, %v14117_v41  ;;  %v23410_v41 = vld [vmem:[%s27010_s5 + $0x88] sm:$0xff]   ;;  %v23421_v33 = vld [vmem:[%s27010_s5 + $0xb0] sm:$0xff]   ;;  %v23422_v44 = vld [vmem:[%s27010_s5 + $0xb8] sm:$0xff]  }
0x13f8   :  { %v14126_v27 = vadd.f32 %v18811_v19, %v14115_v43  ;;  %v14116_v20 = vadd.f32 %v14099_v38, %v27109_v25  ;;  %v23418_v43 = vld [vmem:[%s27010_s5 + $0xa8] sm:$0xff]   ;;  %v23455_v38 = vld [vmem:[%s27011_s21 + $0x10] sm:$0xff]  }
0x13f9   :  { %v14129_v35 = vadd.f32 %v18811_v19, %v14118_v42  ;;  %v14132_v18 = vmax.f32 %v14128_v30, 0.0  ;;  %v23423_v42 = vld [vmem:[%s27010_s5 + $0xc0] sm:$0xff]   ;;  %v23425_v25 = vld [vmem:[%s27010_s5 + $0xd0] sm:$0xff]  }
0x13fa   :  { %v14130_v11 = vmax.f32 %v14126_v27, 0.0  ;;  %v14127_v26 = vadd.f32 %v18811_v19, %v14116_v20  ;;  %v23413_v19 = vld [vmem:[%s27010_s5 + $0x90] sm:$0xff]   ;;  %v23424_v27 = vld [vmem:[%s27010_s5 + $0xc8] sm:$0xff]   ;;  %v23426_v20 = vld [vmem:[%s27010_s5 + $0xd8] sm:$0xff]  }
0x13fb   :  { %v14133_v29 = vmax.f32 %v14129_v35, 0.0  ;;  %v23427_v30 = vld [vmem:[%s27010_s5 + $0xe0] sm:$0xff]   ;;  %v23429_v35 = vld [vmem:[%s27010_s5 + $0xf0] sm:$0xff]  }
0x13fc   :  { %v14131_v34 = vmax.f32 %v14127_v26, 0.0  ;;  %14146 = vrot.lane.b32.xlu0 %v14130_v11, %s23544_s11  ;;  %v23458_v11 = vld [vmem:[%s27011_s21 + $0x18] sm:$0xff]   ;;  %v23428_v26 = vld [vmem:[%s27010_s5 + $0xe8] sm:$0xff]  }
0x13fe   :  { %14148 = vrot.lane.b32.xlu1 %v14131_v34, %s23544_s11  ;;  %v23430_v34 = vld [vmem:[%s27010_s5 + $0xf8] sm:$0xff]  }
0x1400   :  { %14150 = vrot.lane.b32.xlu0 %v14132_v18, %s23544_s11  ;;  %v23431_v18 = vld [vmem:[%s27010_s5 + $0x100] sm:$0xff]  }
0x1402   :  { %14152 = vrot.lane.b32.xlu1 %v14133_v29, %s23544_s11  ;;  %v26546_v29 = vld [vmem:[%s27011_s21] sm:$0xff]  }
0x146e   :  { %v14147_v9 = vpop.permute.xlu0 %14146 }
0x146f   :  { %v14158_v15 = vmul.f32 %v14147_v9, %v14138_v51  ;;  %v23432_v51 = vld [vmem:[%s27010_s5 + $0x108] sm:$0xff]   ;;  %v23433_v9 = vld [vmem:[%s27010_s5 + $0x110] sm:$0xff]  }
0x1470   :  { %v14149_v13 = vpop.permute.xlu1 %14148 }
0x1471   :  { %v14159_v63 = vmul.f32 %v14149_v13, %v14139_v22  ;;  %v14162_v8 = vadd.f32 %v14158_v15, %v14134_v50  ;;  %v23434_v15 = vld [vmem:[%s27010_s5 + $0x118] sm:$0xff]   ;;  %v23435_v22 = vld [vmem:[%s27010_s5 + $0x120] sm:$0xff]   ;;  %v23436_v13 = vld [vmem:[%s27010_s5 + $0x128] sm:$0xff]  }
0x1472   :  { %v14151_v5 = vpop.permute.xlu0 %14150  ;;  %v23439_v50 = vld [vmem:[%s27010_s5 + $0x140] sm:$0xff]  }
0x1473   :  { %v14163_v4 = vadd.f32 %v14159_v63, %v14135_v61  ;;  %v14160_v2 = vmul.f32 %v14151_v5, %v14140_v62  ;;  %v23441_v61 = vld [vmem:[%s27010_s5 + $0x150] sm:$0xff]   ;;  %v23442_v63 = vld [vmem:[%s27010_s5 + $0x158] sm:$0xff]   ;;  %v23443_v62 = vld [vmem:[%s27010_s5 + $0x160] sm:$0xff]  }
0x1474   :  { %v14153_v23 = vpop.permute.xlu1 %14152  ;;  %v23444_v5 = vld [vmem:[%s27010_s5 + $0x168] sm:$0xff]  }
0x1475   :  { %v14161_v24 = vmul.f32 %v14153_v23, %v14141_v7  ;;  %v14166_v60 = vpack.c.bf16 %v14163_v4, %v14162_v8  ;;  %v14164_v31 = vadd.f32 %v14160_v2, %v14136_v17  ;;  %v23445_v8 = vld [vmem:[%s27010_s5 + $0x170] sm:$0xff]   ;;  %v23446_v4 = vld [vmem:[%s27010_s5 + $0x178] sm:$0xff]   ;;  %v23447_v2 = vld [vmem:[%s27010_s5 + $0x180] sm:$0xff]  }
0x1476   :  { %v23448_v7 = vld [vmem:[%s27010_s5 + $0x188] sm:$0xff]   ;;  %v23449_v23 = vld [vmem:[%s27010_s5 + $0x190] sm:$0xff]   ;;  %v23451_v17 = vld [vmem:[%s27010_s5 + $0x1a0] sm:$0xff]  }
0x1477   :  { %v14165_v47 = vadd.f32 %v14161_v24, %v14137_v32  ;;  %14226 = vrot.lane.b32.xlu0 %v14166_v60, %s23545_s13  ;;  %v23453_v32 = vld [vmem:[%s27010_s5 + $0x1b0] sm:$0xff]   ;;  %v23454_v24 = vld [vmem:[%s27010_s5 + $0x1b8] sm:$0xff]   ;;  %v23456_v60 = vld [vmem:[%s27010_s5 + $0x1c0] sm:$0xff]  }
0x1479   :  { %v14167_v40 = vpack.c.bf16 %v14165_v47, %v14164_v31  ;;  %v23457_v31 = vld [vmem:[%s27010_s5 + $0x1c8] sm:$0xff]   ;;  %v23460_v47 = vld [vmem:[%s27010_s5 + $0x1d0] sm:$0xff]  }
0x147b   :  { %14228 = vrot.lane.b32.xlu1 %v14167_v40, %s23545_s13  ;;  %v23461_v40 = vld [vmem:[%s27010_s5 + $0x1d8] sm:$0xff]  }
0x14e9   :  { %v26388_v6 = vpop.permute.xlu0 %14226 }
0x14ea   :  { %22059 = vmatprep.subr.bf16.mxu1 %v26388_v6  ;;  %22079 = vmatprep.subr.bf16.mxu0 %v26388_v6 }
0x14eb   :  { %22060 = vmatpush3.bf16.msra.mxu1 %v26388_v6  ;;  %22080 = vmatpush3.bf16.msra.mxu0 %v26388_v6 }
0x14ed   :  { %v26394_v1 = vpop.permute.xlu1 %14228 }
0x14ee   :  { %22061 = vmatprep.subr.bf16.mxu1 %v26394_v1  ;;  %22081 = vmatprep.subr.bf16.mxu0 %v26394_v1 }
0x14ef   :  { %22062 = vmatpush3.bf16.msra.mxu1 %v26394_v1  ;;  %22082 = vmatpush3.bf16.msra.mxu0 %v26394_v1 }
0x14f0   :  { %22139 = vmatprep.subr.bf16.mxu0 %v26388_v6  ;;  %22099 = vmatprep.subr.bf16.mxu1 %v23455_v38 }
0x14f2   :  { %22084 = vmatmul.mubr.msk.bf16.vlgmr.msra.gmra.mrb[124].mxu0 %vm417_vm1, %v23400_v10  ;;  %22064 = vmatmul.mubr.msk.bf16.vlgmr.msra.gmra.mrb[240].mxu1 %vm417_vm1, %v23408_v52  ;;  %v23465_v10 = vld [vmem:[%s27010_s5 + $0x1f0] sm:$0xff]  }
0x14f3   :  { %22140 = vmatpush3.bf16.msra.mxu0 %v26388_v6  ;;  %22087 = vmatprep.mubr.msk.bf16.mxu0 %vm417_vm1, %v23401_v39 }
0x14f4   :  { %22141 = vmatprep.subr.bf16.mxu0 %v26394_v1  ;;  %22067 = vmatprep.mubr.msk.bf16.mxu1 %vm417_vm1, %v23411_v37 }
0x14f5   :  { %22100 = vmatpush3.bf16.msra.mxu1 %v23455_v38  ;;  %v23470_v38 = vld [vmem:[%s27010_s5 + $0x210] sm:$0xff]  }
0x14f6   :  { %22101 = vmatprep.subr.bf16.mxu1 %v23458_v11 }
0x14f7   :  { %22142 = vmatpush3.bf16.msra.mxu0 %v26394_v1 }
0x14f8   :  { %22179 = vmatprep.subr.bf16.mxu0 %v26388_v6 }
0x14f9   :  { %22102 = vmatpush3.bf16.msra.mxu1 %v23458_v11 }
0x14fa   :  { %22088 = vmatmul.mubr.msk.bf16.gmra.mrb[128].mxu0 %vm417_vm1, %v23402_v48  ;;  %22068 = vmatmul.mubr.msk.bf16.gmra.mrb[244].mxu1 %vm417_vm1, %v23412_v46  ;;  %v23466_v48 = vld [vmem:[%s27010_s5 + $0x1f8] sm:$0xff]  }
0x14fb   :  { %22091 = vmatprep.mubr.msk.bf16.mxu0 %vm417_vm1, %v23403_v14  ;;  %22071 = vmatprep.mubr.msk.bf16.mxu1 %vm417_vm1, %v23415_v36  ;;  %v23468_v36 = vld [vmem:[%s27010_s5 + $0x200] sm:$0xff]  }
0x14fc   :  { %22119 = vmatprep.subr.bf16.mxu1 %v26546_v29 }
0x1502   :  { %22092 = vmatmul.mubr.msk.bf16.gmra.mrb[132].mxu0 %vm417_vm1, %v23404_v59  ;;  %22072 = vmatmul.mubr.msk.bf16.gmra.mrb[248].mxu1 %vm417_vm1, %v23416_v49 }
0x1503   :  { %22095 = vmatprep.mubr.msk.bf16.mxu0 %vm417_vm1, %v23405_v21  ;;  %22075 = vmatprep.mubr.msk.bf16.mxu1 %vm417_vm1, %v23419_v57 }
0x150a   :  { %22096 = vmatmul.mubr.msk.bf16.gmra.mrb[136].mxu0 %vm417_vm1, %v23406_v58  ;;  %22076 = vmatmul.mubr.msk.bf16.gmra.mrb[252].mxu1 %vm417_vm1, %v23420_v28 }
0x150b   :  { %22143 = vmatprep.mubr.msk.bf16.mxu0 %vm417_vm1, %v23409_v54  ;;  %v23462_v54 = vld [vmem:[%s27011_s21 + $0x8] sm:$0xff]  }
0x1512   :  { %22144 = vmatmul.mubr.msk.bf16.vlgmr.msra.gmra.mrb[140].mxu0 %vm417_vm1, %v23410_v41 }
0x1513   :  { %22180 = vmatpush3.bf16.msra.mxu0 %v26388_v6  ;;  %22147 = vmatprep.mubr.msk.bf16.mxu0 %vm417_vm1, %v23413_v19 }
0x1514   :  { %22181 = vmatprep.subr.bf16.mxu0 %v26394_v1 }
0x1517   :  { %22182 = vmatpush3.bf16.msra.mxu0 %v26394_v1 }
0x1518   :  { %22219 = vmatprep.subr.bf16.mxu0 %v26388_v6 }
0x151a   :  { %22148 = vmatmul.mubr.msk.bf16.gmra.mrb[144].mxu0 %vm417_vm1, %v23414_v16 }
0x151b   :  { %22151 = vmatprep.mubr.msk.bf16.mxu0 %vm417_vm1, %v23417_v53 }
0x1522   :  { %22152 = vmatmul.mubr.msk.bf16.gmra.mrb[148].mxu0 %vm417_vm1, %v23418_v43  ;;  %v26717_v43 = vld [vmem:[%s27011_s21 + $0x20] sm:$0xff]  }
0x1523   :  { %22155 = vmatprep.mubr.msk.bf16.mxu0 %vm417_vm1, %v23421_v33  ;;  %v23469_v33 = vld [vmem:[%s27010_s5 + $0x208] sm:$0xff]  }
0x152a   :  { %22156 = vmatmul.mubr.msk.bf16.gmra.mrb[152].mxu0 %vm417_vm1, %v23422_v44 }
0x152b   :  { %22183 = vmatprep.mubr.msk.bf16.mxu0 %vm417_vm1, %v23423_v42 }
0x1532   :  { %22184 = vmatmul.mubr.msk.bf16.vlgmr.msra.gmra.mrb[156].mxu0 %vm417_vm1, %v23424_v27 }
0x1533   :  { %22220 = vmatpush3.bf16.msra.mxu0 %v26388_v6  ;;  %22187 = vmatprep.mubr.msk.bf16.mxu0 %vm417_vm1, %v23425_v25 }
0x1534   :  { %22221 = vmatprep.subr.bf16.mxu0 %v26394_v1 }
0x1537   :  { %22222 = vmatpush3.bf16.msra.mxu0 %v26394_v1 }
0x1538   :  { %22259 = vmatprep.subr.bf16.mxu0 %v26388_v6 }
0x153a   :  { %22188 = vmatmul.mubr.msk.bf16.gmra.mrb[160].mxu0 %vm417_vm1, %v23426_v20 }
0x153b   :  { %22191 = vmatprep.mubr.msk.bf16.mxu0 %vm417_vm1, %v23427_v30 }
0x1542   :  { %22192 = vmatmul.mubr.msk.bf16.gmra.mrb[164].mxu0 %vm417_vm1, %v23428_v26 }
0x1543   :  { %22195 = vmatprep.mubr.msk.bf16.mxu0 %vm417_vm1, %v23429_v35 }
0x154a   :  { %22196 = vmatmul.mubr.msk.bf16.gmra.mrb[168].mxu0 %vm417_vm1, %v23430_v34 }
0x154b   :  { %22223 = vmatprep.mubr.msk.bf16.mxu0 %vm417_vm1, %v23431_v18 }
0x1552   :  { %22224 = vmatmul.mubr.msk.bf16.vlgmr.msra.gmra.mrb[172].mxu0 %vm417_vm1, %v23432_v51  ;;  %v23471_v51 = vld [vmem:[%s27010_s5 + $0x218] sm:$0xff]  }
0x1553   :  { %22260 = vmatpush3.bf16.msra.mxu0 %v26388_v6  ;;  %22227 = vmatprep.mubr.msk.bf16.mxu0 %vm417_vm1, %v23433_v9 }
0x1554   :  { %22261 = vmatprep.subr.bf16.mxu0 %v26394_v1 }
0x1557   :  { %22262 = vmatpush3.bf16.msra.mxu0 %v26394_v1 }
0x1558   :  { %22299 = vmatprep.subr.bf16.mxu0 %v26388_v6 }
0x155a   :  { %22228 = vmatmul.mubr.msk.bf16.gmra.mrb[176].mxu0 %vm417_vm1, %v23434_v15 }
0x155b   :  { %22231 = vmatprep.mubr.msk.bf16.mxu0 %vm417_vm1, %v23435_v22  ;;  %v23473_v22 = vld [vmem:[%s27010_s5 + $0x220] sm:$0xff]  }
0x1562   :  { %22232 = vmatmul.mubr.msk.bf16.gmra.mrb[180].mxu0 %vm417_vm1, %v23436_v13 }
0x1563   :  { %22235 = vmatprep.mubr.msk.bf16.mxu0 %vm417_vm1, %v23437_v55 }
0x156a   :  { %22236 = vmatmul.mubr.msk.bf16.gmra.mrb[184].mxu0 %vm417_vm1, %v23438_v45 }
0x156b   :  { %22263 = vmatprep.mubr.msk.bf16.mxu0 %vm417_vm1, %v23439_v50 }
0x1572   :  { %22264 = vmatmul.mubr.msk.bf16.vlgmr.msra.gmra.mrb[188].mxu0 %vm417_vm1, %v23440_v0 }
0x1573   :  { %22300 = vmatpush3.bf16.msra.mxu0 %v26388_v6  ;;  %22267 = vmatprep.mubr.msk.bf16.mxu0 %vm417_vm1, %v23441_v61 }
0x1574   :  { %22301 = vmatprep.subr.bf16.mxu0 %v26394_v1 }
0x1577   :  { %22302 = vmatpush3.bf16.msra.mxu0 %v26394_v1 }
0x1578   :  { %22339 = vmatprep.subr.bf16.mxu0 %v26388_v6 }
0x157a   :  { %22268 = vmatmul.mubr.msk.bf16.gmra.mrb[192].mxu0 %vm417_vm1, %v23442_v63 }
0x157b   :  { %22271 = vmatprep.mubr.msk.bf16.mxu0 %vm417_vm1, %v23443_v62 }
0x1582   :  { %22272 = vmatmul.mubr.msk.bf16.gmra.mrb[196].mxu0 %vm417_vm1, %v23444_v5 }
0x1583   :  { %22275 = vmatprep.mubr.msk.bf16.mxu0 %vm417_vm1, %v23445_v8 }
0x158a   :  { %22276 = vmatmul.mubr.msk.bf16.gmra.mrb[200].mxu0 %vm417_vm1, %v23446_v4  ;;  %v23474_v4 = vld [vmem:[%s27010_s5 + $0x228] sm:$0xff]  }
0x158b   :  { %22303 = vmatprep.mubr.msk.bf16.mxu0 %vm417_vm1, %v23447_v2 }
0x1592   :  { %22304 = vmatmul.mubr.msk.bf16.vlgmr.msra.gmra.mrb[204].mxu0 %vm417_vm1, %v23448_v7 }
0x1593   :  { %22340 = vmatpush3.bf16.msra.mxu0 %v26388_v6  ;;  %22307 = vmatprep.mubr.msk.bf16.mxu0 %vm417_vm1, %v23449_v23  ;;  %v23475_v23 = vld [vmem:[%s27010_s5 + $0x230] sm:$0xff]  }
0x1594   :  { %22341 = vmatprep.subr.bf16.mxu0 %v26394_v1 }
0x1597   :  { %22342 = vmatpush3.bf16.msra.mxu0 %v26394_v1 }
0x1598   :  { %22379 = vmatprep.subr.bf16.mxu0 %v26388_v6 }
0x159a   :  { %22308 = vmatmul.mubr.msk.bf16.gmra.mrb[212].mxu0 %vm417_vm1, %v23450_v56 }
0x159b   :  { %22311 = vmatprep.mubr.msk.bf16.mxu0 %vm417_vm1, %v23451_v17 }
0x15a2   :  { %22312 = vmatmul.mubr.msk.bf16.gmra.mrb[208].mxu0 %vm417_vm1, %v23452_v12 }
0x15a3   :  { %22315 = vmatprep.mubr.msk.bf16.mxu0 %vm417_vm1, %v23453_v32 }
0x15aa   :  { %22316 = vmatmul.mubr.msk.bf16.gmra.mrb[216].mxu0 %vm417_vm1, %v23454_v24 }
0x15ab   :  { %22343 = vmatprep.mubr.msk.bf16.mxu0 %vm417_vm1, %v23456_v60 }
0x15b2   :  { %22344 = vmatmul.mubr.msk.bf16.vlgmr.msra.gmra.mrb[220].mxu0 %vm417_vm1, %v23457_v31 }
0x15b3   :  { %22380 = vmatpush3.bf16.msra.mxu0 %v26388_v6  ;;  %22347 = vmatprep.mubr.msk.bf16.mxu0 %vm417_vm1, %v23460_v47  ;;  %v23464_v6 = vld [vmem:[%s27010_s5 + $0x1e8] sm:$0xff]  }
0x15b4   :  { %22381 = vmatprep.subr.bf16.mxu0 %v26394_v1 }
0x15b7   :  { %22382 = vmatpush3.bf16.msra.mxu0 %v26394_v1 }
0x15ba   :  { %22348 = vmatmul.mubr.msk.bf16.gmra.mrb[224].mxu0 %vm417_vm1, %v23461_v40  ;;  %v23476_v40 = vld [vmem:[%s27010_s5 + $0x238] sm:$0xff]  }
0x15bb   :  { %22351 = vmatprep.mubr.msk.bf16.mxu0 %vm417_vm1, %v23463_v3 }
0x15c2   :  { %22352 = vmatmul.mubr.msk.bf16.gmra.mrb[228].mxu0 %vm417_vm1, %v23464_v6 }
0x15c3   :  { %22355 = vmatprep.mubr.msk.bf16.mxu0 %vm417_vm1, %v23465_v10 }
0x15c5   :  { %v22085_v1 = vpop.f32.mrb[124].mxu0  ;;  %v26684_v52 = vpop.f32.mrb[240].mxu1 }
0x15c6   :  { %v14479_v39 = vpop.f32.mrb[125].mxu0  ;;  %v26686_v37 = vpop.f32.mrb[241].mxu1 }
0x15c7   :  { %v22086_v46 = vpop.f32.mrb[126].mxu0  ;;  %v26691_v14 = vpop.f32.mrb[242].mxu1 }
0x15c8   :  { %v14543_v59 = vpack.c.bf16 %v22086_v46, %v22085_v1  ;;  %v14482_v49 = vpop.f32.mrb[127].mxu0  ;;  %v14354_v21 = vpack.c.bf16 %v26691_v14, %v26684_v52  ;;  %v26698_v57 = vpop.f32.mrb[243].mxu1  ;;  %v23477_v46 = vld [vmem:[%s27011_s21 + $0x30] sm:$0xff]  }
0x15c9   :  { %v14542_v58 = vpack.c.bf16 %v14482_v49, %v14479_v39  ;;  %v14353_v28 = vpack.c.bf16 %v26698_v57, %v26686_v37  ;;  %v23472_v39 = vld [vmem:[%s27011_s21 + $0x28] sm:$0xff]  }
0x15ca   :  { %22356 = vmatmul.mubr.msk.bf16.gmra.mrb[232].mxu0 %vm417_vm1, %v23466_v48 }
0x15cb   :  { %22103 = vmatprep.mubr.msk.bf16.mxu1 %vm417_vm1, %v14542_v58  ;;  %22383 = vmatprep.mubr.msk.bf16.mxu0 %vm417_vm1, %v23468_v36 }
0x15cc   :  { %22104 = vmatmul.mubr.msk.bf16.vlgmr.msra.gmra.mrb[0].mxu1 %vm417_vm1, %v14543_v59 }
0x15cd   :  { %v22089_v41 = vpop.f32.mrb[128].mxu0  ;;  %22120 = vmatpush3.bf16.msra.mxu1 %v26546_v29  ;;  %v26710_v19 = vpop.f32.mrb[244].mxu1 }
0x15ce   :  { %v14495_v16 = vpop.f32.mrb[129].mxu0  ;;  %22121 = vmatprep.subr.bf16.mxu1 %v23462_v54  ;;  %v26712_v53 = vpop.f32.mrb[245].mxu1 }
0x15cf   :  { %v22090_v44 = vpop.f32.mrb[130].mxu0  ;;  %v26722_v42 = vpop.f32.mrb[246].mxu1 }
0x15d0   :  { %v14545_v27 = vpack.c.bf16 %v22090_v44, %v22089_v41  ;;  %v14498_v25 = vpop.f32.mrb[131].mxu0  ;;  %v14356_v20 = vpack.c.bf16 %v26722_v42, %v26710_v19  ;;  %v14309_v30 = vpop.f32.mrb[247].mxu1 }
0x15d1   :  { %v14544_v11 = vpack.c.bf16 %v14498_v25, %v14495_v16  ;;  %22122 = vmatpush3.bf16.msra.mxu1 %v23462_v54  ;;  %v14355_v26 = vpack.c.bf16 %v14309_v30, %v26712_v53  ;;  %v23478_v30 = vld [vmem:[%s27011_s21 + $0x38] sm:$0xff]  }
0x15d2   :  { %22159 = vmatprep.subr.bf16.mxu1 %v26717_v43  ;;  %22384 = vmatmul.mubr.msk.bf16.vlgmr.msra.gmra.mrb[236].mxu0 %vm417_vm1, %v23469_v33 }
0x15d3   :  { %22107 = vmatprep.mubr.msk.bf16.mxu1 %vm417_vm1, %v14544_v11  ;;  %22387 = vmatprep.mubr.msk.bf16.mxu0 %vm417_vm1, %v23470_v38 }
0x15d4   :  { %22108 = vmatmul.mubr.msk.bf16.gmra.mrb[4].mxu1 %vm417_vm1, %v14545_v27 }
0x15d5   :  { %v22093_v35 = vpop.f32.mrb[132].mxu0  ;;  %v26735_v34 = vpop.f32.mrb[248].mxu1 }
0x15d6   :  { %v14511_v18 = vpop.f32.mrb[133].mxu0  ;;  %v14322_v29 = vpop.f32.mrb[249].mxu1 }
0x15d7   :  { %v22094_v9 = vpop.f32.mrb[134].mxu0  ;;  %v22074_v15 = vpop.f32.mrb[250].mxu1 }
0x15d8   :  { %v14547_v13 = vpack.c.bf16 %v22094_v9, %v22093_v35  ;;  %v14514_v55 = vpop.f32.mrb[135].mxu0  ;;  %v14358_v45 = vpack.c.bf16 %v22074_v15, %v26735_v34  ;;  %v14325_v50 = vpop.f32.mrb[251].mxu1  ;;  %v23479_v35 = vld [vmem:[%s27011_s21 + $0x40] sm:$0xff]  }
0x15d9   :  { %v14546_v0 = vpack.c.bf16 %v14514_v55, %v14511_v18  ;;  %v14357_v61 = vpack.c.bf16 %v14325_v50, %v14322_v29 }
0x15da   :  { %22388 = vmatmul.mubr.msk.bf16.gmra.mrb[240].mxu0 %vm417_vm1, %v23471_v51 }
0x15db   :  { %22111 = vmatprep.mubr.msk.bf16.mxu1 %vm417_vm1, %v14546_v0  ;;  %22391 = vmatprep.mubr.msk.bf16.mxu0 %vm417_vm1, %v23473_v22 }
0x15dc   :  { %22112 = vmatmul.mubr.msk.bf16.gmra.mrb[8].mxu1 %vm417_vm1, %v14547_v13 }
0x15dd   :  { %v22097_v63 = vpop.f32.mrb[136].mxu0  ;;  %v22077_v62 = vpop.f32.mrb[252].mxu1 }
0x15de   :  { %v14527_v5 = vpop.f32.mrb[137].mxu0  ;;  %v14338_v8 = vpop.f32.mrb[253].mxu1 }
0x15df   :  { %v22098_v2 = vpop.f32.mrb[138].mxu0  ;;  %v22078_v7 = vpop.f32.mrb[254].mxu1 }
0x15e0   :  { %v14549_v56 = vpack.c.bf16 %v22098_v2, %v22097_v63  ;;  %v14530_v17 = vpop.f32.mrb[139].mxu0  ;;  %v14360_v12 = vpack.c.bf16 %v22078_v7, %v22077_v62  ;;  %v14341_v32 = vpop.f32.mrb[255].mxu1 }
0x15e1   :  { %v14548_v24 = vpack.c.bf16 %v14530_v17, %v14527_v5  ;;  %v14359_v60 = vpack.c.bf16 %v14341_v32, %v14338_v8  ;;  %v23480_v17 = vld [vmem:[%s27011_s21 + $0x48] sm:$0xff]  }
0x15e2   :  { %22392 = vmatmul.mubr.msk.bf16.gmra.mrb[244].mxu0 %vm417_vm1, %v23474_v4 }
0x15e3   :  { %22115 = vmatprep.mubr.msk.bf16.mxu1 %vm417_vm1, %v14548_v24  ;;  %22395 = vmatprep.mubr.msk.bf16.mxu0 %vm417_vm1, %v23475_v23  ;;  %v23481_v24 = vld [vmem:[%s27011_s21 + $0x50] sm:$0xff]  }
0x15e4   :  { %22116 = vmatmul.mubr.msk.bf16.gmra.mrb[12].mxu1 %vm417_vm1, %v14549_v56 }
0x15e5   :  { %22123 = vmatprep.mubr.msk.bf16.mxu1 %vm417_vm1, %v14353_v28  ;;  %v22145_v31 = vpop.f32.mrb[140].mxu0 }
0x15e6   :  { %v14934_v47 = vpop.f32.mrb[141].mxu0 }
0x15e7   :  { %v22146_v3 = vpop.f32.mrb[142].mxu0 }
0x15e8   :  { %v14998_v6 = vpack.c.bf16 %v22146_v3, %v22145_v31  ;;  %v14937_v10 = vpop.f32.mrb[143].mxu0 }
0x15e9   :  { %v14997_v1 = vpack.c.bf16 %v14937_v10, %v14934_v47 }
0x15ea   :  { %22396 = vmatmul.mubr.msk.bf16.gmra.mrb[248].mxu0 %vm417_vm1, %v23476_v40 }
0x15ec   :  { %22124 = vmatmul.mubr.msk.bf16.vlgmr.msra.gmra.mrb[0].mxu1 %vm417_vm1, %v14354_v21 }
0x15ed   :  { %22160 = vmatpush3.bf16.msra.mxu1 %v26717_v43  ;;  %22127 = vmatprep.mubr.msk.bf16.mxu1 %vm417_vm1, %v14355_v26  ;;  %v22149_v37 = vpop.f32.mrb[144].mxu0 }
0x15ee   :  { %22161 = vmatprep.subr.bf16.mxu1 %v23472_v39  ;;  %v14950_v48 = vpop.f32.mrb[145].mxu0 }
0x15ef   :  { %v22150_v36 = vpop.f32.mrb[146].mxu0 }
0x15f0   :  { %v15000_v59 = vpack.c.bf16 %v22150_v36, %v22149_v37  ;;  %v14953_v49 = vpop.f32.mrb[147].mxu0 }
0x15f1   :  { %22162 = vmatpush3.bf16.msra.mxu1 %v23472_v39  ;;  %v14999_v57 = vpack.c.bf16 %v14953_v49, %v14950_v48 }
0x15f2   :  { %22199 = vmatprep.subr.bf16.mxu1 %v23477_v46 }
0x15f4   :  { %22128 = vmatmul.mubr.msk.bf16.gmra.mrb[4].mxu1 %vm417_vm1, %v14356_v20 }
0x15f5   :  { %22131 = vmatprep.mubr.msk.bf16.mxu1 %vm417_vm1, %v14357_v61  ;;  %v22153_v52 = vpop.f32.mrb[148].mxu0 }
0x15f6   :  { %v14966_v14 = vpop.f32.mrb[149].mxu0 }
0x15f7   :  { %v22154_v21 = vpop.f32.mrb[150].mxu0 }
0x15f8   :  { %v15002_v58 = vpack.c.bf16 %v22154_v21, %v22153_v52  ;;  %v14969_v28 = vpop.f32.mrb[151].mxu0 }
0x15f9   :  { %v15001_v54 = vpack.c.bf16 %v14969_v28, %v14966_v14 }
0x15fc   :  { %22132 = vmatmul.mubr.msk.bf16.gmra.mrb[8].mxu1 %vm417_vm1, %v14358_v45 }
0x15fd   :  { %22135 = vmatprep.mubr.msk.bf16.mxu1 %vm417_vm1, %v14359_v60  ;;  %v22157_v41 = vpop.f32.mrb[152].mxu0 }
0x15fe   :  { %v14982_v16 = vpop.f32.mrb[153].mxu0 }
0x15ff   :  { %v22158_v53 = vpop.f32.mrb[154].mxu0 }
0x1600   :  { %v15004_v43 = vpack.c.bf16 %v22158_v53, %v22157_v41  ;;  %v14985_v33 = vpop.f32.mrb[155].mxu0  ;;  %v23482_v41 = vld [vmem:[%s27011_s21 + $0x58] sm:$0xff]  }
0x1601   :  { %v15003_v19 = vpack.c.bf16 %v14985_v33, %v14982_v16 }
0x1604   :  { %22136 = vmatmul.mubr.msk.bf16.gmra.mrb[12].mxu1 %vm417_vm1, %v14360_v12 }
0x1605   :  { %22163 = vmatprep.mubr.msk.bf16.mxu1 %vm417_vm1, %v14997_v1  ;;  %v22185_v44 = vpop.f32.mrb[156].mxu0 }
0x1606   :  { %v15272_v42 = vpop.f32.mrb[157].mxu0 }
0x1607   :  { %v22186_v38 = vpop.f32.mrb[158].mxu0 }
0x1608   :  { %v15336_v27 = vpack.c.bf16 %v22186_v38, %v22185_v44  ;;  %v15275_v25 = vpop.f32.mrb[159].mxu0 }
0x1609   :  { %v15335_v20 = vpack.c.bf16 %v15275_v25, %v15272_v42 }
0x160c   :  { %22164 = vmatmul.mubr.msk.bf16.vlgmr.msra.gmra.mrb[0].mxu1 %vm417_vm1, %v14998_v6 }
0x160d   :  { %22200 = vmatpush3.bf16.msra.mxu1 %v23477_v46  ;;  %22167 = vmatprep.mubr.msk.bf16.mxu1 %vm417_vm1, %v14999_v57  ;;  %v22189_v11 = vpop.f32.mrb[160].mxu0 }
0x160e   :  { %22201 = vmatprep.subr.bf16.mxu1 %v23478_v30  ;;  %v15288_v26 = vpop.f32.mrb[161].mxu0 }
0x160f   :  { %v22190_v34 = vpop.f32.mrb[162].mxu0 }
0x1610   :  { %v15338_v18 = vpack.c.bf16 %v22190_v34, %v22189_v11  ;;  %v15291_v29 = vpop.f32.mrb[163].mxu0 }
0x1611   :  { %22202 = vmatpush3.bf16.msra.mxu1 %v23478_v30  ;;  %v15337_v51 = vpack.c.bf16 %v15291_v29, %v15288_v26 }
0x1612   :  { %22239 = vmatprep.subr.bf16.mxu1 %v23479_v35 }
0x1614   :  { %22168 = vmatmul.mubr.msk.bf16.gmra.mrb[4].mxu1 %vm417_vm1, %v15000_v59 }
0x1615   :  { %22171 = vmatprep.mubr.msk.bf16.mxu1 %vm417_vm1, %v15001_v54  ;;  %v22193_v9 = vpop.f32.mrb[164].mxu0 }
0x1616   :  { %v15304_v15 = vpop.f32.mrb[165].mxu0 }
0x1617   :  { %v22194_v22 = vpop.f32.mrb[166].mxu0 }
0x1618   :  { %v15340_v13 = vpack.c.bf16 %v22194_v22, %v22193_v9  ;;  %v15307_v55 = vpop.f32.mrb[167].mxu0  ;;  %v23489_v9 = vld [vmem:[%s27012_s23] sm:$0xff]  }
0x1619   :  { %v15339_v45 = vpack.c.bf16 %v15307_v55, %v15304_v15  ;;  %22419 = vmatprep.subr.bf16.mxu0 %v23489_v9 }
0x161a   :  { %22420 = vmatpush3.bf16.msra.mxu0 %v23489_v9 }
0x161c   :  { %22172 = vmatmul.mubr.msk.bf16.gmra.mrb[8].mxu1 %vm417_vm1, %v15002_v58 }
0x161d   :  { %22175 = vmatprep.mubr.msk.bf16.mxu1 %vm417_vm1, %v15003_v19  ;;  %v22197_v50 = vpop.f32.mrb[168].mxu0 }
0x161e   :  { %v15320_v0 = vpop.f32.mrb[169].mxu0 }
0x161f   :  { %v22198_v61 = vpop.f32.mrb[170].mxu0 }
0x1620   :  { %v15342_v63 = vpack.c.bf16 %v22198_v61, %v22197_v50  ;;  %v15323_v62 = vpop.f32.mrb[171].mxu0 }
0x1621   :  { %v15341_v5 = vpack.c.bf16 %v15323_v62, %v15320_v0  ;;  %v23484_v0 = vld [vmem:[%s27011_s21 + $0x68] sm:$0xff]   ;;  %v23485_v62 = vld [vmem:[%s27011_s21 + $0x70] sm:$0xff]  }
0x1624   :  { %22176 = vmatmul.mubr.msk.bf16.gmra.mrb[12].mxu1 %vm417_vm1, %v15004_v43  ;;  %v23483_v43 = vld [vmem:[%s27011_s21 + $0x60] sm:$0xff]  }
0x1625   :  { %22203 = vmatprep.mubr.msk.bf16.mxu1 %vm417_vm1, %v15335_v20  ;;  %v22225_v8 = vpop.f32.mrb[172].mxu0 }
0x1626   :  { %v15610_v4 = vpop.f32.mrb[173].mxu0 }
0x1627   :  { %v22226_v2 = vpop.f32.mrb[174].mxu0 }
0x1628   :  { %v15674_v7 = vpack.c.bf16 %v22226_v2, %v22225_v8  ;;  %v15613_v23 = vpop.f32.mrb[175].mxu0 }
0x1629   :  { %v15673_v56 = vpack.c.bf16 %v15613_v23, %v15610_v4 }
0x162c   :  { %22204 = vmatmul.mubr.msk.bf16.vlgmr.msra.gmra.mrb[0].mxu1 %vm417_vm1, %v15336_v27 }
0x162d   :  { %22240 = vmatpush3.bf16.msra.mxu1 %v23479_v35  ;;  %22207 = vmatprep.mubr.msk.bf16.mxu1 %vm417_vm1, %v15337_v51  ;;  %v22229_v12 = vpop.f32.mrb[176].mxu0 }
0x162e   :  { %22241 = vmatprep.subr.bf16.mxu1 %v23480_v17  ;;  %v15626_v32 = vpop.f32.mrb[177].mxu0 }
0x162f   :  { %v22230_v60 = vpop.f32.mrb[178].mxu0 }
0x1630   :  { %v15676_v31 = vpack.c.bf16 %v22230_v60, %v22229_v12  ;;  %v15629_v47 = vpop.f32.mrb[179].mxu0 }
0x1631   :  { %22242 = vmatpush3.bf16.msra.mxu1 %v23480_v17  ;;  %v15675_v40 = vpack.c.bf16 %v15629_v47, %v15626_v32 }
0x1632   :  { %22279 = vmatprep.subr.bf16.mxu1 %v23481_v24 }
0x1634   :  { %22208 = vmatmul.mubr.msk.bf16.gmra.mrb[4].mxu1 %vm417_vm1, %v15338_v18 }
0x1635   :  { %22211 = vmatprep.mubr.msk.bf16.mxu1 %vm417_vm1, %v15339_v45  ;;  %v22233_v3 = vpop.f32.mrb[180].mxu0 }
0x1636   :  { %v15642_v6 = vpop.f32.mrb[181].mxu0 }
0x1637   :  { %v22234_v10 = vpop.f32.mrb[182].mxu0 }
0x1638   :  { %v15678_v1 = vpack.c.bf16 %v22234_v10, %v22233_v3  ;;  %v15645_v39 = vpop.f32.mrb[183].mxu0 }
0x1639   :  { %v15677_v37 = vpack.c.bf16 %v15645_v39, %v15642_v6 }
0x163c   :  { %22212 = vmatmul.mubr.msk.bf16.gmra.mrb[8].mxu1 %vm417_vm1, %v15340_v13 }
0x163d   :  { %22215 = vmatprep.mubr.msk.bf16.mxu1 %vm417_vm1, %v15341_v5  ;;  %v22237_v48 = vpop.f32.mrb[184].mxu0 }
0x163e   :  { %v15658_v46 = vpop.f32.mrb[185].mxu0 }
0x163f   :  { %v22238_v36 = vpop.f32.mrb[186].mxu0 }
0x1640   :  { %v15680_v59 = vpack.c.bf16 %v22238_v36, %v22237_v48  ;;  %v15661_v49 = vpop.f32.mrb[187].mxu0 }
0x1641   :  { %v15679_v57 = vpack.c.bf16 %v15661_v49, %v15658_v46  ;;  %v23486_v46 = vld [vmem:[%s27011_s21 + $0x78] sm:$0xff]   ;;  %v23487_v49 = vld [vmem:[%s27011_s21 + $0x80] sm:$0xff]  }
0x1644   :  { %22216 = vmatmul.mubr.msk.bf16.gmra.mrb[12].mxu1 %vm417_vm1, %v15342_v63 }
0x1645   :  { %22243 = vmatprep.mubr.msk.bf16.mxu1 %vm417_vm1, %v15673_v56  ;;  %v22265_v52 = vpop.f32.mrb[188].mxu0 }
0x1646   :  { %v15948_v14 = vpop.f32.mrb[189].mxu0 }
0x1647   :  { %v22266_v21 = vpop.f32.mrb[190].mxu0 }
0x1648   :  { %v16012_v58 = vpack.c.bf16 %v22266_v21, %v22265_v52  ;;  %v15951_v28 = vpop.f32.mrb[191].mxu0 }
0x1649   :  { %v16011_v54 = vpack.c.bf16 %v15951_v28, %v15948_v14 }
0x164c   :  { %22244 = vmatmul.mubr.msk.bf16.vlgmr.msra.gmra.mrb[0].mxu1 %vm417_vm1, %v15674_v7 }
0x164d   :  { %22280 = vmatpush3.bf16.msra.mxu1 %v23481_v24  ;;  %22247 = vmatprep.mubr.msk.bf16.mxu1 %vm417_vm1, %v15675_v40  ;;  %v22269_v16 = vpop.f32.mrb[192].mxu0 }
0x164e   :  { %22281 = vmatprep.subr.bf16.mxu1 %v23482_v41  ;;  %v15964_v53 = vpop.f32.mrb[193].mxu0 }
0x164f   :  { %v22270_v33 = vpop.f32.mrb[194].mxu0 }
0x1650   :  { %v16014_v19 = vpack.c.bf16 %v22270_v33, %v22269_v16  ;;  %v15967_v44 = vpop.f32.mrb[195].mxu0 }
0x1651   :  { %22282 = vmatpush3.bf16.msra.mxu1 %v23482_v41  ;;  %v16013_v42 = vpack.c.bf16 %v15967_v44, %v15964_v53 }
0x1652   :  { %22319 = vmatprep.subr.bf16.mxu1 %v23483_v43 }
0x1654   :  { %22248 = vmatmul.mubr.msk.bf16.gmra.mrb[4].mxu1 %vm417_vm1, %v15676_v31 }
0x1655   :  { %22251 = vmatprep.mubr.msk.bf16.mxu1 %vm417_vm1, %v15677_v37  ;;  %v22273_v38 = vpop.f32.mrb[196].mxu0 }
0x1656   :  { %v15980_v27 = vpop.f32.mrb[197].mxu0 }
0x1657   :  { %v22274_v25 = vpop.f32.mrb[198].mxu0 }
0x1658   :  { %v16016_v20 = vpack.c.bf16 %v22274_v25, %v22273_v38  ;;  %v15983_v30 = vpop.f32.mrb[199].mxu0 }
0x1659   :  { %v16015_v11 = vpack.c.bf16 %v15983_v30, %v15980_v27 }
0x165c   :  { %22252 = vmatmul.mubr.msk.bf16.gmra.mrb[8].mxu1 %vm417_vm1, %v15678_v1 }
0x165d   :  { %22255 = vmatprep.mubr.msk.bf16.mxu1 %vm417_vm1, %v15679_v57  ;;  %v22277_v26 = vpop.f32.mrb[200].mxu0 }
0x165e   :  { %v15996_v35 = vpop.f32.mrb[201].mxu0 }
0x165f   :  { %v22278_v34 = vpop.f32.mrb[202].mxu0 }
0x1660   :  { %v16018_v18 = vpack.c.bf16 %v22278_v34, %v22277_v26  ;;  %v15999_v29 = vpop.f32.mrb[203].mxu0 }
0x1661   :  { %v16017_v51 = vpack.c.bf16 %v15999_v29, %v15996_v35  ;;  %v23488_v35 = vld [vmem:[%s27011_s21 + $0x88] sm:$0xff]  }
0x1664   :  { %22256 = vmatmul.mubr.msk.bf16.gmra.mrb[12].mxu1 %vm417_vm1, %v15680_v59 }
0x1665   :  { %22283 = vmatprep.mubr.msk.bf16.mxu1 %vm417_vm1, %v16011_v54  ;;  %v22305_v15 = vpop.f32.mrb[204].mxu0 }
0x1666   :  { %v16286_v22 = vpop.f32.mrb[205].mxu0 }
0x1667   :  { %v22306_v13 = vpop.f32.mrb[206].mxu0 }
0x1668   :  { %v16350_v55 = vpack.c.bf16 %v22306_v13, %v22305_v15  ;;  %v16289_v45 = vpop.f32.mrb[207].mxu0 }
0x1669   :  { %v16349_v50 = vpack.c.bf16 %v16289_v45, %v16286_v22 }
0x166c   :  { %22284 = vmatmul.mubr.msk.bf16.vlgmr.msra.gmra.mrb[0].mxu1 %vm417_vm1, %v16012_v58 }
0x166d   :  { %22320 = vmatpush3.bf16.msra.mxu1 %v23483_v43  ;;  %22287 = vmatprep.mubr.msk.bf16.mxu1 %vm417_vm1, %v16013_v42  ;;  %v22309_v61 = vpop.f32.mrb[212].mxu0 }
0x166e   :  { %22321 = vmatprep.subr.bf16.mxu1 %v23484_v0  ;;  %v16302_v63 = vpop.f32.mrb[213].mxu0 }
0x166f   :  { %v22310_v5 = vpop.f32.mrb[214].mxu0 }
0x1670   :  { %v16352_v8 = vpack.c.bf16 %v22310_v5, %v22309_v61  ;;  %v16305_v4 = vpop.f32.mrb[215].mxu0 }
0x1671   :  { %22322 = vmatpush3.bf16.msra.mxu1 %v23484_v0  ;;  %v16351_v2 = vpack.c.bf16 %v16305_v4, %v16302_v63 }
0x1672   :  { %22359 = vmatprep.subr.bf16.mxu1 %v23485_v62 }
0x1674   :  { %22288 = vmatmul.mubr.msk.bf16.gmra.mrb[4].mxu1 %vm417_vm1, %v16014_v19 }
0x1675   :  { %22291 = vmatprep.mubr.msk.bf16.mxu1 %vm417_vm1, %v16015_v11  ;;  %v22313_v7 = vpop.f32.mrb[208].mxu0 }
0x1676   :  { %v16318_v23 = vpop.f32.mrb[209].mxu0 }
0x1677   :  { %v22314_v56 = vpop.f32.mrb[210].mxu0 }
0x1678   :  { %v16354_v17 = vpack.c.bf16 %v22314_v56, %v22313_v7  ;;  %v16321_v12 = vpop.f32.mrb[211].mxu0  ;;  %v26881_v7 = vld [vmem:[%s27013_s22] ss:$0 sm:$0xff] }
0x1679   :  { %v16353_v32 = vpack.c.bf16 %v16321_v12, %v16318_v23  ;;  %v27114_v23 = vld [vmem:[#allocation6_spill] sm:$0xff]  ;;  %v27115_v12 = vld [vmem:[#allocation7_spill] sm:$0xff] }
0x167c   :  { %22292 = vmatmul.mubr.msk.bf16.gmra.mrb[8].mxu1 %vm417_vm1, %v16016_v20 }
0x167d   :  { %22295 = vmatprep.mubr.msk.bf16.mxu1 %vm417_vm1, %v16017_v51  ;;  %v22317_v24 = vpop.f32.mrb[216].mxu0 }
0x167e   :  { %v16334_v60 = vpop.f32.mrb[217].mxu0 }
0x167f   :  { %v22318_v31 = vpop.f32.mrb[218].mxu0 }
0x1680   :  { %v16356_v47 = vpack.c.bf16 %v22318_v31, %v22317_v24  ;;  %v16337_v40 = vpop.f32.mrb[219].mxu0  ;;  %v27116_v31 = vld [vmem:[#allocation8_spill] sm:$0xff] }
0x1681   :  { %v16355_v3 = vpack.c.bf16 %v16337_v40, %v16334_v60 }
0x1684   :  { %22296 = vmatmul.mubr.msk.bf16.gmra.mrb[12].mxu1 %vm417_vm1, %v16018_v18 }
0x1685   :  { %22323 = vmatprep.mubr.msk.bf16.mxu1 %vm417_vm1, %v16349_v50  ;;  %v22345_v6 = vpop.f32.mrb[220].mxu0 }
0x1686   :  { %v16624_v10 = vpop.f32.mrb[221].mxu0 }
0x1687   :  { %v22346_v1 = vpop.f32.mrb[222].mxu0 }
0x1688   :  { %v16688_v39 = vpack.c.bf16 %v22346_v1, %v22345_v6  ;;  %v16627_v37 = vpop.f32.mrb[223].mxu0  ;;  %v27117_v6 = vld [vmem:[#allocation9_spill] sm:$0xff] }
0x1689   :  { %v16687_v48 = vpack.c.bf16 %v16627_v37, %v16624_v10 }
0x168c   :  { %22324 = vmatmul.mubr.msk.bf16.vlgmr.msra.gmra.mrb[0].mxu1 %vm417_vm1, %v16350_v55 }
0x168d   :  { %22360 = vmatpush3.bf16.msra.mxu1 %v23485_v62  ;;  %22327 = vmatprep.mubr.msk.bf16.mxu1 %vm417_vm1, %v16351_v2  ;;  %v22349_v36 = vpop.f32.mrb[224].mxu0 }
0x168e   :  { %22361 = vmatprep.subr.bf16.mxu1 %v23486_v46  ;;  %v16640_v59 = vpop.f32.mrb[225].mxu0 }
0x168f   :  { %v22350_v57 = vpop.f32.mrb[226].mxu0 }
0x1690   :  { %v16690_v52 = vpack.c.bf16 %v22350_v57, %v22349_v36  ;;  %v16643_v14 = vpop.f32.mrb[227].mxu0  ;;  %v27118_v57 = vld [vmem:[#allocation10_spill] sm:$0xff] }
0x1691   :  { %22362 = vmatpush3.bf16.msra.mxu1 %v23486_v46  ;;  %v16689_v21 = vpack.c.bf16 %v16643_v14, %v16640_v59 }
0x1692   :  { %22399 = vmatprep.subr.bf16.mxu1 %v23487_v49 }
0x1694   :  { %22328 = vmatmul.mubr.msk.bf16.gmra.mrb[4].mxu1 %vm417_vm1, %v16352_v8 }
0x1695   :  { %22331 = vmatprep.mubr.msk.bf16.mxu1 %vm417_vm1, %v16353_v32  ;;  %v22353_v58 = vpop.f32.mrb[228].mxu0 }
0x1696   :  { %v16656_v28 = vpop.f32.mrb[229].mxu0 }
0x1697   :  { %v22354_v54 = vpop.f32.mrb[230].mxu0 }
0x1698   :  { %v16692_v41 = vpack.c.bf16 %v22354_v54, %v22353_v58  ;;  %v16659_v16 = vpop.f32.mrb[231].mxu0  ;;  %v27119_v58 = vld [vmem:[#allocation11_spill] sm:$0xff] }
0x1699   :  { %v16691_v53 = vpack.c.bf16 %v16659_v16, %v16656_v28  ;;  %v27120_v16 = vld [vmem:[#allocation12_spill] sm:$0xff] }
0x169c   :  { %22332 = vmatmul.mubr.msk.bf16.gmra.mrb[8].mxu1 %vm417_vm1, %v16354_v17 }
0x169d   :  { %22335 = vmatprep.mubr.msk.bf16.mxu1 %vm417_vm1, %v16355_v3  ;;  %v22357_v43 = vpop.f32.mrb[232].mxu0 }
0x169e   :  { %v16672_v33 = vpop.f32.mrb[233].mxu0 }
0x169f   :  { %v22358_v19 = vpop.f32.mrb[234].mxu0 }
0x16a0   :  { %v16694_v44 = vpack.c.bf16 %v22358_v19, %v22357_v43  ;;  %v16675_v42 = vpop.f32.mrb[235].mxu0  ;;  %v27121_v19 = vld [vmem:[#allocation13_spill] sm:$0xff] }
0x16a1   :  { %v16693_v38 = vpack.c.bf16 %v16675_v42, %v16672_v33 }
0x16a4   :  { %22336 = vmatmul.mubr.msk.bf16.gmra.mrb[12].mxu1 %vm417_vm1, %v16356_v47 }
0x16a5   :  { %22363 = vmatprep.mubr.msk.bf16.mxu1 %vm417_vm1, %v16687_v48  ;;  %v22385_v27 = vpop.f32.mrb[236].mxu0 }
0x16a6   :  { %v16962_v25 = vpop.f32.mrb[237].mxu0 }
0x16a7   :  { %v22386_v20 = vpop.f32.mrb[238].mxu0 }
0x16a8   :  { %v17026_v30 = vpack.c.bf16 %v22386_v20, %v22385_v27  ;;  %v16965_v11 = vpop.f32.mrb[239].mxu0 }
0x16a9   :  { %v17025_v26 = vpack.c.bf16 %v16965_v11, %v16962_v25 }
0x16ac   :  { %22364 = vmatmul.mubr.msk.bf16.vlgmr.msra.gmra.mrb[0].mxu1 %vm417_vm1, %v16688_v39 }
0x16ad   :  { %22400 = vmatpush3.bf16.msra.mxu1 %v23487_v49  ;;  %22367 = vmatprep.mubr.msk.bf16.mxu1 %vm417_vm1, %v16689_v21  ;;  %v22389_v34 = vpop.f32.mrb[240].mxu0 }
0x16ae   :  { %22401 = vmatprep.subr.bf16.mxu1 %v23488_v35  ;;  %v16978_v18 = vpop.f32.mrb[241].mxu0 }
0x16af   :  { %v22390_v29 = vpop.f32.mrb[242].mxu0 }
0x16b0   :  { %v17028_v51 = vpack.c.bf16 %v22390_v29, %v22389_v34  ;;  %v16981_v9 = vpop.f32.mrb[243].mxu0 }
0x16b1   :  { %22402 = vmatpush3.bf16.msra.mxu1 %v23488_v35  ;;  %v17027_v15 = vpack.c.bf16 %v16981_v9, %v16978_v18  ;;  %v27122_v35 = vld [vmem:[#allocation14_spill] sm:$0xff] }
0x16b4   :  { %22368 = vmatmul.mubr.msk.bf16.gmra.mrb[4].mxu1 %vm417_vm1, %v16690_v52 }
0x16b5   :  { %22371 = vmatprep.mubr.msk.bf16.mxu1 %vm417_vm1, %v16691_v53  ;;  %v22393_v22 = vpop.f32.mrb[244].mxu0 }
0x16b6   :  { %v16994_v13 = vpop.f32.mrb[245].mxu0 }
0x16b7   :  { %v22394_v55 = vpop.f32.mrb[246].mxu0 }
0x16b8   :  { %v17030_v45 = vpack.c.bf16 %v22394_v55, %v22393_v22  ;;  %v16997_v50 = vpop.f32.mrb[247].mxu0 }
0x16b9   :  { %v17029_v0 = vpack.c.bf16 %v16997_v50, %v16994_v13  ;;  %v27124_v13 = vld [vmem:[#allocation16_spill] sm:$0xff] }
0x16bc   :  { %22372 = vmatmul.mubr.msk.bf16.gmra.mrb[8].mxu1 %vm417_vm1, %v16692_v41 }
0x16bd   :  { %22375 = vmatprep.mubr.msk.bf16.mxu1 %vm417_vm1, %v16693_v38  ;;  %v22397_v61 = vpop.f32.mrb[248].mxu0 }
0x16be   :  { %v17010_v63 = vpop.f32.mrb[249].mxu0 }
0x16bf   :  { %v22398_v62 = vpop.f32.mrb[250].mxu0 }
0x16c0   :  { %v17032_v5 = vpack.c.bf16 %v22398_v62, %v22397_v61  ;;  %v17013_v8 = vpop.f32.mrb[251].mxu0 }
0x16c1   :  { %v17031_v4 = vpack.c.bf16 %v17013_v8, %v17010_v63 }
0x16c4   :  { %22376 = vmatmul.mubr.msk.bf16.gmra.mrb[12].mxu1 %vm417_vm1, %v16694_v44 }
0x16c5   :  { %22403 = vmatprep.mubr.msk.bf16.mxu1 %vm417_vm1, %v17025_v26 }
0x16cc   :  { %22404 = vmatmul.mubr.msk.bf16.vlgmr.msra.gmra.mrb[0].mxu1 %vm417_vm1, %v17026_v30 }
0x16cd   :  { %22407 = vmatprep.mubr.msk.bf16.mxu1 %vm417_vm1, %v17027_v15 }
0x16d4   :  { %22408 = vmatmul.mubr.msk.bf16.gmra.mrb[4].mxu1 %vm417_vm1, %v17028_v51  ;;  %v27123_v51 = vld [vmem:[#allocation15_spill] sm:$0xff] }
0x16d5   :  { %22411 = vmatprep.mubr.msk.bf16.mxu1 %vm417_vm1, %v17029_v0  ;;  %v27125_v0 = vld [vmem:[#allocation17_spill] sm:$0xff] }
0x16dc   :  { %22412 = vmatmul.mubr.msk.bf16.gmra.mrb[8].mxu1 %vm417_vm1, %v17030_v45 }
0x16dd   :  { %22415 = vmatprep.mubr.msk.bf16.mxu1 %vm417_vm1, %v17031_v4 }
0x16e4   :  { %22416 = vmatmul.mubr.msk.bf16.gmra.mrb[12].mxu1 %vm417_vm1, %v17032_v5 }
0x179f   :  { %v22405_v2 = vpop.f32.mrb[0].mxu1 }
0x17a0   :  { %v17188_v56 = vadd.f32 %v22405_v2, %v27114_v23  ;;  %v17107_v17 = vpop.f32.mrb[1].mxu1 }
0x17a1   :  { %v17186_v32 = vadd.f32 %v17107_v17, %v27115_v12  ;;  %v22406_v24 = vpop.f32.mrb[2].mxu1  ;;  %v27126_v17 = vld [vmem:[#allocation18_spill] sm:$0xff] }
0x17a2   :  { %v17211_v60 = vadd.f32 %v26881_v7, %v17188_v56  ;;  %v17189_v47 = vadd.f32 %v22406_v24, %v27116_v31  ;;  %v17110_v40 = vpop.f32.mrb[3].mxu1 }
0x17a3   :  { %v17209_v3 = vadd.f32 %v26881_v7, %v17186_v32  ;;  %v17187_v10 = vadd.f32 %v17110_v40, %v27117_v6 }
0x17a4   :  { %v17212_v1 = vadd.f32 %v26881_v7, %v17189_v47  ;;  %v17227_v37 = vmax.f32 %v17211_v60, 0.0  ;;  %v27127_v60 = vld [vmem:[#allocation19_spill] sm:$0xff] }
0x17a5   :  { %v17210_v39 = vadd.f32 %v26881_v7, %v17187_v10  ;;  %v17225_v46 = vmax.f32 %v17209_v3, 0.0  ;;  %v27128_v3 = vld [vmem:[#allocation20_spill] sm:$0xff] }
0x17a6   :  { %v17228_v48 = vmax.f32 %v17212_v1, 0.0 }
0x17a7   :  { %v17226_v36 = vmax.f32 %v17210_v39, 0.0  ;;  %v22409_v59 = vpop.f32.mrb[4].mxu1  ;;  %v27129_v39 = vld [vmem:[#allocation21_spill] sm:$0xff] }
0x17a8   :  { %v17242_v49 = vpack.c.bf16 %v17228_v48, %v17227_v37  ;;  %v17192_v52 = vadd.f32 %v22409_v59, %v27118_v57  ;;  %v17123_v14 = vpop.f32.mrb[5].mxu1 }
0x17a9   :  { %v17241_v21 = vpack.c.bf16 %v17226_v36, %v17225_v46  ;;  %v17190_v28 = vadd.f32 %v17123_v14, %v27119_v58  ;;  %v22410_v54 = vpop.f32.mrb[6].mxu1 }
0x17aa   :  { %v17215_v41 = vadd.f32 %v26881_v7, %v17192_v52  ;;  %v17193_v53 = vadd.f32 %v22410_v54, %v27120_v16  ;;  %v17126_v43 = vpop.f32.mrb[7].mxu1 }
0x17ab   :  { %v17213_v33 = vadd.f32 %v26881_v7, %v17190_v28  ;;  %v17191_v44 = vadd.f32 %v17126_v43, %v27121_v19  ;;  %22421 = vmatprep.mubr.msk.bf16.mxu0 %vm248_vm0, %v17241_v21  ;;  %v19207_v21 = vld [vmem:[%s27014_s24] ss:$0 sm:$0xff] }
0x17ac   :  { %v17216_v42 = vadd.f32 %v26881_v7, %v17193_v53  ;;  %22422 = vmatmul.mubr.msk.bf16.vlgmr.msra.gmra.mrb[252].mxu0 %vm248_vm0, %v17242_v49  ;;  %v17231_v27 = vmax.f32 %v17215_v41, 0.0 }
0x17ad   :  { %v17214_v38 = vadd.f32 %v26881_v7, %v17191_v44  ;;  %v17229_v20 = vmax.f32 %v17213_v33, 0.0 }
0x17ae   :  { %v17232_v25 = vmax.f32 %v17216_v42, 0.0 }
0x17af   :  { %v17230_v30 = vmax.f32 %v17214_v38, 0.0  ;;  %v22413_v11 = vpop.f32.mrb[8].mxu1 }
0x17b0   :  { %v17244_v26 = vpack.c.bf16 %v17232_v25, %v17231_v27  ;;  %v17196_v34 = vadd.f32 %v22413_v11, %v27122_v35  ;;  %v17139_v18 = vpop.f32.mrb[9].mxu1 }
0x17b1   :  { %v17243_v29 = vpack.c.bf16 %v17230_v30, %v17229_v20  ;;  %v17194_v9 = vadd.f32 %v17139_v18, %v27123_v51  ;;  %v22414_v15 = vpop.f32.mrb[10].mxu1 }
0x17b2   :  { %v17219_v22 = vadd.f32 %v26881_v7, %v17196_v34  ;;  %v17197_v55 = vadd.f32 %v22414_v15, %v27124_v13  ;;  %v17142_v45 = vpop.f32.mrb[11].mxu1 }
0x17b3   :  { %v17217_v50 = vadd.f32 %v26881_v7, %v17194_v9  ;;  %v17195_v61 = vadd.f32 %v17142_v45, %v27125_v0  ;;  %22425 = vmatprep.mubr.msk.bf16.mxu0 %vm248_vm0, %v17243_v29 }
0x17b4   :  { %v17220_v63 = vadd.f32 %v26881_v7, %v17197_v55  ;;  %22426 = vmatmul.mubr.msk.bf16.gmra.mrb[0].mxu0 %vm248_vm0, %v17244_v26  ;;  %v17235_v5 = vmax.f32 %v17219_v22, 0.0 }
0x17b5   :  { %v17218_v62 = vadd.f32 %v26881_v7, %v17195_v61  ;;  %v17233_v4 = vmax.f32 %v17217_v50, 0.0 }
0x17b6   :  { %v17236_v8 = vmax.f32 %v17220_v63, 0.0 }
0x17b7   :  { %v17234_v2 = vmax.f32 %v17218_v62, 0.0  ;;  %v22417_v23 = vpop.f32.mrb[12].mxu1 }
0x17b8   :  { %v17246_v56 = vpack.c.bf16 %v17236_v8, %v17235_v5  ;;  %v17200_v12 = vadd.f32 %v22417_v23, %v27126_v17  ;;  %v17155_v32 = vpop.f32.mrb[13].mxu1 }
0x17b9   :  { %v17245_v24 = vpack.c.bf16 %v17234_v2, %v17233_v4  ;;  %v17198_v31 = vadd.f32 %v17155_v32, %v27127_v60  ;;  %v22418_v47 = vpop.f32.mrb[14].mxu1 }
0x17ba   :  { %v17223_v40 = vadd.f32 %v26881_v7, %v17200_v12  ;;  %v17201_v6 = vadd.f32 %v22418_v47, %v27128_v3  ;;  %v17158_v10 = vpop.f32.mrb[15].mxu1 }
0x17bb   :  { %v17221_v1 = vadd.f32 %v26881_v7, %v17198_v31  ;;  %v17199_v37 = vadd.f32 %v17158_v10, %v27129_v39  ;;  %22429 = vmatprep.mubr.msk.bf16.mxu0 %vm248_vm0, %v17245_v24 }
0x17bc   :  { %v17224_v48 = vadd.f32 %v26881_v7, %v17201_v6  ;;  %22430 = vmatmul.mubr.msk.bf16.gmra.mrb[4].mxu0 %vm248_vm0, %v17246_v56  ;;  %v17239_v36 = vmax.f32 %v17223_v40, 0.0 }
0x17bd   :  { %v17222_v46 = vadd.f32 %v26881_v7, %v17199_v37  ;;  %v17237_v49 = vmax.f32 %v17221_v1, 0.0 }
0x17be   :  { %v17240_v59 = vmax.f32 %v17224_v48, 0.0 }
0x17bf   :  { %v17238_v57 = vmax.f32 %v17222_v46, 0.0 }
0x17c0   :  { %v17248_v52 = vpack.c.bf16 %v17240_v59, %v17239_v36 }
0x17c1   :  { %v17247_v14 = vpack.c.bf16 %v17238_v57, %v17237_v49 }
0x17c3   :  { %22433 = vmatprep.mubr.msk.bf16.mxu0 %vm248_vm0, %v17247_v14 }
0x17c4   :  { %22434 = vmatmul.mubr.msk.bf16.gmra.mrb[8].mxu0 %vm248_vm0, %v17248_v52 }
0x187f   :  { %v22423_v58 = vpop.f32.mrb[252].mxu0 }
0x1880   :  { %v17331_v28 = vadd.f32 %v22423_v58, %v19207_v21  ;;  %v17322_v54 = vpop.f32.mrb[253].mxu0 }
0x1881   :  { %v17323_v41 = vadd.f32 %v19207_v21, %v17322_v54  ;;  %v22424_v16 = vpop.f32.mrb[254].mxu0 }
0x1882   :  { %19219 = vst.msk [vmem:[%s27015_s25 + $0x90] sm:$0xff] %vm11605_vm4, %v17331_v28  ;;  %v17334_v7 = vadd.f32 %v22424_v16, %v19207_v21  ;;  %v17325_v53 = vpop.f32.mrb[255].mxu0 }
0x1883   :  { %19217 = vst.msk [vmem:[%s27015_s25 + $0x80] sm:$0xff] %vm11605_vm4, %v17323_v41  ;;  %v17326_v43 = vadd.f32 %v19207_v21, %v17325_v53 }
0x1884   :  { %19220 = vst.msk [vmem:[%s27015_s25 + $0x98] sm:$0xff] %vm11605_vm4, %v17334_v7 }
0x1885   :  { %19218 = vst.msk [vmem:[%s27015_s25 + $0x88] sm:$0xff] %vm11605_vm4, %v17326_v43 }
0x1887   :  { %v22427_v33 = vpop.f32.mrb[0].mxu0 }
0x1888   :  { %v17347_v19 = vadd.f32 %v22427_v33, %v19207_v21  ;;  %v17338_v44 = vpop.f32.mrb[1].mxu0 }
0x1889   :  { %v17339_v42 = vadd.f32 %v19207_v21, %v17338_v44  ;;  %v22428_v38 = vpop.f32.mrb[2].mxu0 }
0x188a   :  { %19223 = vst.msk [vmem:[%s27015_s25 + $0xb0] sm:$0xff] %vm11605_vm4, %v17347_v19  ;;  %v17350_v27 = vadd.f32 %v22428_v38, %v19207_v21  ;;  %v17341_v25 = vpop.f32.mrb[3].mxu0 }
0x188b   :  { %19221 = vst.msk [vmem:[%s27015_s25 + $0xa0] sm:$0xff] %vm11605_vm4, %v17339_v42  ;;  %v17342_v20 = vadd.f32 %v19207_v21, %v17341_v25 }
0x188c   :  { %19224 = vst.msk [vmem:[%s27015_s25 + $0xb8] sm:$0xff] %vm11605_vm4, %v17350_v27 }
0x188d   :  { %19222 = vst.msk [vmem:[%s27015_s25 + $0xa8] sm:$0xff] %vm11605_vm4, %v17342_v20 }
0x188f   :  { %v22431_v30 = vpop.f32.mrb[4].mxu0 }
0x1890   :  { %v17363_v11 = vadd.f32 %v22431_v30, %v19207_v21  ;;  %v17354_v26 = vpop.f32.mrb[5].mxu0 }
0x1891   :  { %v17355_v35 = vadd.f32 %v19207_v21, %v17354_v26  ;;  %v22432_v34 = vpop.f32.mrb[6].mxu0 }
0x1892   :  { %19227 = vst.msk [vmem:[%s27015_s25 + $0xd0] sm:$0xff] %vm11605_vm4, %v17363_v11  ;;  %v17366_v18 = vadd.f32 %v22432_v34, %v19207_v21  ;;  %v17357_v29 = vpop.f32.mrb[7].mxu0 }
0x1893   :  { %19225 = vst.msk [vmem:[%s27015_s25 + $0xc0] sm:$0xff] %vm11605_vm4, %v17355_v35  ;;  %v17358_v51 = vadd.f32 %v19207_v21, %v17357_v29 }
0x1894   :  { %19228 = vst.msk [vmem:[%s27015_s25 + $0xd8] sm:$0xff] %vm11605_vm4, %v17366_v18 }
0x1895   :  { %19226 = vst.msk [vmem:[%s27015_s25 + $0xc8] sm:$0xff] %vm11605_vm4, %v17358_v51 }
0x1897   :  { %v22435_v9 = vpop.f32.mrb[8].mxu0 }
0x1898   :  { %v17379_v15 = vadd.f32 %v22435_v9, %v19207_v21  ;;  %v17370_v22 = vpop.f32.mrb[9].mxu0 }
0x1899   :  { %v17371_v13 = vadd.f32 %v19207_v21, %v17370_v22  ;;  %v22436_v55 = vpop.f32.mrb[10].mxu0 }
0x189a   :  { %19231 = vst.msk [vmem:[%s27015_s25 + $0xf0] sm:$0xff] %vm11605_vm4, %v17379_v15  ;;  %v17382_v45 = vadd.f32 %v22436_v55, %v19207_v21  ;;  %v17373_v50 = vpop.f32.mrb[11].mxu0 }
0x189b   :  { %19229 = vst.msk [vmem:[%s27015_s25 + $0xe0] sm:$0xff] %vm11605_vm4, %v17371_v13  ;;  %v17374_v0 = vadd.f32 %v19207_v21, %v17373_v50 }
0x189c   :  { %19232 = vst.msk [vmem:[%s27015_s25 + $0xf8] sm:$0xff] %vm11605_vm4, %v17382_v45 }
0x189d   :  { %19230 = vst.msk [vmem:[%s27015_s25 + $0xe8] sm:$0xff] %vm11605_vm4, %v17374_v0 }

</bundles_post_ra>
